<compile_context>
chip_gen: v6e
topology: v6e:2x2x1
jax: 0.10.0
libtpu: 0.0.40
codegen_flags: <defaults>
</compile_context>

<pallas_src>
import functools
import math

import jax
import jax.numpy as jnp
from jax.experimental import pallas as pl
from jax.experimental.pallas import tpu as pltpu

LEAKY_SLOPE = 0.2
BN_EPS = 1e-5
LANE = 128


def _round_up(x, m):
    return ((x + m - 1) // m) * m


def _leaky_relu(x):
    # slope < 1  =>  leaky_relu(x) == max(x, slope * x)  (one VALU op)
    return jnp.maximum(x, LEAKY_SLOPE * x)


def _batchnorm(x, gamma, beta):
    # Training-mode BatchNorm1d: batch mean, biased batch variance (f32).
    # scale computed once on the (1, N) stats row, then a single (B, N) mul.
    mean = jnp.mean(x, axis=0, keepdims=True)
    diff = x - mean
    var = jnp.mean(diff * diff, axis=0, keepdims=True)
    scale = jax.lax.rsqrt(var + BN_EPS) * gamma
    return diff * scale + beta


def generator_kernel(
    latent_dim,
    # ---- inputs ----
    z_ref,
    w1_ref, b1_ref,
    w2_ref, g2_ref, be2_ref,
    w3_hbm, g3_ref, be3_ref,
    w4_hbm, b4_ref,
    # ---- outputs ----
    out_ref,
    # ---- scratch ----
    zp_ref, w3_vmem, w4_vmem, dma_sems,
):
    bf16 = jnp.bfloat16

    # Kick off the big-weight fetches immediately so they overlap layer-1/2/3
    # compute instead of serializing before it.
    w3_cp = pltpu.make_async_copy(w3_hbm, w3_vmem, dma_sems.at[0])
    w4_cp = pltpu.make_async_copy(w4_hbm, w4_vmem, dma_sems.at[1])
    w3_cp.start()
    w4_cp.start()

    # In-kernel zero-pad of the latent axis (latent_dim -> 128): lane-dense
    # MXU tile, numerically exact (pad lanes are zero).
    zp_ref[...] = jnp.zeros_like(zp_ref)
    zp_ref[:, :latent_dim] = z_ref[...].astype(bf16)

    # Layer 1: Linear(latent -> 128) + LeakyReLU(0.2)
    h = jnp.dot(zp_ref[...], w1_ref[...],
                preferred_element_type=jnp.float32) + b1_ref[...]
    h = _leaky_relu(h)

    # Layer 2: Linear(128 -> 256, bias dropped: cancelled exactly by the
    # BatchNorm mean subtraction) + BatchNorm1d + LeakyReLU(0.2)
    h = jnp.dot(h.astype(bf16), w2_ref[...], preferred_element_type=jnp.float32)
    h = _batchnorm(h, g2_ref[...], be2_ref[...])
    h = _leaky_relu(h)

    # Layer 3: Linear(256 -> 512, bias dropped) + BatchNorm1d + LeakyReLU(0.2)
    w3_cp.wait()
    h = jnp.dot(h.astype(bf16), w3_vmem[...], preferred_element_type=jnp.float32)
    h = _batchnorm(h, g3_ref[...], be3_ref[...])
    h = _leaky_relu(h)

    # Layer 4: Linear(512 -> out_pad) + Tanh   (out zero-padded to mult of 128)
    w4_cp.wait()
    h = jnp.dot(h.astype(bf16), w4_vmem[...],
                preferred_element_type=jnp.float32) + b4_ref[...]
    out_ref[...] = jnp.tanh(h)


def init_generator_params(key, latent_dim, img_shape, weight_dtype=jnp.bfloat16):
    """nn.Linear / nn.BatchNorm1d-style init, stored lane-dense & (in, out).

    b2 / b3 are intentionally not materialized: under training-mode
    BatchNorm1d the Linear bias is exactly cancelled by the mean subtraction.
    """
    out_dim = math.prod(img_shape)
    k_pad = _round_up(max(latent_dim, LANE), LANE)
    out_pad = _round_up(out_dim, LANE)

    dims_in = [latent_dim, 128, 256, 512]
    dims_out = [128, 256, 512, out_dim]
    pad_in = [k_pad, 128, 256, 512]
    pad_out = [128, 256, 512, out_pad]
    keep_bias = [True, False, False, True]   # b2/b3 cancelled by BN

    params = {}
    keys = jax.random.split(key, 8)
    ki = iter(keys)
    for li in range(4):
        fan_in, fan_out = dims_in[li], dims_out[li]
        bound = 1.0 / math.sqrt(fan_in)
        w = jax.random.uniform(next(ki), (fan_in, fan_out), jnp.float32, -bound, bound)
        b = jax.random.uniform(next(ki), (1, fan_out), jnp.float32, -bound, bound)
        # Zero-pad rows/cols to lane-dense shapes (numerically exact).
        w_p = jnp.zeros((pad_in[li], pad_out[li]), jnp.float32).at[:fan_in, :fan_out].set(w)
        params[f"w{li + 1}"] = w_p.astype(weight_dtype)   # bf16: halves weight DMA
        if keep_bias[li]:
            b_p = jnp.zeros((1, pad_out[li]), jnp.float32).at[:, :fan_out].set(b)
            params[f"b{li + 1}"] = b_p                    # f32 (tiny)
    # BatchNorm1d fresh-init: gamma = 1, beta = 0
    params["g2"] = jnp.ones((1, 256), jnp.float32)
    params["be2"] = jnp.zeros((1, 256), jnp.float32)
    params["g3"] = jnp.ones((1, 512), jnp.float32)
    params["be3"] = jnp.zeros((1, 512), jnp.float32)
    return params


@functools.partial(jax.jit, static_argnames=("img_shape",))
def generator_forward(z, params, img_shape):
    batch, latent_dim = z.shape
    out_dim = math.prod(img_shape)            # static Python int
    out_pad = params["w4"].shape[1]

    args = (
        z,
        params["w1"], params["b1"],
        params["w2"], params["g2"], params["be2"],
        params["w3"], params["g3"], params["be3"],
        params["w4"], params["b4"],
    )

    # Everything except w3/w4 is small -> auto-DMA'd to VMEM in the prologue.
    # w3/w4 stay in HBM (pl.ANY) and are fetched manually inside the kernel
    # so their DMA overlaps earlier-layer compute.
    in_specs = [pl.BlockSpec(memory_space=pltpu.MemorySpace.VMEM) for _ in args]
    in_specs[6] = pl.BlockSpec(memory_space=pl.ANY)    # w3
    in_specs[9] = pl.BlockSpec(memory_space=pl.ANY)    # w4

    flops = 2 * batch * (latent_dim * 128 + 128 * 256 + 256 * 512 + 512 * out_pad)
    bytes_accessed = sum(a.size * a.dtype.itemsize for a in args) + batch * out_pad * 4
    cost = pl.CostEstimate(
        flops=flops,
        transcendentals=batch * out_pad + (256 + 512),   # tanh + BN rsqrt rows
        bytes_accessed=bytes_accessed,
    )

    kernel = functools.partial(generator_kernel, latent_dim)

    # Single grid point: whole batch resident in VMEM (~5 MiB total footprint)
    # so training-mode BatchNorm statistics are exact over the full batch.
    img_flat = pl.pallas_call(
        kernel,
        out_shape=jax.ShapeDtypeStruct((batch, out_pad), jnp.float32),
        in_specs=in_specs,
        out_specs=pl.BlockSpec(memory_space=pltpu.MemorySpace.VMEM),
        scratch_shapes=[
            pltpu.VMEM((batch, LANE), jnp.bfloat16),                # padded z
            pltpu.VMEM(params["w3"].shape, params["w3"].dtype),     # w3 buffer
            pltpu.VMEM(params["w4"].shape, params["w4"].dtype),     # w4 buffer
            pltpu.SemaphoreType.DMA((2,)),
        ],
        cost_estimate=cost,
    )(*args)

    # Glue: drop zero-padded lanes, then img_flat.view(B, *img_shape).
    return img_flat[:, :out_dim].reshape((batch,) + tuple(img_shape))


def generator_reference(z, params, img_shape):
    """Pure-JAX reference mirroring the kernel's math (bf16 matmuls, f32 BN).

    Note: vs. a true f32 PyTorch Generator the error would be larger (bf16
    weights / activation casts); acceptable for a GAN generator.
    """
    bf16 = jnp.bfloat16
    batch, latent_dim = z.shape
    out_dim = math.prod(img_shape)

    zp = jnp.zeros((batch, LANE), bf16).at[:, :latent_dim].set(z.astype(bf16))
    h = jnp.dot(zp, params["w1"], preferred_element_type=jnp.float32) + params["b1"]
    h = _leaky_relu(h)
    h = jnp.dot(h.astype(bf16), params["w2"], preferred_element_type=jnp.float32)
    h = _batchnorm(h, params["g2"], params["be2"])
    h = _leaky_relu(h)
    h = jnp.dot(h.astype(bf16), params["w3"], preferred_element_type=jnp.float32)
    h = _batchnorm(h, params["g3"], params["be3"])
    h = _leaky_relu(h)
    h = jnp.dot(h.astype(bf16), params["w4"], preferred_element_type=jnp.float32) + params["b4"]
    h = jnp.tanh(h)
    return h[:, :out_dim].reshape((batch,) + tuple(img_shape))


if __name__ == "__main__":
    latent_dim = 32
    img_shape = (1, 28, 28)   # out_dim = 784 (padded to 896 inside)
    batch = 256               # large M: amortizes weight DMA, fills the MXU

    key = jax.random.PRNGKey(0)
    k_param, k_z = jax.random.split(key)
    params = init_generator_params(k_param, latent_dim, img_shape)
    z = jax.random.normal(k_z, (batch, latent_dim), jnp.float32)

    imgs = generator_forward(z, params, img_shape)
    imgs = jax.block_until_ready(imgs)
    assert imgs.shape == (batch,) + img_shape, imgs.shape

    ref = generator_reference(z, params, img_shape)
    err = float(jnp.max(jnp.abs(imgs - ref)))
    assert err < 5e-3, err

    print("KERNEL_OK")
</pallas_src>

<mosaic_0001>
module attributes {stable_mosaic.version = 11 : i64} {
  func.func @generator_kernel(%arg0: memref<256x32xf32, #tpu.memory_space<vmem>>, %arg1: memref<128x128xbf16, #tpu.memory_space<vmem>>, %arg2: memref<1x128xf32, #tpu.memory_space<vmem>>, %arg3: memref<128x256xbf16, #tpu.memory_space<vmem>>, %arg4: memref<1x256xf32, #tpu.memory_space<vmem>>, %arg5: memref<1x256xf32, #tpu.memory_space<vmem>>, %arg6: memref<256x512xbf16, #tpu.memory_space<any>>, %arg7: memref<1x512xf32, #tpu.memory_space<vmem>>, %arg8: memref<1x512xf32, #tpu.memory_space<vmem>>, %arg9: memref<512x896xbf16, #tpu.memory_space<any>>, %arg10: memref<1x896xf32, #tpu.memory_space<vmem>>, %arg11: memref<256x896xf32, #tpu.memory_space<vmem>>, %arg12: memref<256x128xbf16, #tpu.memory_space<vmem>>, %arg13: memref<256x512xbf16, #tpu.memory_space<vmem>>, %arg14: memref<512x896xbf16, #tpu.memory_space<vmem>>, %arg15: memref<2x!tpu.dma_semaphore, #tpu.memory_space<semaphore_mem>>) attributes {dimension_semantics = [], scalar_prefetch = 0 : i64, scratch_operands = 4 : i64, tpu.core_type = #tpu.core_type<tc>} {
    %c0_i32 = arith.constant 0 : i32
    %0 = tpu.memref_slice %arg15[%c0_i32] : memref<2x!tpu.dma_semaphore, #tpu.memory_space<semaphore_mem>> -> memref<1x!tpu.dma_semaphore, #tpu.memory_space<semaphore_mem>>
    %1 = tpu.memref_squeeze %0 : memref<1x!tpu.dma_semaphore, #tpu.memory_space<semaphore_mem>> -> memref<!tpu.dma_semaphore, #tpu.memory_space<semaphore_mem>>
    tpu.enqueue_dma source(%arg6 : memref<256x512xbf16, #tpu.memory_space<any>>) target(%arg13 : memref<256x512xbf16, #tpu.memory_space<vmem>>) target_semaphore(%1 : memref<!tpu.dma_semaphore, #tpu.memory_space<semaphore_mem>>)
    %c1_i32 = arith.constant 1 : i32
    %2 = tpu.memref_slice %arg15[%c1_i32] : memref<2x!tpu.dma_semaphore, #tpu.memory_space<semaphore_mem>> -> memref<1x!tpu.dma_semaphore, #tpu.memory_space<semaphore_mem>>
    %3 = tpu.memref_squeeze %2 : memref<1x!tpu.dma_semaphore, #tpu.memory_space<semaphore_mem>> -> memref<!tpu.dma_semaphore, #tpu.memory_space<semaphore_mem>>
    tpu.enqueue_dma source(%arg9 : memref<512x896xbf16, #tpu.memory_space<any>>) target(%arg14 : memref<512x896xbf16, #tpu.memory_space<vmem>>) target_semaphore(%3 : memref<!tpu.dma_semaphore, #tpu.memory_space<semaphore_mem>>)
    %cst = arith.constant 0.000000e+00 : bf16
    %4 = vector.broadcast %cst : bf16 to vector<256x128xbf16>
    %c0 = arith.constant 0 : index
    %c0_0 = arith.constant 0 : index
    %5 = vector.load %arg12[%c0, %c0_0] : memref<256x128xbf16, #tpu.memory_space<vmem>>, vector<256x128xbf16>
    tpu.vector_store %arg12[%c0, %c0_0], %4 {strides = array<i32>} : memref<256x128xbf16, #tpu.memory_space<vmem>>, vector<256x128xbf16>,
    %c0_1 = arith.constant 0 : index
    %c0_2 = arith.constant 0 : index
    %6 = vector.load %arg0[%c0_1, %c0_2] : memref<256x32xf32, #tpu.memory_space<vmem>>, vector<256x32xf32>
    %7 = arith.truncf %6 : vector<256x32xf32> to vector<256x32xbf16>
    %c0_3 = arith.constant 0 : index
    %c0_4 = arith.constant 0 : index
    %8 = vector.load %arg12[%c0_3, %c0_4] : memref<256x128xbf16, #tpu.memory_space<vmem>>, vector<256x32xbf16>
    tpu.vector_store %arg12[%c0_3, %c0_4], %7 {strides = array<i32>} : memref<256x128xbf16, #tpu.memory_space<vmem>>, vector<256x32xbf16>,
    %c0_5 = arith.constant 0 : index
    %c0_6 = arith.constant 0 : index
    %9 = vector.load %arg12[%c0_5, %c0_6] : memref<256x128xbf16, #tpu.memory_space<vmem>>, vector<256x128xbf16>
    %c0_7 = arith.constant 0 : index
    %c0_8 = arith.constant 0 : index
    %10 = vector.load %arg1[%c0_7, %c0_8] : memref<128x128xbf16, #tpu.memory_space<vmem>>, vector<128x128xbf16>
    %cst_9 = arith.constant dense<0.000000e+00> : vector<256x128xf32>
    %11 = tpu.matmul %9, %10, %cst_9 {dimension_numbers = #tpu.dot_dimension_numbers<[1], [0], [0], [1], [0, 0, 1, 1], [], []>} : vector<256x128xbf16>, vector<128x128xbf16>, vector<256x128xf32> -> vector<256x128xf32>
    %c0_10 = arith.constant 0 : index
    %c0_11 = arith.constant 0 : index
    %12 = vector.load %arg2[%c0_10, %c0_11] : memref<1x128xf32, #tpu.memory_space<vmem>>, vector<1x128xf32>
    %13 = vector.broadcast %12 : vector<1x128xf32> to vector<256x128xf32>
    %14 = arith.addf %11, %13 : vector<256x128xf32>
    %cst_12 = arith.constant 2.000000e-01 : f32
    %15 = vector.broadcast %cst_12 : f32 to vector<256x128xf32>
    %16 = arith.mulf %15, %14 : vector<256x128xf32>
    %17 = arith.maximumf %14, %16 : vector<256x128xf32>
    %18 = arith.truncf %17 : vector<256x128xf32> to vector<256x128xbf16>
    %c0_13 = arith.constant 0 : index
    %c0_14 = arith.constant 0 : index
    %19 = vector.load %arg3[%c0_13, %c0_14] : memref<128x256xbf16, #tpu.memory_space<vmem>>, vector<128x256xbf16>
    %cst_15 = arith.constant dense<0.000000e+00> : vector<256x256xf32>
    %20 = tpu.matmul %18, %19, %cst_15 {dimension_numbers = #tpu.dot_dimension_numbers<[1], [0], [0], [1], [0, 0, 1, 1], [], []>} : vector<256x128xbf16>, vector<128x256xbf16>, vector<256x256xf32> -> vector<256x256xf32>
    %c0_16 = arith.constant 0 : index
    %c0_17 = arith.constant 0 : index
    %21 = vector.load %arg4[%c0_16, %c0_17] : memref<1x256xf32, #tpu.memory_space<vmem>>, vector<1x256xf32>
    %c0_18 = arith.constant 0 : index
    %c0_19 = arith.constant 0 : index
    %22 = vector.load %arg5[%c0_18, %c0_19] : memref<1x256xf32, #tpu.memory_space<vmem>>, vector<1x256xf32>
    %cst_20 = arith.constant dense<0.000000e+00> : vector<256xf32>
    %23 = vector.multi_reduction <add>, %20, %cst_20 [0] : vector<256x256xf32> to vector<256xf32>
    %24 = vector.shape_cast %23 : vector<256xf32> to vector<1x256xf32>
    %cst_21 = arith.constant 2.560000e+02 : f32
    %25 = vector.broadcast %cst_21 : f32 to vector<1x256xf32>
    %26 = arith.divf %24, %25 : vector<1x256xf32>
    %27 = vector.broadcast %26 : vector<1x256xf32> to vector<256x256xf32>
    %28 = arith.subf %20, %27 : vector<256x256xf32>
    %29 = arith.mulf %28, %28 : vector<256x256xf32>
    %cst_22 = arith.constant dense<0.000000e+00> : vector<256xf32>
    %30 = vector.multi_reduction <add>, %29, %cst_22 [0] : vector<256x256xf32> to vector<256xf32>
    %31 = vector.shape_cast %30 : vector<256xf32> to vector<1x256xf32>
    %cst_23 = arith.constant 2.560000e+02 : f32
    %32 = vector.broadcast %cst_23 : f32 to vector<1x256xf32>
    %33 = arith.divf %31, %32 : vector<1x256xf32>
    %cst_24 = arith.constant 9.99999974E-6 : f32
    %34 = vector.broadcast %cst_24 : f32 to vector<1x256xf32>
    %35 = arith.addf %33, %34 : vector<1x256xf32>
    %36 = math.rsqrt %35 : vector<1x256xf32>
    %37 = arith.mulf %36, %21 : vector<1x256xf32>
    %38 = vector.broadcast %37 : vector<1x256xf32> to vector<256x256xf32>
    %39 = arith.mulf %28, %38 : vector<256x256xf32>
    %40 = vector.broadcast %22 : vector<1x256xf32> to vector<256x256xf32>
    %41 = arith.addf %39, %40 : vector<256x256xf32>
    %cst_25 = arith.constant 2.000000e-01 : f32
    %42 = vector.broadcast %cst_25 : f32 to vector<256x256xf32>
    %43 = arith.mulf %42, %41 : vector<256x256xf32>
    %44 = arith.maximumf %41, %43 : vector<256x256xf32>
    %c0_i32_26 = arith.constant 0 : i32
    %45 = tpu.memref_slice %arg15[%c0_i32_26] : memref<2x!tpu.dma_semaphore, #tpu.memory_space<semaphore_mem>> -> memref<1x!tpu.dma_semaphore, #tpu.memory_space<semaphore_mem>>
    %46 = tpu.memref_squeeze %45 : memref<1x!tpu.dma_semaphore, #tpu.memory_space<semaphore_mem>> -> memref<!tpu.dma_semaphore, #tpu.memory_space<semaphore_mem>>
    tpu.wait_dma2 semaphore(%46 : memref<!tpu.dma_semaphore, #tpu.memory_space<semaphore_mem>>) src(%arg6 : memref<256x512xbf16, #tpu.memory_space<any>>) dst(%arg13 : memref<256x512xbf16, #tpu.memory_space<vmem>>)
    %47 = arith.truncf %44 : vector<256x256xf32> to vector<256x256xbf16>
    %c0_27 = arith.constant 0 : index
    %c0_28 = arith.constant 0 : index
    %48 = vector.load %arg13[%c0_27, %c0_28] : memref<256x512xbf16, #tpu.memory_space<vmem>>, vector<256x512xbf16>
    %cst_29 = arith.constant dense<0.000000e+00> : vector<256x512xf32>
    %49 = tpu.matmul %47, %48, %cst_29 {dimension_numbers = #tpu.dot_dimension_numbers<[1], [0], [0], [1], [0, 0, 1, 1], [], []>} : vector<256x256xbf16>, vector<256x512xbf16>, vector<256x512xf32> -> vector<256x512xf32>
    %c0_30 = arith.constant 0 : index
    %c0_31 = arith.constant 0 : index
    %50 = vector.load %arg7[%c0_30, %c0_31] : memref<1x512xf32, #tpu.memory_space<vmem>>, vector<1x512xf32>
    %c0_32 = arith.constant 0 : index
    %c0_33 = arith.constant 0 : index
    %51 = vector.load %arg8[%c0_32, %c0_33] : memref<1x512xf32, #tpu.memory_space<vmem>>, vector<1x512xf32>
    %cst_34 = arith.constant dense<0.000000e+00> : vector<512xf32>
    %52 = vector.multi_reduction <add>, %49, %cst_34 [0] : vector<256x512xf32> to vector<512xf32>
    %53 = vector.shape_cast %52 : vector<512xf32> to vector<1x512xf32>
    %cst_35 = arith.constant 2.560000e+02 : f32
    %54 = vector.broadcast %cst_35 : f32 to vector<1x512xf32>
    %55 = arith.divf %53, %54 : vector<1x512xf32>
    %56 = vector.broadcast %55 : vector<1x512xf32> to vector<256x512xf32>
    %57 = arith.subf %49, %56 : vector<256x512xf32>
    %58 = arith.mulf %57, %57 : vector<256x512xf32>
    %cst_36 = arith.constant dense<0.000000e+00> : vector<512xf32>
    %59 = vector.multi_reduction <add>, %58, %cst_36 [0] : vector<256x512xf32> to vector<512xf32>
    %60 = vector.shape_cast %59 : vector<512xf32> to vector<1x512xf32>
    %cst_37 = arith.constant 2.560000e+02 : f32
    %61 = vector.broadcast %cst_37 : f32 to vector<1x512xf32>
    %62 = arith.divf %60, %61 : vector<1x512xf32>
    %cst_38 = arith.constant 9.99999974E-6 : f32
    %63 = vector.broadcast %cst_38 : f32 to vector<1x512xf32>
    %64 = arith.addf %62, %63 : vector<1x512xf32>
    %65 = math.rsqrt %64 : vector<1x512xf32>
    %66 = arith.mulf %65, %50 : vector<1x512xf32>
    %67 = vector.broadcast %66 : vector<1x512xf32> to vector<256x512xf32>
    %68 = arith.mulf %57, %67 : vector<256x512xf32>
    %69 = vector.broadcast %51 : vector<1x512xf32> to vector<256x512xf32>
    %70 = arith.addf %68, %69 : vector<256x512xf32>
    %cst_39 = arith.constant 2.000000e-01 : f32
    %71 = vector.broadcast %cst_39 : f32 to vector<256x512xf32>
    %72 = arith.mulf %71, %70 : vector<256x512xf32>
    %73 = arith.maximumf %70, %72 : vector<256x512xf32>
    %c1_i32_40 = arith.constant 1 : i32
    %74 = tpu.memref_slice %arg15[%c1_i32_40] : memref<2x!tpu.dma_semaphore, #tpu.memory_space<semaphore_mem>> -> memref<1x!tpu.dma_semaphore, #tpu.memory_space<semaphore_mem>>
    %75 = tpu.memref_squeeze %74 : memref<1x!tpu.dma_semaphore, #tpu.memory_space<semaphore_mem>> -> memref<!tpu.dma_semaphore, #tpu.memory_space<semaphore_mem>>
    tpu.wait_dma2 semaphore(%75 : memref<!tpu.dma_semaphore, #tpu.memory_space<semaphore_mem>>) src(%arg9 : memref<512x896xbf16, #tpu.memory_space<any>>) dst(%arg14 : memref<512x896xbf16, #tpu.memory_space<vmem>>)
    %76 = arith.truncf %73 : vector<256x512xf32> to vector<256x512xbf16>
    %c0_41 = arith.constant 0 : index
    %c0_42 = arith.constant 0 : index
    %77 = vector.load %arg14[%c0_41, %c0_42] : memref<512x896xbf16, #tpu.memory_space<vmem>>, vector<512x896xbf16>
    %cst_43 = arith.constant dense<0.000000e+00> : vector<256x896xf32>
    %78 = tpu.matmul %76, %77, %cst_43 {dimension_numbers = #tpu.dot_dimension_numbers<[1], [0], [0], [1], [0, 0, 1, 1], [], []>} : vector<256x512xbf16>, vector<512x896xbf16>, vector<256x896xf32> -> vector<256x896xf32>
    %c0_44 = arith.constant 0 : index
    %c0_45 = arith.constant 0 : index
    %79 = vector.load %arg10[%c0_44, %c0_45] : memref<1x896xf32, #tpu.memory_space<vmem>>, vector<1x896xf32>
    %80 = vector.broadcast %79 : vector<1x896xf32> to vector<256x896xf32>
    %81 = arith.addf %78, %80 : vector<256x896xf32>
    %82 = math.tanh %81 : vector<256x896xf32>
    %c0_46 = arith.constant 0 : index
    %c0_47 = arith.constant 0 : index
    %83 = vector.load %arg11[%c0_46, %c0_47] : memref<256x896xf32, #tpu.memory_space<vmem>>, vector<256x896xf32>
    tpu.vector_store %arg11[%c0_46, %c0_47], %82 {strides = array<i32>} : memref<256x896xf32, #tpu.memory_space<vmem>>, vector<256x896xf32>,
    return
  }
}

</mosaic_0001>

<bundles_post_ra>
// kernel: generator_forward.1
= control target key start
LH: loop header
LB: loop body
LE: loop exit
PB: predicated region body
PF: predicated region fallthrough
CT: control target
= control target key end

     0   :  { %v8704_v1 = vmov 0   ;;  %vm250_vm0 = vcmask 257024   ;;  %s8706_s13 = smov [#allocation4]   ;;  %s14985_s1 = inlined_call_operand.vmem [shape: bf16[128,128], index: 1, kind: input, shape index: {}]   ;;  %s14986_s0 = inlined_call_operand.vmem [shape: f32[256,32], index: 0, kind: input, shape index: {}]   ;;  %s14987_s3 = inlined_call_operand.vmem [shape: bf16[128,256], index: 3, kind: input, shape index: {}]   ;;  %s14988_s2 = inlined_call_operand.vmem [shape: f32[1,128], index: 2, kind: input, shape index: {}]   ;;  %s14989_s6 = inlined_call_operand.hbm [shape: bf16[256,512], index: 6, kind: input, shape index: {}]   ;;  %s14990_s9 = inlined_call_operand.hbm [shape: bf16[512,896], index: 9, kind: input, shape index: {}]   ;;  %s14991_s7 = inlined_call_operand.vmem [shape: f32[1,512], index: 7, kind: input, shape index: {}]   ;;  %s14992_s8 = inlined_call_operand.vmem [shape: f32[1,512], index: 8, kind: input, shape index: {}]   ;;  %s14993_s10 = inlined_call_operand.vmem [shape: f32[1,896], index: 10, kind: input, shape index: {}]   ;;  %s14994_s11 = inlined_call_operand.vmem [shape: f32[256,896], index: 11, kind: output, shape index: {}]   ;;  %s14995_s4 = inlined_call_operand.vmem [shape: f32[1,256], index: 4, kind: input, shape index: {}]   ;;  %s14996_s5 = inlined_call_operand.vmem [shape: f32[1,256], index: 5, kind: input, shape index: {}]  }
   0x1   :  { %v7721_v0 = vld [vmem:[%s14985_s1 + $0x38] sm:$0xff]   ;;  %58 = vst [vmem:[#allocation2] sm:$0xf] %v8704_v1  ;;  %59 = vst [vmem:[#allocation2 + $0x4] sm:$0xf] %v8704_v1  ;;  %851 = vmatprep.mubr.bf16.mxu1 %v8704_v1  ;;  %v7722_v2 = vld [vmem:[%s14985_s1 + $0x30] sm:$0xff]  }
   0x2   :  { %60 = vst [vmem:[#allocation2 + $0x8] sm:$0xf] %v8704_v1  ;;  %61 = vst [vmem:[#allocation2 + $0xc] sm:$0xf] %v8704_v1  ;;  %7638 = vmatprep.subr.bf16.mxu0 %v7721_v0  ;;  %v7723_v3 = vld [vmem:[%s14985_s1 + $0x28] sm:$0xff]   ;;  %v7724_v4 = vld [vmem:[%s14985_s1 + $0x20] sm:$0xff]  }
   0x3   :  { %62 = vst [vmem:[#allocation2 + $0x10] sm:$0xf] %v8704_v1  ;;  %63 = vst [vmem:[#allocation2 + $0x14] sm:$0xf] %v8704_v1  ;;  %7639 = vmatpush3.bf16.msra.mxu0 %v7721_v0  ;;  %v90_v5 = vld [vmem:[%s14986_s0] sm:$0xff]  ;;  %v91_v6 = vld [vmem:[%s14986_s0 + $0x8] sm:$0xff] }
   0x4   :  { %64 = vst [vmem:[#allocation2 + $0x18] sm:$0xf] %v8704_v1  ;;  %65 = vst [vmem:[#allocation2 + $0x1c] sm:$0xf] %v8704_v1  ;;  %7640 = vmatprep.subr.bf16.mxu0 %v7722_v2  ;;  %v92_v7 = vld [vmem:[%s14986_s0 + $0x10] sm:$0xff]  ;;  %v7358_v8 = vpack.c.bf16 %v90_v5, %v90_v5  ;;  %v7359_v9 = vpack.c.bf16 %v91_v6, %v91_v6  ;;  %v93_v10 = vld [vmem:[%s14986_s0 + $0x18] sm:$0xff] }
   0x5   :  { %66 = vst [vmem:[#allocation2 + $0x20] sm:$0xf] %v8704_v1  ;;  %67 = vst [vmem:[#allocation2 + $0x24] sm:$0xf] %v8704_v1  ;;  %v7360_v11 = vpack.c.bf16 %v92_v7, %v92_v7  ;;  %v94_v12 = vld [vmem:[%s14986_s0 + $0x20] sm:$0xff]  ;;  %v95_v13 = vld [vmem:[%s14986_s0 + $0x28] sm:$0xff]  ;;  %v7361_v15 = vpack.c.bf16 %v93_v10, %v93_v10 }
   0x6   :  { %68 = vst [vmem:[#allocation2 + $0x28] sm:$0xf] %v8704_v1  ;;  %69 = vst [vmem:[#allocation2 + $0x2c] sm:$0xf] %v8704_v1  ;;  %v8833_v14 = vld [vmem:[%s14985_s1 + $0x18] sm:$0xff]   ;;  %v7362_v16 = vpack.c.bf16 %v94_v12, %v94_v12  ;;  %v7363_v17 = vpack.c.bf16 %v95_v13, %v95_v13  ;;  %v96_v18 = vld [vmem:[%s14986_s0 + $0x30] sm:$0xff] }
   0x7   :  { %70 = vst [vmem:[#allocation2 + $0x30] sm:$0xf] %v8704_v1  ;;  %71 = vst [vmem:[#allocation2 + $0x34] sm:$0xf] %v8704_v1  ;;  %7641 = vmatpush3.bf16.msra.mxu0 %v7722_v2  ;;  %v97_v19 = vld [vmem:[%s14986_s0 + $0x38] sm:$0xff]  ;;  %v98_v20 = vld [vmem:[%s14986_s0 + $0x40] sm:$0xff]  ;;  %v7364_v21 = vpack.c.bf16 %v96_v18, %v96_v18 }
   0x8   :  { %72 = vst [vmem:[#allocation2 + $0x38] sm:$0xf] %v8704_v1  ;;  %73 = vst [vmem:[#allocation2 + $0x3c] sm:$0xf] %v8704_v1  ;;  %7642 = vmatprep.subr.bf16.mxu0 %v7723_v3  ;;  %v7365_v22 = vpack.c.bf16 %v97_v19, %v97_v19  ;;  %v99_v23 = vld [vmem:[%s14986_s0 + $0x48] sm:$0xff]  ;;  %v7366_v24 = vpack.c.bf16 %v98_v20, %v98_v20  ;;  %v100_v25 = vld [vmem:[%s14986_s0 + $0x50] sm:$0xff] }
   0x9   :  { %74 = vst [vmem:[#allocation2 + $0x40] sm:$0xf] %v8704_v1  ;;  %75 = vst [vmem:[#allocation2 + $0x44] sm:$0xf] %v8704_v1  ;;  %v101_v26 = vld [vmem:[%s14986_s0 + $0x58] sm:$0xff]  ;;  %v7367_v27 = vpack.c.bf16 %v99_v23, %v99_v23  ;;  %v7368_v28 = vpack.c.bf16 %v100_v25, %v100_v25  ;;  %v102_v30 = vld [vmem:[%s14986_s0 + $0x60] sm:$0xff] }
   0xa   :  { %76 = vst [vmem:[#allocation2 + $0x48] sm:$0xf] %v8704_v1  ;;  %77 = vst [vmem:[#allocation2 + $0x4c] sm:$0xf] %v8704_v1  ;;  %v7369_v29 = vpack.c.bf16 %v101_v26, %v101_v26  ;;  %v103_v31 = vld [vmem:[%s14986_s0 + $0x68] sm:$0xff]  ;;  %v104_v32 = vld [vmem:[%s14986_s0 + $0x70] sm:$0xff]  ;;  %v7370_v33 = vpack.c.bf16 %v102_v30, %v102_v30 }
   0xb   :  { %78 = vst [vmem:[#allocation2 + $0x50] sm:$0xf] %v8704_v1  ;;  %79 = vst [vmem:[#allocation2 + $0x54] sm:$0xf] %v8704_v1  ;;  %7643 = vmatpush3.bf16.msra.mxu0 %v7723_v3  ;;  %v7371_v34 = vpack.c.bf16 %v103_v31, %v103_v31  ;;  %v105_v35 = vld [vmem:[%s14986_s0 + $0x78] sm:$0xff]  ;;  %v7372_v36 = vpack.c.bf16 %v104_v32, %v104_v32  ;;  %v106_v37 = vld [vmem:[%s14986_s0 + $0x80] sm:$0xff] }
   0xc   :  { %80 = vst [vmem:[#allocation2 + $0x58] sm:$0xf] %v8704_v1  ;;  %81 = vst [vmem:[#allocation2 + $0x5c] sm:$0xf] %v8704_v1  ;;  %7644 = vmatprep.subr.bf16.mxu0 %v7724_v4  ;;  %v107_v38 = vld [vmem:[%s14986_s0 + $0x88] sm:$0xff]  ;;  %v7726_v39 = vld [vmem:[%s14985_s1 + $0x10] sm:$0xff]   ;;  %v7373_v40 = vpack.c.bf16 %v105_v35, %v105_v35  ;;  %v7374_v41 = vpack.c.bf16 %v106_v37, %v106_v37 }
   0xd   :  { %82 = vst [vmem:[#allocation2 + $0x60] sm:$0xf] %v8704_v1  ;;  %83 = vst [vmem:[#allocation2 + $0x64] sm:$0xf] %v8704_v1  ;;  %v7375_v42 = vpack.c.bf16 %v107_v38, %v107_v38  ;;  %v108_v43 = vld [vmem:[%s14986_s0 + $0x90] sm:$0xff]  ;;  %v109_v44 = vld [vmem:[%s14986_s0 + $0x98] sm:$0xff] }
   0xe   :  { %84 = vst [vmem:[#allocation2 + $0x68] sm:$0xf] %v8704_v1  ;;  %85 = vst [vmem:[#allocation2 + $0x6c] sm:$0xf] %v8704_v1  ;;  %v110_v45 = vld [vmem:[%s14986_s0 + $0xa0] sm:$0xff]  ;;  %v7376_v46 = vpack.c.bf16 %v108_v43, %v108_v43  ;;  %v7377_v47 = vpack.c.bf16 %v109_v44, %v109_v44  ;;  %v111_v48 = vld [vmem:[%s14986_s0 + $0xa8] sm:$0xff] }
   0xf   :  { %86 = vst [vmem:[#allocation2 + $0x70] sm:$0xf] %v8704_v1  ;;  %87 = vst [vmem:[#allocation2 + $0x74] sm:$0xf] %v8704_v1  ;;  %7645 = vmatpush3.bf16.msra.mxu0 %v7724_v4  ;;  %v7378_v49 = vpack.c.bf16 %v110_v45, %v110_v45  ;;  %v112_v50 = vld [vmem:[%s14986_s0 + $0xb0] sm:$0xff]  ;;  %v113_v51 = vld [vmem:[%s14986_s0 + $0xb8] sm:$0xff]  ;;  %v7379_v52 = vpack.c.bf16 %v111_v48, %v111_v48 }
  0x10   :  { %88 = vst [vmem:[#allocation2 + $0x78] sm:$0xf] %v8704_v1  ;;  %89 = vst [vmem:[#allocation2 + $0x7c] sm:$0xf] %v8704_v1  ;;  %7646 = vmatprep.subr.bf16.mxu0 %v8833_v14  ;;  %v7380_v53 = vpack.c.bf16 %v112_v50, %v112_v50  ;;  %v7381_v54 = vpack.c.bf16 %v113_v51, %v113_v51  ;;  %v114_v55 = vld [vmem:[%s14986_s0 + $0xc0] sm:$0xff]  ;;  %v115_v56 = vld [vmem:[%s14986_s0 + $0xc8] sm:$0xff] }
  0x11   :  { %251 = vst.msk [vmem:[#allocation2] sm:$0xf] %vm250_vm0, %v7358_v8  ;;  %252 = vst.msk [vmem:[#allocation2 + $0x4] sm:$0xf] %vm250_vm0, %v7359_v9  ;;  %v116_v57 = vld [vmem:[%s14986_s0 + $0xd0] sm:$0xff]  ;;  %v7382_v58 = vpack.c.bf16 %v114_v55, %v114_v55  ;;  %v7383_v59 = vpack.c.bf16 %v115_v56, %v115_v56  ;;  %v117_v60 = vld [vmem:[%s14986_s0 + $0xd8] sm:$0xff] }
  0x12   :  { %253 = vst.msk [vmem:[#allocation2 + $0x8] sm:$0xf] %vm250_vm0, %v7360_v11  ;;  %254 = vst.msk [vmem:[#allocation2 + $0xc] sm:$0xf] %vm250_vm0, %v7361_v15  ;;  %v7384_v61 = vpack.c.bf16 %v116_v57, %v116_v57  ;;  %v118_v62 = vld [vmem:[%s14986_s0 + $0xe0] sm:$0xff]  ;;  %v119_v63 = vld [vmem:[%s14986_s0 + $0xe8] sm:$0xff]  ;;  %v7385_v2 = vpack.c.bf16 %v117_v60, %v117_v60 }
  0x13   :  { %255 = vst.msk [vmem:[#allocation2 + $0x10] sm:$0xf] %vm250_vm0, %v7362_v16  ;;  %256 = vst.msk [vmem:[#allocation2 + $0x14] sm:$0xf] %vm250_vm0, %v7363_v17  ;;  %v7386_v3 = vpack.c.bf16 %v118_v62, %v118_v62  ;;  %v7387_v4 = vpack.c.bf16 %v119_v63, %v119_v63  ;;  %7647 = vmatpush3.bf16.msra.mxu0 %v8833_v14  ;;  %v7727_v5 = vld [vmem:[%s14985_s1 + $0x8] sm:$0xff]   ;;  %v7728_v6 = vld [vmem:[%s14985_s1] sm:$0xff]  }
  0x14   :  { %257 = vst.msk [vmem:[#allocation2 + $0x18] sm:$0xf] %vm250_vm0, %v7364_v21  ;;  %258 = vst.msk [vmem:[#allocation2 + $0x1c] sm:$0xf] %vm250_vm0, %v7365_v22  ;;  %7648 = vmatprep.subr.bf16.mxu0 %v7726_v39  ;;  %v120_v9 = vld [vmem:[%s14986_s0 + $0xf0] sm:$0xff]  ;;  %v121_v10 = vld [vmem:[%s14986_s0 + $0xf8] sm:$0xff] }
  0x15   :  { %259 = vst.msk [vmem:[#allocation2 + $0x20] sm:$0xf] %vm250_vm0, %v7366_v24  ;;  %260 = vst.msk [vmem:[#allocation2 + $0x24] sm:$0xf] %vm250_vm0, %v7367_v27  ;;  %v7388_v11 = vpack.c.bf16 %v120_v9, %v120_v9  ;;  %v7389_v12 = vpack.c.bf16 %v121_v10, %v121_v10  ;;  %v7745_v13 = vld [vmem:[%s14987_s3 + $0x74] ss:$8 sps:$4 sm:$0xff]  }
  0x16   :  { %261 = vst.msk [vmem:[#allocation2 + $0x28] sm:$0xf] %vm250_vm0, %v7368_v28  ;;  %262 = vst.msk [vmem:[#allocation2 + $0x2c] sm:$0xf] %vm250_vm0, %v7369_v29  ;;  %v7747_v14 = vld [vmem:[%s14987_s3 + $0x70] ss:$8 sps:$4 sm:$0xff]   ;;  %819 = vmatprep.subr.bf16.mxu1 %v7745_v13 }
  0x17   :  { %263 = vst.msk [vmem:[#allocation2 + $0x30] sm:$0xf] %vm250_vm0, %v7370_v33  ;;  %264 = vst.msk [vmem:[#allocation2 + $0x34] sm:$0xf] %vm250_vm0, %v7371_v34  ;;  %7649 = vmatpush3.bf16.msra.mxu0 %v7726_v39  ;;  %v7748_v15 = vld [vmem:[%s14987_s3 + $0x64] ss:$8 sps:$4 sm:$0xff]   ;;  %820 = vmatpush1.bf16.msra.mxu1 %v7747_v14 }
  0x18   :  { %265 = vst.msk [vmem:[#allocation2 + $0x38] sm:$0xf] %vm250_vm0, %v7372_v36  ;;  %266 = vst.msk [vmem:[#allocation2 + $0x3c] sm:$0xf] %vm250_vm0, %v7373_v40  ;;  %v7729_v0 = vld [vmem:[#allocation2] sm:$0xff]   ;;  %7650 = vmatprep.subr.bf16.mxu0 %v7727_v5  ;;  %821 = vmatprep.subr.bf16.mxu1 %v7748_v15  ;;  %s54_s14 = sshll.u32 %s8706_s13, 4  ;;  %s55_s14 = int_to_ptr.vmem [resolvable:$true] %s54_s14 }
  0x19   :  { %267 = vst.msk [vmem:[#allocation2 + $0x40] sm:$0xf] %vm250_vm0, %v7374_v41  ;;  %268 = vst.msk [vmem:[#allocation2 + $0x44] sm:$0xf] %vm250_vm0, %v7375_v42  ;;  %7654 = vmatprep.mubr.bf16.mxu0 %v7729_v0  ;;  %v7730_v7 = vld [vmem:[#allocation2 + $0x8] sm:$0xff]  }
  0x1a   :  { %269 = vst.msk [vmem:[#allocation2 + $0x48] sm:$0xf] %vm250_vm0, %v7376_v46  ;;  %270 = vst.msk [vmem:[#allocation2 + $0x4c] sm:$0xf] %vm250_vm0, %v7377_v47  ;;  %v7731_v8 = vld [vmem:[#allocation2 + $0x10] sm:$0xff]  }
  0x1b   :  { %271 = vst.msk [vmem:[#allocation2 + $0x50] sm:$0xf] %vm250_vm0, %v7378_v49  ;;  %272 = vst.msk [vmem:[#allocation2 + $0x54] sm:$0xf] %vm250_vm0, %v7379_v52  ;;  %7651 = vmatpush3.bf16.msra.mxu0 %v7727_v5  ;;  %v7732_v16 = vld [vmem:[#allocation2 + $0x18] sm:$0xff]  }
  0x1c   :  { %273 = vst.msk [vmem:[#allocation2 + $0x58] sm:$0xf] %vm250_vm0, %v7380_v53  ;;  %274 = vst.msk [vmem:[#allocation2 + $0x5c] sm:$0xf] %vm250_vm0, %v7381_v54  ;;  %7652 = vmatprep.subr.bf16.mxu0 %v7728_v6  ;;  %v7750_v17 = vld [vmem:[%s14987_s3 + $0x60] ss:$8 sps:$4 sm:$0xff]  }
  0x1d   :  { %275 = vst.msk [vmem:[#allocation2 + $0x60] sm:$0xf] %vm250_vm0, %v7382_v58  ;;  %276 = vst.msk [vmem:[#allocation2 + $0x64] sm:$0xf] %vm250_vm0, %v7383_v59  ;;  %v7733_v18 = vld [vmem:[#allocation2 + $0x20] sm:$0xff]   ;;  %822 = vmatpush1.bf16.msra.mxu1 %v7750_v17  ;;  %v7734_v23 = vld [vmem:[#allocation2 + $0x28] sm:$0xff]  }
  0x1e   :  { %277 = vst.msk [vmem:[#allocation2 + $0x68] sm:$0xf] %vm250_vm0, %v7384_v61  ;;  %278 = vst.msk [vmem:[#allocation2 + $0x6c] sm:$0xf] %vm250_vm0, %v7385_v2  ;;  %v7751_v19 = vld [vmem:[%s14987_s3 + $0x54] ss:$8 sps:$4 sm:$0xff]  }
  0x1f   :  { %279 = vst.msk [vmem:[#allocation2 + $0x70] sm:$0xf] %vm250_vm0, %v7386_v3  ;;  %280 = vst.msk [vmem:[#allocation2 + $0x74] sm:$0xf] %vm250_vm0, %v7387_v4  ;;  %7653 = vmatpush3.bf16.msra.mxu0 %v7728_v6  ;;  %v7753_v20 = vld [vmem:[%s14987_s3 + $0x50] ss:$8 sps:$4 sm:$0xff]   ;;  %823 = vmatprep.subr.bf16.mxu1 %v7751_v19 }
  0x20   :  { %281 = vst.msk [vmem:[#allocation2 + $0x78] sm:$0xf] %vm250_vm0, %v7388_v11  ;;  %282 = vst.msk [vmem:[#allocation2 + $0x7c] sm:$0xf] %vm250_vm0, %v7389_v12  ;;  %v7754_v21 = vld [vmem:[%s14987_s3 + $0x44] ss:$8 sps:$4 sm:$0xff]  }
  0x21   :  { %824 = vmatpush1.bf16.msra.mxu1 %v7753_v20  ;;  %v7756_v22 = vld [vmem:[%s14987_s3 + $0x40] ss:$8 sps:$4 sm:$0xff]   ;;  %v7757_v24 = vld [vmem:[%s14987_s3 + $0x34] ss:$8 sps:$4 sm:$0xff]   ;;  %v7759_v35 = vld [vmem:[%s14987_s3 + $0x30] ss:$8 sps:$4 sm:$0xff]  }
  0x22   :  { %7655 = vmatmul.mubr.bf16.vlgmr.msra.gmra.mxu0 %v7730_v7  ;;  %825 = vmatprep.subr.bf16.mxu1 %v7754_v21  ;;  %v7735_v25 = vld [vmem:[#allocation2 + $0x30] sm:$0xff]   ;;  %v7736_v26 = vld [vmem:[#allocation2 + $0x38] sm:$0xff]   ;;  %v7737_v27 = vld [vmem:[#allocation2 + $0x40] sm:$0xff]  }
  0x23   :  { %7658 = vmatprep.mubr.bf16.mxu0 %v7731_v8  ;;  %v7738_v28 = vld [vmem:[#allocation2 + $0x48] sm:$0xff]   ;;  %v7739_v29 = vld [vmem:[#allocation2 + $0x50] sm:$0xff]   ;;  %v7740_v30 = vld [vmem:[#allocation2 + $0x58] sm:$0xff]  }
  0x24   :  { %v7741_v31 = vld [vmem:[#allocation2 + $0x60] sm:$0xff]   ;;  %v7763_v38 = vld [vmem:[%s14987_s3 + $0x14] ss:$8 sps:$4 sm:$0xff]   ;;  %v7765_v39 = vld [vmem:[%s14987_s3 + $0x10] ss:$8 sps:$4 sm:$0xff]  }
  0x25   :  { %826 = vmatpush1.bf16.msra.mxu1 %v7756_v22  ;;  %v7742_v32 = vld [vmem:[#allocation2 + $0x68] sm:$0xff]   ;;  %v9007_v43 = vld [vmem:[%s14988_s2] ss:$0 sm:$0xff]  ;;  %s8705_s2 = smov [#allocation3]  }
  0x26   :  { %827 = vmatprep.subr.bf16.mxu1 %v7757_v24  ;;  %v7743_v33 = vld [vmem:[#allocation2 + $0x70] sm:$0xff]   ;;  %v7760_v36 = vld [vmem:[%s14987_s3 + $0x24] ss:$8 sps:$4 sm:$0xff]   ;;  %v7762_v37 = vld [vmem:[%s14987_s3 + $0x20] ss:$8 sps:$4 sm:$0xff]  }
  0x27   :  { %v7744_v34 = vld [vmem:[#allocation2 + $0x78] sm:$0xff]   ;;  %v7766_v40 = vld [vmem:[%s14987_s3 + $0x4] ss:$8 sps:$4 sm:$0xff]   ;;  %v7768_v41 = vld [vmem:[%s14987_s3] ss:$8 sps:$4 sm:$0xff]   ;;  %s42_s3 = sshll.u32 %s8705_s2, 4  ;;  %s43_s3 = int_to_ptr.vmem [resolvable:$true] %s42_s3 }
  0x28   :  { %s8668_s15 = scalar_lea.vmem %s43_s3, 8192  ;;  %p8673_p1 = scmp.lt.s32.totalorder %s43_s3, %s43_s3 }
  0x29   :  { %828 = vmatpush1.bf16.msra.mxu1 %v7759_v35  ;;  %p8669_p0 = scmp.ne.s32.totalorder %s43_s3, %s8668_s15  ;;  %p8674_p2 = scmp.lt.s32.totalorder %s8668_s15, %s8668_s15 }
  0x2a   :  { %7659 = vmatmul.mubr.bf16.gmra.mxu0 %v7732_v16  ;;  %829 = vmatprep.subr.bf16.mxu1 %v7760_v36 }
  0x2b   :  { %7662 = vmatprep.mubr.bf16.mxu0 %v7733_v18  ;;  %p8675_p3 = por %p8674_p2, %p8673_p1 }
  0x2d   :  { %830 = vmatpush1.bf16.msra.mxu1 %v7762_v37  ;;  %p8676_p4 = pnand %p8675_p3, %p8669_p0 }
  0x2e   :  { %831 = vmatprep.subr.bf16.mxu1 %v7763_v38 }
  0x31   :  { %832 = vmatpush1.bf16.msra.mxu1 %v7765_v39 }
  0x32   :  { %7663 = vmatmul.mubr.bf16.gmra.mxu0 %v7734_v23  ;;  %833 = vmatprep.subr.bf16.mxu1 %v7766_v40 }
  0x33   :  { %7666 = vmatprep.mubr.bf16.mxu0 %v7735_v25 }
  0x35   :  { %834 = vmatpush1.bf16.msra.mxu1 %v7768_v41 }
  0x3a   :  { %7667 = vmatmul.mubr.bf16.gmra.mxu0 %v7736_v26 }
  0x3b   :  { %7670 = vmatprep.mubr.bf16.mxu0 %v7737_v27 }
  0x42   :  { %7671 = vmatmul.mubr.bf16.gmra.mxu0 %v7738_v28 }
  0x43   :  { %7674 = vmatprep.mubr.bf16.mxu0 %v7739_v29 }
  0x4a   :  { %7675 = vmatmul.mubr.bf16.gmra.mxu0 %v7740_v30 }
  0x4b   :  { %7678 = vmatprep.mubr.bf16.mxu0 %v7741_v31 }
  0x52   :  { %7679 = vmatmul.mubr.bf16.gmra.mxu0 %v7742_v32 }
  0x53   :  { %7682 = vmatprep.mubr.bf16.mxu0 %v7743_v33 }
  0x5a   :  { %7683 = vmatmul.mubr.bf16.gmra.mxu0 %v7744_v34 }
  0xe2   :  { %v7656_v42 = vpop.f32.mrf.mxu0 }
  0xe3   :  { %v525_v54 = vadd.f32 %v7656_v42, %v9007_v43 }
  0xe4   :  { %v516_v44 = vpop.f32.mrf.mxu0 }
  0xe5   :  { %v517_v45 = vadd.f32 %v9007_v43, %v516_v44  ;;  %v645_v61 = vmul.f32 0.2, %v525_v54 }
  0xe6   :  { %v7657_v46 = vpop.f32.mrf.mxu0 }
  0xe7   :  { %v643_v48 = vmul.f32 0.2, %v517_v45  ;;  %v528_v51 = vadd.f32 %v7657_v46, %v9007_v43  ;;  %v677_v3 = vmax.f32 %v525_v54, %v645_v61 }
  0xe8   :  { %v519_v47 = vpop.f32.mrf.mxu0 }
  0xe9   :  { %v520_v49 = vadd.f32 %v9007_v43, %v519_v47  ;;  %v675_v55 = vmax.f32 %v517_v45, %v643_v48  ;;  %v646_v58 = vmul.f32 0.2, %v528_v51 }
  0xea   :  { %v7660_v50 = vpop.f32.mrf.mxu0 }
  0xeb   :  { %v644_v52 = vmul.f32 0.2, %v520_v49  ;;  %v678_v62 = vmax.f32 %v528_v51, %v646_v58  ;;  %v541_v8 = vadd.f32 %v7660_v50, %v9007_v43 }
  0xec   :  { %v532_v53 = vpop.f32.mrf.mxu0 }
  0xed   :  { %v676_v56 = vmax.f32 %v520_v49, %v644_v52  ;;  %v533_v63 = vadd.f32 %v9007_v43, %v532_v53  ;;  %v708_v6 = vpack.c.bf16 %v678_v62, %v677_v3  ;;  %v649_v13 = vmul.f32 0.2, %v541_v8 }
  0xee   :  { %v7661_v57 = vpop.f32.mrf.mxu0 }
  0xef   :  { %v707_v59 = vpack.c.bf16 %v676_v56, %v675_v55  ;;  %v647_v4 = vmul.f32 0.2, %v533_v63  ;;  %v544_v10 = vadd.f32 %v7661_v57, %v9007_v43  ;;  %v681_v17 = vmax.f32 %v541_v8, %v649_v13 }
  0xf0   :  { %v535_v60 = vpop.f32.mrf.mxu0 }
  0xf1   :  { %852 = vmatmul.mubr.bf16.vlgmr.msra.gmra.mxu1 %v707_v59  ;;  %v536_v0 = vadd.f32 %v9007_v43, %v535_v60  ;;  %v679_v9 = vmax.f32 %v533_v63, %v647_v4  ;;  %v650_v14 = vmul.f32 0.2, %v544_v10 }
  0xf2   :  { %861 = vmatprep.mubr.bf16.mxu1 %v8704_v1  ;;  %v7664_v2 = vpop.f32.mrf.mxu0 }
  0xf3   :  { %v648_v5 = vmul.f32 0.2, %v536_v0  ;;  %v682_v18 = vmax.f32 %v544_v10, %v650_v14  ;;  %v557_v26 = vadd.f32 %v7664_v2, %v9007_v43 }
  0xf4   :  { %v548_v7 = vpop.f32.mrf.mxu0 }
  0xf5   :  { %v680_v11 = vmax.f32 %v536_v0, %v648_v5  ;;  %v549_v19 = vadd.f32 %v9007_v43, %v548_v7  ;;  %v710_v24 = vpack.c.bf16 %v682_v18, %v681_v17  ;;  %v653_v31 = vmul.f32 0.2, %v557_v26 }
  0xf6   :  { %v7665_v12 = vpop.f32.mrf.mxu0 }
  0xf7   :  { %v709_v15 = vpack.c.bf16 %v680_v11, %v679_v9  ;;  %v651_v22 = vmul.f32 0.2, %v549_v19  ;;  %v560_v28 = vadd.f32 %v7665_v12, %v9007_v43  ;;  %v685_v35 = vmax.f32 %v557_v26, %v653_v31 }
  0xf8   :  { %v551_v16 = vpop.f32.mrf.mxu0 }
  0xf9   :  { %862 = vmatmul.mubr.bf16.gmra.mxu1 %v708_v6  ;;  %v552_v20 = vadd.f32 %v9007_v43, %v551_v16  ;;  %v683_v27 = vmax.f32 %v549_v19, %v651_v22  ;;  %v654_v32 = vmul.f32 0.2, %v560_v28 }
  0xfa   :  { %871 = vmatprep.mubr.bf16.mxu1 %v8704_v1  ;;  %v7668_v21 = vpop.f32.mrf.mxu0 }
  0xfb   :  { %v652_v23 = vmul.f32 0.2, %v552_v20  ;;  %v686_v36 = vmax.f32 %v560_v28, %v654_v32  ;;  %v573_v45 = vadd.f32 %v7668_v21, %v9007_v43 }
  0xfc   :  { %v564_v25 = vpop.f32.mrf.mxu0 }
  0xfd   :  { %v684_v29 = vmax.f32 %v552_v20, %v652_v23  ;;  %v565_v37 = vadd.f32 %v9007_v43, %v564_v25  ;;  %v712_v42 = vpack.c.bf16 %v686_v36, %v685_v35  ;;  %v657_v50 = vmul.f32 0.2, %v573_v45 }
  0xfe   :  { %v7669_v30 = vpop.f32.mrf.mxu0 }
  0xff   :  { %v711_v33 = vpack.c.bf16 %v684_v29, %v683_v27  ;;  %v655_v40 = vmul.f32 0.2, %v565_v37  ;;  %v576_v47 = vadd.f32 %v7669_v30, %v9007_v43  ;;  %v689_v54 = vmax.f32 %v573_v45, %v657_v50 }
 0x100   :  { %v567_v34 = vpop.f32.mrf.mxu0 }
 0x101   :  { %872 = vmatmul.mubr.bf16.gmra.mxu1 %v709_v15  ;;  %v568_v38 = vadd.f32 %v9007_v43, %v567_v34  ;;  %v687_v46 = vmax.f32 %v565_v37, %v655_v40  ;;  %v658_v51 = vmul.f32 0.2, %v576_v47 }
 0x102   :  { %881 = vmatprep.mubr.bf16.mxu1 %v8704_v1  ;;  %v7672_v39 = vpop.f32.mrf.mxu0 }
 0x103   :  { %v656_v41 = vmul.f32 0.2, %v568_v38  ;;  %v690_v55 = vmax.f32 %v576_v47, %v658_v51  ;;  %v589_v63 = vadd.f32 %v7672_v39, %v9007_v43 }
 0x104   :  { %v580_v44 = vpop.f32.mrf.mxu0 }
 0x105   :  { %v688_v48 = vmax.f32 %v568_v38, %v656_v41  ;;  %v581_v56 = vadd.f32 %v9007_v43, %v580_v44  ;;  %v714_v61 = vpack.c.bf16 %v690_v55, %v689_v54  ;;  %v661_v5 = vmul.f32 0.2, %v589_v63 }
 0x106   :  { %v7673_v49 = vpop.f32.mrf.mxu0 }
 0x107   :  { %v713_v52 = vpack.c.bf16 %v688_v48, %v687_v46  ;;  %v659_v59 = vmul.f32 0.2, %v581_v56  ;;  %v592_v2 = vadd.f32 %v7673_v49, %v9007_v43  ;;  %v693_v9 = vmax.f32 %v589_v63, %v661_v5 }
 0x108   :  { %v583_v53 = vpop.f32.mrf.mxu0 }
 0x109   :  { %882 = vmatmul.mubr.bf16.gmra.mxu1 %v710_v24  ;;  %v584_v57 = vadd.f32 %v9007_v43, %v583_v53  ;;  %v691_v0 = vmax.f32 %v581_v56, %v659_v59  ;;  %v662_v6 = vmul.f32 0.2, %v592_v2 }
 0x10a   :  { %891 = vmatprep.mubr.bf16.mxu1 %v8704_v1  ;;  %v7676_v58 = vpop.f32.mrf.mxu0 }
 0x10b   :  { %v660_v60 = vmul.f32 0.2, %v584_v57  ;;  %v694_v10 = vmax.f32 %v592_v2, %v662_v6  ;;  %v605_v18 = vadd.f32 %v7676_v58, %v9007_v43 }
 0x10c   :  { %v596_v62 = vpop.f32.mrf.mxu0 }
 0x10d   :  { %v692_v3 = vmax.f32 %v584_v57, %v660_v60  ;;  %v597_v11 = vadd.f32 %v9007_v43, %v596_v62  ;;  %v716_v16 = vpack.c.bf16 %v694_v10, %v693_v9  ;;  %v665_v23 = vmul.f32 0.2, %v605_v18 }
 0x10e   :  { %v7677_v4 = vpop.f32.mrf.mxu0 }
 0x10f   :  { %v715_v7 = vpack.c.bf16 %v692_v3, %v691_v0  ;;  %v663_v14 = vmul.f32 0.2, %v597_v11  ;;  %v608_v20 = vadd.f32 %v7677_v4, %v9007_v43  ;;  %v697_v27 = vmax.f32 %v605_v18, %v665_v23 }
 0x110   :  { %v599_v8 = vpop.f32.mrf.mxu0 }
 0x111   :  { %892 = vmatmul.mubr.bf16.gmra.mxu1 %v711_v33  ;;  %v600_v12 = vadd.f32 %v9007_v43, %v599_v8  ;;  %v695_v19 = vmax.f32 %v597_v11, %v663_v14  ;;  %v666_v24 = vmul.f32 0.2, %v608_v20 }
 0x112   :  { %901 = vmatprep.mubr.bf16.mxu1 %v8704_v1  ;;  %v7680_v13 = vpop.f32.mrf.mxu0 }
 0x113   :  { %v664_v15 = vmul.f32 0.2, %v600_v12  ;;  %v698_v28 = vmax.f32 %v608_v20, %v666_v24  ;;  %v621_v36 = vadd.f32 %v7680_v13, %v9007_v43 }
 0x114   :  { %v612_v17 = vpop.f32.mrf.mxu0 }
 0x115   :  { %v696_v21 = vmax.f32 %v600_v12, %v664_v15  ;;  %v613_v29 = vadd.f32 %v9007_v43, %v612_v17  ;;  %v718_v34 = vpack.c.bf16 %v698_v28, %v697_v27  ;;  %v669_v41 = vmul.f32 0.2, %v621_v36 }
 0x116   :  { %v7681_v22 = vpop.f32.mrf.mxu0 }
 0x117   :  { %v717_v25 = vpack.c.bf16 %v696_v21, %v695_v19  ;;  %v667_v32 = vmul.f32 0.2, %v613_v29  ;;  %v624_v38 = vadd.f32 %v7681_v22, %v9007_v43  ;;  %v701_v46 = vmax.f32 %v621_v36, %v669_v41 }
 0x118   :  { %v615_v26 = vpop.f32.mrf.mxu0 }
 0x119   :  { %902 = vmatmul.mubr.bf16.gmra.mxu1 %v712_v42  ;;  %v616_v30 = vadd.f32 %v9007_v43, %v615_v26  ;;  %v699_v37 = vmax.f32 %v613_v29, %v667_v32  ;;  %v670_v42 = vmul.f32 0.2, %v624_v38 }
 0x11a   :  { %911 = vmatprep.mubr.bf16.mxu1 %v8704_v1  ;;  %v7684_v31 = vpop.f32.mrf.mxu0 }
 0x11b   :  { %v668_v33 = vmul.f32 0.2, %v616_v30  ;;  %v702_v47 = vmax.f32 %v624_v38, %v670_v42  ;;  %v637_v53 = vadd.f32 %v7684_v31, %v9007_v43 }
 0x11c   :  { %v628_v35 = vpop.f32.mrf.mxu0 }
 0x11d   :  { %v700_v39 = vmax.f32 %v616_v30, %v668_v33  ;;  %v629_v48 = vadd.f32 %v9007_v43, %v628_v35  ;;  %v673_v57 = vmul.f32 0.2, %v637_v53 }
 0x11e   :  { %v7685_v40 = vpop.f32.mrf.mxu0 }
 0x11f   :  { %v719_v44 = vpack.c.bf16 %v700_v39, %v699_v37  ;;  %v671_v50 = vmul.f32 0.2, %v629_v48  ;;  %v640_v55 = vadd.f32 %v7685_v40, %v9007_v43  ;;  %v705_v60 = vmax.f32 %v637_v53, %v673_v57 }
 0x120   :  { %v631_v45 = vpop.f32.mrf.mxu0 }
 0x121   :  { %912 = vmatmul.mubr.bf16.gmra.mxu1 %v713_v52  ;;  %v632_v49 = vadd.f32 %v9007_v43, %v631_v45  ;;  %v720_v52 = vpack.c.bf16 %v702_v47, %v701_v46  ;;  %v703_v54 = vmax.f32 %v629_v48, %v671_v50  ;;  %v674_v58 = vmul.f32 0.2, %v640_v55 }
 0x122   :  { %921 = vmatprep.mubr.bf16.mxu1 %v8704_v1 }
 0x123   :  { %v672_v51 = vmul.f32 0.2, %v632_v49 }
 0x125   :  { %v704_v56 = vmax.f32 %v632_v49, %v672_v51 }
 0x127   :  { %v721_v59 = vpack.c.bf16 %v704_v56, %v703_v54 }
 0x129   :  { %922 = vmatmul.mubr.bf16.gmra.mxu1 %v714_v61  ;;  %v706_v61 = vmax.f32 %v640_v55, %v674_v58 }
 0x12a   :  { %931 = vmatprep.mubr.bf16.mxu1 %v8704_v1 }
 0x12b   :  { %v722_v62 = vpack.c.bf16 %v706_v61, %v705_v60 }
 0x131   :  { %932 = vmatmul.mubr.bf16.gmra.mxu1 %v715_v7 }
 0x132   :  { %941 = vmatprep.mubr.bf16.mxu1 %v8704_v1 }
 0x139   :  { %942 = vmatmul.mubr.bf16.gmra.mxu1 %v716_v16 }
 0x13a   :  { %951 = vmatprep.mubr.bf16.mxu1 %v8704_v1 }
 0x141   :  { %952 = vmatmul.mubr.bf16.gmra.mxu1 %v717_v25 }
 0x142   :  { %961 = vmatprep.mubr.bf16.mxu1 %v8704_v1 }
 0x149   :  { %962 = vmatmul.mubr.bf16.gmra.mxu1 %v718_v34 }
 0x14a   :  { %971 = vmatprep.mubr.bf16.mxu1 %v8704_v1 }
 0x151   :  { %972 = vmatmul.mubr.bf16.gmra.mxu1 %v719_v44 }
 0x152   :  { %981 = vmatprep.mubr.bf16.mxu1 %v8704_v1 }
 0x159   :  { %982 = vmatmul.mubr.bf16.gmra.mxu1 %v720_v52 }
 0x15a   :  { %991 = vmatprep.mubr.bf16.mxu1 %v8704_v1 }
 0x161   :  { %992 = vmatmul.mubr.bf16.gmra.mxu1 %v721_v59 }
 0x162   :  { %1001 = vmatprep.mubr.bf16.mxu1 %v8704_v1 }
 0x169   :  { %1002 = vmatmul.mubr.bf16.gmra.mxu1 %v722_v62 }
 0x1b1   :  { %v9056_v63 = vpop.f32.mrf.mxu1 }
 0x1b3   :  { %v9058_v0 = vpop.f32.mrf.mxu1 }
 0x1b5   :  { %v9060_v2 = vpop.f32.mrf.mxu1 }
 0x1b6   :  { %v1014_v31 = vadd.f32 %v9060_v2, %v9056_v63 }
 0x1b7   :  { %v9062_v3 = vpop.f32.mrf.mxu1 }
 0x1b8   :  { %v1051_v44 = vadd.f32 %v9062_v3, %v9058_v0 }
 0x1b9   :  { %v9064_v43 = vpop.f32.mrf.mxu1 }
 0x1ba   :  { %v1015_v33 = vadd.f32 %v1014_v31, %v9064_v43 }
 0x1bb   :  { %v9066_v4 = vpop.f32.mrf.mxu1 }
 0x1bc   :  { %v1052_v47 = vadd.f32 %v1051_v44, %v9066_v4 }
 0x1bd   :  { %v9068_v5 = vpop.f32.mrf.mxu1 }
 0x1be   :  { %v1016_v35 = vadd.f32 %v1015_v33, %v9068_v5 }
 0x1bf   :  { %v9070_v6 = vpop.f32.mrf.mxu1 }
 0x1c0   :  { %v1053_v50 = vadd.f32 %v1052_v47, %v9070_v6 }
 0x1c1   :  { %v9072_v1 = vpop.f32.mrf.mxu1 }
 0x1c2   :  { %v1017_v37 = vadd.f32 %v1016_v35, %v9072_v1 }
 0x1c3   :  { %v9074_v7 = vpop.f32.mrf.mxu1 }
 0x1c4   :  { %v1054_v53 = vadd.f32 %v1053_v50, %v9074_v7 }
 0x1c5   :  { %v9076_v8 = vpop.f32.mrf.mxu1 }
 0x1c6   :  { %v1018_v39 = vadd.f32 %v1017_v37, %v9076_v8 }
 0x1c7   :  { %v9078_v9 = vpop.f32.mrf.mxu1 }
 0x1c8   :  { %v1055_v56 = vadd.f32 %v1054_v53, %v9078_v9 }
 0x1c9   :  { %v9080_v10 = vpop.f32.mrf.mxu1 }
 0x1ca   :  { %v1019_v41 = vadd.f32 %v1018_v39, %v9080_v10 }
 0x1cb   :  { %v9082_v11 = vpop.f32.mrf.mxu1 }
 0x1cc   :  { %v1056_v59 = vadd.f32 %v1055_v56, %v9082_v11 }
 0x1cd   :  { %v9084_v12 = vpop.f32.mrf.mxu1 }
 0x1ce   :  { %v1020_v45 = vadd.f32 %v1019_v41, %v9084_v12 }
 0x1cf   :  { %v9086_v13 = vpop.f32.mrf.mxu1 }
 0x1d0   :  { %v1057_v62 = vadd.f32 %v1056_v59, %v9086_v13 }
 0x1d1   :  { %v9088_v14 = vpop.f32.mrf.mxu1 }
 0x1d2   :  { %v1021_v48 = vadd.f32 %v1020_v45, %v9088_v14 }
 0x1d3   :  { %v9090_v15 = vpop.f32.mrf.mxu1 }
 0x1d4   :  { %v1058_v35 = vadd.f32 %v1057_v62, %v9090_v15 }
 0x1d5   :  { %v9092_v16 = vpop.f32.mrf.mxu1 }
 0x1d6   :  { %v1022_v51 = vadd.f32 %v1021_v48, %v9092_v16 }
 0x1d7   :  { %v9094_v17 = vpop.f32.mrf.mxu1 }
 0x1d8   :  { %v1059_v41 = vadd.f32 %v1058_v35, %v9094_v17 }
 0x1d9   :  { %v9096_v18 = vpop.f32.mrf.mxu1 }
 0x1da   :  { %v1023_v54 = vadd.f32 %v1022_v51, %v9096_v18 }
 0x1db   :  { %v9098_v19 = vpop.f32.mrf.mxu1 }
 0x1dc   :  { %v1060_v47 = vadd.f32 %v1059_v41, %v9098_v19 }
 0x1dd   :  { %v9100_v20 = vpop.f32.mrf.mxu1 }
 0x1de   :  { %v1024_v57 = vadd.f32 %v1023_v54, %v9100_v20 }
 0x1df   :  { %v9102_v21 = vpop.f32.mrf.mxu1 }
 0x1e0   :  { %v1061_v51 = vadd.f32 %v1060_v47, %v9102_v21 }
 0x1e1   :  { %v9104_v22 = vpop.f32.mrf.mxu1 }
 0x1e2   :  { %v1025_v60 = vadd.f32 %v1024_v57, %v9104_v22 }
 0x1e3   :  { %v9106_v23 = vpop.f32.mrf.mxu1 }
 0x1e4   :  { %v1062_v56 = vadd.f32 %v1061_v51, %v9106_v23 }
 0x1e5   :  { %v9108_v24 = vpop.f32.mrf.mxu1 }
 0x1e6   :  { %v1026_v31 = vadd.f32 %v1025_v60, %v9108_v24 }
 0x1e7   :  { %v9110_v25 = vpop.f32.mrf.mxu1 }
 0x1e8   :  { %v1063_v60 = vadd.f32 %v1062_v56, %v9110_v25 }
 0x1e9   :  { %v9112_v26 = vpop.f32.mrf.mxu1 }
 0x1ea   :  { %v1027_v37 = vadd.f32 %v1026_v31, %v9112_v26 }
 0x1eb   :  { %v9114_v27 = vpop.f32.mrf.mxu1 }
 0x1ec   :  { %15626 = vst [vmem:[#allocation14_spill] sm:$0xff] %v9114_v27  ;;  %v1064_v35 = vadd.f32 %v1063_v60, %v9114_v27 }
 0x1ed   :  { %v9116_v28 = vpop.f32.mrf.mxu1 }
 0x1ee   :  { %v1028_v44 = vadd.f32 %v1027_v37, %v9116_v28 }
 0x1ef   :  { %v9118_v29 = vpop.f32.mrf.mxu1 }
 0x1f0   :  { %15627 = vst [vmem:[#allocation15_spill] sm:$0xff] %v9118_v29 }
 0x1f1   :  { %v9120_v30 = vpop.f32.mrf.mxu1 }
 0x1f2   :  { %v1029_v48 = vadd.f32 %v1028_v44, %v9120_v30  ;;  %v1065_v44 = vadd.f32 %v1064_v35, %v9118_v29 }
 0x1f3   :  { %v9124_v32 = vpop.f32.mrf.mxu1 }
 0x1f4   :  { %15628 = vst [vmem:[#allocation16_spill] sm:$0xff] %v9124_v32  ;;  %v1066_v51 = vadd.f32 %v1065_v44, %v9124_v32 }
 0x1f5   :  { %v9127_v34 = vpop.f32.mrf.mxu1 }
 0x1f6   :  { %v1030_v53 = vadd.f32 %v1029_v48, %v9127_v34 }
 0x1f7   :  { %v9130_v36 = vpop.f32.mrf.mxu1 }
 0x1f8   :  { %15629 = vst [vmem:[#allocation17_spill] sm:$0xff] %v9130_v36 }
 0x1f9   :  { %v9133_v38 = vpop.f32.mrf.mxu1 }
 0x1fa   :  { %v1031_v57 = vadd.f32 %v1030_v53, %v9133_v38 }
 0x1fb   :  { %v9136_v40 = vpop.f32.mrf.mxu1 }
 0x1fc   :  { %15630 = vst [vmem:[#allocation18_spill] sm:$0xff] %v9136_v40 }
 0x1fd   :  { %v9139_v42 = vpop.f32.mrf.mxu1 }
 0x1fe   :  { %v1032_v62 = vadd.f32 %v1031_v57, %v9139_v42  ;;  %v1067_v57 = vadd.f32 %v1066_v51, %v9130_v36 }
 0x1ff   :  { %v9144_v46 = vpop.f32.mrf.mxu1 }
 0x200   :  { %15631 = vst [vmem:[#allocation19_spill] sm:$0xff] %v9144_v46 }
 0x201   :  { %v9148_v49 = vpop.f32.mrf.mxu1 }
 0x202   :  { %v1033_v37 = vadd.f32 %v1032_v62, %v9148_v49  ;;  %v1068_v62 = vadd.f32 %v1067_v57, %v9136_v40 }
 0x203   :  { %v9152_v52 = vpop.f32.mrf.mxu1 }
 0x204   :  { %15632 = vst [vmem:[#allocation20_spill] sm:$0xff] %v9152_v52 }
 0x205   :  { %v9156_v55 = vpop.f32.mrf.mxu1 }
 0x206   :  { %v1034_v47 = vadd.f32 %v1033_v37, %v9156_v55  ;;  %v1069_v37 = vadd.f32 %v1068_v62, %v9144_v46 }
 0x207   :  { %v9160_v58 = vpop.f32.mrf.mxu1 }
 0x208   :  { %15633 = vst [vmem:[#allocation21_spill] sm:$0xff] %v9160_v58 }
 0x209   :  { %v9164_v61 = vpop.f32.mrf.mxu1 }
 0x20a   :  { %v1035_v53 = vadd.f32 %v1034_v47, %v9164_v61  ;;  %v1070_v47 = vadd.f32 %v1069_v37, %v9152_v52 }
 0x20b   :  { %v9168_v33 = vpop.f32.mrf.mxu1 }
 0x20c   :  { %15634 = vst [vmem:[#allocation22_spill] sm:$0xff] %v9168_v33 }
 0x20d   :  { %v9172_v39 = vpop.f32.mrf.mxu1 }
 0x20e   :  { %v1036_v60 = vadd.f32 %v1035_v53, %v9172_v39  ;;  %v1071_v53 = vadd.f32 %v1070_v47, %v9160_v58 }
 0x20f   :  { %v9176_v45 = vpop.f32.mrf.mxu1 }
 0x210   :  { %15635 = vst [vmem:[#allocation23_spill] sm:$0xff] %v9176_v45 }
 0x211   :  { %v9180_v50 = vpop.f32.mrf.mxu1 }
 0x212   :  { %v1037_v35 = vadd.f32 %v1036_v60, %v9180_v50  ;;  %v1072_v60 = vadd.f32 %v1071_v53, %v9168_v33 }
 0x213   :  { %v9184_v54 = vpop.f32.mrf.mxu1 }
 0x214   :  { %15636 = vst [vmem:[#allocation24_spill] sm:$0xff] %v9184_v54 }
 0x215   :  { %v9188_v59 = vpop.f32.mrf.mxu1 }
 0x216   :  { %v1038_v44 = vadd.f32 %v1037_v35, %v9188_v59  ;;  %v1073_v35 = vadd.f32 %v1072_v60, %v9176_v45 }
 0x217   :  { %v9192_v31 = vpop.f32.mrf.mxu1 }
 0x218   :  { %15637 = vst [vmem:[#allocation25_spill] sm:$0xff] %v9192_v31 }
 0x219   :  { %v9196_v41 = vpop.f32.mrf.mxu1 }
 0x21a   :  { %v1039_v51 = vadd.f32 %v1038_v44, %v9196_v41  ;;  %v1074_v44 = vadd.f32 %v1073_v35, %v9184_v54 }
 0x21b   :  { %v9200_v48 = vpop.f32.mrf.mxu1 }
 0x21c   :  { %15638 = vst [vmem:[#allocation26_spill] sm:$0xff] %v9200_v48 }
 0x21d   :  { %v9204_v56 = vpop.f32.mrf.mxu1 }
 0x21e   :  { %v1040_v57 = vadd.f32 %v1039_v51, %v9204_v56  ;;  %v1075_v51 = vadd.f32 %v1074_v44, %v9192_v31 }
 0x21f   :  { %v9208_v27 = vpop.f32.mrf.mxu1 }
 0x221   :  { %v9212_v29 = vpop.f32.mrf.mxu1 }
 0x222   :  { %15639 = vst [vmem:[#allocation27_spill] sm:$0xff] %v9212_v29  ;;  %v1041_v62 = vadd.f32 %v1040_v57, %v9212_v29  ;;  %v1076_v57 = vadd.f32 %v1075_v51, %v9200_v48 }
 0x223   :  { %v9216_v32 = vpop.f32.mrf.mxu1 }
 0x224   :  { %v1077_v29 = vadd.f32 %v1076_v57, %v9208_v27 }
 0x225   :  { %v9220_v36 = vpop.f32.mrf.mxu1 }
 0x226   :  { %15640 = vst [vmem:[#allocation28_spill] sm:$0xff] %v9220_v36  ;;  %v1042_v37 = vadd.f32 %v1041_v62, %v9220_v36  ;;  %v1078_v62 = vadd.f32 %v1077_v29, %v9216_v32 }
 0x227   :  { %v9224_v40 = vpop.f32.mrf.mxu1 }
 0x228   :  { %v1079_v36 = vadd.f32 %v1078_v62, %v9224_v40 }
 0x229   :  { %v9228_v46 = vpop.f32.mrf.mxu1 }
 0x22a   :  { %15641 = vst [vmem:[#allocation29_spill] sm:$0xff] %v9228_v46  ;;  %v1043_v47 = vadd.f32 %v1042_v37, %v9228_v46 }
 0x22b   :  { %v9232_v52 = vpop.f32.mrf.mxu1 }
 0x22c   :  { %v1080_v37 = vadd.f32 %v1079_v36, %v9232_v52 }
 0x22d   :  { %v9236_v58 = vpop.f32.mrf.mxu1 }
 0x22e   :  { %v1044_v53 = vadd.f32 %v1043_v47, %v9236_v58 }
 0x22f   :  { %v9244_v54 = vpop.f32.mrf.mxu1 }
 0x230   :  { %v1045_v33 = vrot.slane %v1044_v53, 4  ;;  %v1081_v44 = vadd.f32 %v1080_v37, %v9244_v54 }
 0x232   :  { %v1046_v60 = vadd.f32 %v1045_v33, %v1044_v53  ;;  %v1082_v31 = vrot.slane %v1081_v44, 4 }
 0x234   :  { %v1047_v45 = vrot.slane %v1046_v60, 2  ;;  %v1083_v48 = vadd.f32 %v1082_v31, %v1081_v44 }
 0x236   :  { %v1048_v35 = vadd.f32 %v1047_v45, %v1046_v60  ;;  %v1084_v45 = vrot.slane %v1083_v48, 2 }
 0x238   :  { %v1049_v46 = vrot.slane %v1048_v35, 1  ;;  %v1085_v31 = vadd.f32 %v1084_v45, %v1083_v48 }
 0x23a   :  { %v1050_v47 = vadd.f32 %v1049_v46, %v1048_v35  ;;  %v1086_v60 = vrot.slane %v1085_v31, 1 }
 0x23c   :  { %v9248_v51 = vmul.f32 0.00390625, %v1050_v47  ;;  %v1087_v44 = vadd.f32 %v1086_v60, %v1085_v31 }
 0x23e   :  { %v9252_v33 = vsub.f32 %v9056_v63, %v9248_v51  ;;  %v9256_v29 = vsub.f32 %v9060_v2, %v9248_v51  ;;  %v9260_v36 = vsub.f32 %v9064_v43, %v9248_v51  ;;  %v9268_v63 = vsub.f32 %v9068_v5, %v9248_v51 }
 0x23f   :  { %v9272_v2 = vsub.f32 %v9072_v1, %v9248_v51  ;;  %v9278_v62 = vsub.f32 %v9076_v8, %v9248_v51  ;;  %v9284_v5 = vsub.f32 %v9080_v10, %v9248_v51  ;;  %v9290_v47 = vsub.f32 %v9084_v12, %v9248_v51 }
 0x240   :  { %v1155_v46 = vmul.f32 %v9252_v33, %v9252_v33  ;;  %v1157_v53 = vmul.f32 %v9256_v29, %v9256_v29  ;;  %v1159_v57 = vmul.f32 %v9260_v36, %v9260_v36  ;;  %v1161_v48 = vmul.f32 %v9268_v63, %v9268_v63 }
 0x241   :  { %v1163_v1 = vmul.f32 %v9272_v2, %v9272_v2  ;;  %v1165_v8 = vmul.f32 %v9278_v62, %v9278_v62  ;;  %v1167_v10 = vmul.f32 %v9284_v5, %v9284_v5  ;;  %v9304_v31 = vsub.f32 %v9092_v16, %v9248_v51 }
 0x242   :  { %v1219_v43 = vadd.f32 %v1157_v53, %v1155_v46  ;;  %v9296_v46 = vsub.f32 %v9088_v14, %v9248_v51  ;;  %v1169_v12 = vmul.f32 %v9290_v47, %v9290_v47  ;;  %v9310_v60 = vsub.f32 %v9096_v18, %v9248_v51 }
 0x243   :  { %v1173_v18 = vmul.f32 %v9304_v31, %v9304_v31 }
 0x244   :  { %v1220_v35 = vadd.f32 %v1219_v43, %v1159_v57  ;;  %v9300_v57 = vmul.f32 0.00390625, %v1087_v44  ;;  %v1171_v14 = vmul.f32 %v9296_v46, %v9296_v46  ;;  %v9330_v44 = vsub.f32 %v9104_v22, %v9248_v51 }
 0x246   :  { %v1221_v37 = vadd.f32 %v1220_v35, %v1161_v48  ;;  %v9316_v35 = vsub.f32 %v9058_v0, %v9300_v57  ;;  %v9320_v16 = vsub.f32 %v9062_v3, %v9300_v57  ;;  %v1175_v0 = vmul.f32 %v9310_v60, %v9310_v60 }
 0x247   :  { %v9336_v3 = vsub.f32 %v9066_v4, %v9300_v57  ;;  %v9354_v4 = vsub.f32 %v9112_v26, %v9248_v51 }
 0x248   :  { %v1222_v45 = vadd.f32 %v1221_v37, %v1163_v1  ;;  %v9324_v1 = vsub.f32 %v9100_v20, %v9248_v51  ;;  %v1156_v20 = vmul.f32 %v9316_v35, %v9316_v35 }
 0x24a   :  { %v1223_v53 = vadd.f32 %v1222_v45, %v1165_v8  ;;  %v1158_v45 = vmul.f32 %v9320_v16, %v9320_v16  ;;  %v1177_v22 = vmul.f32 %v9324_v1, %v9324_v1 }
 0x24c   :  { %v1224_v43 = vadd.f32 %v1223_v53, %v1167_v10  ;;  %v9344_v10 = vsub.f32 %v9108_v24, %v9248_v51  ;;  %v9360_v24 = vsub.f32 %v9074_v7, %v9300_v57 }
 0x24e   :  { %v1225_v48 = vadd.f32 %v1224_v43, %v1169_v12  ;;  %v9350_v12 = vsub.f32 %v9070_v6, %v9300_v57  ;;  %v1179_v43 = vmul.f32 %v9330_v44, %v9330_v44  ;;  %15642 = vst [vmem:[#allocation30_spill] sm:$0xff] %v9360_v24  ;;  %v9366_v6 = vsub.f32 %v9116_v28, %v9248_v51 }
 0x24f   :  { %v1181_v26 = vmul.f32 %v9344_v10, %v9344_v10  ;;  %v1183_v28 = vmul.f32 %v9354_v4, %v9354_v4 }
 0x250   :  { %v1226_v37 = vadd.f32 %v1225_v48, %v1171_v14  ;;  %v1160_v48 = vmul.f32 %v9336_v3, %v9336_v3  ;;  %v1162_v7 = vmul.f32 %v9350_v12, %v9350_v12 }
 0x252   :  { %v1227_v8 = vadd.f32 %v1226_v37, %v1173_v18  ;;  %v1256_v18 = vadd.f32 %v1158_v45, %v1156_v20  ;;  %v9384_v45 = vsub.f32 %v9082_v11, %v9300_v57 }
 0x254   :  { %v1228_v53 = vadd.f32 %v1227_v8, %v1175_v0  ;;  %v9372_v0 = vsub.f32 %v9078_v9, %v9300_v57  ;;  %v1257_v8 = vadd.f32 %v1256_v18, %v1160_v48  ;;  %15644 = vst [vmem:[#allocation32_spill] sm:$0xff] %v9384_v45  ;;  %v1164_v9 = vmul.f32 %v9360_v24, %v9360_v24 }
 0x255   :  { %v9396_v48 = vsub.f32 %v9086_v13, %v9300_v57  ;;  %v1168_v13 = vmul.f32 %v9384_v45, %v9384_v45 }
 0x256   :  { %v1229_v14 = vadd.f32 %v1228_v53, %v1177_v22  ;;  %15643 = vst [vmem:[#allocation31_spill] sm:$0xff] %v9372_v0  ;;  %v9378_v22 = vsub.f32 %v9120_v30, %v9248_v51  ;;  %v1258_v53 = vadd.f32 %v1257_v8, %v1162_v7  ;;  %v1185_v30 = vmul.f32 %v9366_v6, %v9366_v6 }
 0x257   :  { %15645 = vst [vmem:[#allocation33_spill] sm:$0xff] %v9396_v48  ;;  %v1166_v11 = vmul.f32 %v9372_v0, %v9372_v0  ;;  %v9408_v7 = vsub.f32 %v9090_v15, %v9300_v57  ;;  %v1170_v15 = vmul.f32 %v9396_v48, %v9396_v48 }
 0x258   :  { %v1230_v37 = vadd.f32 %v1229_v14, %v1179_v43  ;;  %v9390_v43 = vsub.f32 %v9127_v34, %v9248_v51  ;;  %v1259_v18 = vadd.f32 %v1258_v53, %v1164_v9  ;;  %v1187_v34 = vmul.f32 %v9378_v22, %v9378_v22 }
 0x259   :  { %15646 = vst [vmem:[#allocation34_spill] sm:$0xff] %v9408_v7  ;;  %v9420_v9 = vsub.f32 %v9094_v17, %v9300_v57  ;;  %v1172_v17 = vmul.f32 %v9408_v7, %v9408_v7 }
 0x25a   :  { %v1231_v20 = vadd.f32 %v1230_v37, %v1181_v26  ;;  %v9402_v26 = vsub.f32 %v9133_v38, %v9248_v51  ;;  %v1260_v8 = vadd.f32 %v1259_v18, %v1166_v11  ;;  %v1189_v38 = vmul.f32 %v9390_v43, %v9390_v43 }
 0x25b   :  { %15647 = vst [vmem:[#allocation35_spill] sm:$0xff] %v9420_v9  ;;  %v9432_v11 = vsub.f32 %v9098_v19, %v9300_v57  ;;  %v1174_v19 = vmul.f32 %v9420_v9, %v9420_v9 }
 0x25c   :  { %v1232_v14 = vadd.f32 %v1231_v20, %v1183_v28  ;;  %v9414_v28 = vsub.f32 %v9139_v42, %v9248_v51  ;;  %v1261_v53 = vadd.f32 %v1260_v8, %v1168_v13  ;;  %v1191_v42 = vmul.f32 %v9402_v26, %v9402_v26 }
 0x25d   :  { %15648 = vst [vmem:[#allocation36_spill] sm:$0xff] %v9432_v11  ;;  %v9444_v13 = vsub.f32 %v9102_v21, %v9300_v57  ;;  %v1176_v21 = vmul.f32 %v9432_v11, %v9432_v11 }
 0x25e   :  { %v1233_v37 = vadd.f32 %v1232_v14, %v1185_v30  ;;  %v9426_v30 = vsub.f32 %v9148_v49, %v9248_v51  ;;  %v1262_v18 = vadd.f32 %v1261_v53, %v1170_v15  ;;  %v1193_v49 = vmul.f32 %v9414_v28, %v9414_v28 }
 0x25f   :  { %15649 = vst [vmem:[#allocation37_spill] sm:$0xff] %v9444_v13  ;;  %v9456_v15 = vsub.f32 %v9106_v23, %v9300_v57  ;;  %v1178_v23 = vmul.f32 %v9444_v13, %v9444_v13 }
 0x260   :  { %v1234_v20 = vadd.f32 %v1233_v37, %v1187_v34  ;;  %v9438_v34 = vsub.f32 %v9156_v55, %v9248_v51  ;;  %v1263_v8 = vadd.f32 %v1262_v18, %v1172_v17  ;;  %v1195_v55 = vmul.f32 %v9426_v30, %v9426_v30 }
 0x261   :  { %15650 = vst [vmem:[#allocation38_spill] sm:$0xff] %v9456_v15  ;;  %v9468_v17 = vsub.f32 %v9110_v25, %v9300_v57  ;;  %v1180_v25 = vmul.f32 %v9456_v15, %v9456_v15 }
 0x262   :  { %v1235_v14 = vadd.f32 %v1234_v20, %v1189_v38  ;;  %v9450_v38 = vsub.f32 %v9164_v61, %v9248_v51  ;;  %v1264_v53 = vadd.f32 %v1263_v8, %v1174_v19  ;;  %v1197_v61 = vmul.f32 %v9438_v34, %v9438_v34  ;;  %v15652_v19 = vld [vmem:[#allocation14_spill] sm:$0xff] }
 0x263   :  { %15651 = vst [vmem:[#allocation39_spill] sm:$0xff] %v9468_v17  ;;  %v9480_v8 = vsub.f32 %v15652_v19, %v9300_v57  ;;  %v9498_v19 = vsub.f32 %v9196_v41, %v9248_v51 }
 0x264   :  { %v1236_v37 = vadd.f32 %v1235_v14, %v1191_v42  ;;  %v9462_v42 = vsub.f32 %v9172_v39, %v9248_v51  ;;  %v1265_v18 = vadd.f32 %v1264_v53, %v1176_v21  ;;  %v1199_v39 = vmul.f32 %v9450_v38, %v9450_v38  ;;  %v15654_v53 = vld [vmem:[#allocation15_spill] sm:$0xff] }
 0x265   :  { %15653 = vst [vmem:[#allocation14_spill] sm:$0xff] %v9480_v8  ;;  %v9492_v13 = vsub.f32 %v15654_v53, %v9300_v57  ;;  %v9510_v53 = vsub.f32 %v9204_v56, %v9248_v51  ;;  %v1207_v56 = vmul.f32 %v9498_v19, %v9498_v19 }
 0x266   :  { %v1237_v20 = vadd.f32 %v1236_v37, %v1193_v49  ;;  %v9474_v49 = vsub.f32 %v9180_v50, %v9248_v51  ;;  %v1201_v50 = vmul.f32 %v9462_v42, %v9462_v42 }
 0x267   :  { %15655 = vst [vmem:[#allocation15_spill] sm:$0xff] %v9492_v13 }
 0x268   :  { %v1238_v14 = vadd.f32 %v1237_v20, %v1195_v55  ;;  %v1266_v55 = vadd.f32 %v1265_v18, %v1178_v23  ;;  %v9486_v20 = vsub.f32 %v9188_v59, %v9248_v51  ;;  %v1203_v59 = vmul.f32 %v9474_v49, %v9474_v49  ;;  %v15656_v18 = vld [vmem:[#allocation16_spill] sm:$0xff] }
 0x269   :  { %v9504_v15 = vsub.f32 %v15656_v18, %v9300_v57  ;;  %v15660_v18 = vld [vmem:[#allocation27_spill] sm:$0xff] }
 0x26a   :  { %v1239_v37 = vadd.f32 %v1238_v14, %v1197_v61  ;;  %v1182_v61 = vmul.f32 %v9468_v17, %v9468_v17  ;;  %v1267_v14 = vadd.f32 %v1266_v55, %v1180_v25  ;;  %v1205_v41 = vmul.f32 %v9486_v20, %v9486_v20  ;;  %v15658_v55 = vld [vmem:[#allocation17_spill] sm:$0xff] }
 0x26b   :  { %15657 = vst [vmem:[#allocation16_spill] sm:$0xff] %v9504_v15  ;;  %v9516_v17 = vsub.f32 %v15658_v55, %v9300_v57  ;;  %v15663_v55 = vld [vmem:[#allocation28_spill] sm:$0xff] }
 0x26c   :  { %v1240_v21 = vadd.f32 %v1239_v37, %v1199_v39  ;;  %v1184_v39 = vmul.f32 %v9480_v8, %v9480_v8  ;;  %v1268_v37 = vadd.f32 %v1267_v14, %v1182_v61  ;;  %v9522_v8 = vsub.f32 %v15660_v18, %v9248_v51  ;;  %v15661_v14 = vld [vmem:[#allocation18_spill] sm:$0xff] }
 0x26d   :  { %15659 = vst [vmem:[#allocation17_spill] sm:$0xff] %v9516_v17  ;;  %v9528_v11 = vsub.f32 %v15661_v14, %v9300_v57  ;;  %v1190_v18 = vmul.f32 %v9516_v17, %v9516_v17 }
 0x26e   :  { %v1241_v23 = vadd.f32 %v1240_v21, %v1201_v50  ;;  %v1186_v50 = vmul.f32 %v9492_v13, %v9492_v13  ;;  %v1269_v21 = vadd.f32 %v1268_v37, %v1184_v39  ;;  %v9534_v13 = vsub.f32 %v15663_v55, %v9248_v51 }
 0x26f   :  { %15662 = vst [vmem:[#allocation27_spill] sm:$0xff] %v9528_v11  ;;  %v1209_v39 = vmul.f32 %v9510_v53, %v9510_v53  ;;  %v1211_v55 = vmul.f32 %v9522_v8, %v9522_v8 }
 0x270   :  { %v1242_v25 = vadd.f32 %v1241_v23, %v1203_v59  ;;  %v1188_v59 = vmul.f32 %v9504_v15, %v9504_v15  ;;  %v1270_v23 = vadd.f32 %v1269_v21, %v1186_v50  ;;  %v15666_v50 = vld [vmem:[#allocation29_spill] sm:$0xff] }
 0x271   :  { %v9546_v21 = vsub.f32 %v15666_v50, %v9248_v51 }
 0x272   :  { %v1243_v61 = vadd.f32 %v1242_v25, %v1205_v41  ;;  %v15664_v41 = vld [vmem:[#allocation19_spill] sm:$0xff]  ;;  %v1271_v14 = vadd.f32 %v1270_v23, %v1188_v59 }
 0x273   :  { %v9540_v25 = vsub.f32 %v15664_v41, %v9300_v57 }
 0x274   :  { %v1244_v37 = vadd.f32 %v1243_v61, %v1207_v56 }
 0x275   :  { %15665 = vst [vmem:[#allocation18_spill] sm:$0xff] %v9540_v25 }
 0x276   :  { %8679 = shalt.err (!%p8676_p4)  }
 0x277   :  { %45 = dma.hbm_to_vmem [thread:$0]  %s14989_s6, 8192, %s43_s3, [#allocation5]  ;;  %v1245_v56 = vadd.f32 %v1244_v37, %v1209_v39  ;;  %v15667_v61 = vld [vmem:[#allocation20_spill] sm:$0xff]  ;;  %v1192_v23 = vmul.f32 %v9528_v11, %v9528_v11  ;;  %v1272_v41 = vadd.f32 %v1271_v14, %v1190_v18  ;;  %v9561_v50 = vsub.f32 %v9236_v58, %v9248_v51 }
 0x278   :  { %v9555_v59 = vsub.f32 %v15667_v61, %v9300_v57  ;;  %v1213_v17 = vmul.f32 %v9534_v13, %v9534_v13  ;;  %s8688_s18 = scalar_lea.vmem %s55_s14, 28672  ;;  %p8693_p6 = scmp.lt.s32.totalorder %s55_s14, %s55_s14 }
 0x279   :  { %p8689_p5 = scmp.ne.s32.totalorder %s55_s14, %s8688_s18  ;;  %p8694_p7 = scmp.lt.s32.totalorder %s8688_s18, %s8688_s18 }
 0x27a   :  { %15668 = vst [vmem:[#allocation28_spill] sm:$0xff] %v9555_v59 }
 0x27b   :  { %p8695_p8 = por %p8694_p7, %p8693_p6 }
 0x27d   :  { %p8696_p9 = pnand %p8695_p8, %p8689_p5 }
 0x27f   :  { %8699 = shalt.err (!%p8696_p9)  }
 0x280   :  { %57 = dma.hbm_to_vmem [thread:$0]  %s14990_s9, 28672, %s55_s14, [#allocation5 + $0x1]  ;;  %v1246_v39 = vadd.f32 %v1245_v56, %v1211_v55  ;;  %v15669_v37 = vld [vmem:[#allocation21_spill] sm:$0xff]  ;;  %v1194_v58 = vmul.f32 %v9540_v25, %v9540_v25  ;;  %v1273_v51 = vadd.f32 %v1272_v41, %v1192_v23  ;;  %v1215_v14 = vmul.f32 %v9546_v21, %v9546_v21  ;;  %v15671_v11 = vld [vmem:[#allocation22_spill] sm:$0xff]  ;;  %v15673_v7 = vld [vmem:[#allocation23_spill] sm:$0xff] }
 0x281   :  { %v9570_v18 = vsub.f32 %v15669_v37, %v9300_v57  ;;  %v9578_v15 = vsub.f32 %v15671_v11, %v9300_v57  ;;  %v1196_v9 = vmul.f32 %v9555_v59, %v9555_v59  ;;  %v1217_v56 = vmul.f32 %v9561_v50, %v9561_v50  ;;  %v15675_v11 = vld [vmem:[#allocation24_spill] sm:$0xff] }
 0x282   :  { %v1247_v61 = vadd.f32 %v1246_v39, %v1213_v17  ;;  %v1274_v55 = vadd.f32 %v1273_v51, %v1194_v58  ;;  %v9586_v25 = vsub.f32 %v15673_v7, %v9300_v57  ;;  %v9592_v39 = vsub.f32 %v15675_v11, %v9300_v57 }
 0x283   :  { %15670 = vst [vmem:[#allocation19_spill] sm:$0xff] %v9570_v18  ;;  %15672 = vst [vmem:[#allocation29_spill] sm:$0xff] %v9578_v15  ;;  %v1198_v23 = vmul.f32 %v9570_v18, %v9570_v18  ;;  %v1200_v58 = vmul.f32 %v9578_v15, %v9578_v15 }
 0x284   :  { %v1248_v37 = vadd.f32 %v1247_v61, %v1215_v14  ;;  %15674 = vst [vmem:[#allocation20_spill] sm:$0xff] %v9586_v25  ;;  %v1275_v17 = vadd.f32 %v1274_v55, %v1196_v9  ;;  %15676 = vst [vmem:[#allocation21_spill] sm:$0xff] %v9592_v39  ;;  %v15677_v14 = vld [vmem:[#allocation25_spill] sm:$0xff]  ;;  %v1202_v7 = vmul.f32 %v9586_v25, %v9586_v25  ;;  %v15679_v9 = vld [vmem:[#allocation26_spill] sm:$0xff] }
 0x285   :  { %v9598_v61 = vsub.f32 %v15677_v14, %v9300_v57  ;;  %v9604_v55 = vsub.f32 %v15679_v9, %v9300_v57 }
 0x286   :  { %v1249_v41 = vadd.f32 %v1248_v37, %v1217_v56  ;;  %v1276_v51 = vadd.f32 %v1275_v17, %v1198_v23  ;;  %v1204_v56 = vmul.f32 %v9592_v39, %v9592_v39  ;;  %v9610_v23 = vsub.f32 %v9208_v27, %v9300_v57 }
 0x287   :  { %15678 = vst [vmem:[#allocation22_spill] sm:$0xff] %v9598_v61  ;;  %15680 = vst [vmem:[#allocation23_spill] sm:$0xff] %v9604_v55  ;;  %v1206_v17 = vmul.f32 %v9598_v61, %v9598_v61 }
 0x288   :  { %v1250_v59 = vrot.slane %v1249_v41, 4  ;;  %v1277_v48 = vadd.f32 %v1276_v51, %v1200_v58  ;;  %15681 = vst [vmem:[#allocation24_spill] sm:$0xff] %v9610_v23  ;;  %v1210_v27 = vmul.f32 %v9610_v23, %v9610_v23 }
 0x28a   :  { %v1251_v18 = vadd.f32 %v1250_v59, %v1249_v41  ;;  %v1278_v37 = vadd.f32 %v1277_v48, %v1202_v7  ;;  %v9616_v59 = vsub.f32 %v9216_v32, %v9300_v57  ;;  %v1208_v41 = vmul.f32 %v9604_v55, %v9604_v55 }
 0x28b   :  { %v9622_v48 = vsub.f32 %v9224_v40, %v9300_v57 }
 0x28c   :  { %v1252_v11 = vrot.slane %v1251_v18, 2  ;;  %v1279_v14 = vadd.f32 %v1278_v37, %v1204_v56  ;;  %15682 = vst [vmem:[#allocation25_spill] sm:$0xff] %v9616_v59  ;;  %v1212_v32 = vmul.f32 %v9616_v59, %v9616_v59 }
 0x28d   :  { %15683 = vst [vmem:[#allocation26_spill] sm:$0xff] %v9622_v48  ;;  %v1214_v40 = vmul.f32 %v9622_v48, %v9622_v48 }
 0x28e   :  { %v1253_v25 = vadd.f32 %v1252_v11, %v1251_v18  ;;  %v1280_v58 = vadd.f32 %v1279_v14, %v1206_v17  ;;  %v9628_v18 = vsub.f32 %v9232_v52, %v9300_v57  ;;  %v9634_v11 = vsub.f32 %v9244_v54, %v9300_v57 }
 0x290   :  { %v1254_v51 = vrot.slane %v1253_v25, 1  ;;  %v1281_v7 = vadd.f32 %v1280_v58, %v1208_v41  ;;  %15684 = vst [vmem:[#allocation40_spill] sm:$0xff] %v9628_v18  ;;  %15685 = vst [vmem:[#allocation41_spill] sm:$0xff] %v9634_v11  ;;  %v1300_v41 = vlaneseq  ;;  %v1218_v58 = vmul.f32 %v9634_v11, %v9634_v11 }
 0x292   :  { %v1255_v9 = vadd.f32 %v1254_v51, %v1253_v25  ;;  %v1282_v56 = vadd.f32 %v1281_v7, %v1210_v27  ;;  %v1216_v25 = vmul.f32 %v9628_v18, %v9628_v18  ;;  %v9642_v27 = vshrl.u32 %v1300_v41, 7 }
 0x294   :  { %v1293_v37 = vmul.f32 0.00390625, %v1255_v9  ;;  %v1283_v17 = vadd.f32 %v1282_v56, %v1212_v32  ;;  %15686 = vst [vmem:[#allocation42_spill] sm:$0xff] %v9642_v27  ;;  %v9645_v57 = vsub.s32 0, %v9642_v27  ;;  %v9650_v32 = vld [vmem:[%s14995_s4] sm:$0x3] }
 0x296   :  { %v1295_v14 = vadd.f32 1e-05, %v1293_v37  ;;  %v1284_v52 = vadd.f32 %v1283_v17, %v1214_v40  ;;  %15687 = vst [vmem:[#allocation43_spill] sm:$0xff] %v9645_v57  ;;  %v1303_v37 = vrot.slane %v9650_v32, %v9645_v57 }
 0x298   :  { %7769 = vrsqrt.f32 %v1295_v14  ;;  %v1285_v51 = vadd.f32 %v1284_v52, %v1216_v25  ;;  %v9657_v52 = vld [vmem:[%s14996_s5] sm:$0x3] }
 0x29a   :  { %v1286_v7 = vadd.f32 %v1285_v51, %v1218_v58 }
 0x29c   :  { %v1287_v54 = vrot.slane %v1286_v7, 4 }
 0x29e   :  { %v1288_v9 = vadd.f32 %v1287_v54, %v1286_v7  ;;  %v9664_v54 = vrot.slane %v9657_v52, %v9645_v57 }
 0x2a0   :  { %v1289_v56 = vrot.slane %v1288_v9, 2 }
 0x2a2   :  { %v1290_v40 = vadd.f32 %v1289_v56, %v1288_v9 }
 0x2a4   :  { %v1291_v17 = vrot.slane %v1290_v40, 1 }
 0x2a5   :  { %v7770_v14 = vpop.eup %7769 }
 0x2a6   :  { %v1310_v41 = vmul.f32 %v7770_v14, %v1303_v37  ;;  %v1292_v25 = vadd.f32 %v1291_v17, %v1290_v40 }
 0x2a8   :  { %v1315_v58 = vrot.slane %v1310_v41, %v9645_v57  ;;  %v9666_v9 = vmul.f32 0.00390625, %v1292_v25 }
 0x2aa   :  { %v1320_v51 = vmul.f32 %v1315_v58, %v9252_v33  ;;  %v1322_v7 = vmul.f32 %v1315_v58, %v9256_v29  ;;  %v1324_v56 = vmul.f32 %v1315_v58, %v9260_v36  ;;  %v1326_v37 = vmul.f32 %v1315_v58, %v9268_v63 }
 0x2ab   :  { %v1328_v40 = vmul.f32 %v1315_v58, %v9272_v2  ;;  %v1330_v17 = vmul.f32 %v1315_v58, %v9278_v62  ;;  %v1332_v14 = vmul.f32 %v1315_v58, %v9284_v5  ;;  %v1334_v33 = vmul.f32 %v1315_v58, %v9290_v47 }
 0x2ac   :  { %v1336_v29 = vmul.f32 %v1315_v58, %v9296_v46  ;;  %v1338_v41 = vmul.f32 %v1315_v58, %v9304_v31  ;;  %v1340_v39 = vmul.f32 %v1315_v58, %v9310_v60  ;;  %v1342_v25 = vmul.f32 %v1315_v58, %v9324_v1 }
 0x2ad   :  { %v1344_v36 = vmul.f32 %v1315_v58, %v9330_v44  ;;  %v1346_v63 = vmul.f32 %v1315_v58, %v9344_v10  ;;  %v1348_v2 = vmul.f32 %v1315_v58, %v9354_v4  ;;  %v1350_v62 = vmul.f32 %v1315_v58, %v9366_v6 }
 0x2ae   :  { %v1352_v5 = vmul.f32 %v1315_v58, %v9378_v22  ;;  %v1356_v47 = vmul.f32 %v1315_v58, %v9402_v26  ;;  %v1354_v46 = vmul.f32 %v1315_v58, %v9390_v43  ;;  %v1362_v31 = vmul.f32 %v1315_v58, %v9438_v34 }
 0x2af   :  { %v1364_v60 = vmul.f32 %v1315_v58, %v9450_v38  ;;  %v1366_v1 = vmul.f32 %v1315_v58, %v9462_v42  ;;  %v1368_v44 = vmul.f32 %v1315_v58, %v9474_v49  ;;  %v1370_v10 = vmul.f32 %v1315_v58, %v9486_v20 }
 0x2b0   :  { %v1372_v4 = vmul.f32 %v1315_v58, %v9498_v19  ;;  %v1374_v6 = vmul.f32 %v1315_v58, %v9510_v53  ;;  %v1376_v22 = vmul.f32 %v1315_v58, %v9522_v8  ;;  %v1378_v26 = vmul.f32 %v1315_v58, %v9534_v13 }
 0x2b1   :  { %v1380_v43 = vmul.f32 %v1315_v58, %v9546_v21  ;;  %v1382_v34 = vmul.f32 %v1315_v58, %v9561_v50  ;;  %v1358_v38 = vmul.f32 %v1315_v58, %v9414_v28  ;;  %v1360_v42 = vmul.f32 %v1315_v58, %v9426_v30 }
 0x2b2   :  { %v9699_v49 = vadd.f32 %v9664_v54, %v1320_v51  ;;  %v9702_v20 = vadd.f32 %v9664_v54, %v1322_v7  ;;  %v9705_v19 = vadd.f32 %v9664_v54, %v1324_v56  ;;  %v9708_v8 = vadd.f32 %v9664_v54, %v1326_v37 }
 0x2b3   :  { %v9711_v13 = vadd.f32 %v9664_v54, %v1328_v40  ;;  %v9714_v53 = vadd.f32 %v9664_v54, %v1330_v17  ;;  %v9717_v28 = vadd.f32 %v9664_v54, %v1332_v14  ;;  %v9720_v30 = vadd.f32 %v9664_v54, %v1334_v33 }
 0x2b4   :  { %15688 = vst [vmem:[#allocation44_spill] sm:$0xff] %v9699_v49  ;;  %15689 = vst [vmem:[#allocation45_spill] sm:$0xff] %v9702_v20  ;;  %v9723_v21 = vadd.f32 %v9664_v54, %v1336_v29  ;;  %v9726_v50 = vadd.f32 %v9664_v54, %v1338_v41  ;;  %v9729_v58 = vadd.f32 %v9664_v54, %v1340_v39  ;;  %v1296_v24 = vadd.f32 1e-05, %v9666_v9 }
 0x2b5   :  { %15690 = vst [vmem:[#allocation46_spill] sm:$0xff] %v9705_v19  ;;  %15691 = vst [vmem:[#allocation47_spill] sm:$0xff] %v9708_v8  ;;  %v9732_v51 = vadd.f32 %v9664_v54, %v1342_v25  ;;  %v9735_v7 = vadd.f32 %v9664_v54, %v1344_v36  ;;  %v9738_v56 = vadd.f32 %v9664_v54, %v1346_v63 }
 0x2b6   :  { %15692 = vst [vmem:[#allocation48_spill] sm:$0xff] %v9711_v13  ;;  %15693 = vst [vmem:[#allocation49_spill] sm:$0xff] %v9714_v53  ;;  %v9741_v37 = vadd.f32 %v9664_v54, %v1348_v2  ;;  %v9744_v40 = vadd.f32 %v9664_v54, %v1350_v62  ;;  %v9747_v17 = vadd.f32 %v9664_v54, %v1352_v5  ;;  %7771 = vrsqrt.f32 %v1296_v24 }
 0x2b7   :  { %15694 = vst [vmem:[#allocation50_spill] sm:$0xff] %v9717_v28  ;;  %15695 = vst [vmem:[#allocation51_spill] sm:$0xff] %v9720_v30  ;;  %v9750_v39 = vadd.f32 %v9664_v54, %v1354_v46  ;;  %v9753_v14 = vadd.f32 %v9664_v54, %v1356_v47  ;;  %v9756_v33 = vadd.f32 %v9664_v54, %v1358_v38  ;;  %v9819_v38 = vmul.f32 0.2, %v9723_v21 }
 0x2b8   :  { %15696 = vst [vmem:[#allocation52_spill] sm:$0xff] %v9723_v21  ;;  %15697 = vst [vmem:[#allocation53_spill] sm:$0xff] %v9726_v50  ;;  %v9759_v29 = vadd.f32 %v9664_v54, %v1360_v42  ;;  %v9762_v41 = vadd.f32 %v9664_v54, %v1362_v31  ;;  %v9765_v25 = vadd.f32 %v9664_v54, %v1364_v60  ;;  %v9792_v60 = vmul.f32 0.2, %v9699_v49 }
 0x2b9   :  { %15698 = vst [vmem:[#allocation54_spill] sm:$0xff] %v9729_v58  ;;  %15699 = vst [vmem:[#allocation55_spill] sm:$0xff] %v9732_v51  ;;  %v9768_v36 = vadd.f32 %v9664_v54, %v1366_v1  ;;  %v9771_v63 = vadd.f32 %v9664_v54, %v1368_v44  ;;  %v9774_v2 = vadd.f32 %v9664_v54, %v1370_v10  ;;  %v9795_v1 = vmul.f32 0.2, %v9702_v20 }
 0x2ba   :  { %15700 = vst [vmem:[#allocation56_spill] sm:$0xff] %v9735_v7  ;;  %15701 = vst [vmem:[#allocation57_spill] sm:$0xff] %v9738_v56  ;;  %v9777_v62 = vadd.f32 %v9664_v54, %v1372_v4  ;;  %v9780_v5 = vadd.f32 %v9664_v54, %v1374_v6  ;;  %v9783_v47 = vadd.f32 %v9664_v54, %v1376_v22  ;;  %v9798_v44 = vmul.f32 0.2, %v9705_v19 }
 0x2bb   :  { %15702 = vst [vmem:[#allocation58_spill] sm:$0xff] %v9741_v37  ;;  %15703 = vst [vmem:[#allocation59_spill] sm:$0xff] %v9744_v40  ;;  %v9786_v46 = vadd.f32 %v9664_v54, %v1378_v26  ;;  %v9789_v31 = vadd.f32 %v9664_v54, %v1380_v43  ;;  %v9801_v10 = vadd.f32 %v9664_v54, %v1382_v34  ;;  %v9804_v4 = vmul.f32 0.2, %v9708_v8 }
 0x2bc   :  { %15704 = vst [vmem:[#allocation60_spill] sm:$0xff] %v9747_v17  ;;  %15705 = vst [vmem:[#allocation61_spill] sm:$0xff] %v9750_v39  ;;  %v9807_v6 = vmul.f32 0.2, %v9711_v13  ;;  %v9810_v22 = vmul.f32 0.2, %v9714_v53 }
 0x2bd   :  { %15706 = vst [vmem:[#allocation62_spill] sm:$0xff] %v9753_v14  ;;  %15707 = vst [vmem:[#allocation63_spill] sm:$0xff] %v9756_v33  ;;  %v9813_v26 = vmul.f32 0.2, %v9717_v28  ;;  %v9816_v43 = vmul.f32 0.2, %v9720_v30 }
 0x2be   :  { %15708 = vst [vmem:[#allocation64_spill] sm:$0xff] %v9759_v29  ;;  %15709 = vst [vmem:[#allocation65_spill] sm:$0xff] %v9762_v41  ;;  %v9824_v34 = vmul.f32 0.2, %v9726_v50  ;;  %v9827_v42 = vmul.f32 0.2, %v9729_v58 }
 0x2bf   :  { %15710 = vst [vmem:[#allocation66_spill] sm:$0xff] %v9765_v25  ;;  %15711 = vst [vmem:[#allocation67_spill] sm:$0xff] %v9768_v36  ;;  %v9830_v11 = vmul.f32 0.2, %v9732_v51  ;;  %v9835_v48 = vmul.f32 0.2, %v9735_v7 }
 0x2c0   :  { %15712 = vst [vmem:[#allocation68_spill] sm:$0xff] %v9771_v63  ;;  %15713 = vst [vmem:[#allocation69_spill] sm:$0xff] %v9774_v2  ;;  %v9838_v59 = vmul.f32 0.2, %v9738_v56  ;;  %v9841_v54 = vmul.f32 0.2, %v9741_v37 }
 0x2c1   :  { %15714 = vst [vmem:[#allocation70_spill] sm:$0xff] %v9777_v62  ;;  %15715 = vst [vmem:[#allocation71_spill] sm:$0xff] %v9780_v5  ;;  %v9846_v49 = vmul.f32 0.2, %v9744_v40  ;;  %v9849_v23 = vmul.f32 0.2, %v9747_v17 }
 0x2c2   :  { %15716 = vst [vmem:[#allocation72_spill] sm:$0xff] %v9783_v47  ;;  %15717 = vst [vmem:[#allocation73_spill] sm:$0xff] %v9786_v46  ;;  %v9852_v18 = vmul.f32 0.2, %v9750_v39  ;;  %v9857_v20 = vmul.f32 0.2, %v9753_v14 }
 0x2c3   :  { %15718 = vst [vmem:[#allocation74_spill] sm:$0xff] %v9789_v31  ;;  %15719 = vst [vmem:[#allocation75_spill] sm:$0xff] %v9792_v60  ;;  %v9860_v55 = vmul.f32 0.2, %v9756_v33  ;;  %v9863_v60 = vmul.f32 0.2, %v9759_v29 }
 0x2c4   :  { %15720 = vst [vmem:[#allocation76_spill] sm:$0xff] %v9795_v1  ;;  %15721 = vst [vmem:[#allocation77_spill] sm:$0xff] %v9798_v44  ;;  %v9868_v19 = vmul.f32 0.2, %v9762_v41  ;;  %v9871_v61 = vmul.f32 0.2, %v9765_v25 }
 0x2c5   :  { %15722 = vst [vmem:[#allocation78_spill] sm:$0xff] %v9801_v10  ;;  %15723 = vst [vmem:[#allocation79_spill] sm:$0xff] %v9804_v4  ;;  %v9874_v1 = vmul.f32 0.2, %v9768_v36  ;;  %v9879_v8 = vmul.f32 0.2, %v9771_v63 }
 0x2c6   :  { %15724 = vst [vmem:[#allocation80_spill] sm:$0xff] %v9807_v6  ;;  %15725 = vst [vmem:[#allocation81_spill] sm:$0xff] %v9810_v22  ;;  %v9882_v15 = vmul.f32 0.2, %v9774_v2  ;;  %v9885_v44 = vmul.f32 0.2, %v9777_v62 }
 0x2c7   :  { %15726 = vst [vmem:[#allocation82_spill] sm:$0xff] %v9813_v26  ;;  %15727 = vst [vmem:[#allocation83_spill] sm:$0xff] %v9816_v43  ;;  %v9890_v13 = vmul.f32 0.2, %v9780_v5  ;;  %v9893_v45 = vmul.f32 0.2, %v9783_v47 }
 0x2c8   :  { %15728 = vst [vmem:[#allocation84_spill] sm:$0xff] %v9819_v38  ;;  %15729 = vst [vmem:[#allocation85_spill] sm:$0xff] %v9824_v34  ;;  %v9896_v4 = vmul.f32 0.2, %v9786_v46  ;;  %v9901_v53 = vmul.f32 0.2, %v9789_v31 }
 0x2c9   :  { %15730 = vst [vmem:[#allocation86_spill] sm:$0xff] %v9827_v42  ;;  %15731 = vst [vmem:[#allocation87_spill] sm:$0xff] %v9830_v11  ;;  %v9904_v0 = vmul.f32 0.2, %v9801_v10  ;;  %v9956_v22 = vsub.s32 1, %v9642_v27  ;;  %v15753_v27 = vld [vmem:[#allocation30_spill] sm:$0xff] }
 0x2ca   :  { %15732 = vst [vmem:[#allocation88_spill] sm:$0xff] %v9835_v48  ;;  %15733 = vst [vmem:[#allocation89_spill] sm:$0xff] %v9838_v59  ;;  %v15754_v10 = vld [vmem:[#allocation31_spill] sm:$0xff]  ;;  %v15761_v47 = vld [vmem:[#allocation38_spill] sm:$0xff] }
 0x2cb   :  { %15734 = vst [vmem:[#allocation90_spill] sm:$0xff] %v9841_v54  ;;  %15735 = vst [vmem:[#allocation91_spill] sm:$0xff] %v9846_v49  ;;  %v1307_v43 = vrot.slane %v9650_v32, %v9956_v22  ;;  %v9965_v28 = vrot.slane %v9657_v52, %v9956_v22  ;;  %v15758_v31 = vld [vmem:[#allocation35_spill] sm:$0xff]  ;;  %v15760_v52 = vld [vmem:[#allocation37_spill] sm:$0xff] }
 0x2cc   :  { %15736 = vst [vmem:[#allocation92_spill] sm:$0xff] %v9849_v23  ;;  %15737 = vst [vmem:[#allocation93_spill] sm:$0xff] %v9852_v18  ;;  %v15762_v5 = vld [vmem:[#allocation39_spill] sm:$0xff]  ;;  %v15768_v63 = vld [vmem:[#allocation18_spill] sm:$0xff] }
 0x2cd   :  { %15738 = vst [vmem:[#allocation94_spill] sm:$0xff] %v9857_v20  ;;  %15739 = vst [vmem:[#allocation95_spill] sm:$0xff] %v9860_v55  ;;  %v15764_v62 = vld [vmem:[#allocation15_spill] sm:$0xff]  ;;  %v15772_v25 = vld [vmem:[#allocation22_spill] sm:$0xff] }
 0x2ce   :  { %15740 = vst [vmem:[#allocation96_spill] sm:$0xff] %v9863_v60  ;;  %15741 = vst [vmem:[#allocation97_spill] sm:$0xff] %v9868_v19  ;;  %v15766_v2 = vld [vmem:[#allocation27_spill] sm:$0xff]  ;;  %v15774_v41 = vld [vmem:[#allocation24_spill] sm:$0xff] }
 0x2cf   :  { %15742 = vst [vmem:[#allocation98_spill] sm:$0xff] %v9871_v61  ;;  %15743 = vst [vmem:[#allocation99_spill] sm:$0xff] %v9874_v1  ;;  %v15769_v1 = vld [vmem:[#allocation28_spill] sm:$0xff]  ;;  %v15770_v36 = vld [vmem:[#allocation19_spill] sm:$0xff] }
 0x2d0   :  { %15744 = vst [vmem:[#allocation100_spill] sm:$0xff] %v9879_v8  ;;  %15745 = vst [vmem:[#allocation101_spill] sm:$0xff] %v9882_v15  ;;  %v15765_v15 = vld [vmem:[#allocation16_spill] sm:$0xff]  ;;  %v15767_v8 = vld [vmem:[#allocation17_spill] sm:$0xff] }
 0x2d1   :  { %15746 = vst [vmem:[#allocation102_spill] sm:$0xff] %v9885_v44  ;;  %15747 = vst [vmem:[#allocation103_spill] sm:$0xff] %v9890_v13  ;;  %v7772_v13 = vpop.eup %7771  ;;  %v15763_v44 = vld [vmem:[#allocation14_spill] sm:$0xff]  ;;  %v15771_v61 = vld [vmem:[#allocation29_spill] sm:$0xff] }
 0x2d2   :  { %15748 = vst [vmem:[#allocation104_spill] sm:$0xff] %v9893_v45  ;;  %15749 = vst [vmem:[#allocation105_spill] sm:$0xff] %v9896_v4  ;;  %v1311_v30 = vmul.f32 %v7772_v13, %v1307_v43  ;;  %v15756_v43 = vld [vmem:[#allocation33_spill] sm:$0xff]  ;;  %v15759_v4 = vld [vmem:[#allocation36_spill] sm:$0xff] }
 0x2d3   :  { %15750 = vst [vmem:[#allocation106_spill] sm:$0xff] %v9901_v53  ;;  %15751 = vst [vmem:[#allocation107_spill] sm:$0xff] %v9904_v0  ;;  %v15755_v53 = vld [vmem:[#allocation32_spill] sm:$0xff]  ;;  %v15773_v19 = vld [vmem:[#allocation23_spill] sm:$0xff] }
 0x2d4   :  { %15752 = vst [vmem:[#allocation108_spill] sm:$0xff] %v9956_v22  ;;  %v1319_v45 = vrot.slane %v1311_v30, %v9645_v57  ;;  %v15757_v57 = vld [vmem:[#allocation34_spill] sm:$0xff]  ;;  %v15775_v60 = vld [vmem:[#allocation25_spill] sm:$0xff]  ;;  %v15777_v55 = vld [vmem:[#allocation40_spill] sm:$0xff] }
 0x2d5   :  { %v15776_v29 = vld [vmem:[#allocation26_spill] sm:$0xff]  ;;  %v15778_v33 = vld [vmem:[#allocation41_spill] sm:$0xff]  ;;  %v15779_v20 = vld [vmem:[#allocation20_spill] sm:$0xff] }
 0x2d6   :  { %v1321_v6 = vmul.f32 %v1319_v45, %v9316_v35  ;;  %v1323_v26 = vmul.f32 %v1319_v45, %v9320_v16  ;;  %v1325_v24 = vmul.f32 %v1319_v45, %v9336_v3  ;;  %v1327_v9 = vmul.f32 %v1319_v45, %v9350_v12  ;;  %v15780_v14 = vld [vmem:[#allocation21_spill] sm:$0xff] }
 0x2d7   :  { %v1329_v0 = vmul.f32 %v1319_v45, %v15753_v27  ;;  %v1331_v32 = vmul.f32 %v1319_v45, %v15754_v10  ;;  %v1333_v13 = vmul.f32 %v1319_v45, %v15755_v53  ;;  %v1335_v30 = vmul.f32 %v1319_v45, %v15756_v43 }
 0x2d8   :  { %v1337_v35 = vmul.f32 %v1319_v45, %v15757_v57  ;;  %v1339_v16 = vmul.f32 %v1319_v45, %v15758_v31  ;;  %v1341_v46 = vmul.f32 %v1319_v45, %v15759_v4  ;;  %v1343_v22 = vmul.f32 %v1319_v45, %v15760_v52 }
 0x2d9   :  { %v1345_v3 = vmul.f32 %v1319_v45, %v15761_v47  ;;  %v1347_v12 = vmul.f32 %v1319_v45, %v15762_v5  ;;  %v1349_v27 = vmul.f32 %v1319_v45, %v15763_v44  ;;  %v1351_v10 = vmul.f32 %v1319_v45, %v15764_v62 }
 0x2da   :  { %v1353_v53 = vmul.f32 %v1319_v45, %v15765_v15  ;;  %v1357_v43 = vmul.f32 %v1319_v45, %v15766_v2  ;;  %v1355_v57 = vmul.f32 %v1319_v45, %v15767_v8  ;;  %v1359_v31 = vmul.f32 %v1319_v45, %v15768_v63 }
 0x2db   :  { %v1361_v4 = vmul.f32 %v1319_v45, %v15769_v1  ;;  %v1363_v52 = vmul.f32 %v1319_v45, %v15770_v36  ;;  %v1365_v47 = vmul.f32 %v1319_v45, %v15771_v61  ;;  %v1371_v5 = vmul.f32 %v1319_v45, %v15772_v25 }
 0x2dc   :  { %v1373_v44 = vmul.f32 %v1319_v45, %v15773_v19  ;;  %v1375_v62 = vmul.f32 %v1319_v45, %v15774_v41  ;;  %v1377_v15 = vmul.f32 %v1319_v45, %v15775_v60  ;;  %v1379_v2 = vmul.f32 %v1319_v45, %v15776_v29 }
 0x2dd   :  { %v1381_v8 = vmul.f32 %v1319_v45, %v15777_v55  ;;  %v1383_v63 = vmul.f32 %v1319_v45, %v15778_v33  ;;  %v1367_v1 = vmul.f32 %v1319_v45, %v15779_v20  ;;  %v1369_v36 = vmul.f32 %v1319_v45, %v15780_v14 }
 0x2de   :  { %v9998_v61 = vadd.f32 %v9965_v28, %v1321_v6  ;;  %v10001_v25 = vadd.f32 %v9965_v28, %v1323_v26  ;;  %v10004_v19 = vadd.f32 %v9965_v28, %v1325_v24  ;;  %v10007_v41 = vadd.f32 %v9965_v28, %v1327_v9 }
 0x2df   :  { %v10010_v55 = vadd.f32 %v9965_v28, %v1329_v0  ;;  %v10013_v33 = vadd.f32 %v9965_v28, %v1331_v32  ;;  %v10016_v45 = vadd.f32 %v9965_v28, %v1333_v13  ;;  %v10019_v20 = vadd.f32 %v9965_v28, %v1335_v30 }
 0x2e0   :  { %v10022_v14 = vadd.f32 %v9965_v28, %v1337_v35  ;;  %v10025_v29 = vadd.f32 %v9965_v28, %v1339_v16  ;;  %v10028_v60 = vadd.f32 %v9965_v28, %v1341_v46  ;;  %v10031_v0 = vadd.f32 %v9965_v28, %v1343_v22 }
 0x2e1   :  { %15781 = vst [vmem:[#allocation30_spill] sm:$0xff] %v10016_v45  ;;  %15782 = vst [vmem:[#allocation31_spill] sm:$0xff] %v10019_v20  ;;  %v10034_v6 = vadd.f32 %v9965_v28, %v1345_v3  ;;  %v10037_v26 = vadd.f32 %v9965_v28, %v1347_v12  ;;  %v10040_v24 = vadd.f32 %v9965_v28, %v1349_v27 }
 0x2e2   :  { %v10043_v9 = vadd.f32 %v9965_v28, %v1351_v10  ;;  %v10046_v32 = vadd.f32 %v9965_v28, %v1353_v53  ;;  %v10049_v46 = vadd.f32 %v9965_v28, %v1355_v57  ;;  %v10052_v22 = vadd.f32 %v9965_v28, %v1357_v43 }
 0x2e3   :  { %v10055_v13 = vadd.f32 %v9965_v28, %v1359_v31  ;;  %v10058_v30 = vadd.f32 %v9965_v28, %v1361_v4  ;;  %v10061_v35 = vadd.f32 %v9965_v28, %v1363_v52  ;;  %v10064_v16 = vadd.f32 %v9965_v28, %v1365_v47 }
 0x2e4   :  { %v10067_v3 = vadd.f32 %v9965_v28, %v1367_v1  ;;  %v10070_v12 = vadd.f32 %v9965_v28, %v1369_v36  ;;  %v10073_v27 = vadd.f32 %v9965_v28, %v1371_v5  ;;  %v10076_v10 = vadd.f32 %v9965_v28, %v1373_v44 }
 0x2e5   :  { %v10079_v53 = vadd.f32 %v9965_v28, %v1375_v62  ;;  %v10082_v43 = vadd.f32 %v9965_v28, %v1377_v15  ;;  %v10085_v57 = vadd.f32 %v9965_v28, %v1379_v2  ;;  %v10088_v31 = vadd.f32 %v9965_v28, %v1381_v8 }
 0x2e6   :  { %v10091_v4 = vmul.f32 0.2, %v9998_v61  ;;  %v10094_v52 = vmul.f32 0.2, %v10001_v25  ;;  %v10097_v47 = vmul.f32 0.2, %v10004_v19  ;;  %v10100_v5 = vadd.f32 %v9965_v28, %v1383_v63 }
 0x2e7   :  { %15783 = vst [vmem:[#allocation32_spill] sm:$0xff] %v10088_v31  ;;  %v10103_v44 = vmul.f32 0.2, %v10007_v41  ;;  %v10106_v62 = vmul.f32 0.2, %v10010_v55 }
 0x2e8   :  { %15784 = vst [vmem:[#allocation33_spill] sm:$0xff] %v10100_v5  ;;  %v10109_v15 = vmul.f32 0.2, %v10013_v33  ;;  %v10112_v2 = vmul.f32 0.2, %v10016_v45  ;;  %v1524_v28 = vmax.f32 %v9998_v61, %v10091_v4  ;;  %v1526_v39 = vmax.f32 %v10001_v25, %v10094_v52 }
 0x2e9   :  { %v10115_v8 = vmul.f32 0.2, %v10019_v20  ;;  %v10118_v1 = vmul.f32 0.2, %v10022_v14  ;;  %v10123_v63 = vmul.f32 0.2, %v10025_v29 }
 0x2ea   :  { %15785 = vst [vmem:[#allocation34_spill] sm:$0xff] %v10109_v15  ;;  %15786 = vst [vmem:[#allocation35_spill] sm:$0xff] %v10112_v2  ;;  %v10126_v36 = vmul.f32 0.2, %v10028_v60  ;;  %v10129_v18 = vmul.f32 0.2, %v10031_v0 }
 0x2eb   :  { %15787 = vst [vmem:[#allocation36_spill] sm:$0xff] %v10115_v8  ;;  %v10134_v23 = vmul.f32 0.2, %v10034_v6  ;;  %v10137_v17 = vmul.f32 0.2, %v10037_v26 }
 0x2ec   :  { %v10140_v61 = vmul.f32 0.2, %v10040_v24  ;;  %v10145_v49 = vmul.f32 0.2, %v10043_v9  ;;  %v10148_v40 = vmul.f32 0.2, %v10046_v32 }
 0x2ed   :  { %v10151_v25 = vmul.f32 0.2, %v10049_v46  ;;  %v10156_v54 = vmul.f32 0.2, %v10052_v22  ;;  %v10159_v37 = vmul.f32 0.2, %v10055_v13 }
 0x2ee   :  { %v10162_v4 = vmul.f32 0.2, %v10058_v30  ;;  %v10167_v56 = vmul.f32 0.2, %v10061_v35  ;;  %v10170_v48 = vmul.f32 0.2, %v10064_v16 }
 0x2ef   :  { %v10173_v52 = vmul.f32 0.2, %v10067_v3  ;;  %v10178_v11 = vmul.f32 0.2, %v10070_v12  ;;  %v10181_v51 = vmul.f32 0.2, %v10073_v27 }
 0x2f0   :  { %v10184_v59 = vmul.f32 0.2, %v10076_v10  ;;  %v10189_v58 = vmul.f32 0.2, %v10079_v53  ;;  %v10192_v34 = vmul.f32 0.2, %v10082_v43 }
 0x2f1   :  { %v10195_v7 = vmul.f32 0.2, %v10085_v57  ;;  %v10200_v38 = vmul.f32 0.2, %v10088_v31  ;;  %v10203_v21 = vmul.f32 0.2, %v10100_v5 }
 0x2f2   :  { %15788 = vst [vmem:[#allocation37_spill] sm:$0xff] %v10184_v59  ;;  %15789 = vst [vmem:[#allocation38_spill] sm:$0xff] %v10189_v58 }
 0x2f3   :  { %15790 = vst [vmem:[#allocation39_spill] sm:$0xff] %v10195_v7  ;;  %15791 = vst [vmem:[#allocation14_spill] sm:$0xff] %v10200_v38 }
 0x2f4   :  { %15792 = vst [vmem:[#allocation15_spill] sm:$0xff] %v10203_v21 }
 0x2f5   :  { %8700 = dma.done.wait [#allocation5], 8192 }
 0x2f6   :  { %8701 = vsyncadd [#allocation5], 4294959104  ;;  %v1592_v15 = vpack.c.bf16 %v1526_v39, %v1524_v28  ;;  %v7773_v50 = vld [vmem:[#allocation3 + $0xe4] ss:$16 sps:$4 sm:$0xff]   ;;  %v7775_v59 = vld [vmem:[#allocation3 + $0xec] ss:$16 sps:$4 sm:$0xff]  }
 0x2f7   :  { %2007 = vmatprep.subr.bf16.mxu0 %v7773_v50  ;;  %v7777_v8 = vld [vmem:[#allocation3 + $0xe0] ss:$16 sps:$4 sm:$0xff]   ;;  %v7778_v58 = vld [vmem:[#allocation3 + $0xe8] ss:$16 sps:$4 sm:$0xff]   ;;  %2200 = vmatprep.subr.bf16.mxu1 %v7775_v59  ;;  %v7779_v20 = vld [vmem:[#allocation3 + $0xc4] ss:$16 sps:$4 sm:$0xff]  }
 0x2f8   :  { %2039 = vmatprep.mubr.bf16.mxu0 %v1592_v15  ;;  %2232 = vmatprep.mubr.bf16.mxu1 %v1592_v15  ;;  %v7781_v42 = vld [vmem:[#allocation3 + $0xcc] ss:$16 sps:$4 sm:$0xff]   ;;  %v7783_v7 = vld [vmem:[#allocation3 + $0xc0] ss:$16 sps:$4 sm:$0xff]   ;;  %v7784_v2 = vld [vmem:[#allocation3 + $0xc8] ss:$16 sps:$4 sm:$0xff]  }
 0x2f9   :  { %2008 = vmatpush1.bf16.msra.mxu0 %v7777_v8  ;;  %2201 = vmatpush1.bf16.msra.mxu1 %v7778_v58  ;;  %v7785_v45 = vld [vmem:[#allocation3 + $0xa4] ss:$16 sps:$4 sm:$0xff]   ;;  %v7787_v21 = vld [vmem:[#allocation3 + $0xac] ss:$16 sps:$4 sm:$0xff]   ;;  %v7789_v5 = vld [vmem:[#allocation3 + $0xa0] ss:$16 sps:$4 sm:$0xff]  }
 0x2fa   :  { %2009 = vmatprep.subr.bf16.mxu0 %v7779_v20  ;;  %2202 = vmatprep.subr.bf16.mxu1 %v7781_v42  ;;  %v7790_v39 = vld [vmem:[#allocation3 + $0xa8] ss:$16 sps:$4 sm:$0xff]   ;;  %v7791_v15 = vld [vmem:[#allocation3 + $0x84] ss:$16 sps:$4 sm:$0xff]   ;;  %v7793_v50 = vld [vmem:[#allocation3 + $0x8c] ss:$16 sps:$4 sm:$0xff]  }
 0x2fb   :  { %v7795_v28 = vld [vmem:[#allocation3 + $0x80] ss:$16 sps:$4 sm:$0xff]   ;;  %v7796_v59 = vld [vmem:[#allocation3 + $0x88] ss:$16 sps:$4 sm:$0xff]   ;;  %v7797_v58 = vld [vmem:[#allocation3 + $0x64] ss:$16 sps:$4 sm:$0xff]  }
 0x2fc   :  { %v7799_v20 = vld [vmem:[#allocation3 + $0x6c] ss:$16 sps:$4 sm:$0xff]   ;;  %v7801_v8 = vld [vmem:[#allocation3 + $0x60] ss:$16 sps:$4 sm:$0xff]   ;;  %v7802_v42 = vld [vmem:[#allocation3 + $0x68] ss:$16 sps:$4 sm:$0xff]  }
 0x2fd   :  { %2010 = vmatpush1.bf16.msra.mxu0 %v7783_v7  ;;  %2203 = vmatpush1.bf16.msra.mxu1 %v7784_v2  ;;  %v7803_v38 = vld [vmem:[#allocation3 + $0x44] ss:$16 sps:$4 sm:$0xff]   ;;  %v7805_v7 = vld [vmem:[#allocation3 + $0x4c] ss:$16 sps:$4 sm:$0xff]   ;;  %v7807_v2 = vld [vmem:[#allocation3 + $0x40] ss:$16 sps:$4 sm:$0xff]  }
 0x2fe   :  { %2011 = vmatprep.subr.bf16.mxu0 %v7785_v45  ;;  %2204 = vmatprep.subr.bf16.mxu1 %v7787_v21  ;;  %v7808_v21 = vld [vmem:[#allocation3 + $0x48] ss:$16 sps:$4 sm:$0xff]   ;;  %v7809_v45 = vld [vmem:[#allocation3 + $0x24] ss:$16 sps:$4 sm:$0xff]  }
 0x301   :  { %2012 = vmatpush1.bf16.msra.mxu0 %v7789_v5  ;;  %2205 = vmatpush1.bf16.msra.mxu1 %v7790_v39  ;;  %v7811_v5 = vld [vmem:[#allocation3 + $0x2c] ss:$16 sps:$4 sm:$0xff]   ;;  %v7813_v39 = vld [vmem:[#allocation3 + $0x20] ss:$16 sps:$4 sm:$0xff]  }
 0x302   :  { %2013 = vmatprep.subr.bf16.mxu0 %v7791_v15  ;;  %2206 = vmatprep.subr.bf16.mxu1 %v7793_v50  ;;  %v7814_v15 = vld [vmem:[#allocation3 + $0x28] ss:$16 sps:$4 sm:$0xff]   ;;  %v7815_v50 = vld [vmem:[#allocation3 + $0x4] ss:$16 sps:$4 sm:$0xff]  }
 0x305   :  { %2014 = vmatpush1.bf16.msra.mxu0 %v7795_v28  ;;  %2207 = vmatpush1.bf16.msra.mxu1 %v7796_v59  ;;  %v7817_v28 = vld [vmem:[#allocation3 + $0xc] ss:$16 sps:$4 sm:$0xff]   ;;  %v7819_v59 = vld [vmem:[#allocation3] ss:$16 sps:$4 sm:$0xff]  }
 0x306   :  { %2015 = vmatprep.subr.bf16.mxu0 %v7797_v58  ;;  %2208 = vmatprep.subr.bf16.mxu1 %v7799_v20  ;;  %v7820_v58 = vld [vmem:[#allocation3 + $0x8] ss:$16 sps:$4 sm:$0xff]   ;;  %v7821_v20 = vld [vmem:[#allocation3 + $0x1e4] ss:$16 sps:$4 sm:$0xff]  }
 0x309   :  { %2016 = vmatpush1.bf16.msra.mxu0 %v7801_v8  ;;  %2209 = vmatpush1.bf16.msra.mxu1 %v7802_v42  ;;  %v7823_v8 = vld [vmem:[#allocation3 + $0x1ec] ss:$16 sps:$4 sm:$0xff]   ;;  %v7825_v42 = vld [vmem:[#allocation3 + $0x1e0] ss:$16 sps:$4 sm:$0xff]  }
 0x30a   :  { %2017 = vmatprep.subr.bf16.mxu0 %v7803_v38  ;;  %2210 = vmatprep.subr.bf16.mxu1 %v7805_v7  ;;  %v7826_v38 = vld [vmem:[#allocation3 + $0x1e8] ss:$16 sps:$4 sm:$0xff]   ;;  %v7827_v7 = vld [vmem:[#allocation3 + $0x1c4] ss:$16 sps:$4 sm:$0xff]  }
 0x30d   :  { %2018 = vmatpush1.bf16.msra.mxu0 %v7807_v2  ;;  %2211 = vmatpush1.bf16.msra.mxu1 %v7808_v21  ;;  %v7829_v2 = vld [vmem:[#allocation3 + $0x1cc] ss:$16 sps:$4 sm:$0xff]   ;;  %v7831_v21 = vld [vmem:[#allocation3 + $0x1c0] ss:$16 sps:$4 sm:$0xff]  }
 0x30e   :  { %2019 = vmatprep.subr.bf16.mxu0 %v7809_v45  ;;  %2212 = vmatprep.subr.bf16.mxu1 %v7811_v5  ;;  %v7832_v45 = vld [vmem:[#allocation3 + $0x1c8] ss:$16 sps:$4 sm:$0xff]   ;;  %v7833_v5 = vld [vmem:[#allocation3 + $0x1a4] ss:$16 sps:$4 sm:$0xff]  }
 0x311   :  { %2020 = vmatpush1.bf16.msra.mxu0 %v7813_v39  ;;  %2213 = vmatpush1.bf16.msra.mxu1 %v7814_v15  ;;  %v7835_v39 = vld [vmem:[#allocation3 + $0x1ac] ss:$16 sps:$4 sm:$0xff]   ;;  %v7837_v15 = vld [vmem:[#allocation3 + $0x1a0] ss:$16 sps:$4 sm:$0xff]  }
 0x312   :  { %2021 = vmatprep.subr.bf16.mxu0 %v7815_v50  ;;  %2214 = vmatprep.subr.bf16.mxu1 %v7817_v28  ;;  %v7838_v50 = vld [vmem:[#allocation3 + $0x1a8] ss:$16 sps:$4 sm:$0xff]   ;;  %v7839_v28 = vld [vmem:[#allocation3 + $0x184] ss:$16 sps:$4 sm:$0xff]  }
 0x315   :  { %2022 = vmatpush1.bf16.msra.mxu0 %v7819_v59  ;;  %2215 = vmatpush1.bf16.msra.mxu1 %v7820_v58  ;;  %v7841_v59 = vld [vmem:[#allocation3 + $0x18c] ss:$16 sps:$4 sm:$0xff]   ;;  %v7843_v58 = vld [vmem:[#allocation3 + $0x180] ss:$16 sps:$4 sm:$0xff]  }
 0x316   :  { %2023 = vmatprep.subr.bf16.mxu0 %v7821_v20  ;;  %2216 = vmatprep.subr.bf16.mxu1 %v7823_v8  ;;  %v7844_v20 = vld [vmem:[#allocation3 + $0x188] ss:$16 sps:$4 sm:$0xff]   ;;  %v7845_v8 = vld [vmem:[#allocation3 + $0x164] ss:$16 sps:$4 sm:$0xff]  }
 0x319   :  { %2024 = vmatpush2.bf16.msra.mxu0 %v7825_v42  ;;  %2217 = vmatpush2.bf16.msra.mxu1 %v7826_v38  ;;  %v7847_v42 = vld [vmem:[#allocation3 + $0x16c] ss:$16 sps:$4 sm:$0xff]   ;;  %v7849_v38 = vld [vmem:[#allocation3 + $0x160] ss:$16 sps:$4 sm:$0xff]  }
 0x31a   :  { %2025 = vmatprep.subr.bf16.mxu0 %v7827_v7  ;;  %2218 = vmatprep.subr.bf16.mxu1 %v7829_v2  ;;  %v7850_v7 = vld [vmem:[#allocation3 + $0x168] ss:$16 sps:$4 sm:$0xff]   ;;  %v7851_v2 = vld [vmem:[#allocation3 + $0x144] ss:$16 sps:$4 sm:$0xff]  }
 0x31d   :  { %2026 = vmatpush2.bf16.msra.mxu0 %v7831_v21  ;;  %2219 = vmatpush2.bf16.msra.mxu1 %v7832_v45  ;;  %v7853_v21 = vld [vmem:[#allocation3 + $0x14c] ss:$16 sps:$4 sm:$0xff]   ;;  %v7855_v45 = vld [vmem:[#allocation3 + $0x140] ss:$16 sps:$4 sm:$0xff]  }
 0x31e   :  { %2027 = vmatprep.subr.bf16.mxu0 %v7833_v5  ;;  %2220 = vmatprep.subr.bf16.mxu1 %v7835_v39  ;;  %v7856_v5 = vld [vmem:[#allocation3 + $0x148] ss:$16 sps:$4 sm:$0xff]   ;;  %v7857_v39 = vld [vmem:[#allocation3 + $0x124] ss:$16 sps:$4 sm:$0xff]  }
 0x321   :  { %2028 = vmatpush2.bf16.msra.mxu0 %v7837_v15  ;;  %2221 = vmatpush2.bf16.msra.mxu1 %v7838_v50  ;;  %v7859_v15 = vld [vmem:[#allocation3 + $0x12c] ss:$16 sps:$4 sm:$0xff]   ;;  %v7861_v50 = vld [vmem:[#allocation3 + $0x120] ss:$16 sps:$4 sm:$0xff]  }
 0x322   :  { %2029 = vmatprep.subr.bf16.mxu0 %v7839_v28  ;;  %2222 = vmatprep.subr.bf16.mxu1 %v7841_v59  ;;  %v7862_v28 = vld [vmem:[#allocation3 + $0x128] ss:$16 sps:$4 sm:$0xff]   ;;  %v7863_v59 = vld [vmem:[#allocation3 + $0x104] ss:$16 sps:$4 sm:$0xff]  }
 0x325   :  { %2030 = vmatpush2.bf16.msra.mxu0 %v7843_v58  ;;  %2223 = vmatpush2.bf16.msra.mxu1 %v7844_v20  ;;  %v7865_v58 = vld [vmem:[#allocation3 + $0x10c] ss:$16 sps:$4 sm:$0xff]   ;;  %v7867_v20 = vld [vmem:[#allocation3 + $0x100] ss:$16 sps:$4 sm:$0xff]  }
 0x326   :  { %2031 = vmatprep.subr.bf16.mxu0 %v7845_v8  ;;  %2224 = vmatprep.subr.bf16.mxu1 %v7847_v42  ;;  %v7868_v8 = vld [vmem:[#allocation3 + $0x108] ss:$16 sps:$4 sm:$0xff]   ;;  %v15793_v42 = vld [vmem:[#allocation44_spill] sm:$0xff] }
 0x329   :  { %2032 = vmatpush2.bf16.msra.mxu0 %v7849_v38  ;;  %2225 = vmatpush2.bf16.msra.mxu1 %v7850_v7  ;;  %v15794_v38 = vld [vmem:[#allocation75_spill] sm:$0xff] }
 0x32a   :  { %2033 = vmatprep.subr.bf16.mxu0 %v7851_v2  ;;  %2226 = vmatprep.subr.bf16.mxu1 %v7853_v21  ;;  %v15795_v7 = vmax.f32 %v15793_v42, %v15794_v38  ;;  %v15796_v2 = vld [vmem:[#allocation45_spill] sm:$0xff]  ;;  %v15797_v21 = vld [vmem:[#allocation76_spill] sm:$0xff]  ;;  %v15805_v42 = vld [vmem:[#allocation79_spill] sm:$0xff] }
 0x32b   :  { %v15798_v31 = vmax.f32 %v15796_v2, %v15797_v21  ;;  %v15813_v2 = vld [vmem:[#allocation49_spill] sm:$0xff] }
 0x32c   :  { %v15814_v21 = vld [vmem:[#allocation81_spill] sm:$0xff] }
 0x32d   :  { %2034 = vmatpush2.bf16.msra.mxu0 %v7855_v45  ;;  %2227 = vmatpush2.bf16.msra.mxu1 %v7856_v5  ;;  %v1591_v45 = vpack.c.bf16 %v15798_v31, %v15795_v7  ;;  %v15799_v5 = vmax.f32 %v10004_v19, %v10097_v47  ;;  %v15808_v19 = vld [vmem:[#allocation34_spill] sm:$0xff] }
 0x32e   :  { %2035 = vmatprep.subr.bf16.mxu0 %v7857_v39  ;;  %2228 = vmatprep.subr.bf16.mxu1 %v7859_v15  ;;  %v15800_v39 = vmax.f32 %v10007_v41, %v10103_v44  ;;  %v15809_v47 = vmax.f32 %v10013_v33, %v15808_v19  ;;  %v15810_v41 = vld [vmem:[#allocation48_spill] sm:$0xff]  ;;  %v15822_v33 = vld [vmem:[#allocation50_spill] sm:$0xff] }
 0x32f   :  { %v15811_v44 = vld [vmem:[#allocation80_spill] sm:$0xff] }
 0x330   :  { %v1594_v15 = vpack.c.bf16 %v15800_v39, %v15799_v5  ;;  %v15812_v7 = vmax.f32 %v15810_v41, %v15811_v44  ;;  %v15816_v39 = vld [vmem:[#allocation30_spill] sm:$0xff]  ;;  %v15830_v44 = vld [vmem:[#allocation52_spill] sm:$0xff] }
 0x331   :  { %2036 = vmatpush2.bf16.msra.mxu0 %v7861_v50  ;;  %2229 = vmatpush2.bf16.msra.mxu1 %v7862_v28  ;;  %v15801_v50 = vld [vmem:[#allocation46_spill] sm:$0xff]  ;;  %v15802_v28 = vld [vmem:[#allocation77_spill] sm:$0xff] }
 0x332   :  { %2037 = vmatprep.subr.bf16.mxu0 %v7863_v59  ;;  %2230 = vmatprep.subr.bf16.mxu1 %v7865_v58  ;;  %v15803_v59 = vmax.f32 %v15801_v50, %v15802_v28  ;;  %v15804_v58 = vld [vmem:[#allocation47_spill] sm:$0xff] }
 0x333   :  { %v15806_v38 = vmax.f32 %v15804_v58, %v15805_v42  ;;  %v15819_v28 = vld [vmem:[#allocation31_spill] sm:$0xff]  ;;  %v15823_v58 = vld [vmem:[#allocation82_spill] sm:$0xff] }
 0x334   :  { %v15824_v42 = vmax.f32 %v15822_v33, %v15823_v58  ;;  %v15844_v33 = vmax.f32 %v10034_v6, %v10134_v23  ;;  %v15853_v23 = vmax.f32 %v10043_v9, %v10145_v49  ;;  %v15862_v49 = vld [vmem:[#allocation60_spill] sm:$0xff] }
 0x335   :  { %2038 = vmatpush2.bf16.msra.mxu0 %v7867_v20  ;;  %2231 = vmatpush2.bf16.msra.mxu1 %v7868_v8  ;;  %v1593_v31 = vpack.c.bf16 %v15806_v38, %v15803_v59  ;;  %v15807_v20 = vmax.f32 %v10010_v55, %v10106_v62  ;;  %v15820_v55 = vld [vmem:[#allocation36_spill] sm:$0xff]  ;;  %v15825_v38 = vld [vmem:[#allocation51_spill] sm:$0xff] }
 0x336   :  { %v15821_v62 = vmax.f32 %v15819_v28, %v15820_v55  ;;  %v15841_v28 = vld [vmem:[#allocation55_spill] sm:$0xff]  ;;  %v15863_v9 = vld [vmem:[#allocation92_spill] sm:$0xff] }
 0x337   :  { %v1596_v8 = vpack.c.bf16 %v15809_v47, %v15807_v20  ;;  %v15828_v47 = vmax.f32 %v10022_v14, %v10118_v1  ;;  %v15837_v14 = vmax.f32 %v10031_v0, %v10129_v18  ;;  %v15842_v55 = vld [vmem:[#allocation87_spill] sm:$0xff]  ;;  %v15846_v18 = vld [vmem:[#allocation56_spill] sm:$0xff] }
 0x338   :  { %2040 = vmatmul.mubr.bf16.vlgmr.msra.gmra.mxu0 %v1591_v45  ;;  %2233 = vmatmul.mubr.bf16.vlgmr.msra.gmra.mxu1 %v1591_v45  ;;  %v15815_v45 = vmax.f32 %v15813_v2, %v15814_v21  ;;  %v15833_v21 = vld [vmem:[#allocation53_spill] sm:$0xff]  ;;  %v15847_v0 = vld [vmem:[#allocation88_spill] sm:$0xff] }
 0x339   :  { %2049 = vmatprep.mubr.bf16.mxu0 %v1594_v15  ;;  %2242 = vmatprep.mubr.bf16.mxu1 %v1594_v15  ;;  %v15817_v15 = vld [vmem:[#allocation35_spill] sm:$0xff]  ;;  %v15848_v58 = vmax.f32 %v15846_v18, %v15847_v0  ;;  %v15884_v18 = vmax.f32 %v10064_v16, %v10170_v48  ;;  %v15893_v48 = vmax.f32 %v10073_v27, %v10181_v51  ;;  %v15904_v51 = vld [vmem:[#allocation70_spill] sm:$0xff] }
 0x33a   :  { %v1595_v5 = vpack.c.bf16 %v15815_v45, %v15812_v7  ;;  %v15818_v50 = vmax.f32 %v15816_v39, %v15817_v15  ;;  %v15831_v7 = vld [vmem:[#allocation84_spill] sm:$0xff]  ;;  %v15834_v45 = vld [vmem:[#allocation85_spill] sm:$0xff]  ;;  %v15836_v15 = vmax.f32 %v10028_v60, %v10126_v36  ;;  %v15845_v60 = vmax.f32 %v10037_v26, %v10137_v17  ;;  %v15854_v17 = vld [vmem:[#allocation58_spill] sm:$0xff] }
 0x33b   :  { %v15832_v2 = vmax.f32 %v15830_v44, %v15831_v7  ;;  %v15855_v26 = vld [vmem:[#allocation90_spill] sm:$0xff] }
 0x33c   :  { %v1598_v59 = vpack.c.bf16 %v15821_v62, %v15818_v50  ;;  %v1602_v1 = vpack.c.bf16 %v15837_v14, %v15836_v15  ;;  %v15843_v62 = vmax.f32 %v15841_v28, %v15842_v55  ;;  %v1604_v36 = vpack.c.bf16 %v15845_v60, %v15844_v33  ;;  %v15882_v33 = vld [vmem:[#allocation97_spill] sm:$0xff]  ;;  %v15905_v27 = vld [vmem:[#allocation102_spill] sm:$0xff] }
 0x33d   :  { %v15868_v14 = vmax.f32 %v10052_v22, %v10156_v54  ;;  %v15876_v55 = vmax.f32 %v10058_v30, %v10162_v4  ;;  %v15877_v54 = vmax.f32 %v10061_v35, %v10167_v56  ;;  %v15885_v30 = vmax.f32 %v10067_v3, %v10173_v52  ;;  %v15886_v56 = vld [vmem:[#allocation66_spill] sm:$0xff]  ;;  %v15894_v3 = vld [vmem:[#allocation68_spill] sm:$0xff] }
 0x33e   :  { %v15887_v35 = vld [vmem:[#allocation98_spill] sm:$0xff]  ;;  %v15895_v52 = vld [vmem:[#allocation100_spill] sm:$0xff] }
 0x33f   :  { %v1612_v22 = vpack.c.bf16 %v15877_v54, %v15876_v55  ;;  %v1614_v4 = vpack.c.bf16 %v15885_v30, %v15884_v18  ;;  %v15888_v0 = vmax.f32 %v15886_v56, %v15887_v35  ;;  %v15929_v55 = vld [vmem:[#allocation107_spill] sm:$0xff] }
 0x340   :  { %2050 = vmatmul.mubr.bf16.gmra.mxu0 %v1593_v31  ;;  %2243 = vmatmul.mubr.bf16.gmra.mxu1 %v1593_v31  ;;  %v15826_v31 = vld [vmem:[#allocation83_spill] sm:$0xff] }
 0x341   :  { %2059 = vmatprep.mubr.bf16.mxu0 %v1596_v8  ;;  %2252 = vmatprep.mubr.bf16.mxu1 %v1596_v8  ;;  %v15827_v20 = vmax.f32 %v15825_v38, %v15826_v31  ;;  %v15829_v8 = vmax.f32 %v10025_v29, %v10123_v63  ;;  %v15838_v29 = vld [vmem:[#allocation54_spill] sm:$0xff]  ;;  %v15850_v38 = vld [vmem:[#allocation89_spill] sm:$0xff] }
 0x342   :  { %v15839_v63 = vld [vmem:[#allocation86_spill] sm:$0xff] }
 0x343   :  { %v1597_v19 = vpack.c.bf16 %v15827_v20, %v15824_v42  ;;  %v1600_v41 = vpack.c.bf16 %v15829_v8, %v15828_v47  ;;  %v15840_v50 = vmax.f32 %v15838_v29, %v15839_v63  ;;  %v15849_v42 = vld [vmem:[#allocation57_spill] sm:$0xff]  ;;  %v15856_v47 = vmax.f32 %v15854_v17, %v15855_v26  ;;  %v15857_v8 = vld [vmem:[#allocation59_spill] sm:$0xff] }
 0x344   :  { %v15851_v31 = vmax.f32 %v15849_v42, %v15850_v38  ;;  %v15873_v29 = vld [vmem:[#allocation63_spill] sm:$0xff] }
 0x345   :  { %v15874_v63 = vld [vmem:[#allocation95_spill] sm:$0xff] }
 0x346   :  { %v1603_v20 = vpack.c.bf16 %v15851_v31, %v15848_v58  ;;  %v15889_v58 = vld [vmem:[#allocation67_spill] sm:$0xff] }
 0x347   :  { %v15890_v42 = vld [vmem:[#allocation99_spill] sm:$0xff] }
 0x348   :  { %2060 = vmatmul.mubr.bf16.gmra.mxu0 %v1595_v5  ;;  %2253 = vmatmul.mubr.bf16.gmra.mxu1 %v1595_v5  ;;  %v15835_v5 = vmax.f32 %v15833_v21, %v15834_v45  ;;  %v15864_v21 = vmax.f32 %v15862_v49, %v15863_v9  ;;  %v15865_v45 = vld [vmem:[#allocation61_spill] sm:$0xff]  ;;  %v15891_v38 = vmax.f32 %v15889_v58, %v15890_v42 }
 0x349   :  { %2069 = vmatprep.mubr.bf16.mxu0 %v1598_v59  ;;  %2262 = vmatprep.mubr.bf16.mxu1 %v1598_v59  ;;  %v1601_v59 = vpack.c.bf16 %v15843_v62, %v15840_v50  ;;  %v15875_v50 = vmax.f32 %v15873_v29, %v15874_v63  ;;  %v15910_v49 = vmax.f32 %v10082_v43, %v10192_v34  ;;  %v15923_v34 = vld [vmem:[#allocation15_spill] sm:$0xff]  ;;  %v15926_v63 = vld [vmem:[#allocation106_spill] sm:$0xff] }
 0x34a   :  { %v1599_v39 = vpack.c.bf16 %v15835_v5, %v15832_v2  ;;  %v15860_v2 = vmax.f32 %v10046_v32, %v10148_v40  ;;  %v15866_v5 = vld [vmem:[#allocation93_spill] sm:$0xff]  ;;  %v15869_v40 = vmax.f32 %v10055_v13, %v10159_v37  ;;  %v15878_v37 = vld [vmem:[#allocation64_spill] sm:$0xff]  ;;  %v1613_v31 = vpack.c.bf16 %v15891_v38, %v15888_v0 }
 0x34b   :  { %v15879_v13 = vld [vmem:[#allocation96_spill] sm:$0xff] }
 0x34c   :  { %v1610_v32 = vpack.c.bf16 %v15869_v40, %v15868_v14  ;;  %v15880_v62 = vmax.f32 %v15878_v37, %v15879_v13 }
 0x350   :  { %2070 = vmatmul.mubr.bf16.gmra.mxu0 %v1597_v19  ;;  %2263 = vmatmul.mubr.bf16.gmra.mxu1 %v1597_v19  ;;  %v15852_v19 = vmax.f32 %v10040_v24, %v10140_v61  ;;  %v15861_v24 = vmax.f32 %v10049_v46, %v10151_v25  ;;  %v15870_v46 = vld [vmem:[#allocation62_spill] sm:$0xff] }
 0x351   :  { %2079 = vmatprep.mubr.bf16.mxu0 %v1600_v41  ;;  %2272 = vmatprep.mubr.bf16.mxu1 %v1600_v41  ;;  %v15858_v41 = vld [vmem:[#allocation91_spill] sm:$0xff]  ;;  %v15871_v25 = vld [vmem:[#allocation94_spill] sm:$0xff] }
 0x352   :  { %v1606_v6 = vpack.c.bf16 %v15853_v23, %v15852_v19  ;;  %v15859_v44 = vmax.f32 %v15857_v8, %v15858_v41  ;;  %v1608_v61 = vpack.c.bf16 %v15861_v24, %v15860_v2  ;;  %v15896_v19 = vmax.f32 %v15894_v3, %v15895_v52  ;;  %v15897_v23 = vld [vmem:[#allocation69_spill] sm:$0xff]  ;;  %v15908_v2 = vld [vmem:[#allocation103_spill] sm:$0xff] }
 0x354   :  { %v1605_v7 = vpack.c.bf16 %v15859_v44, %v15856_v47  ;;  %v15900_v47 = vld [vmem:[#allocation37_spill] sm:$0xff]  ;;  %v15906_v44 = vmax.f32 %v15904_v51, %v15905_v27 }
 0x355   :  { %v15901_v8 = vmax.f32 %v10076_v10, %v15900_v47  ;;  %v15911_v10 = vld [vmem:[#allocation39_spill] sm:$0xff] }
 0x356   :  { %v15912_v9 = vmax.f32 %v10085_v57, %v15911_v10  ;;  %v15925_v57 = vld [vmem:[#allocation74_spill] sm:$0xff] }
 0x358   :  { %2080 = vmatmul.mubr.bf16.gmra.mxu0 %v1599_v39  ;;  %2273 = vmatmul.mubr.bf16.gmra.mxu1 %v1599_v39  ;;  %v15867_v39 = vmax.f32 %v15865_v45, %v15866_v5  ;;  %v15914_v45 = vld [vmem:[#allocation104_spill] sm:$0xff] }
 0x359   :  { %2089 = vmatprep.mubr.bf16.mxu0 %v1602_v1  ;;  %2282 = vmatprep.mubr.bf16.mxu1 %v1602_v1  ;;  %v15872_v1 = vmax.f32 %v15870_v46, %v15871_v25  ;;  %v15920_v46 = vld [vmem:[#allocation14_spill] sm:$0xff] }
 0x35a   :  { %v1607_v15 = vpack.c.bf16 %v15867_v39, %v15864_v21  ;;  %v1620_v21 = vpack.c.bf16 %v15912_v9, %v15910_v49  ;;  %v15916_v39 = vld [vmem:[#allocation73_spill] sm:$0xff] }
 0x35b   :  { %v1609_v28 = vpack.c.bf16 %v15875_v50, %v15872_v1  ;;  %v15922_v1 = vld [vmem:[#allocation33_spill] sm:$0xff]  ;;  %v15927_v50 = vmax.f32 %v15925_v57, %v15926_v63 }
 0x35c   :  { %v15924_v43 = vmax.f32 %v15922_v1, %v15923_v34 }
 0x360   :  { %2090 = vmatmul.mubr.bf16.gmra.mxu0 %v1601_v59  ;;  %2283 = vmatmul.mubr.bf16.gmra.mxu1 %v1601_v59  ;;  %v15881_v59 = vld [vmem:[#allocation65_spill] sm:$0xff] }
 0x361   :  { %2099 = vmatprep.mubr.bf16.mxu0 %v1604_v36  ;;  %2292 = vmatprep.mubr.bf16.mxu1 %v1604_v36  ;;  %v15883_v60 = vmax.f32 %v15881_v59, %v15882_v33 }
 0x363   :  { %v1611_v36 = vpack.c.bf16 %v15883_v60, %v15880_v62 }
 0x368   :  { %2100 = vmatmul.mubr.bf16.gmra.mxu0 %v1603_v20  ;;  %2293 = vmatmul.mubr.bf16.gmra.mxu1 %v1603_v20  ;;  %v15892_v20 = vmax.f32 %v10070_v12, %v10178_v11  ;;  %v15902_v11 = vld [vmem:[#allocation38_spill] sm:$0xff] }
 0x369   :  { %2109 = vmatprep.mubr.bf16.mxu0 %v1606_v6  ;;  %2302 = vmatprep.mubr.bf16.mxu1 %v1606_v6  ;;  %v15898_v6 = vld [vmem:[#allocation101_spill] sm:$0xff]  ;;  %v15903_v12 = vmax.f32 %v10079_v53, %v15902_v11  ;;  %v15913_v53 = vld [vmem:[#allocation72_spill] sm:$0xff] }
 0x36a   :  { %v1616_v16 = vpack.c.bf16 %v15893_v48, %v15892_v20  ;;  %v15899_v17 = vmax.f32 %v15897_v23, %v15898_v6  ;;  %v15915_v5 = vmax.f32 %v15913_v53, %v15914_v45 }
 0x36b   :  { %v1618_v41 = vpack.c.bf16 %v15903_v12, %v15901_v8 }
 0x36c   :  { %v1615_v26 = vpack.c.bf16 %v15899_v17, %v15896_v19 }
 0x370   :  { %2110 = vmatmul.mubr.bf16.gmra.mxu0 %v1605_v7  ;;  %2303 = vmatmul.mubr.bf16.gmra.mxu1 %v1605_v7  ;;  %v15907_v7 = vld [vmem:[#allocation71_spill] sm:$0xff] }
 0x371   :  { %2119 = vmatprep.mubr.bf16.mxu0 %v1608_v61  ;;  %2312 = vmatprep.mubr.bf16.mxu1 %v1608_v61  ;;  %v15909_v24 = vmax.f32 %v15907_v7, %v15908_v2 }
 0x373   :  { %v1617_v61 = vpack.c.bf16 %v15909_v24, %v15906_v44 }
 0x378   :  { %2120 = vmatmul.mubr.bf16.gmra.mxu0 %v1607_v15  ;;  %2313 = vmatmul.mubr.bf16.gmra.mxu1 %v1607_v15  ;;  %v15917_v15 = vld [vmem:[#allocation105_spill] sm:$0xff] }
 0x379   :  { %2129 = vmatprep.mubr.bf16.mxu0 %v1610_v32  ;;  %2322 = vmatprep.mubr.bf16.mxu1 %v1610_v32  ;;  %v15918_v14 = vmax.f32 %v15916_v39, %v15917_v15  ;;  %v15919_v32 = vld [vmem:[#allocation32_spill] sm:$0xff] }
 0x37a   :  { %v15921_v25 = vmax.f32 %v15919_v32, %v15920_v46 }
 0x37b   :  { %v1619_v40 = vpack.c.bf16 %v15918_v14, %v15915_v5 }
 0x37c   :  { %v1622_v29 = vpack.c.bf16 %v15924_v43, %v15921_v25 }
 0x380   :  { %2130 = vmatmul.mubr.bf16.gmra.mxu0 %v1609_v28  ;;  %2323 = vmatmul.mubr.bf16.gmra.mxu1 %v1609_v28  ;;  %v15928_v28 = vld [vmem:[#allocation78_spill] sm:$0xff] }
 0x381   :  { %2139 = vmatprep.mubr.bf16.mxu0 %v1612_v22  ;;  %2332 = vmatprep.mubr.bf16.mxu1 %v1612_v22  ;;  %v15930_v54 = vmax.f32 %v15928_v28, %v15929_v55 }
 0x383   :  { %v1621_v22 = vpack.c.bf16 %v15930_v54, %v15927_v50 }
 0x388   :  { %2140 = vmatmul.mubr.bf16.gmra.mxu0 %v1611_v36  ;;  %2333 = vmatmul.mubr.bf16.gmra.mxu1 %v1611_v36 }
 0x389   :  { %2149 = vmatprep.mubr.bf16.mxu0 %v1614_v4  ;;  %2342 = vmatprep.mubr.bf16.mxu1 %v1614_v4 }
 0x390   :  { %2150 = vmatmul.mubr.bf16.gmra.mxu0 %v1613_v31  ;;  %2343 = vmatmul.mubr.bf16.gmra.mxu1 %v1613_v31 }
 0x391   :  { %2159 = vmatprep.mubr.bf16.mxu0 %v1616_v16  ;;  %2352 = vmatprep.mubr.bf16.mxu1 %v1616_v16 }
 0x398   :  { %2160 = vmatmul.mubr.bf16.gmra.mxu0 %v1615_v26  ;;  %2353 = vmatmul.mubr.bf16.gmra.mxu1 %v1615_v26 }
 0x399   :  { %2169 = vmatprep.mubr.bf16.mxu0 %v1618_v41  ;;  %2362 = vmatprep.mubr.bf16.mxu1 %v1618_v41 }
 0x3a0   :  { %2170 = vmatmul.mubr.bf16.gmra.mxu0 %v1617_v61  ;;  %2363 = vmatmul.mubr.bf16.gmra.mxu1 %v1617_v61 }
 0x3a1   :  { %2179 = vmatprep.mubr.bf16.mxu0 %v1620_v21  ;;  %2372 = vmatprep.mubr.bf16.mxu1 %v1620_v21 }
 0x3a8   :  { %2180 = vmatmul.mubr.bf16.gmra.mxu0 %v1619_v40  ;;  %2373 = vmatmul.mubr.bf16.gmra.mxu1 %v1619_v40 }
 0x3a9   :  { %2189 = vmatprep.mubr.bf16.mxu0 %v1622_v29  ;;  %2382 = vmatprep.mubr.bf16.mxu1 %v1622_v29 }
 0x3b0   :  { %2190 = vmatmul.mubr.bf16.gmra.mxu0 %v1621_v22  ;;  %2383 = vmatmul.mubr.bf16.gmra.mxu1 %v1621_v22 }
 0x3f8   :  { %v10439_v37 = vpop.f32.mrf.mxu0  ;;  %v10441_v13 = vpop.f32.mrf.mxu1 }
 0x3f9   :  { %15931 = vst [vmem:[#allocation16_spill] sm:$0xff] %v10439_v37  ;;  %15932 = vst [vmem:[#allocation27_spill] sm:$0xff] %v10441_v13 }
 0x3fa   :  { %v10443_v62 = vpop.f32.mrf.mxu0  ;;  %v10445_v59 = vpop.f32.mrf.mxu1 }
 0x3fb   :  { %15933 = vst [vmem:[#allocation17_spill] sm:$0xff] %v10443_v62  ;;  %15934 = vst [vmem:[#allocation18_spill] sm:$0xff] %v10445_v59 }
 0x3fc   :  { %v10447_v33 = vpop.f32.mrf.mxu0  ;;  %v10449_v60 = vpop.f32.mrf.mxu1 }
 0x3fd   :  { %15935 = vst [vmem:[#allocation28_spill] sm:$0xff] %v10447_v33  ;;  %15936 = vst [vmem:[#allocation19_spill] sm:$0xff] %v10449_v60 }
 0x3fe   :  { %v10451_v36 = vpop.f32.mrf.mxu0  ;;  %v10453_v18 = vpop.f32.mrf.mxu1 }
 0x3ff   :  { %15937 = vst [vmem:[#allocation29_spill] sm:$0xff] %v10451_v36  ;;  %15938 = vst [vmem:[#allocation22_spill] sm:$0xff] %v10453_v18 }
 0x400   :  { %v10455_v30 = vpop.f32.mrf.mxu0  ;;  %v10457_v4 = vpop.f32.mrf.mxu1 }
 0x401   :  { %15939 = vst [vmem:[#allocation23_spill] sm:$0xff] %v10455_v30  ;;  %15940 = vst [vmem:[#allocation24_spill] sm:$0xff] %v10457_v4 }
 0x402   :  { %v10459_v56 = vpop.f32.mrf.mxu0  ;;  %v10461_v35 = vpop.f32.mrf.mxu1 }
 0x403   :  { %15941 = vst [vmem:[#allocation25_spill] sm:$0xff] %v10459_v56  ;;  %15942 = vst [vmem:[#allocation26_spill] sm:$0xff] %v10461_v35 }
 0x404   :  { %v10463_v0 = vpop.f32.mrf.mxu0  ;;  %v10465_v58 = vpop.f32.mrf.mxu1 }
 0x405   :  { %15943 = vst [vmem:[#allocation40_spill] sm:$0xff] %v10463_v0  ;;  %15944 = vst [vmem:[#allocation41_spill] sm:$0xff] %v10465_v58 }
 0x406   :  { %v10467_v42 = vpop.f32.mrf.mxu0  ;;  %v10469_v38 = vpop.f32.mrf.mxu1 }
 0x407   :  { %15945 = vst [vmem:[#allocation20_spill] sm:$0xff] %v10467_v42  ;;  %15946 = vst [vmem:[#allocation21_spill] sm:$0xff] %v10469_v38 }
 0x408   :  { %v10471_v31 = vpop.f32.mrf.mxu0  ;;  %v10473_v20 = vpop.f32.mrf.mxu1 }
 0x409   :  { %15947 = vst [vmem:[#allocation44_spill] sm:$0xff] %v10471_v31  ;;  %15948 = vst [vmem:[#allocation75_spill] sm:$0xff] %v10473_v20 }
 0x40a   :  { %v10475_v48 = vpop.f32.mrf.mxu0  ;;  %v10477_v16 = vpop.f32.mrf.mxu1 }
 0x40b   :  { %15949 = vst [vmem:[#allocation45_spill] sm:$0xff] %v10475_v48  ;;  %15950 = vst [vmem:[#allocation76_spill] sm:$0xff] %v10477_v16 }
 0x40c   :  { %v10479_v3 = vpop.f32.mrf.mxu0  ;;  %v10481_v52 = vpop.f32.mrf.mxu1 }
 0x40d   :  { %15951 = vst [vmem:[#allocation46_spill] sm:$0xff] %v10479_v3  ;;  %15952 = vst [vmem:[#allocation77_spill] sm:$0xff] %v10481_v52 }
 0x40e   :  { %v10483_v19 = vpop.f32.mrf.mxu0  ;;  %v10485_v23 = vpop.f32.mrf.mxu1 }
 0x40f   :  { %15953 = vst [vmem:[#allocation47_spill] sm:$0xff] %v10483_v19  ;;  %15954 = vst [vmem:[#allocation79_spill] sm:$0xff] %v10485_v23 }
 0x410   :  { %v10487_v6 = vpop.f32.mrf.mxu0  ;;  %v10489_v17 = vpop.f32.mrf.mxu1 }
 0x411   :  { %15955 = vst [vmem:[#allocation34_spill] sm:$0xff] %v10487_v6  ;;  %15956 = vst [vmem:[#allocation48_spill] sm:$0xff] %v10489_v17 }
 0x412   :  { %v10491_v26 = vpop.f32.mrf.mxu0  ;;  %v10493_v47 = vpop.f32.mrf.mxu1 }
 0x413   :  { %15957 = vst [vmem:[#allocation80_spill] sm:$0xff] %v10491_v26  ;;  %15958 = vst [vmem:[#allocation49_spill] sm:$0xff] %v10493_v47 }
 0x414   :  { %v10495_v8 = vpop.f32.mrf.mxu0  ;;  %v10497_v11 = vpop.f32.mrf.mxu1 }
 0x415   :  { %15959 = vst [vmem:[#allocation81_spill] sm:$0xff] %v10495_v8  ;;  %15960 = vst [vmem:[#allocation30_spill] sm:$0xff] %v10497_v11 }
 0x416   :  { %v10499_v12 = vpop.f32.mrf.mxu0  ;;  %v10501_v41 = vpop.f32.mrf.mxu1 }
 0x417   :  { %15961 = vst [vmem:[#allocation35_spill] sm:$0xff] %v10499_v12  ;;  %15962 = vst [vmem:[#allocation31_spill] sm:$0xff] %v10501_v41 }
 0x418   :  { %v10503_v51 = vpop.f32.mrf.mxu0  ;;  %v10505_v27 = vpop.f32.mrf.mxu1 }
 0x419   :  { %15963 = vst [vmem:[#allocation36_spill] sm:$0xff] %v10503_v51  ;;  %15964 = vst [vmem:[#allocation50_spill] sm:$0xff] %v10505_v27 }
 0x41a   :  { %v10507_v44 = vpop.f32.mrf.mxu0  ;;  %v10509_v7 = vpop.f32.mrf.mxu1 }
 0x41b   :  { %15965 = vst [vmem:[#allocation82_spill] sm:$0xff] %v10507_v44  ;;  %15966 = vst [vmem:[#allocation51_spill] sm:$0xff] %v10509_v7 }
 0x41c   :  { %v10511_v2 = vpop.f32.mrf.mxu0  ;;  %v10513_v24 = vpop.f32.mrf.mxu1 }
 0x41d   :  { %15967 = vst [vmem:[#allocation83_spill] sm:$0xff] %v10511_v2  ;;  %15968 = vst [vmem:[#allocation52_spill] sm:$0xff] %v10513_v24 }
 0x41e   :  { %v10515_v61 = vpop.f32.mrf.mxu0  ;;  %v10517_v49 = vpop.f32.mrf.mxu1 }
 0x41f   :  { %15969 = vst [vmem:[#allocation84_spill] sm:$0xff] %v10515_v61  ;;  %15970 = vst [vmem:[#allocation53_spill] sm:$0xff] %v10517_v49 }
 0x420   :  { %v10519_v10 = vpop.f32.mrf.mxu0  ;;  %v10521_v9 = vpop.f32.mrf.mxu1 }
 0x421   :  { %15971 = vst [vmem:[#allocation85_spill] sm:$0xff] %v10519_v10  ;;  %15972 = vst [vmem:[#allocation54_spill] sm:$0xff] %v10521_v9 }
 0x422   :  { %v10523_v21 = vpop.f32.mrf.mxu0  ;;  %v10525_v53 = vpop.f32.mrf.mxu1 }
 0x423   :  { %15973 = vst [vmem:[#allocation86_spill] sm:$0xff] %v10523_v21  ;;  %15974 = vst [vmem:[#allocation55_spill] sm:$0xff] %v10525_v53 }
 0x424   :  { %v10527_v45 = vpop.f32.mrf.mxu0  ;;  %v10529_v5 = vpop.f32.mrf.mxu1 }
 0x425   :  { %15975 = vst [vmem:[#allocation87_spill] sm:$0xff] %v10527_v45  ;;  %15976 = vst [vmem:[#allocation56_spill] sm:$0xff] %v10529_v5 }
 0x426   :  { %v10531_v39 = vpop.f32.mrf.mxu0  ;;  %v10533_v15 = vpop.f32.mrf.mxu1 }
 0x427   :  { %15977 = vst [vmem:[#allocation88_spill] sm:$0xff] %v10531_v39  ;;  %15978 = vst [vmem:[#allocation57_spill] sm:$0xff] %v10533_v15 }
 0x428   :  { %v10535_v14 = vpop.f32.mrf.mxu0  ;;  %v10537_v40 = vpop.f32.mrf.mxu1 }
 0x429   :  { %15979 = vst [vmem:[#allocation89_spill] sm:$0xff] %v10537_v40 }
 0x42a   :  { %v10539_v32 = vpop.f32.mrf.mxu0  ;;  %v10541_v46 = vpop.f32.mrf.mxu1 }
 0x42b   :  { %15980 = vst [vmem:[#allocation58_spill] sm:$0xff] %v10539_v32  ;;  %15981 = vst [vmem:[#allocation90_spill] sm:$0xff] %v10541_v46 }
 0x42c   :  { %v10543_v25 = vpop.f32.mrf.mxu0  ;;  %v10545_v1 = vpop.f32.mrf.mxu1 }
 0x42d   :  { %15982 = vst [vmem:[#allocation59_spill] sm:$0xff] %v10543_v25  ;;  %15983 = vst [vmem:[#allocation91_spill] sm:$0xff] %v10545_v1 }
 0x42e   :  { %v10547_v34 = vpop.f32.mrf.mxu0  ;;  %v10549_v43 = vpop.f32.mrf.mxu1 }
 0x42f   :  { %15984 = vst [vmem:[#allocation60_spill] sm:$0xff] %v10547_v34  ;;  %15985 = vst [vmem:[#allocation92_spill] sm:$0xff] %v10549_v43  ;;  %v2395_v43 = vadd.f32 %v10447_v33, %v10439_v37 }
 0x430   :  { %v10551_v29 = vpop.f32.mrf.mxu0  ;;  %v10553_v57 = vpop.f32.mrf.mxu1 }
 0x431   :  { %15986 = vst [vmem:[#allocation61_spill] sm:$0xff] %v10551_v29  ;;  %15987 = vst [vmem:[#allocation93_spill] sm:$0xff] %v10553_v57 }
 0x432   :  { %v10555_v63 = vpop.f32.mrf.mxu0  ;;  %v10557_v50 = vpop.f32.mrf.mxu1 }
 0x433   :  { %15988 = vst [vmem:[#allocation62_spill] sm:$0xff] %v10555_v63  ;;  %15989 = vst [vmem:[#allocation94_spill] sm:$0xff] %v10557_v50  ;;  %v2396_v50 = vadd.f32 %v2395_v43, %v10455_v30  ;;  %v2469_v30 = vadd.f32 %v10449_v60, %v10441_v13 }
 0x434   :  { %v10559_v28 = vpop.f32.mrf.mxu0  ;;  %v10561_v55 = vpop.f32.mrf.mxu1 }
 0x435   :  { %15990 = vst [vmem:[#allocation63_spill] sm:$0xff] %v10561_v55  ;;  %v2397_v47 = vadd.f32 %v2396_v50, %v10463_v0 }
 0x436   :  { %v10563_v54 = vpop.f32.mrf.mxu0  ;;  %v10565_v22 = vpop.f32.mrf.mxu1 }
 0x437   :  { %15991 = vst [vmem:[#allocation95_spill] sm:$0xff] %v10563_v54  ;;  %15992 = vst [vmem:[#allocation64_spill] sm:$0xff] %v10565_v22  ;;  %v2398_v54 = vadd.f32 %v2397_v47, %v10471_v31  ;;  %v2470_v47 = vadd.f32 %v2469_v30, %v10457_v4 }
 0x438   :  { %v10567_v46 = vpop.f32.mrf.mxu0  ;;  %v10569_v15 = vpop.f32.mrf.mxu1 }
 0x439   :  { %15993 = vst [vmem:[#allocation96_spill] sm:$0xff] %v10569_v15  ;;  %v2399_v37 = vadd.f32 %v2398_v54, %v10479_v3  ;;  %v2471_v3 = vadd.f32 %v2470_v47, %v10465_v58 }
 0x43a   :  { %v10573_v53 = vpop.f32.mrf.mxu0  ;;  %v10575_v49 = vpop.f32.mrf.mxu1 }
 0x43b   :  { %15994 = vst [vmem:[#allocation65_spill] sm:$0xff] %v10573_v53  ;;  %15995 = vst [vmem:[#allocation97_spill] sm:$0xff] %v10575_v49  ;;  %v2400_v50 = vadd.f32 %v2399_v37, %v10487_v6  ;;  %v2472_v37 = vadd.f32 %v2471_v3, %v10473_v20 }
 0x43c   :  { %v10578_v7 = vpop.f32.mrf.mxu0  ;;  %v10580_v41 = vpop.f32.mrf.mxu1 }
 0x43d   :  { %15996 = vst [vmem:[#allocation66_spill] sm:$0xff] %v10580_v41  ;;  %v2401_v31 = vadd.f32 %v2400_v50, %v10495_v8  ;;  %v2473_v50 = vadd.f32 %v2472_v37, %v10481_v52 }
 0x43e   :  { %v10583_v22 = vpop.f32.mrf.mxu0  ;;  %v10585_v23 = vpop.f32.mrf.mxu1 }
 0x43f   :  { %15997 = vst [vmem:[#allocation98_spill] sm:$0xff] %v10583_v22  ;;  %15998 = vst [vmem:[#allocation67_spill] sm:$0xff] %v10585_v23 }
 0x440   :  { %v10588_v16 = vpop.f32.mrf.mxu0  ;;  %v10590_v33 = vpop.f32.mrf.mxu1 }
 0x441   :  { %15999 = vst [vmem:[#allocation99_spill] sm:$0xff] %v10590_v33 }
 0x442   :  { %v10593_v49 = vpop.f32.mrf.mxu0  ;;  %v10595_v43 = vpop.f32.mrf.mxu1 }
 0x443   :  { %16000 = vst [vmem:[#allocation68_spill] sm:$0xff] %v10593_v49  ;;  %16001 = vst [vmem:[#allocation100_spill] sm:$0xff] %v10595_v43  ;;  %v2402_v43 = vadd.f32 %v2401_v31, %v10503_v51  ;;  %v2474_v31 = vadd.f32 %v2473_v50, %v10489_v17 }
 0x444   :  { %v10600_v0 = vpop.f32.mrf.mxu0  ;;  %v10602_v23 = vpop.f32.mrf.mxu1 }
 0x445   :  { %16002 = vst [vmem:[#allocation69_spill] sm:$0xff] %v10602_v23  ;;  %v2403_v13 = vadd.f32 %v2402_v43, %v10511_v2  ;;  %v2475_v43 = vadd.f32 %v2474_v31, %v10497_v11 }
 0x446   :  { %v10606_v22 = vpop.f32.mrf.mxu0  ;;  %v10608_v54 = vpop.f32.mrf.mxu1 }
 0x447   :  { %16003 = vst [vmem:[#allocation101_spill] sm:$0xff] %v10606_v22  ;;  %16004 = vst [vmem:[#allocation37_spill] sm:$0xff] %v10608_v54  ;;  %v2404_v4 = vadd.f32 %v2403_v13, %v10519_v10  ;;  %v2476_v13 = vadd.f32 %v2475_v43, %v10505_v27  ;;  %v2432_v43 = vadd.f32 %v10451_v36, %v10443_v62 }
 0x448   :  { %v10612_v49 = vpop.f32.mrf.mxu0  ;;  %v10614_v60 = vpop.f32.mrf.mxu1 }
 0x449   :  { %16005 = vst [vmem:[#allocation38_spill] sm:$0xff] %v10614_v60  ;;  %v2405_v58 = vadd.f32 %v2404_v4, %v10527_v45  ;;  %v2477_v4 = vadd.f32 %v2476_v13, %v10513_v24 }
 0x44a   :  { %v10618_v6 = vpop.f32.mrf.mxu0  ;;  %v10620_v30 = vpop.f32.mrf.mxu1 }
 0x44b   :  { %16006 = vst [vmem:[#allocation70_spill] sm:$0xff] %v10618_v6  ;;  %16007 = vst [vmem:[#allocation102_spill] sm:$0xff] %v10620_v30  ;;  %v2406_v20 = vadd.f32 %v2405_v58, %v10535_v14  ;;  %v2478_v58 = vadd.f32 %v2477_v4, %v10521_v9 }
 0x44c   :  { %v10624_v8 = vpop.f32.mrf.mxu0  ;;  %v10626_v47 = vpop.f32.mrf.mxu1 }
 0x44d   :  { %16008 = vst [vmem:[#allocation71_spill] sm:$0xff] %v10626_v47  ;;  %v2407_v52 = vadd.f32 %v2406_v20, %v10543_v25  ;;  %v2479_v25 = vadd.f32 %v2478_v58, %v10529_v5 }
 0x44e   :  { %v10630_v51 = vpop.f32.mrf.mxu0  ;;  %v10632_v3 = vpop.f32.mrf.mxu1 }
 0x44f   :  { %16009 = vst [vmem:[#allocation103_spill] sm:$0xff] %v10632_v3  ;;  %v2408_v17 = vadd.f32 %v2407_v52, %v10551_v29  ;;  %v2433_v52 = vadd.f32 %v2432_v43, %v10459_v56  ;;  %v2480_v4 = vadd.f32 %v2479_v25, %v10537_v40 }
 0x450   :  { %v10636_v2 = vpop.f32.mrf.mxu0  ;;  %v10638_v37 = vpop.f32.mrf.mxu1 }
 0x451   :  { %16010 = vst [vmem:[#allocation39_spill] sm:$0xff] %v10638_v37  ;;  %v2409_v11 = vadd.f32 %v2408_v17, %v10559_v28  ;;  %v2434_v36 = vadd.f32 %v2433_v52, %v10467_v42  ;;  %v2481_v58 = vadd.f32 %v2480_v4, %v10545_v1 }
 0x452   :  { %v10642_v10 = vpop.f32.mrf.mxu0  ;;  %v10644_v50 = vpop.f32.mrf.mxu1 }
 0x453   :  { %16011 = vst [vmem:[#allocation72_spill] sm:$0xff] %v10644_v50  ;;  %v2410_v13 = vadd.f32 %v2409_v11, %v10567_v46  ;;  %v2435_v43 = vadd.f32 %v2434_v36, %v10475_v48  ;;  %v2482_v25 = vadd.f32 %v2481_v58, %v10553_v57 }
 0x454   :  { %v10648_v45 = vpop.f32.mrf.mxu0  ;;  %v10650_v31 = vpop.f32.mrf.mxu1 }
 0x455   :  { %16012 = vst [vmem:[#allocation104_spill] sm:$0xff] %v10650_v31  ;;  %v2411_v17 = vadd.f32 %v2410_v13, %v10578_v7  ;;  %v2436_v52 = vadd.f32 %v2435_v43, %v10483_v19  ;;  %v2483_v4 = vadd.f32 %v2482_v25, %v10561_v55 }
 0x456   :  { %v10656_v20 = vpop.f32.mrf.mxu0  ;;  %v10658_v27 = vpop.f32.mrf.mxu1 }
 0x457   :  { %16013 = vst [vmem:[#allocation73_spill] sm:$0xff] %v10656_v20  ;;  %16014 = vst [vmem:[#allocation105_spill] sm:$0xff] %v10658_v27  ;;  %v2412_v11 = vadd.f32 %v2411_v17, %v10588_v16  ;;  %v2437_v36 = vadd.f32 %v2436_v52, %v10491_v26  ;;  %v2484_v58 = vadd.f32 %v2483_v4, %v10569_v15 }
 0x458   :  { %v10663_v24 = vpop.f32.mrf.mxu0  ;;  %v10665_v29 = vpop.f32.mrf.mxu1 }
 0x459   :  { %16015 = vst [vmem:[#allocation32_spill] sm:$0xff] %v10665_v29  ;;  %v2413_v13 = vadd.f32 %v2412_v11, %v10600_v0  ;;  %v2438_v43 = vadd.f32 %v2437_v36, %v10499_v12  ;;  %v2485_v25 = vadd.f32 %v2484_v58, %v10580_v41 }
 0x45a   :  { %v10670_v62 = vpop.f32.mrf.mxu0  ;;  %v10672_v9 = vpop.f32.mrf.mxu1 }
 0x45b   :  { %16016 = vst [vmem:[#allocation14_spill] sm:$0xff] %v10672_v9  ;;  %v2414_v17 = vadd.f32 %v2413_v13, %v10612_v49  ;;  %v2439_v52 = vadd.f32 %v2438_v43, %v10507_v44  ;;  %v2486_v4 = vadd.f32 %v2485_v25, %v10590_v33 }
 0x45c   :  { %v10677_v56 = vpop.f32.mrf.mxu0  ;;  %v10679_v5 = vpop.f32.mrf.mxu1 }
 0x45d   :  { %16017 = vst [vmem:[#allocation33_spill] sm:$0xff] %v10679_v5  ;;  %v2415_v11 = vadd.f32 %v2414_v17, %v10624_v8  ;;  %v2440_v36 = vadd.f32 %v2439_v52, %v10515_v61  ;;  %v2487_v58 = vadd.f32 %v2486_v4, %v10602_v23 }
 0x45e   :  { %v10684_v42 = vpop.f32.mrf.mxu0  ;;  %v10686_v40 = vpop.f32.mrf.mxu1 }
 0x45f   :  { %16018 = vst [vmem:[#allocation15_spill] sm:$0xff] %v10686_v40  ;;  %v2416_v13 = vadd.f32 %v2415_v11, %v10636_v2  ;;  %v2441_v43 = vadd.f32 %v2440_v36, %v10523_v21  ;;  %v2488_v25 = vadd.f32 %v2487_v58, %v10614_v60  ;;  %v2506_v36 = vadd.f32 %v10453_v18, %v10445_v59 }
 0x460   :  { %v10691_v48 = vpop.f32.mrf.mxu0  ;;  %v10693_v1 = vpop.f32.mrf.mxu1 }
 0x461   :  { %v2417_v17 = vadd.f32 %v2416_v13, %v10648_v45  ;;  %v2442_v52 = vadd.f32 %v2441_v43, %v10531_v39  ;;  %v2489_v4 = vadd.f32 %v2488_v25, %v10626_v47  ;;  %v2507_v39 = vadd.f32 %v2506_v36, %v10461_v35  ;;  %v16026_v36 = vld [vmem:[#allocation76_spill] sm:$0xff]  ;;  %v16027_v35 = vld [vmem:[#allocation95_spill] sm:$0xff] }
 0x462   :  { %v10698_v19 = vpop.f32.mrf.mxu0  ;;  %v10700_v57 = vpop.f32.mrf.mxu1 }
 0x463   :  { %16019 = vst [vmem:[#allocation74_spill] sm:$0xff] %v10700_v57  ;;  %v2418_v11 = vadd.f32 %v2417_v17, %v10663_v24  ;;  %v2443_v21 = vadd.f32 %v2442_v52, %v10539_v32  ;;  %v2508_v52 = vadd.f32 %v2507_v39, %v10469_v38 }
 0x464   :  { %v10705_v26 = vpop.f32.mrf.mxu0  ;;  %v10707_v55 = vpop.f32.mrf.mxu1 }
 0x465   :  { %16020 = vst [vmem:[#allocation106_spill] sm:$0xff] %v10707_v55  ;;  %v2419_v13 = vadd.f32 %v2418_v11, %v10677_v56  ;;  %v2490_v11 = vadd.f32 %v2489_v4, %v10638_v37  ;;  %v2444_v60 = vadd.f32 %v2443_v21, %v10547_v34  ;;  %v2509_v21 = vadd.f32 %v2508_v52, %v16026_v36  ;;  %v16029_v52 = vld [vmem:[#allocation49_spill] sm:$0xff]  ;;  %v16030_v36 = vld [vmem:[#allocation98_spill] sm:$0xff] }
 0x466   :  { %v10712_v12 = vpop.f32.mrf.mxu0  ;;  %v10714_v15 = vpop.f32.mrf.mxu1 }
 0x467   :  { %16021 = vst [vmem:[#allocation78_spill] sm:$0xff] %v10714_v15  ;;  %v2420_v17 = vadd.f32 %v2419_v13, %v10691_v48  ;;  %v2491_v13 = vadd.f32 %v2490_v11, %v10650_v31  ;;  %v2445_v59 = vadd.f32 %v2444_v60, %v10555_v63 }
 0x468   :  { %v10719_v44 = vpop.f32.mrf.mxu0  ;;  %v10721_v41 = vpop.f32.mrf.mxu1 }
 0x469   :  { %v2421_v43 = vadd.f32 %v2420_v17, %v10705_v26  ;;  %v2492_v4 = vadd.f32 %v2491_v13, %v10665_v29  ;;  %v2446_v34 = vadd.f32 %v2445_v59, %v16027_v35 }
 0x46a   :  { %v10726_v61 = vpop.f32.mrf.mxu0  ;;  %v10728_v33 = vpop.f32.mrf.mxu1 }
 0x46b   :  { %16022 = vst [vmem:[#allocation107_spill] sm:$0xff] %v10728_v33  ;;  %v2422_v18 = vadd.f32 %v2421_v43, %v10719_v44  ;;  %v2493_v11 = vadd.f32 %v2492_v4, %v10679_v5  ;;  %v16028_v43 = vld [vmem:[#allocation79_spill] sm:$0xff]  ;;  %v2447_v38 = vadd.f32 %v2446_v34, %v10573_v53 }
 0x46c   :  { %v10735_v23 = vpop.f32.mrf.mxu0  ;;  %v10737_v58 = vpop.f32.mrf.mxu1  ;;  %v2510_v60 = vadd.f32 %v2509_v21, %v16028_v43  ;;  %v16032_v21 = vld [vmem:[#allocation68_spill] sm:$0xff] }
 0x46d   :  { %16023 = vst [vmem:[#allocation109_spill] sm:$0xff] %v10735_v23  ;;  %v2423_v17 = vadd.f32 %v2422_v18, %v10735_v23  ;;  %v2494_v18 = vadd.f32 %v2493_v11, %v10693_v1  ;;  %v2448_v35 = vadd.f32 %v2447_v38, %v16030_v36  ;;  %v16034_v23 = vld [vmem:[#allocation51_spill] sm:$0xff]  ;;  %v16035_v38 = vld [vmem:[#allocation53_spill] sm:$0xff] }
 0x46e   :  { %v10743_v25 = vpop.f32.mrf.mxu0  ;;  %v10749_v32 = vpop.f32.mrf.mxu1  ;;  %v2511_v59 = vadd.f32 %v2510_v60, %v16029_v52 }
 0x46f   :  { %16024 = vst [vmem:[#allocation110_spill] sm:$0xff] %v10749_v32  ;;  %v2495_v4 = vadd.f32 %v2494_v18, %v10707_v55  ;;  %v2449_v43 = vadd.f32 %v2448_v35, %v16032_v21 }
 0x470   :  { %v10751_v47 = vpop.f32.mrf.mxu0  ;;  %v10763_v63 = vpop.f32.mrf.mxu1 }
 0x471   :  { %16025 = vst [vmem:[#allocation111_spill] sm:$0xff] %v10751_v47  ;;  %v2424_v39 = vadd.f32 %v2423_v17, %v10751_v47  ;;  %v16031_v17 = vld [vmem:[#allocation31_spill] sm:$0xff]  ;;  %v2496_v53 = vadd.f32 %v2495_v4, %v10721_v41 }
 0x472   :  { %v10757_v37 = vpop.f32.mrf.mxu0  ;;  %v2512_v29 = vadd.f32 %v2511_v59, %v16031_v17  ;;  %v10774_v34 = vpop.f32.mrf.mxu1  ;;  %v16036_v17 = vld [vmem:[#allocation55_spill] sm:$0xff] }
 0x473   :  { %16033 = vst [vmem:[#allocation112_spill] sm:$0xff] %v10774_v34  ;;  %v2497_v60 = vadd.f32 %v2496_v53, %v10737_v58 }
 0x474   :  { %v10765_v31 = vpop.f32.mrf.mxu0  ;;  %v2513_v11 = vadd.f32 %v2512_v29, %v16034_v23  ;;  %v10782_v55 = vpop.f32.mrf.mxu1  ;;  %v16038_v23 = vld [vmem:[#allocation90_spill] sm:$0xff] }
 0x475   :  { %v2425_v13 = vadd.f32 %v2424_v39, %v10765_v31  ;;  %v2450_v39 = vadd.f32 %v2449_v43, %v10606_v22  ;;  %v2498_v35 = vadd.f32 %v2497_v60, %v10763_v63 }
 0x476   :  { %v2514_v36 = vadd.f32 %v2513_v11, %v16035_v38 }
 0x477   :  { %v2426_v5 = vrot.slane %v2425_v13, 4  ;;  %v2451_v18 = vadd.f32 %v2450_v39, %v10618_v6  ;;  %v2499_v29 = vadd.f32 %v2498_v35, %v10782_v55  ;;  %v16039_v6 = vld [vmem:[#allocation92_spill] sm:$0xff] }
 0x478   :  { %v2515_v21 = vadd.f32 %v2514_v36, %v16036_v17  ;;  %v16040_v36 = vld [vmem:[#allocation94_spill] sm:$0xff]  ;;  %v16041_v17 = vld [vmem:[#allocation64_spill] sm:$0xff] }
 0x479   :  { %v2427_v47 = vadd.f32 %v2426_v5, %v2425_v13  ;;  %v2452_v5 = vadd.f32 %v2451_v18, %v10630_v51  ;;  %v16037_v13 = vld [vmem:[#allocation57_spill] sm:$0xff]  ;;  %v2500_v38 = vrot.slane %v2499_v29, 4 }
 0x47a   :  { %v2516_v43 = vadd.f32 %v2515_v21, %v16037_v13 }
 0x47b   :  { %v2428_v52 = vrot.slane %v2427_v47, 2  ;;  %v2453_v53 = vadd.f32 %v2452_v5, %v10642_v10  ;;  %v2501_v35 = vadd.f32 %v2500_v38, %v2499_v29  ;;  %v16045_v38 = vld [vmem:[#allocation28_spill] sm:$0xff] }
 0x47c   :  { %v2517_v11 = vadd.f32 %v2516_v43, %v16038_v23  ;;  %v16042_v43 = vld [vmem:[#allocation97_spill] sm:$0xff] }
 0x47d   :  { %v2429_v59 = vadd.f32 %v2428_v52, %v2427_v47  ;;  %v2454_v39 = vadd.f32 %v2453_v53, %v10656_v20  ;;  %v2502_v20 = vrot.slane %v2501_v35, 2 }
 0x47e   :  { %v2518_v22 = vadd.f32 %v2517_v11, %v16039_v6  ;;  %v16043_v11 = vld [vmem:[#allocation67_spill] sm:$0xff] }
 0x47f   :  { %v2430_v4 = vrot.slane %v2429_v59, 1  ;;  %v2455_v47 = vadd.f32 %v2454_v39, %v10670_v62  ;;  %v16047_v39 = vld [vmem:[#allocation100_spill] sm:$0xff] }
 0x480   :  { %v2519_v60 = vadd.f32 %v2518_v22, %v16040_v36  ;;  %v16044_v22 = vld [vmem:[#allocation16_spill] sm:$0xff] }
 0x481   :  { %v2431_v52 = vadd.f32 %v2430_v4, %v2429_v59  ;;  %v2456_v18 = vadd.f32 %v2455_v47, %v10684_v42 }
 0x482   :  { %v2520_v21 = vadd.f32 %v2519_v60, %v16041_v17  ;;  %v2503_v60 = vadd.f32 %v2502_v20, %v2501_v35  ;;  %v16050_v35 = vld [vmem:[#allocation40_spill] sm:$0xff] }
 0x483   :  { %v2457_v5 = vadd.f32 %v2456_v18, %v10698_v19  ;;  %v10798_v13 = vmul.f32 0.00390625, %v2431_v52  ;;  %v10814_v18 = vpop.f32.mrf.mxu0 }
 0x484   :  { %v2521_v23 = vadd.f32 %v2520_v21, %v16042_v43 }
 0x485   :  { %v2458_v53 = vadd.f32 %v2457_v5, %v10712_v12  ;;  %v10806_v4 = vsub.f32 %v16044_v22, %v10798_v13  ;;  %v10810_v29 = vsub.f32 %v16045_v38, %v10798_v13  ;;  %v16048_v5 = vld [vmem:[#allocation23_spill] sm:$0xff] }
 0x486   :  { %v2522_v6 = vadd.f32 %v2521_v23, %v16043_v11 }
 0x487   :  { %v2459_v59 = vadd.f32 %v2458_v53, %v10726_v61  ;;  %16046 = vst [vmem:[#allocation94_spill] sm:$0xff] %v10810_v29  ;;  %v10820_v53 = vsub.f32 %v16048_v5, %v10798_v13  ;;  %v2675_v22 = vmul.f32 %v10806_v4, %v10806_v4  ;;  %v2679_v38 = vmul.f32 %v10810_v29, %v10810_v29  ;;  %v16051_v5 = vld [vmem:[#allocation44_spill] sm:$0xff] }
 0x488   :  { %v2523_v47 = vadd.f32 %v2522_v6, %v16047_v39 }
 0x489   :  { %v2460_v52 = vadd.f32 %v2459_v59, %v10743_v25  ;;  %16049 = vst [vmem:[#allocation16_spill] sm:$0xff] %v10820_v53  ;;  %v10830_v59 = vsub.f32 %v16050_v35, %v10798_v13  ;;  %v2683_v39 = vmul.f32 %v10820_v53, %v10820_v53  ;;  %v2803_v11 = vadd.f32 %v2679_v38, %v2675_v22 }
 0x48a   :  { %v2524_v21 = vadd.f32 %v2523_v47, %v10608_v54  ;;  %v2504_v47 = vrot.slane %v2503_v60, 1  ;;  %v10835_v54 = vsub.f32 %v16051_v5, %v10798_v13  ;;  %v16053_v5 = vld [vmem:[#allocation34_spill] sm:$0xff] }
 0x48b   :  { %v2461_v23 = vadd.f32 %v2460_v52, %v10757_v37  ;;  %v2687_v35 = vmul.f32 %v10830_v59, %v10830_v59  ;;  %v2804_v17 = vadd.f32 %v2803_v11, %v2683_v39  ;;  %v10849_v29 = vsub.f32 %v16053_v5, %v10798_v13 }
 0x48c   :  { %v2525_v6 = vadd.f32 %v2524_v21, %v10620_v30  ;;  %v2691_v22 = vmul.f32 %v10835_v54, %v10835_v54 }
 0x48d   :  { %v2462_v20 = vadd.f32 %v2461_v23, %v10814_v18  ;;  %v16052_v23 = vld [vmem:[#allocation46_spill] sm:$0xff]  ;;  %v2805_v38 = vadd.f32 %v2804_v17, %v2687_v35 }
 0x48e   :  { %v2526_v52 = vadd.f32 %v2525_v6, %v10632_v3  ;;  %v10842_v30 = vsub.f32 %v16052_v23, %v10798_v13  ;;  %v2505_v6 = vadd.f32 %v2504_v47, %v2503_v60  ;;  %v16054_v23 = vld [vmem:[#allocation81_spill] sm:$0xff]  ;;  %v16055_v47 = vld [vmem:[#allocation36_spill] sm:$0xff] }
 0x48f   :  { %v2463_v21 = vrot.slane %v2462_v20, 4  ;;  %v10856_v53 = vsub.f32 %v16054_v23, %v10798_v13  ;;  %v2806_v39 = vadd.f32 %v2805_v38, %v2691_v22  ;;  %v10865_v5 = vsub.f32 %v16055_v47, %v10798_v13  ;;  %v16057_v38 = vld [vmem:[#allocation27_spill] sm:$0xff] }
 0x490   :  { %v2527_v43 = vadd.f32 %v2526_v52, %v10644_v50  ;;  %v2695_v11 = vmul.f32 %v10842_v30, %v10842_v30  ;;  %v16059_v47 = vld [vmem:[#allocation19_spill] sm:$0xff] }
 0x491   :  { %v2464_v50 = vadd.f32 %v2463_v21, %v2462_v20  ;;  %v16056_v21 = vld [vmem:[#allocation83_spill] sm:$0xff] }
 0x492   :  { %v2528_v3 = vadd.f32 %v2527_v43, %v10658_v27  ;;  %v10860_v43 = vmul.f32 0.00390625, %v2505_v6  ;;  %v2807_v17 = vadd.f32 %v2806_v39, %v2695_v11  ;;  %v10872_v35 = vsub.f32 %v16056_v21, %v10798_v13  ;;  %v16061_v39 = vld [vmem:[#allocation85_spill] sm:$0xff] }
 0x493   :  { %v2465_v23 = vrot.slane %v2464_v50, 2  ;;  %v2703_v6 = vmul.f32 %v10856_v53, %v10856_v53  ;;  %v2707_v21 = vmul.f32 %v10865_v5, %v10865_v5 }
 0x494   :  { %v2529_v52 = vadd.f32 %v2528_v3, %v10672_v9  ;;  %v2699_v3 = vmul.f32 %v10849_v29, %v10849_v29 }
 0x495   :  { %v2466_v9 = vadd.f32 %v2465_v23, %v2464_v50  ;;  %v16068_v23 = vld [vmem:[#allocation41_spill] sm:$0xff] }
 0x496   :  { %v2530_v60 = vadd.f32 %v2529_v52, %v10686_v40  ;;  %v2808_v22 = vadd.f32 %v2807_v17, %v2699_v3  ;;  %v10878_v52 = vsub.f32 %v16057_v38, %v10860_v43  ;;  %v10882_v40 = vsub.f32 %v16059_v47, %v10860_v43  ;;  %v16063_v17 = vld [vmem:[#allocation87_spill] sm:$0xff] }
 0x497   :  { %v10894_v38 = vsub.f32 %v16063_v17, %v10798_v13  ;;  %v2711_v47 = vmul.f32 %v10872_v35, %v10872_v35  ;;  %v10917_v17 = vpop.f32.mrf.mxu1 }
 0x498   :  { %v2531_v20 = vadd.f32 %v2530_v60, %v10700_v57  ;;  %16058 = vst [vmem:[#allocation28_spill] sm:$0xff] %v10878_v52  ;;  %16060 = vst [vmem:[#allocation23_spill] sm:$0xff] %v10882_v40  ;;  %v10887_v60 = vsub.f32 %v16061_v39, %v10798_v13  ;;  %v2809_v57 = vadd.f32 %v2808_v22, %v2703_v6 }
 0x499   :  { %16064 = vst [vmem:[#allocation44_spill] sm:$0xff] %v10894_v38  ;;  %v2677_v39 = vmul.f32 %v10878_v52, %v10878_v52  ;;  %v2681_v6 = vmul.f32 %v10882_v40, %v10882_v40  ;;  %16070 = vst [vmem:[#allocation36_spill] sm:$0xff] %v10917_v17  ;;  %v16072_v52 = vld [vmem:[#allocation75_spill] sm:$0xff] }
 0x49a   :  { %v2532_v11 = vadd.f32 %v2531_v20, %v10714_v15  ;;  %16062 = vst [vmem:[#allocation40_spill] sm:$0xff] %v10887_v60  ;;  %v2810_v27 = vadd.f32 %v2809_v57, %v2707_v21  ;;  %v16065_v20 = vld [vmem:[#allocation24_spill] sm:$0xff]  ;;  %v2715_v50 = vmul.f32 %v10887_v60, %v10887_v60  ;;  %v10915_v21 = vsub.f32 %v16068_v23, %v10860_v43  ;;  %v16074_v60 = vld [vmem:[#allocation61_spill] sm:$0xff] }
 0x49b   :  { %v10900_v15 = vsub.f32 %v16065_v20, %v10860_v43  ;;  %v2877_v23 = vadd.f32 %v2681_v6, %v2677_v39  ;;  %v10949_v39 = vsub.f32 %v10559_v28, %v10798_v13  ;;  %v10965_v28 = vsub.f32 %v10578_v7, %v10798_v13 }
 0x49c   :  { %v2533_v3 = vadd.f32 %v2532_v11, %v10728_v33  ;;  %v10909_v11 = vsub.f32 %v10535_v14, %v10798_v13  ;;  %v2811_v57 = vadd.f32 %v2810_v27, %v2711_v47  ;;  %16069 = vst [vmem:[#allocation81_spill] sm:$0xff] %v10915_v21  ;;  %v16071_v33 = vld [vmem:[#allocation59_spill] sm:$0xff]  ;;  %v2719_v14 = vmul.f32 %v10894_v38, %v10894_v38 }
 0x49d   :  { %16066 = vst [vmem:[#allocation46_spill] sm:$0xff] %v10900_v15  ;;  %v10922_v40 = vsub.f32 %v16071_v33, %v10798_v13  ;;  %v10928_v27 = vsub.f32 %v16072_v52, %v10860_v43  ;;  %v2685_v47 = vmul.f32 %v10900_v15, %v10900_v15  ;;  %v2689_v52 = vmul.f32 %v10915_v21, %v10915_v21 }
 0x49e   :  { %v2534_v22 = vadd.f32 %v2533_v3, %v10749_v32  ;;  %16067 = vst [vmem:[#allocation34_spill] sm:$0xff] %v10909_v11  ;;  %v2467_v3 = vrot.slane %v2466_v9, 1  ;;  %v2812_v32 = vadd.f32 %v2811_v57, %v2715_v50  ;;  %v2723_v33 = vmul.f32 %v10909_v11, %v10909_v11  ;;  %v16075_v50 = vld [vmem:[#allocation77_spill] sm:$0xff] }
 0x49f   :  { %16073 = vst [vmem:[#allocation83_spill] sm:$0xff] %v10928_v27  ;;  %v10943_v57 = vsub.f32 %v16075_v50, %v10860_v43  ;;  %v2878_v15 = vadd.f32 %v2877_v23, %v2685_v47  ;;  %v10961_v47 = vsub.f32 %v10567_v46, %v10798_v13  ;;  %v16079_v23 = vld [vmem:[#allocation30_spill] sm:$0xff]  ;;  %v10978_v46 = vsub.f32 %v10588_v16, %v10798_v13 }
 0x4a0   :  { %v2535_v20 = vadd.f32 %v2534_v22, %v10774_v34  ;;  %v10934_v22 = vsub.f32 %v16074_v60, %v10798_v13  ;;  %v2813_v38 = vadd.f32 %v2812_v32, %v2719_v14  ;;  %v2727_v60 = vmul.f32 %v10922_v40, %v10922_v40 }
 0x4a1   :  { %16076 = vst [vmem:[#allocation27_spill] sm:$0xff] %v10943_v57  ;;  %v2468_v6 = vadd.f32 %v2467_v3, %v2466_v9  ;;  %v2693_v14 = vmul.f32 %v10928_v27, %v10928_v27  ;;  %v2879_v50 = vadd.f32 %v2878_v15, %v2689_v52  ;;  %v2697_v15 = vmul.f32 %v10943_v57, %v10943_v57  ;;  %v16101_v27 = vld [vmem:[#allocation17_spill] sm:$0xff] }
 0x4a2   :  { %v10939_v34 = vadd.f32 %v2535_v20, %v10917_v17  ;;  %v2814_v11 = vadd.f32 %v2813_v38, %v2723_v33  ;;  %v16077_v20 = vld [vmem:[#allocation48_spill] sm:$0xff]  ;;  %v2731_v9 = vmul.f32 %v10934_v22, %v10934_v22  ;;  %v10972_v33 = vsub.f32 %v16079_v23, %v10860_v43  ;;  %v16083_v23 = vld [vmem:[#allocation50_spill] sm:$0xff] }
 0x4a3   :  { %v10955_v32 = vsub.f32 %v16077_v20, %v10860_v43  ;;  %v2880_v52 = vadd.f32 %v2879_v50, %v2693_v14  ;;  %v10982_v7 = vsub.f32 %v10600_v0, %v10798_v13  ;;  %v10986_v20 = vsub.f32 %v10612_v49, %v10798_v13 }
 0x4a4   :  { %v2815_v3 = vadd.f32 %v2814_v11, %v2727_v60  ;;  %16080 = vst [vmem:[#allocation85_spill] sm:$0xff] %v10972_v33  ;;  %v2735_v11 = vmul.f32 %v10949_v39, %v10949_v39  ;;  %v10992_v38 = vsub.f32 %v16083_v23, %v10860_v43  ;;  %v10998_v0 = vsub.f32 %v10624_v8, %v10798_v13  ;;  %v16088_v23 = vld [vmem:[#allocation52_spill] sm:$0xff] }
 0x4a5   :  { %16078 = vst [vmem:[#allocation19_spill] sm:$0xff] %v10955_v32  ;;  %16081 = vst [vmem:[#allocation87_spill] sm:$0xff] %v10982_v7  ;;  %v2701_v16 = vmul.f32 %v10955_v32, %v10955_v32  ;;  %v2881_v14 = vadd.f32 %v2880_v52, %v2697_v15  ;;  %v11002_v49 = vsub.f32 %v10636_v2, %v10798_v13 }
 0x4a6   :  { %16082 = vst [vmem:[#allocation24_spill] sm:$0xff] %v10986_v20  ;;  %v2816_v60 = vadd.f32 %v2815_v3, %v2731_v9  ;;  %16084 = vst [vmem:[#allocation41_spill] sm:$0xff] %v10992_v38  ;;  %v11006_v50 = vsub.f32 %v10648_v45, %v10798_v13  ;;  %v2739_v9 = vmul.f32 %v10961_v47, %v10961_v47 }
 0x4a7   :  { %16085 = vst [vmem:[#allocation59_spill] sm:$0xff] %v10998_v0  ;;  %16086 = vst [vmem:[#allocation75_spill] sm:$0xff] %v11002_v49  ;;  %v11012_v17 = vsub.f32 %v16088_v23, %v10860_v43  ;;  %v2705_v8 = vmul.f32 %v10972_v33, %v10972_v33  ;;  %v2882_v15 = vadd.f32 %v2881_v14, %v2701_v16  ;;  %v11032_v14 = vmul.f32 0.00390625, %v2468_v6 }
 0x4a8   :  { %16087 = vst [vmem:[#allocation61_spill] sm:$0xff] %v11006_v50  ;;  %v2817_v3 = vadd.f32 %v2816_v60, %v2735_v11  ;;  %v11018_v2 = vsub.f32 %v10663_v24, %v10798_v13  ;;  %v11022_v45 = vsub.f32 %v10677_v56, %v10798_v13  ;;  %v2743_v52 = vmul.f32 %v10965_v28, %v10965_v28  ;;  %v16092_v11 = vld [vmem:[#allocation54_spill] sm:$0xff] }
 0x4a9   :  { %16089 = vst [vmem:[#allocation77_spill] sm:$0xff] %v11012_v17  ;;  %v11028_v60 = vsub.f32 %v16092_v11, %v10860_v43  ;;  %v2709_v33 = vmul.f32 %v10992_v38, %v10992_v38  ;;  %v2883_v16 = vadd.f32 %v2882_v15, %v2705_v8  ;;  %v11036_v24 = vsub.f32 %v10691_v48, %v10798_v13  ;;  %v16096_v8 = vld [vmem:[#allocation56_spill] sm:$0xff]  ;;  %v16098_v11 = vld [vmem:[#allocation109_spill] sm:$0xff] }
 0x4aa   :  { %16090 = vst [vmem:[#allocation48_spill] sm:$0xff] %v11018_v2  ;;  %16091 = vst [vmem:[#allocation30_spill] sm:$0xff] %v11022_v45  ;;  %v2818_v23 = vadd.f32 %v2817_v3, %v2739_v9  ;;  %v11040_v56 = vsub.f32 %v10705_v26, %v10798_v13  ;;  %v11044_v32 = vsub.f32 %v10719_v44, %v10798_v13  ;;  %v16099_v38 = vld [vmem:[#allocation89_spill] sm:$0xff] }
 0x4ab   :  { %16093 = vst [vmem:[#allocation50_spill] sm:$0xff] %v11028_v60  ;;  %16094 = vst [vmem:[#allocation52_spill] sm:$0xff] %v11036_v24  ;;  %v2747_v9 = vmul.f32 %v10978_v46, %v10978_v46  ;;  %v11050_v6 = vsub.f32 %v16096_v8, %v10860_v43  ;;  %v2713_v48 = vmul.f32 %v11012_v17, %v11012_v17 }
 0x4ac   :  { %16095 = vst [vmem:[#allocation54_spill] sm:$0xff] %v11044_v32  ;;  %v2819_v3 = vadd.f32 %v2818_v23, %v2743_v52  ;;  %v2884_v15 = vadd.f32 %v2883_v16, %v2709_v33  ;;  %v11056_v26 = vsub.f32 %v16098_v11, %v10798_v13  ;;  %v2751_v44 = vmul.f32 %v10982_v7, %v10982_v7  ;;  %v16103_v33 = vld [vmem:[#allocation29_spill] sm:$0xff]  ;;  %v16105_v11 = vld [vmem:[#allocation111_spill] sm:$0xff] }
 0x4ad   :  { %16097 = vst [vmem:[#allocation56_spill] sm:$0xff] %v11050_v6  ;;  %v11062_v57 = vsub.f32 %v16099_v38, %v10860_v43  ;;  %v2717_v52 = vmul.f32 %v11028_v60, %v11028_v60  ;;  %v11068_v17 = vsub.f32 %v16101_v27, %v11032_v14  ;;  %v11072_v16 = vsub.f32 %v16103_v33, %v11032_v14  ;;  %v16122_v7 = vld [vmem:[#allocation47_spill] sm:$0xff] }
 0x4ae   :  { %v2820_v23 = vadd.f32 %v2819_v3, %v2747_v9  ;;  %v2885_v8 = vadd.f32 %v2884_v15, %v2713_v48  ;;  %v11076_v21 = vsub.f32 %v16105_v11, %v10798_v13  ;;  %v11080_v38 = vsub.f32 %v10765_v31, %v10798_v13  ;;  %v16106_v48 = vld [vmem:[#allocation91_spill] sm:$0xff]  ;;  %v16108_v31 = vld [vmem:[#allocation93_spill] sm:$0xff] }
 0x4af   :  { %16100 = vst [vmem:[#allocation109_spill] sm:$0xff] %v11062_v57  ;;  %16102 = vst [vmem:[#allocation89_spill] sm:$0xff] %v11068_v17  ;;  %v2755_v9 = vmul.f32 %v10986_v20, %v10986_v20  ;;  %v2759_v3 = vmul.f32 %v10998_v0, %v10998_v0  ;;  %v11088_v15 = vsub.f32 %v16106_v48, %v10860_v43 }
 0x4b0   :  { %16104 = vst [vmem:[#allocation17_spill] sm:$0xff] %v11072_v16  ;;  %v2821_v27 = vadd.f32 %v2820_v23, %v2751_v44  ;;  %v2721_v33 = vmul.f32 %v11050_v6, %v11050_v6  ;;  %v2886_v11 = vadd.f32 %v2885_v8, %v2717_v52  ;;  %v2763_v60 = vmul.f32 %v11002_v49, %v11002_v49  ;;  %v16110_v44 = vld [vmem:[#allocation25_spill] sm:$0xff] }
 0x4b1   :  { %16107 = vst [vmem:[#allocation29_spill] sm:$0xff] %v11088_v15  ;;  %v11096_v13 = vsub.f32 %v16108_v31, %v10860_v43  ;;  %v2725_v20 = vmul.f32 %v11062_v57, %v11062_v57  ;;  %v11102_v23 = vsub.f32 %v16110_v44, %v11032_v14  ;;  %v2676_v6 = vmul.f32 %v11068_v17, %v11068_v17  ;;  %v16112_v44 = vld [vmem:[#allocation63_spill] sm:$0xff] }
 0x4b2   :  { %v2822_v48 = vadd.f32 %v2821_v27, %v2755_v9  ;;  %v2887_v0 = vadd.f32 %v2886_v11, %v2721_v33  ;;  %v2680_v52 = vmul.f32 %v11072_v16, %v11072_v16  ;;  %v2767_v8 = vmul.f32 %v11006_v50, %v11006_v50  ;;  %v16114_v11 = vld [vmem:[#allocation20_spill] sm:$0xff] }
 0x4b3   :  { %16109 = vst [vmem:[#allocation111_spill] sm:$0xff] %v11096_v13  ;;  %16111 = vst [vmem:[#allocation91_spill] sm:$0xff] %v11102_v23  ;;  %v2771_v31 = vmul.f32 %v11018_v2, %v11018_v2  ;;  %v2775_v57 = vmul.f32 %v11022_v45, %v11022_v45  ;;  %v11116_v49 = vsub.f32 %v16112_v44, %v10860_v43  ;;  %v16116_v2 = vld [vmem:[#allocation96_spill] sm:$0xff]  ;;  %v16120_v45 = vld [vmem:[#allocation66_spill] sm:$0xff] }
 0x4b4   :  { %v2823_v9 = vadd.f32 %v2822_v48, %v2759_v3  ;;  %v2729_v27 = vmul.f32 %v11088_v15, %v11088_v15  ;;  %v2888_v33 = vadd.f32 %v2887_v0, %v2725_v20  ;;  %v11122_v16 = vsub.f32 %v16114_v11, %v11032_v14  ;;  %v16118_v3 = vld [vmem:[#allocation45_spill] sm:$0xff] }
 0x4b5   :  { %16113 = vst [vmem:[#allocation93_spill] sm:$0xff] %v11116_v49  ;;  %v2779_v17 = vmul.f32 %v11036_v24, %v11036_v24  ;;  %v11128_v50 = vsub.f32 %v16116_v2, %v10860_v43  ;;  %v2733_v44 = vmul.f32 %v11096_v13, %v11096_v13  ;;  %v11134_v48 = vsub.f32 %v16118_v3, %v11032_v14 }
 0x4b6   :  { %16115 = vst [vmem:[#allocation25_spill] sm:$0xff] %v11122_v16  ;;  %v2824_v15 = vadd.f32 %v2823_v9, %v2763_v60  ;;  %v2889_v20 = vadd.f32 %v2888_v33, %v2729_v27  ;;  %v2684_v0 = vmul.f32 %v11102_v23, %v11102_v23  ;;  %v2840_v11 = vadd.f32 %v2680_v52, %v2676_v6  ;;  %v16124_v33 = vld [vmem:[#allocation99_spill] sm:$0xff] }
 0x4b7   :  { %16117 = vst [vmem:[#allocation63_spill] sm:$0xff] %v11128_v50  ;;  %16119 = vst [vmem:[#allocation20_spill] sm:$0xff] %v11134_v48  ;;  %v2783_v24 = vmul.f32 %v11040_v56, %v11040_v56  ;;  %v11142_v2 = vsub.f32 %v16120_v45, %v10860_v43  ;;  %v2737_v13 = vmul.f32 %v11116_v49, %v11116_v49  ;;  %v16126_v49 = vld [vmem:[#allocation80_spill] sm:$0xff] }
 0x4b8   :  { %v11148_v3 = vsub.f32 %v16122_v7, %v11032_v14  ;;  %v2825_v60 = vadd.f32 %v2824_v15, %v2767_v8  ;;  %v2890_v9 = vadd.f32 %v2889_v20, %v2733_v44  ;;  %v2688_v27 = vmul.f32 %v11122_v16, %v11122_v16  ;;  %v16130_v16 = vld [vmem:[#allocation35_spill] sm:$0xff] }
 0x4b9   :  { %16121 = vst [vmem:[#allocation96_spill] sm:$0xff] %v11142_v2  ;;  %v2841_v6 = vadd.f32 %v2840_v11, %v2684_v0  ;;  %v2787_v52 = vmul.f32 %v11044_v32, %v11044_v32  ;;  %v11156_v45 = vsub.f32 %v16124_v33, %v10860_v43  ;;  %v2741_v23 = vmul.f32 %v11128_v50, %v11128_v50  ;;  %v16128_v0 = vld [vmem:[#allocation69_spill] sm:$0xff] }
 0x4ba   :  { %16123 = vst [vmem:[#allocation45_spill] sm:$0xff] %v11148_v3  ;;  %v11162_v7 = vsub.f32 %v16126_v49, %v11032_v14  ;;  %v2826_v15 = vadd.f32 %v2825_v60, %v2771_v31  ;;  %v2891_v8 = vadd.f32 %v2890_v9, %v2737_v13  ;;  %v2692_v44 = vmul.f32 %v11134_v48, %v11134_v48 }
 0x4bb   :  { %16125 = vst [vmem:[#allocation66_spill] sm:$0xff] %v11156_v45  ;;  %v2842_v20 = vadd.f32 %v2841_v6, %v2688_v27  ;;  %v11168_v11 = vsub.f32 %v16128_v0, %v10860_v43  ;;  %v2745_v33 = vmul.f32 %v11142_v2, %v11142_v2  ;;  %v11174_v50 = vsub.f32 %v16130_v16, %v11032_v14  ;;  %v16133_v0 = vld [vmem:[#allocation38_spill] sm:$0xff] }
 0x4bc   :  { %16127 = vst [vmem:[#allocation47_spill] sm:$0xff] %v11162_v7  ;;  %v16132_v49 = vrot.slane %v10939_v34, 4  ;;  %v2827_v13 = vadd.f32 %v2826_v15, %v2775_v57  ;;  %v2892_v60 = vadd.f32 %v2891_v8, %v2741_v23  ;;  %v2696_v9 = vmul.f32 %v11148_v3, %v11148_v3  ;;  %v16135_v2 = vld [vmem:[#allocation82_spill] sm:$0xff]  ;;  %v16137_v8 = vld [vmem:[#allocation71_spill] sm:$0xff] }
 0x4bd   :  { %16129 = vst [vmem:[#allocation99_spill] sm:$0xff] %v11168_v11  ;;  %16131 = vst [vmem:[#allocation80_spill] sm:$0xff] %v11174_v50  ;;  %v2843_v27 = vadd.f32 %v2842_v20, %v2692_v44  ;;  %v2791_v6 = vmul.f32 %v11056_v26, %v11056_v26  ;;  %v11185_v48 = vsub.f32 %v16133_v0, %v10860_v43 }
 0x4be   :  { %v2538_v31 = vadd.f32 %v16132_v49, %v10939_v34  ;;  %v2749_v16 = vmul.f32 %v11156_v45, %v11156_v45  ;;  %v11191_v32 = vsub.f32 %v16135_v2, %v11032_v14  ;;  %v2828_v34 = vadd.f32 %v2827_v13, %v2779_v17  ;;  %v16139_v49 = vld [vmem:[#allocation84_spill] sm:$0xff] }
 0x4bf   :  { %16134 = vst [vmem:[#allocation69_spill] sm:$0xff] %v11185_v48  ;;  %v2893_v57 = vadd.f32 %v2892_v60, %v2745_v33  ;;  %v2700_v23 = vmul.f32 %v11162_v7, %v11162_v7  ;;  %v2844_v15 = vadd.f32 %v2843_v27, %v2696_v9  ;;  %v11197_v44 = vsub.f32 %v16137_v8, %v10860_v43  ;;  %v16141_v60 = vld [vmem:[#allocation39_spill] sm:$0xff]  ;;  %v16143_v8 = vld [vmem:[#allocation86_spill] sm:$0xff] }
 0x4c0   :  { %16136 = vst [vmem:[#allocation35_spill] sm:$0xff] %v11191_v32  ;;  %v2753_v20 = vmul.f32 %v11168_v11, %v11168_v11  ;;  %v11203_v0 = vsub.f32 %v16139_v49, %v11032_v14  ;;  %v2539_v3 = vrot.slane %v2538_v31, 2  ;;  %v2829_v2 = vadd.f32 %v2828_v34, %v2783_v24 }
 0x4c1   :  { %16138 = vst [vmem:[#allocation38_spill] sm:$0xff] %v11197_v44  ;;  %v2894_v45 = vadd.f32 %v2893_v57, %v2749_v16  ;;  %v2704_v17 = vmul.f32 %v11174_v50, %v11174_v50  ;;  %v2845_v33 = vadd.f32 %v2844_v15, %v2700_v23  ;;  %v2795_v13 = vmul.f32 %v11076_v21, %v11076_v21  ;;  %v16145_v23 = vld [vmem:[#allocation104_spill] sm:$0xff] }
 0x4c2   :  { %16140 = vst [vmem:[#allocation82_spill] sm:$0xff] %v11203_v0  ;;  %v11211_v9 = vsub.f32 %v16141_v60, %v10860_v43  ;;  %v2757_v27 = vmul.f32 %v11185_v48, %v11185_v48  ;;  %v11217_v49 = vsub.f32 %v16143_v8, %v11032_v14  ;;  %v2830_v24 = vadd.f32 %v2829_v2, %v2787_v52  ;;  %v16147_v50 = vld [vmem:[#allocation88_spill] sm:$0xff] }
 0x4c3   :  { %v2895_v16 = vadd.f32 %v2894_v45, %v2753_v20  ;;  %v2708_v34 = vmul.f32 %v11191_v32, %v11191_v32  ;;  %v2846_v57 = vadd.f32 %v2845_v33, %v2704_v17  ;;  %v11223_v15 = vsub.f32 %v16145_v23, %v10860_v43  ;;  %v16149_v2 = vld [vmem:[#allocation32_spill] sm:$0xff] }
 0x4c4   :  { %16142 = vst [vmem:[#allocation71_spill] sm:$0xff] %v11211_v9  ;;  %16144 = vst [vmem:[#allocation84_spill] sm:$0xff] %v11217_v49  ;;  %v2761_v60 = vmul.f32 %v11197_v44, %v11197_v44  ;;  %v11229_v7 = vsub.f32 %v16147_v50, %v11032_v14  ;;  %v2540_v48 = vadd.f32 %v2539_v3, %v2538_v31  ;;  %v16151_v50 = vld [vmem:[#allocation58_spill] sm:$0xff] }
 0x4c5   :  { %16146 = vst [vmem:[#allocation39_spill] sm:$0xff] %v11223_v15  ;;  %v2831_v8 = vadd.f32 %v2830_v24, %v2791_v6  ;;  %v2896_v11 = vadd.f32 %v2895_v16, %v2757_v27  ;;  %v2712_v52 = vmul.f32 %v11203_v0, %v11203_v0  ;;  %v2847_v45 = vadd.f32 %v2846_v57, %v2708_v34  ;;  %v16153_v24 = vld [vmem:[#allocation33_spill] sm:$0xff]  ;;  %v16155_v57 = vld [vmem:[#allocation60_spill] sm:$0xff] }
 0x4c6   :  { %16148 = vst [vmem:[#allocation86_spill] sm:$0xff] %v11229_v7  ;;  %v2799_v20 = vmul.f32 %v11080_v38, %v11080_v38  ;;  %v11237_v17 = vsub.f32 %v16149_v2, %v10860_v43  ;;  %v2765_v33 = vmul.f32 %v11211_v9, %v11211_v9  ;;  %v11243_v23 = vsub.f32 %v16151_v50, %v11032_v14 }
 0x4c7   :  { %v2832_v3 = vadd.f32 %v2831_v8, %v2795_v13  ;;  %v2897_v31 = vadd.f32 %v2896_v11, %v2761_v60  ;;  %v2716_v6 = vmul.f32 %v11217_v49, %v11217_v49  ;;  %v2848_v27 = vadd.f32 %v2847_v45, %v2712_v52  ;;  %v16158_v52 = vld [vmem:[#allocation62_spill] sm:$0xff] }
 0x4c8   :  { %16150 = vst [vmem:[#allocation104_spill] sm:$0xff] %v11237_v17  ;;  %16152 = vst [vmem:[#allocation88_spill] sm:$0xff] %v11243_v23  ;;  %v11249_v16 = vsub.f32 %v16153_v24, %v10860_v43  ;;  %v2769_v34 = vmul.f32 %v11223_v15, %v11223_v15  ;;  %v11255_v2 = vsub.f32 %v16155_v57, %v11032_v14  ;;  %v2541_v0 = vrot.slane %v2540_v48, 1 }
 0x4c9   :  { %v2833_v50 = vadd.f32 %v2832_v3, %v2799_v20  ;;  %v2898_v32 = vadd.f32 %v2897_v31, %v2765_v33  ;;  %v2720_v11 = vmul.f32 %v11229_v7, %v11229_v7  ;;  %v2849_v13 = vadd.f32 %v2848_v27, %v2716_v6  ;;  %v16160_v3 = vld [vmem:[#allocation106_spill] sm:$0xff]  ;;  %v16162_v6 = vld [vmem:[#allocation95_spill] sm:$0xff] }
 0x4ca   :  { %16154 = vst [vmem:[#allocation32_spill] sm:$0xff] %v11249_v16  ;;  %16156 = vst [vmem:[#allocation58_spill] sm:$0xff] %v11255_v2  ;;  %v11261_v60 = vsub.f32 %v10693_v1, %v10860_v43  ;;  %v2773_v8 = vmul.f32 %v11237_v17, %v11237_v17  ;;  %v11267_v45 = vsub.f32 %v16158_v52, %v11032_v14 }
 0x4cb   :  { %v2834_v24 = vrot.slane %v2833_v50, 4  ;;  %v2899_v57 = vadd.f32 %v2898_v32, %v2769_v34  ;;  %v2724_v20 = vmul.f32 %v11243_v23, %v11243_v23  ;;  %v2850_v33 = vadd.f32 %v2849_v13, %v2720_v11 }
 0x4cc   :  { %16157 = vst [vmem:[#allocation33_spill] sm:$0xff] %v11261_v60  ;;  %16159 = vst [vmem:[#allocation60_spill] sm:$0xff] %v11267_v45  ;;  %v11273_v31 = vsub.f32 %v16160_v3, %v10860_v43  ;;  %v2777_v1 = vmul.f32 %v11249_v16, %v11249_v16  ;;  %v11279_v27 = vsub.f32 %v16162_v6, %v11032_v14  ;;  %v16165_v3 = vld [vmem:[#allocation65_spill] sm:$0xff] }
 0x4cd   :  { %v2542_v7 = vadd.f32 %v2541_v0, %v2540_v48  ;;  %v2835_v52 = vadd.f32 %v2834_v24, %v2833_v50  ;;  %v2900_v49 = vadd.f32 %v2899_v57, %v2773_v8  ;;  %v2728_v32 = vmul.f32 %v11255_v2, %v11255_v2  ;;  %v16168_v8 = vld [vmem:[#allocation98_spill] sm:$0xff] }
 0x4ce   :  { %16161 = vst [vmem:[#allocation62_spill] sm:$0xff] %v11273_v31  ;;  %16163 = vst [vmem:[#allocation106_spill] sm:$0xff] %v11279_v27  ;;  %v2851_v34 = vadd.f32 %v2850_v33, %v2724_v20  ;;  %v11285_v11 = vsub.f32 %v10721_v41, %v10860_v43  ;;  %v2781_v13 = vmul.f32 %v11261_v60, %v11261_v60  ;;  %v16238_v60 = vld [vmem:[#allocation54_spill] sm:$0xff] }
 0x4cf   :  { %v11291_v23 = vsub.f32 %v16165_v3, %v11032_v14  ;;  %v2836_v6 = vrot.slane %v2835_v52, 2  ;;  %v2901_v16 = vadd.f32 %v2900_v49, %v2777_v1  ;;  %v2732_v48 = vmul.f32 %v11267_v45, %v11267_v45 }
 0x4d0   :  { %16164 = vst [vmem:[#allocation95_spill] sm:$0xff] %v11285_v11  ;;  %v2852_v0 = vadd.f32 %v2851_v34, %v2728_v32  ;;  %v11297_v50 = vsub.f32 %v10737_v58, %v10860_v43  ;;  %v2785_v41 = vmul.f32 %v11273_v31, %v11273_v31  ;;  %v11303_v24 = vsub.f32 %v16168_v8, %v11032_v14  ;;  %v16179_v8 = vld [vmem:[#allocation22_spill] sm:$0xff]  ;;  %v16237_v31 = vld [vmem:[#allocation52_spill] sm:$0xff] }
 0x4d1   :  { %16166 = vst [vmem:[#allocation65_spill] sm:$0xff] %v11291_v23  ;;  %v11305_v57 = vmul.f32 0.00390625, %v2542_v7  ;;  %v2837_v20 = vadd.f32 %v2836_v6, %v2835_v52  ;;  %v2902_v33 = vadd.f32 %v2901_v16, %v2781_v13  ;;  %v2736_v49 = vmul.f32 %v11279_v27, %v11279_v27  ;;  %v16173_v7 = vld [vmem:[#allocation68_spill] sm:$0xff]  ;;  %v16181_v27 = vld [vmem:[#allocation70_spill] sm:$0xff] }
 0x4d2   :  { %16167 = vst [vmem:[#allocation113_spill] sm:$0xff] %v11297_v50  ;;  %16169 = vst [vmem:[#allocation98_spill] sm:$0xff] %v11303_v24  ;;  %v2853_v1 = vadd.f32 %v2852_v0, %v2732_v48  ;;  %v11311_v32 = vsub.f32 %v10763_v63, %v10860_v43  ;;  %v11315_v58 = vsub.f32 %v10782_v55, %v10860_v43  ;;  %v16175_v48 = vld [vmem:[#allocation101_spill] sm:$0xff]  ;;  %v16177_v43 = vld [vmem:[#allocation18_spill] sm:$0xff] }
 0x4d3   :  { %16170 = vst [vmem:[#allocation114_spill] sm:$0xff] %v11305_v57  ;;  %v2789_v34 = vmul.f32 %v11285_v11, %v11285_v11  ;;  %v11321_v3 = vsub.f32 %v16173_v7, %v11032_v14  ;;  %v2838_v16 = vrot.slane %v2837_v20, 1  ;;  %v2903_v52 = vadd.f32 %v2902_v33, %v2785_v41  ;;  %v16236_v11 = vld [vmem:[#allocation30_spill] sm:$0xff] }
 0x4d4   :  { %16171 = vst [vmem:[#allocation115_spill] sm:$0xff] %v11311_v32  ;;  %16172 = vst [vmem:[#allocation116_spill] sm:$0xff] %v11315_v58  ;;  %v2740_v13 = vmul.f32 %v11291_v23, %v11291_v23  ;;  %v2854_v6 = vadd.f32 %v2853_v1, %v2736_v49  ;;  %v2793_v63 = vmul.f32 %v11297_v50, %v11297_v50  ;;  %v16235_v50 = vld [vmem:[#allocation48_spill] sm:$0xff] }
 0x4d5   :  { %16174 = vst [vmem:[#allocation68_spill] sm:$0xff] %v11321_v3  ;;  %v11329_v55 = vsub.f32 %v16175_v48, %v11032_v14  ;;  %v11333_v0 = vsub.f32 %v16177_v43, %v11305_v57  ;;  %v11337_v7 = vsub.f32 %v16179_v8, %v11305_v57  ;;  %v2839_v41 = vadd.f32 %v2838_v16, %v2837_v20  ;;  %v11352_v8 = vld [vmem:[%s14991_s7] sm:$0xf] }
 0x4d6   :  { %v2904_v33 = vadd.f32 %v2903_v52, %v2789_v34  ;;  %v2744_v49 = vmul.f32 %v11303_v24, %v11303_v24  ;;  %v2855_v1 = vadd.f32 %v2854_v6, %v2740_v13  ;;  %v2797_v23 = vmul.f32 %v11311_v32, %v11311_v32  ;;  %v16184_v6 = vld [vmem:[#allocation26_spill] sm:$0xff]  ;;  %v16234_v32 = vld [vmem:[#allocation61_spill] sm:$0xff] }
 0x4d7   :  { %16176 = vst [vmem:[#allocation101_spill] sm:$0xff] %v11329_v55  ;;  %16178 = vst [vmem:[#allocation18_spill] sm:$0xff] %v11333_v0  ;;  %v2801_v48 = vmul.f32 %v11315_v58, %v11315_v58  ;;  %v11347_v43 = vsub.f32 %v16181_v27, %v11032_v14  ;;  %v2951_v20 = vmul.f32 0.00390625, %v2839_v41  ;;  %v2748_v16 = vmul.f32 %v11321_v3, %v11321_v3  ;;  %v16188_v3 = vld [vmem:[#allocation42_spill] sm:$0xff] }
 0x4d8   :  { %16180 = vst [vmem:[#allocation22_spill] sm:$0xff] %v11337_v7  ;;  %v2905_v34 = vadd.f32 %v2904_v33, %v2793_v63  ;;  %v2856_v52 = vadd.f32 %v2855_v1, %v2744_v49  ;;  %v11358_v13 = vsub.f32 %v10630_v51, %v11032_v14  ;;  %v11362_v24 = vsub.f32 %v16184_v6, %v11305_v57  ;;  %v11371_v63 = vld [vmem:[%s14992_s8] sm:$0xf]  ;;  %v16187_v1 = vld [vmem:[#allocation43_spill] sm:$0xff] }
 0x4d9   :  { %16182 = vst [vmem:[#allocation70_spill] sm:$0xff] %v11347_v43  ;;  %v2678_v27 = vmul.f32 %v11333_v0, %v11333_v0  ;;  %v2682_v45 = vmul.f32 %v11337_v7, %v11337_v7  ;;  %16186 = vst [vmem:[#allocation118_spill] sm:$0xff] %v11371_v63  ;;  %v2955_v41 = vadd.f32 1e-05, %v2951_v20  ;;  %v2752_v51 = vmul.f32 %v11329_v55, %v11329_v55  ;;  %v16191_v0 = vld [vmem:[#allocation21_spill] sm:$0xff] }
 0x4da   :  { %16183 = vst [vmem:[#allocation117_spill] sm:$0xff] %v11358_v13  ;;  %16185 = vst [vmem:[#allocation26_spill] sm:$0xff] %v11362_v24  ;;  %v2906_v33 = vadd.f32 %v2905_v34, %v2797_v23  ;;  %v2857_v49 = vadd.f32 %v2856_v52, %v2748_v16  ;;  %v2967_v6 = vrot.slane %v11352_v8, %v16187_v1  ;;  %v11378_v2 = vsub.s32 2, %v16188_v3  ;;  %v16193_v52 = vld [vmem:[#allocation76_spill] sm:$0xff] }
 0x4db   :  { %v11382_v7 = vsub.f32 %v10642_v10, %v11032_v14  ;;  %v11386_v58 = vsub.f32 %v16191_v0, %v11305_v57  ;;  %7869 = vrsqrt.f32 %v2955_v41  ;;  %v2756_v20 = vmul.f32 %v11347_v43, %v11347_v43  ;;  %v16195_v41 = vld [vmem:[#allocation73_spill] sm:$0xff]  ;;  %v16197_v43 = vld [vmem:[#allocation79_spill] sm:$0xff] }
 0x4dc   :  { %16189 = vst [vmem:[#allocation119_spill] sm:$0xff] %v11378_v2  ;;  %v2907_v23 = vadd.f32 %v2906_v33, %v2801_v48  ;;  %v2858_v34 = vadd.f32 %v2857_v49, %v2752_v51  ;;  %v11392_v16 = vrot.slane %v11371_v63, %v16187_v1  ;;  %v11396_v3 = vsub.f32 %v16193_v52, %v11305_v57 }
 0x4dd   :  { %16190 = vst [vmem:[#allocation120_spill] sm:$0xff] %v11382_v7  ;;  %16192 = vst [vmem:[#allocation21_spill] sm:$0xff] %v11386_v58  ;;  %v2686_v10 = vmul.f32 %v11362_v24, %v11362_v24  ;;  %v2914_v55 = vadd.f32 %v2682_v45, %v2678_v27  ;;  %v11402_v48 = vsub.f32 %v16195_v41, %v11032_v14 }
 0x4de   :  { %16194 = vst [vmem:[#allocation76_spill] sm:$0xff] %v11396_v3  ;;  %v2908_v0 = vrot.slane %v2907_v23, 4  ;;  %v2760_v33 = vmul.f32 %v11358_v13, %v11358_v13  ;;  %v2859_v51 = vadd.f32 %v2858_v34, %v2756_v20  ;;  %v11410_v52 = vsub.f32 %v16197_v43, %v11305_v57  ;;  %v16201_v43 = vld [vmem:[#allocation49_spill] sm:$0xff] }
 0x4df   :  { %16196 = vst [vmem:[#allocation73_spill] sm:$0xff] %v11402_v48  ;;  %v2690_v24 = vmul.f32 %v11386_v58, %v11386_v58  ;;  %v2915_v45 = vadd.f32 %v2914_v55, %v2686_v10  ;;  %v11416_v41 = vsub.f32 %v10670_v62, %v11032_v14  ;;  %v2764_v13 = vmul.f32 %v11382_v7, %v11382_v7  ;;  %v16231_v7 = vld [vmem:[#allocation24_spill] sm:$0xff] }
 0x4e0   :  { %16198 = vst [vmem:[#allocation79_spill] sm:$0xff] %v11410_v52  ;;  %v2909_v27 = vadd.f32 %v2908_v0, %v2907_v23  ;;  %v2860_v20 = vadd.f32 %v2859_v51, %v2760_v33  ;;  %v11422_v34 = vrot.slane %v11371_v63, %v11378_v2  ;;  %v11426_v49 = vsub.f32 %v16201_v43, %v11305_v57  ;;  %v16205_v43 = vld [vmem:[#allocation31_spill] sm:$0xff] }
 0x4e1   :  { %16199 = vst [vmem:[#allocation121_spill] sm:$0xff] %v11416_v41  ;;  %v2694_v55 = vmul.f32 %v11396_v3, %v11396_v3  ;;  %v2916_v23 = vadd.f32 %v2915_v45, %v2690_v24  ;;  %v11432_v62 = vsub.f32 %v10684_v42, %v11032_v14  ;;  %v2768_v0 = vmul.f32 %v11402_v48, %v11402_v48  ;;  %v16232_v63 = vld [vmem:[#allocation59_spill] sm:$0xff] }
 0x4e2   :  { %16200 = vst [vmem:[#allocation122_spill] sm:$0xff] %v11422_v34  ;;  %16202 = vst [vmem:[#allocation49_spill] sm:$0xff] %v11426_v49  ;;  %v2910_v10 = vrot.slane %v2909_v27, 2  ;;  %v2861_v33 = vadd.f32 %v2860_v20, %v2764_v13  ;;  %v11438_v51 = vsub.f32 %v10698_v19, %v11032_v14  ;;  %v11442_v58 = vsub.f32 %v16205_v43, %v11305_v57  ;;  %v16209_v43 = vld [vmem:[#allocation51_spill] sm:$0xff] }
 0x4e3   :  { %16203 = vst [vmem:[#allocation123_spill] sm:$0xff] %v11432_v62  ;;  %v2698_v24 = vmul.f32 %v11410_v52, %v11410_v52  ;;  %v2917_v45 = vadd.f32 %v2916_v23, %v2694_v55  ;;  %v11448_v42 = vsub.f32 %v10712_v12, %v11032_v14  ;;  %v2772_v13 = vmul.f32 %v11416_v41, %v11416_v41  ;;  %v16230_v41 = vld [vmem:[#allocation87_spill] sm:$0xff] }
 0x4e4   :  { %16204 = vst [vmem:[#allocation124_spill] sm:$0xff] %v11438_v51  ;;  %16206 = vst [vmem:[#allocation31_spill] sm:$0xff] %v11442_v58  ;;  %v2911_v3 = vadd.f32 %v2910_v10, %v2909_v27  ;;  %v2862_v20 = vadd.f32 %v2861_v33, %v2768_v0  ;;  %v11454_v19 = vsub.f32 %v10726_v61, %v11032_v14  ;;  %v16213_v33 = vld [vmem:[#allocation53_spill] sm:$0xff]  ;;  %v16233_v34 = vld [vmem:[#allocation75_spill] sm:$0xff] }
 0x4e5   :  { %16207 = vst [vmem:[#allocation125_spill] sm:$0xff] %v11448_v42  ;;  %v11458_v48 = vsub.f32 %v16209_v43, %v11305_v57  ;;  %v2702_v55 = vmul.f32 %v11426_v49, %v11426_v49  ;;  %v2918_v27 = vadd.f32 %v2917_v45, %v2698_v24  ;;  %v11464_v12 = vsub.f32 %v10743_v25, %v11032_v14 }
 0x4e6   :  { %16208 = vst [vmem:[#allocation126_spill] sm:$0xff] %v11454_v19  ;;  %v2912_v23 = vrot.slane %v2911_v3, 1  ;;  %v2776_v10 = vmul.f32 %v11432_v62, %v11432_v62  ;;  %v2863_v0 = vadd.f32 %v2862_v20, %v2772_v13  ;;  %v11470_v61 = vsub.f32 %v10757_v37, %v11032_v14 }
 0x4e7   :  { %16210 = vst [vmem:[#allocation51_spill] sm:$0xff] %v11458_v48  ;;  %16211 = vst [vmem:[#allocation127_spill] sm:$0xff] %v11464_v12  ;;  %v11474_v43 = vsub.f32 %v16213_v33, %v11305_v57  ;;  %v2706_v24 = vmul.f32 %v11442_v58, %v11442_v58  ;;  %v2919_v45 = vadd.f32 %v2918_v27, %v2702_v55  ;;  %v16216_v33 = vld [vmem:[#allocation55_spill] sm:$0xff] }
 0x4e8   :  { %16212 = vst [vmem:[#allocation128_spill] sm:$0xff] %v11470_v61  ;;  %v2913_v49 = vadd.f32 %v2912_v23, %v2911_v3  ;;  %v11480_v25 = vsub.f32 %v10814_v18, %v11032_v14  ;;  %v2780_v13 = vmul.f32 %v11438_v51, %v11438_v51  ;;  %v2864_v20 = vadd.f32 %v2863_v0, %v2776_v10  ;;  %v7870_v52 = vpop.eup %7869  ;;  %v16218_v0 = vld [vmem:[#allocation57_spill] sm:$0xff]  ;;  %v16229_v51 = vld [vmem:[#allocation34_spill] sm:$0xff] }
 0x4e9   :  { %16214 = vst [vmem:[#allocation53_spill] sm:$0xff] %v11474_v43  ;;  %v2784_v37 = vmul.f32 %v11448_v42, %v11448_v42  ;;  %v11488_v62 = vsub.f32 %v16216_v33, %v11305_v57  ;;  %v2710_v55 = vmul.f32 %v11458_v48, %v11458_v48  ;;  %v2920_v3 = vadd.f32 %v2919_v45, %v2706_v24  ;;  %v16222_v24 = vld [vmem:[#allocation92_spill] sm:$0xff] }
 0x4ea   :  { %16215 = vst [vmem:[#allocation129_spill] sm:$0xff] %v11480_v25  ;;  %v2984_v27 = vmul.f32 %v7870_v52, %v2967_v6  ;;  %v2953_v23 = vmul.f32 0.00390625, %v2913_v49  ;;  %v11494_v18 = vmul.f32 %v11454_v19, %v11454_v19  ;;  %v2865_v14 = vadd.f32 %v2864_v20, %v2780_v13  ;;  %v16220_v49 = vld [vmem:[#allocation90_spill] sm:$0xff]  ;;  %v16228_v42 = vld [vmem:[#allocation44_spill] sm:$0xff] }
 0x4eb   :  { %16217 = vst [vmem:[#allocation55_spill] sm:$0xff] %v11488_v62  ;;  %v11498_v10 = vmul.f32 %v11464_v12, %v11464_v12  ;;  %v11502_v58 = vsub.f32 %v16218_v0, %v11305_v57  ;;  %v2714_v33 = vmul.f32 %v11474_v43, %v11474_v43  ;;  %v2921_v48 = vadd.f32 %v2920_v3, %v2710_v55 }
 0x4ec   :  { %v2991_v6 = vrot.slane %v2984_v27, %v16187_v1  ;;  %v11509_v52 = vsub.f32 %v16220_v49, %v11305_v57  ;;  %v11513_v45 = vsub.f32 %v16222_v24, %v11305_v57  ;;  %v11517_v13 = vsub.f32 %v16040_v36, %v11305_v57  ;;  %v16225_v49 = vld [vmem:[#allocation94_spill] sm:$0xff]  ;;  %v16226_v24 = vld [vmem:[#allocation16_spill] sm:$0xff] }
 0x4ed   :  { %16219 = vst [vmem:[#allocation57_spill] sm:$0xff] %v11502_v58  ;;  %v11519_v20 = vadd.f32 1e-05, %v2953_v23  ;;  %v11521_v0 = vadd.f32 %v2865_v14, %v2784_v37  ;;  %v11525_v55 = vmul.f32 %v11488_v62, %v11488_v62  ;;  %v11527_v3 = vadd.f32 %v2921_v48, %v2714_v33  ;;  %v16227_v33 = vld [vmem:[#allocation40_spill] sm:$0xff] }
 0x4ee   :  { %16221 = vst [vmem:[#allocation90_spill] sm:$0xff] %v11509_v52  ;;  %16223 = vst [vmem:[#allocation92_spill] sm:$0xff] %v11513_v45  ;;  %v3004_v27 = vmul.f32 %v2991_v6, %v10806_v4  ;;  %v3008_v43 = vmul.f32 %v2991_v6, %v16225_v49  ;;  %v3012_v12 = vmul.f32 %v2991_v6, %v16226_v24 }
 0x4ef   :  { %16224 = vst [vmem:[#allocation130_spill] sm:$0xff] %v11517_v13  ;;  %v3016_v19 = vmul.f32 %v2991_v6, %v10830_v59  ;;  %v3020_v36 = vmul.f32 %v2991_v6, %v10835_v54  ;;  %v3024_v23 = vmul.f32 %v2991_v6, %v10842_v30  ;;  %v3028_v37 = vmul.f32 %v2991_v6, %v10849_v29 }
 0x4f0   :  { %v3032_v14 = vmul.f32 %v2991_v6, %v10856_v53  ;;  %v3036_v62 = vmul.f32 %v2991_v6, %v10865_v5  ;;  %v3040_v48 = vmul.f32 %v2991_v6, %v10872_v35  ;;  %v3044_v4 = vmul.f32 %v2991_v6, %v16227_v33 }
 0x4f1   :  { %v3048_v49 = vmul.f32 %v2991_v6, %v16228_v42  ;;  %v3052_v24 = vmul.f32 %v2991_v6, %v16229_v51  ;;  %v3056_v59 = vmul.f32 %v2991_v6, %v10922_v40  ;;  %v3060_v54 = vmul.f32 %v2991_v6, %v10934_v22 }
 0x4f2   :  { %v3064_v30 = vmul.f32 %v2991_v6, %v10949_v39  ;;  %v3068_v29 = vmul.f32 %v2991_v6, %v10961_v47  ;;  %v3072_v53 = vmul.f32 %v2991_v6, %v10965_v28  ;;  %v3076_v5 = vmul.f32 %v2991_v6, %v10978_v46 }
 0x4f3   :  { %v3080_v35 = vmul.f32 %v2991_v6, %v16230_v41  ;;  %v3084_v33 = vmul.f32 %v2991_v6, %v16231_v7  ;;  %v3088_v42 = vmul.f32 %v2991_v6, %v16232_v63  ;;  %v3092_v51 = vmul.f32 %v2991_v6, %v16233_v34 }
 0x4f4   :  { %v3096_v40 = vmul.f32 %v2991_v6, %v16234_v32  ;;  %v3100_v22 = vmul.f32 %v2991_v6, %v16235_v50  ;;  %v3104_v39 = vmul.f32 %v2991_v6, %v16236_v11  ;;  %v3108_v47 = vmul.f32 %v2991_v6, %v16237_v31 }
 0x4f5   :  { %v3112_v28 = vmul.f32 %v2991_v6, %v11040_v56  ;;  %v3116_v46 = vmul.f32 %v2991_v6, %v16238_v60  ;;  %v3120_v41 = vmul.f32 %v2991_v6, %v11056_v26  ;;  %v3124_v7 = vmul.f32 %v2991_v6, %v11076_v21 }
 0x4f6   :  { %v3128_v63 = vmul.f32 %v2991_v6, %v11080_v38  ;;  %v11562_v34 = vadd.f32 %v11392_v16, %v3004_v27  ;;  %v11565_v32 = vadd.f32 %v11392_v16, %v3008_v43  ;;  %v11568_v11 = vadd.f32 %v11392_v16, %v3012_v12 }
 0x4f7   :  { %v11571_v31 = vadd.f32 %v11392_v16, %v3016_v19  ;;  %v11574_v56 = vadd.f32 %v11392_v16, %v3020_v36  ;;  %v11577_v26 = vadd.f32 %v11392_v16, %v3024_v23  ;;  %v11580_v21 = vadd.f32 %v11392_v16, %v3028_v37 }
 0x4f8   :  { %16239 = vst [vmem:[#allocation94_spill] sm:$0xff] %v11562_v34  ;;  %16240 = vst [vmem:[#allocation16_spill] sm:$0xff] %v11565_v32  ;;  %v11583_v38 = vadd.f32 %v11392_v16, %v3032_v14  ;;  %v11586_v60 = vadd.f32 %v11392_v16, %v3036_v62  ;;  %v11589_v50 = vadd.f32 %v11392_v16, %v3040_v48  ;;  %7871 = vrsqrt.f32 %v11519_v20 }
 0x4f9   :  { %16241 = vst [vmem:[#allocation40_spill] sm:$0xff] %v11568_v11  ;;  %16242 = vst [vmem:[#allocation44_spill] sm:$0xff] %v11571_v31  ;;  %v11592_v19 = vadd.f32 %v11392_v16, %v3044_v4  ;;  %v11595_v12 = vadd.f32 %v11392_v16, %v3048_v49  ;;  %v11598_v43 = vadd.f32 %v11392_v16, %v3052_v24 }
 0x4fa   :  { %16243 = vst [vmem:[#allocation34_spill] sm:$0xff] %v11574_v56  ;;  %16244 = vst [vmem:[#allocation87_spill] sm:$0xff] %v11577_v26  ;;  %v11601_v6 = vadd.f32 %v11392_v16, %v3056_v59  ;;  %v11604_v27 = vadd.f32 %v11392_v16, %v3060_v54  ;;  %v11607_v62 = vadd.f32 %v11392_v16, %v3064_v30  ;;  %v11685_v20 = vmul.f32 0.2, %v11586_v60 }
 0x4fb   :  { %16245 = vst [vmem:[#allocation24_spill] sm:$0xff] %v11580_v21  ;;  %16246 = vst [vmem:[#allocation59_spill] sm:$0xff] %v11583_v38  ;;  %v11610_v36 = vadd.f32 %v11392_v16, %v3068_v29  ;;  %v11613_v23 = vadd.f32 %v11392_v16, %v3072_v53  ;;  %v11616_v37 = vadd.f32 %v11392_v16, %v3076_v5  ;;  %v11701_v17 = vmul.f32 0.2, %v11598_v43 }
 0x4fc   :  { %16247 = vst [vmem:[#allocation75_spill] sm:$0xff] %v11586_v60  ;;  %16248 = vst [vmem:[#allocation61_spill] sm:$0xff] %v11589_v50  ;;  %v11619_v14 = vadd.f32 %v11392_v16, %v3080_v35  ;;  %v11622_v48 = vadd.f32 %v11392_v16, %v3084_v33  ;;  %v11625_v4 = vadd.f32 %v11392_v16, %v3088_v42  ;;  %v11658_v42 = vmul.f32 0.2, %v11562_v34 }
 0x4fd   :  { %16249 = vst [vmem:[#allocation48_spill] sm:$0xff] %v11592_v19  ;;  %16250 = vst [vmem:[#allocation30_spill] sm:$0xff] %v11595_v12  ;;  %v11628_v49 = vadd.f32 %v11392_v16, %v3092_v51  ;;  %v11631_v24 = vadd.f32 %v11392_v16, %v3096_v40  ;;  %v11634_v59 = vadd.f32 %v11392_v16, %v3100_v22  ;;  %v11661_v51 = vmul.f32 0.2, %v11565_v32 }
 0x4fe   :  { %16251 = vst [vmem:[#allocation52_spill] sm:$0xff] %v11598_v43  ;;  %16252 = vst [vmem:[#allocation54_spill] sm:$0xff] %v11601_v6  ;;  %v11637_v54 = vadd.f32 %v11392_v16, %v3104_v39  ;;  %v11640_v30 = vadd.f32 %v11392_v16, %v3108_v47  ;;  %v11643_v29 = vadd.f32 %v11392_v16, %v3112_v28  ;;  %v11664_v40 = vmul.f32 0.2, %v11568_v11  ;;  %v16339_v43 = vld [vmem:[#allocation95_spill] sm:$0xff] }
 0x4ff   :  { %16253 = vst [vmem:[#allocation131_spill] sm:$0xff] %v11604_v27  ;;  %16254 = vst [vmem:[#allocation132_spill] sm:$0xff] %v11607_v62  ;;  %v11646_v53 = vadd.f32 %v11392_v16, %v3116_v46  ;;  %v11649_v5 = vadd.f32 %v11392_v16, %v3120_v41  ;;  %v11652_v35 = vadd.f32 %v11392_v16, %v3124_v7  ;;  %v11668_v22 = vmul.f32 0.2, %v11571_v31 }
 0x500   :  { %16255 = vst [vmem:[#allocation133_spill] sm:$0xff] %v11610_v36  ;;  %16256 = vst [vmem:[#allocation134_spill] sm:$0xff] %v11613_v23  ;;  %v11655_v33 = vadd.f32 %v11392_v16, %v3128_v63  ;;  %v11671_v39 = vmul.f32 0.2, %v11574_v56  ;;  %v11674_v16 = vmul.f32 0.2, %v11577_v26  ;;  %v2867_v47 = vadd.f32 %v11521_v0, %v11494_v18 }
 0x501   :  { %16257 = vst [vmem:[#allocation135_spill] sm:$0xff] %v11616_v37  ;;  %16258 = vst [vmem:[#allocation136_spill] sm:$0xff] %v11619_v14  ;;  %v11679_v28 = vmul.f32 0.2, %v11580_v21  ;;  %v11682_v46 = vmul.f32 0.2, %v11583_v38  ;;  %v16303_v1 = vrot.slane %v11352_v8, %v11378_v2  ;;  %v11828_v38 = vmul.f32 %v11480_v25, %v11480_v25 }
 0x502   :  { %16259 = vst [vmem:[#allocation137_spill] sm:$0xff] %v11622_v48  ;;  %16260 = vst [vmem:[#allocation138_spill] sm:$0xff] %v11625_v4  ;;  %v11690_v7 = vmul.f32 0.2, %v11589_v50  ;;  %v11693_v63 = vmul.f32 0.2, %v11592_v19 }
 0x503   :  { %16261 = vst [vmem:[#allocation139_spill] sm:$0xff] %v11628_v49  ;;  %16262 = vst [vmem:[#allocation140_spill] sm:$0xff] %v11631_v24  ;;  %v11696_v18 = vmul.f32 0.2, %v11595_v12  ;;  %v11704_v15 = vmul.f32 0.2, %v11601_v6 }
 0x504   :  { %16263 = vst [vmem:[#allocation141_spill] sm:$0xff] %v11634_v59  ;;  %16264 = vst [vmem:[#allocation142_spill] sm:$0xff] %v11637_v54  ;;  %v11707_v41 = vmul.f32 0.2, %v11604_v27  ;;  %v11712_v34 = vmul.f32 0.2, %v11607_v62 }
 0x505   :  { %16265 = vst [vmem:[#allocation143_spill] sm:$0xff] %v11640_v30  ;;  %16266 = vst [vmem:[#allocation144_spill] sm:$0xff] %v11643_v29  ;;  %v11715_v9 = vmul.f32 0.2, %v11610_v36  ;;  %v11718_v0 = vmul.f32 0.2, %v11613_v23 }
 0x506   :  { %16267 = vst [vmem:[#allocation145_spill] sm:$0xff] %v11646_v53  ;;  %16268 = vst [vmem:[#allocation146_spill] sm:$0xff] %v11649_v5  ;;  %v11723_v32 = vmul.f32 0.2, %v11616_v37  ;;  %v11726_v44 = vmul.f32 0.2, %v11619_v14 }
 0x507   :  { %16269 = vst [vmem:[#allocation147_spill] sm:$0xff] %v11652_v35  ;;  %16270 = vst [vmem:[#allocation148_spill] sm:$0xff] %v11655_v33  ;;  %v11734_v11 = vmul.f32 0.2, %v11625_v4  ;;  %v11737_v13 = vmul.f32 0.2, %v11628_v49 }
 0x508   :  { %16271 = vst [vmem:[#allocation149_spill] sm:$0xff] %v11658_v42  ;;  %16272 = vst [vmem:[#allocation150_spill] sm:$0xff] %v11661_v51  ;;  %v11729_v42 = vmul.f32 0.2, %v11622_v48  ;;  %v11740_v51 = vmul.f32 0.2, %v11631_v24 }
 0x509   :  { %16273 = vst [vmem:[#allocation151_spill] sm:$0xff] %v11664_v40  ;;  %16274 = vst [vmem:[#allocation152_spill] sm:$0xff] %v11668_v22  ;;  %v11745_v31 = vmul.f32 0.2, %v11634_v59  ;;  %v11748_v45 = vmul.f32 0.2, %v11637_v54 }
 0x50a   :  { %16275 = vst [vmem:[#allocation153_spill] sm:$0xff] %v11671_v39  ;;  %16276 = vst [vmem:[#allocation154_spill] sm:$0xff] %v11674_v16  ;;  %v11751_v40 = vmul.f32 0.2, %v11640_v30  ;;  %v11756_v56 = vmul.f32 0.2, %v11643_v29  ;;  %v2868_v16 = vadd.f32 %v2867_v47, %v11498_v10  ;;  %v2722_v39 = vmul.f32 %v11502_v58, %v11502_v58 }
 0x50b   :  { %16277 = vst [vmem:[#allocation155_spill] sm:$0xff] %v11679_v28  ;;  %16278 = vst [vmem:[#allocation156_spill] sm:$0xff] %v11682_v46  ;;  %v11759_v52 = vmul.f32 0.2, %v11646_v53  ;;  %v11762_v22 = vmul.f32 0.2, %v11649_v5  ;;  %v2796_v46 = vmul.f32 %v11470_v61, %v11470_v61  ;;  %v2923_v28 = vadd.f32 %v11527_v3, %v11525_v55 }
 0x50c   :  { %16279 = vst [vmem:[#allocation157_spill] sm:$0xff] %v11685_v20  ;;  %16280 = vst [vmem:[#allocation158_spill] sm:$0xff] %v11690_v7  ;;  %v11767_v26 = vmul.f32 0.2, %v11652_v35  ;;  %v11770_v57 = vmul.f32 0.2, %v11655_v33 }
 0x50d   :  { %16281 = vst [vmem:[#allocation159_spill] sm:$0xff] %v11693_v63  ;;  %16282 = vst [vmem:[#allocation160_spill] sm:$0xff] %v11696_v18  ;;  %v7872_v63 = vpop.eup %7871  ;;  %v16304_v21 = vld [vmem:[#allocation43_spill] sm:$0xff]  ;;  %v16305_v33 = vld [vmem:[#allocation114_spill] sm:$0xff]  ;;  %v11847_v35 = vadd.f32 %v2868_v16, %v2796_v46 }
 0x50e   :  { %16283 = vst [vmem:[#allocation161_spill] sm:$0xff] %v11701_v17  ;;  %16284 = vst [vmem:[#allocation162_spill] sm:$0xff] %v11704_v15  ;;  %v16306_v2 = vld [vmem:[#allocation64_spill] sm:$0xff]  ;;  %v16307_v10 = vld [vmem:[#allocation97_spill] sm:$0xff] }
 0x50f   :  { %16285 = vst [vmem:[#allocation163_spill] sm:$0xff] %v11707_v41  ;;  %16286 = vst [vmem:[#allocation164_spill] sm:$0xff] %v11712_v34  ;;  %v11841_v47 = vsub.f32 %v16307_v10, %v16305_v33  ;;  %v16310_v55 = vld [vmem:[#allocation130_spill] sm:$0xff]  ;;  %v16311_v3 = vld [vmem:[#allocation28_spill] sm:$0xff] }
 0x510   :  { %16287 = vst [vmem:[#allocation165_spill] sm:$0xff] %v11715_v9  ;;  %16288 = vst [vmem:[#allocation166_spill] sm:$0xff] %v11718_v0  ;;  %v16312_v10 = vld [vmem:[#allocation23_spill] sm:$0xff]  ;;  %v16318_v24 = vld [vmem:[#allocation85_spill] sm:$0xff] }
 0x511   :  { %16289 = vst [vmem:[#allocation167_spill] sm:$0xff] %v11723_v32  ;;  %16290 = vst [vmem:[#allocation168_spill] sm:$0xff] %v11726_v44  ;;  %v16315_v16 = vld [vmem:[#allocation83_spill] sm:$0xff]  ;;  %v16319_v49 = vld [vmem:[#allocation41_spill] sm:$0xff] }
 0x512   :  { %16291 = vst [vmem:[#allocation169_spill] sm:$0xff] %v11729_v42  ;;  %16292 = vst [vmem:[#allocation170_spill] sm:$0xff] %v11734_v11  ;;  %v16316_v54 = vld [vmem:[#allocation27_spill] sm:$0xff]  ;;  %v16321_v4 = vld [vmem:[#allocation50_spill] sm:$0xff] }
 0x513   :  { %16293 = vst [vmem:[#allocation171_spill] sm:$0xff] %v11737_v13  ;;  %16294 = vst [vmem:[#allocation172_spill] sm:$0xff] %v11740_v51  ;;  %v16317_v59 = vld [vmem:[#allocation19_spill] sm:$0xff]  ;;  %v16322_v42 = vld [vmem:[#allocation56_spill] sm:$0xff] }
 0x514   :  { %16295 = vst [vmem:[#allocation173_spill] sm:$0xff] %v11745_v31  ;;  %16296 = vst [vmem:[#allocation174_spill] sm:$0xff] %v11748_v45  ;;  %v2986_v45 = vmul.f32 %v7872_v63, %v16303_v1  ;;  %v11837_v1 = vsub.f32 %v16306_v2, %v16305_v33  ;;  %v16308_v63 = vld [vmem:[#allocation90_spill] sm:$0xff]  ;;  %v11857_v2 = vadd.f32 %v2923_v28, %v2722_v39  ;;  %v16320_v39 = vld [vmem:[#allocation77_spill] sm:$0xff] }
 0x515   :  { %16297 = vst [vmem:[#allocation175_spill] sm:$0xff] %v11751_v40  ;;  %16298 = vst [vmem:[#allocation176_spill] sm:$0xff] %v11756_v56  ;;  %v16313_v56 = vld [vmem:[#allocation46_spill] sm:$0xff]  ;;  %v16314_v40 = vld [vmem:[#allocation81_spill] sm:$0xff] }
 0x516   :  { %16299 = vst [vmem:[#allocation177_spill] sm:$0xff] %v11759_v52  ;;  %16300 = vst [vmem:[#allocation178_spill] sm:$0xff] %v11762_v22  ;;  %v16309_v22 = vld [vmem:[#allocation92_spill] sm:$0xff]  ;;  %v16323_v48 = vld [vmem:[#allocation109_spill] sm:$0xff] }
 0x517   :  { %16301 = vst [vmem:[#allocation179_spill] sm:$0xff] %v11767_v26  ;;  %16302 = vst [vmem:[#allocation180_spill] sm:$0xff] %v11770_v57  ;;  %v2999_v57 = vrot.slane %v2986_v45, %v16304_v21  ;;  %v11845_v26 = vmul.f32 %v16308_v63, %v16308_v63  ;;  %v11851_v5 = vmul.f32 %v16309_v22, %v16309_v22  ;;  %v16324_v44 = vld [vmem:[#allocation29_spill] sm:$0xff]  ;;  %v16325_v14 = vld [vmem:[#allocation111_spill] sm:$0xff] }
 0x518   :  { %v11855_v45 = vmul.f32 %v16310_v55, %v16310_v55  ;;  %v16326_v32 = vld [vmem:[#allocation93_spill] sm:$0xff]  ;;  %v16327_v37 = vld [vmem:[#allocation63_spill] sm:$0xff]  ;;  %v16328_v0 = vld [vmem:[#allocation96_spill] sm:$0xff] }
 0x519   :  { %v3006_v52 = vmul.f32 %v2999_v57, %v16311_v3  ;;  %v3010_v53 = vmul.f32 %v2999_v57, %v16312_v10  ;;  %v3014_v29 = vmul.f32 %v2999_v57, %v16313_v56  ;;  %v3018_v30 = vmul.f32 %v2999_v57, %v16314_v40  ;;  %v16329_v23 = vld [vmem:[#allocation66_spill] sm:$0xff]  ;;  %v16330_v9 = vld [vmem:[#allocation99_spill] sm:$0xff]  ;;  %v16331_v36 = vld [vmem:[#allocation69_spill] sm:$0xff] }
 0x51a   :  { %v3022_v46 = vmul.f32 %v2999_v57, %v16315_v16  ;;  %v3026_v31 = vmul.f32 %v2999_v57, %v16316_v54  ;;  %v3030_v51 = vmul.f32 %v2999_v57, %v16317_v59  ;;  %v3034_v13 = vmul.f32 %v2999_v57, %v16318_v24  ;;  %v16332_v34 = vld [vmem:[#allocation38_spill] sm:$0xff]  ;;  %v16333_v62 = vld [vmem:[#allocation71_spill] sm:$0xff]  ;;  %v16335_v27 = vld [vmem:[#allocation104_spill] sm:$0xff] }
 0x51b   :  { %v3038_v11 = vmul.f32 %v2999_v57, %v16319_v49  ;;  %v3042_v28 = vmul.f32 %v2999_v57, %v16320_v39  ;;  %v3046_v3 = vmul.f32 %v2999_v57, %v16321_v4  ;;  %v3050_v10 = vmul.f32 %v2999_v57, %v16322_v42  ;;  %v16334_v41 = vld [vmem:[#allocation39_spill] sm:$0xff]  ;;  %v16336_v15 = vld [vmem:[#allocation32_spill] sm:$0xff]  ;;  %v16337_v6 = vld [vmem:[#allocation33_spill] sm:$0xff] }
 0x51c   :  { %v3054_v56 = vmul.f32 %v2999_v57, %v16323_v48  ;;  %v3058_v40 = vmul.f32 %v2999_v57, %v16324_v44  ;;  %v3062_v16 = vmul.f32 %v2999_v57, %v16325_v14  ;;  %v3066_v54 = vmul.f32 %v2999_v57, %v16326_v32  ;;  %v16338_v17 = vld [vmem:[#allocation62_spill] sm:$0xff]  ;;  %v16340_v18 = vld [vmem:[#allocation113_spill] sm:$0xff]  ;;  %v16341_v12 = vld [vmem:[#allocation115_spill] sm:$0xff] }
 0x51d   :  { %v3070_v59 = vmul.f32 %v2999_v57, %v16327_v37  ;;  %v3074_v24 = vmul.f32 %v2999_v57, %v16328_v0  ;;  %v3078_v49 = vmul.f32 %v2999_v57, %v16329_v23  ;;  %v3082_v39 = vmul.f32 %v2999_v57, %v16330_v9  ;;  %v16342_v19 = vld [vmem:[#allocation116_spill] sm:$0xff]  ;;  %v16343_v7 = vld [vmem:[#allocation122_spill] sm:$0xff] }
 0x51e   :  { %v3086_v4 = vmul.f32 %v2999_v57, %v16331_v36  ;;  %v3090_v42 = vmul.f32 %v2999_v57, %v16332_v34  ;;  %v3094_v48 = vmul.f32 %v2999_v57, %v16333_v62  ;;  %v3098_v44 = vmul.f32 %v2999_v57, %v16334_v41 }
 0x51f   :  { %v3102_v14 = vmul.f32 %v2999_v57, %v16335_v27  ;;  %v3106_v32 = vmul.f32 %v2999_v57, %v16336_v15  ;;  %v3110_v37 = vmul.f32 %v2999_v57, %v16337_v6  ;;  %v3114_v0 = vmul.f32 %v2999_v57, %v16338_v17 }
 0x520   :  { %v3118_v23 = vmul.f32 %v2999_v57, %v16339_v43  ;;  %v3122_v9 = vmul.f32 %v2999_v57, %v16340_v18  ;;  %v3126_v36 = vmul.f32 %v2999_v57, %v16341_v12  ;;  %v3130_v34 = vmul.f32 %v2999_v57, %v16342_v19 }
 0x521   :  { %v11892_v62 = vadd.f32 %v16343_v7, %v3006_v52  ;;  %v11895_v41 = vadd.f32 %v16343_v7, %v3010_v53  ;;  %v11898_v15 = vadd.f32 %v16343_v7, %v3014_v29  ;;  %v11901_v6 = vadd.f32 %v16343_v7, %v3018_v30 }
 0x522   :  { %v11904_v17 = vadd.f32 %v16343_v7, %v3022_v46  ;;  %v11907_v43 = vadd.f32 %v16343_v7, %v3026_v31  ;;  %v11910_v57 = vadd.f32 %v16343_v7, %v3030_v51  ;;  %v11913_v52 = vadd.f32 %v16343_v7, %v3034_v13 }
 0x523   :  { %16344 = vst [vmem:[#allocation114_spill] sm:$0xff] %v11892_v62  ;;  %16345 = vst [vmem:[#allocation64_spill] sm:$0xff] %v11895_v41  ;;  %v11916_v19 = vadd.f32 %v16343_v7, %v3038_v11  ;;  %v11919_v12 = vadd.f32 %v16343_v7, %v3042_v28  ;;  %v11922_v27 = vadd.f32 %v16343_v7, %v3046_v3 }
 0x524   :  { %16346 = vst [vmem:[#allocation97_spill] sm:$0xff] %v11898_v15  ;;  %16347 = vst [vmem:[#allocation28_spill] sm:$0xff] %v11901_v6  ;;  %v11925_v30 = vadd.f32 %v16343_v7, %v3050_v10  ;;  %v11928_v31 = vadd.f32 %v16343_v7, %v3054_v56  ;;  %v11931_v29 = vadd.f32 %v16343_v7, %v3058_v40 }
 0x525   :  { %16348 = vst [vmem:[#allocation23_spill] sm:$0xff] %v11904_v17  ;;  %16349 = vst [vmem:[#allocation46_spill] sm:$0xff] %v11907_v43  ;;  %v11934_v13 = vadd.f32 %v16343_v7, %v3062_v16  ;;  %v11937_v11 = vadd.f32 %v16343_v7, %v3066_v54  ;;  %v11940_v53 = vadd.f32 %v16343_v7, %v3070_v59 }
 0x526   :  { %16350 = vst [vmem:[#allocation81_spill] sm:$0xff] %v11910_v57  ;;  %16351 = vst [vmem:[#allocation83_spill] sm:$0xff] %v11913_v52  ;;  %v11943_v51 = vadd.f32 %v16343_v7, %v3074_v24  ;;  %v11946_v18 = vadd.f32 %v16343_v7, %v3078_v49  ;;  %v11949_v46 = vadd.f32 %v16343_v7, %v3082_v39  ;;  %v12034_v50 = vmul.f32 0.2, %v11928_v31 }
 0x527   :  { %16352 = vst [vmem:[#allocation27_spill] sm:$0xff] %v11916_v19  ;;  %16353 = vst [vmem:[#allocation19_spill] sm:$0xff] %v11919_v12  ;;  %v11952_v28 = vadd.f32 %v16343_v7, %v3086_v4  ;;  %v11955_v3 = vadd.f32 %v16343_v7, %v3090_v42  ;;  %v11958_v10 = vadd.f32 %v16343_v7, %v3094_v48  ;;  %v11988_v42 = vmul.f32 0.2, %v11892_v62 }
 0x528   :  { %16354 = vst [vmem:[#allocation85_spill] sm:$0xff] %v11922_v27  ;;  %16355 = vst [vmem:[#allocation41_spill] sm:$0xff] %v11925_v30  ;;  %v11961_v56 = vadd.f32 %v16343_v7, %v3098_v44  ;;  %v11964_v40 = vadd.f32 %v16343_v7, %v3102_v14  ;;  %v11967_v16 = vadd.f32 %v16343_v7, %v3106_v32  ;;  %v11991_v48 = vmul.f32 0.2, %v11895_v41 }
 0x529   :  { %16356 = vst [vmem:[#allocation77_spill] sm:$0xff] %v11928_v31  ;;  %16357 = vst [vmem:[#allocation50_spill] sm:$0xff] %v11931_v29  ;;  %v11970_v54 = vadd.f32 %v16343_v7, %v3110_v37  ;;  %v11973_v59 = vadd.f32 %v16343_v7, %v3114_v0  ;;  %v11976_v24 = vadd.f32 %v16343_v7, %v3118_v23  ;;  %v11994_v44 = vmul.f32 0.2, %v11898_v15  ;;  %v16458_v31 = vld [vmem:[#allocation120_spill] sm:$0xff] }
 0x52a   :  { %16358 = vst [vmem:[#allocation56_spill] sm:$0xff] %v11934_v13  ;;  %16359 = vst [vmem:[#allocation109_spill] sm:$0xff] %v11937_v11  ;;  %v11979_v49 = vadd.f32 %v16343_v7, %v3122_v9  ;;  %v11982_v39 = vadd.f32 %v16343_v7, %v3126_v36  ;;  %v11985_v4 = vadd.f32 %v16343_v7, %v3130_v34  ;;  %v12001_v32 = vmul.f32 0.2, %v11901_v6 }
 0x52b   :  { %16360 = vst [vmem:[#allocation29_spill] sm:$0xff] %v11940_v53  ;;  %16361 = vst [vmem:[#allocation111_spill] sm:$0xff] %v11943_v51  ;;  %v11998_v14 = vadd.f32 %v11847_v35, %v11828_v38  ;;  %v12004_v37 = vmul.f32 0.2, %v11904_v17  ;;  %v12007_v7 = vmul.f32 0.2, %v11907_v43  ;;  %v2925_v0 = vadd.f32 %v11857_v2, %v11845_v26 }
 0x52c   :  { %16362 = vst [vmem:[#allocation93_spill] sm:$0xff] %v11946_v18  ;;  %16363 = vst [vmem:[#allocation63_spill] sm:$0xff] %v11949_v46  ;;  %v12012_v23 = vmul.f32 0.2, %v11910_v57  ;;  %v12015_v9 = vmul.f32 0.2, %v11913_v52  ;;  %v2738_v52 = vmul.f32 %v11837_v1, %v11837_v1  ;;  %v2742_v57 = vmul.f32 %v11841_v47, %v11841_v47 }
 0x52d   :  { %16364 = vst [vmem:[#allocation96_spill] sm:$0xff] %v11952_v28  ;;  %16365 = vst [vmem:[#allocation66_spill] sm:$0xff] %v11955_v3  ;;  %v12018_v38 = vmul.f32 0.2, %v11916_v19  ;;  %v12023_v36 = vmul.f32 0.2, %v11919_v12 }
 0x52e   :  { %16366 = vst [vmem:[#allocation99_spill] sm:$0xff] %v11958_v10  ;;  %16367 = vst [vmem:[#allocation69_spill] sm:$0xff] %v11961_v56  ;;  %v12026_v34 = vmul.f32 0.2, %v11922_v27  ;;  %v12029_v26 = vmul.f32 0.2, %v11925_v30 }
 0x52f   :  { %16368 = vst [vmem:[#allocation38_spill] sm:$0xff] %v11964_v40  ;;  %16369 = vst [vmem:[#allocation71_spill] sm:$0xff] %v11967_v16  ;;  %v12037_v20 = vmul.f32 0.2, %v11931_v29  ;;  %v12040_v35 = vmul.f32 0.2, %v11934_v13 }
 0x530   :  { %16370 = vst [vmem:[#allocation39_spill] sm:$0xff] %v11970_v54  ;;  %16371 = vst [vmem:[#allocation104_spill] sm:$0xff] %v11973_v59  ;;  %v12048_v62 = vmul.f32 0.2, %v11940_v53  ;;  %v12051_v2 = vmul.f32 0.2, %v11943_v51 }
 0x531   :  { %16372 = vst [vmem:[#allocation32_spill] sm:$0xff] %v11976_v24  ;;  %16373 = vst [vmem:[#allocation33_spill] sm:$0xff] %v11979_v49  ;;  %v12056_v41 = vmul.f32 0.2, %v11946_v18  ;;  %v12059_v55 = vmul.f32 0.2, %v11949_v46 }
 0x532   :  { %16374 = vst [vmem:[#allocation62_spill] sm:$0xff] %v11982_v39  ;;  %16375 = vst [vmem:[#allocation95_spill] sm:$0xff] %v11985_v4  ;;  %v12062_v60 = vmul.f32 0.2, %v11952_v28  ;;  %v12067_v15 = vmul.f32 0.2, %v11955_v3 }
 0x533   :  { %16376 = vst [vmem:[#allocation113_spill] sm:$0xff] %v11988_v42  ;;  %16377 = vst [vmem:[#allocation115_spill] sm:$0xff] %v11991_v48  ;;  %v12045_v42 = vmul.f32 0.2, %v11937_v11  ;;  %v12070_v22 = vmul.f32 0.2, %v11958_v10 }
 0x534   :  { %16378 = vst [vmem:[#allocation116_spill] sm:$0xff] %v11994_v44  ;;  %16379 = vst [vmem:[#allocation122_spill] sm:$0xff] %v12001_v32  ;;  %v12073_v48 = vmul.f32 0.2, %v11961_v56  ;;  %v12078_v6 = vmul.f32 0.2, %v11964_v40 }
 0x535   :  { %16380 = vst [vmem:[#allocation181_spill] sm:$0xff] %v12004_v37  ;;  %16381 = vst [vmem:[#allocation182_spill] sm:$0xff] %v12007_v7  ;;  %v12081_v63 = vmul.f32 0.2, %v11967_v16  ;;  %v12084_v44 = vmul.f32 0.2, %v11970_v54 }
 0x536   :  { %16382 = vst [vmem:[#allocation183_spill] sm:$0xff] %v12012_v23  ;;  %16383 = vst [vmem:[#allocation184_spill] sm:$0xff] %v12015_v9  ;;  %v12089_v17 = vmul.f32 0.2, %v11973_v59  ;;  %v12092_v58 = vmul.f32 0.2, %v11976_v24 }
 0x537   :  { %16384 = vst [vmem:[#allocation185_spill] sm:$0xff] %v12018_v38  ;;  %16385 = vst [vmem:[#allocation186_spill] sm:$0xff] %v12023_v36  ;;  %v12095_v32 = vmul.f32 0.2, %v11979_v49  ;;  %v12100_v43 = vmul.f32 0.2, %v11982_v39 }
 0x538   :  { %16386 = vst [vmem:[#allocation187_spill] sm:$0xff] %v12026_v34  ;;  %16387 = vst [vmem:[#allocation188_spill] sm:$0xff] %v12029_v26  ;;  %v12103_v25 = vmul.f32 0.2, %v11985_v4  ;;  %v2871_v61 = vrot.slane %v11998_v14, 4  ;;  %v16408_v9 = vld [vmem:[#allocation67_spill] sm:$0xff] }
 0x539   :  { %16388 = vst [vmem:[#allocation189_spill] sm:$0xff] %v12034_v50  ;;  %16389 = vst [vmem:[#allocation190_spill] sm:$0xff] %v12037_v20  ;;  %v16409_v23 = vld [vmem:[#allocation100_spill] sm:$0xff]  ;;  %v16441_v10 = vld [vmem:[#allocation45_spill] sm:$0xff] }
 0x53a   :  { %16390 = vst [vmem:[#allocation191_spill] sm:$0xff] %v12040_v35  ;;  %16391 = vst [vmem:[#allocation192_spill] sm:$0xff] %v12045_v42  ;;  %v2872_v7 = vadd.f32 %v2871_v61, %v11998_v14  ;;  %v16410_v61 = vld [vmem:[#allocation37_spill] sm:$0xff]  ;;  %v16442_v3 = vld [vmem:[#allocation47_spill] sm:$0xff] }
 0x53b   :  { %16392 = vst [vmem:[#allocation193_spill] sm:$0xff] %v12048_v62  ;;  %16393 = vst [vmem:[#allocation194_spill] sm:$0xff] %v12051_v2  ;;  %v12171_v14 = vsub.f32 %v16410_v61, %v16305_v33  ;;  %v16443_v28 = vld [vmem:[#allocation80_spill] sm:$0xff]  ;;  %v16444_v46 = vld [vmem:[#allocation35_spill] sm:$0xff] }
 0x53c   :  { %16394 = vst [vmem:[#allocation195_spill] sm:$0xff] %v12056_v41  ;;  %16395 = vst [vmem:[#allocation196_spill] sm:$0xff] %v12059_v55  ;;  %v16445_v18 = vld [vmem:[#allocation82_spill] sm:$0xff]  ;;  %v16446_v2 = vld [vmem:[#allocation84_spill] sm:$0xff] }
 0x53d   :  { %16396 = vst [vmem:[#allocation197_spill] sm:$0xff] %v12062_v60  ;;  %16397 = vst [vmem:[#allocation198_spill] sm:$0xff] %v12067_v15  ;;  %v16447_v51 = vld [vmem:[#allocation86_spill] sm:$0xff]  ;;  %v16450_v53 = vld [vmem:[#allocation60_spill] sm:$0xff] }
 0x53e   :  { %16398 = vst [vmem:[#allocation199_spill] sm:$0xff] %v12070_v22  ;;  %16399 = vst [vmem:[#allocation200_spill] sm:$0xff] %v12073_v48  ;;  %v16449_v62 = vld [vmem:[#allocation58_spill] sm:$0xff]  ;;  %v16452_v11 = vld [vmem:[#allocation65_spill] sm:$0xff] }
 0x53f   :  { %16400 = vst [vmem:[#allocation201_spill] sm:$0xff] %v12078_v6  ;;  %16401 = vst [vmem:[#allocation202_spill] sm:$0xff] %v12081_v63  ;;  %v2926_v63 = vadd.f32 %v2925_v0, %v11851_v5  ;;  %v16431_v6 = vld [vmem:[#allocation112_spill] sm:$0xff]  ;;  %v16451_v42 = vld [vmem:[#allocation106_spill] sm:$0xff] }
 0x540   :  { %16402 = vst [vmem:[#allocation203_spill] sm:$0xff] %v12084_v44  ;;  %16403 = vst [vmem:[#allocation204_spill] sm:$0xff] %v12089_v17  ;;  %v12158_v17 = vsub.f32 %v16408_v9, %v16305_v33  ;;  %v12241_v40 = vsub.f32 %v16431_v6, %v16305_v33  ;;  %v16453_v35 = vld [vmem:[#allocation98_spill] sm:$0xff]  ;;  %v16454_v13 = vld [vmem:[#allocation68_spill] sm:$0xff] }
 0x541   :  { %16404 = vst [vmem:[#allocation205_spill] sm:$0xff] %v12092_v58  ;;  %16405 = vst [vmem:[#allocation206_spill] sm:$0xff] %v12095_v32  ;;  %v2927_v37 = vadd.f32 %v2926_v63, %v11855_v45  ;;  %v2873_v32 = vrot.slane %v2872_v7, 2  ;;  %v16411_v63 = vld [vmem:[#allocation102_spill] sm:$0xff]  ;;  %v16455_v20 = vld [vmem:[#allocation101_spill] sm:$0xff] }
 0x542   :  { %16406 = vst [vmem:[#allocation207_spill] sm:$0xff] %v12100_v43  ;;  %16407 = vst [vmem:[#allocation208_spill] sm:$0xff] %v12103_v25  ;;  %v12165_v43 = vsub.f32 %v16409_v23, %v16305_v33  ;;  %v2746_v9 = vmul.f32 %v12158_v17, %v12158_v17  ;;  %v12177_v45 = vsub.f32 %v16411_v63, %v16305_v33  ;;  %v16456_v29 = vld [vmem:[#allocation70_spill] sm:$0xff]  ;;  %v16457_v50 = vld [vmem:[#allocation117_spill] sm:$0xff] }
 0x543   :  { %v2928_v5 = vadd.f32 %v2927_v37, %v2738_v52  ;;  %v2874_v0 = vadd.f32 %v2873_v32, %v2872_v7  ;;  %v16412_v52 = vld [vmem:[#allocation103_spill] sm:$0xff]  ;;  %v2754_v37 = vmul.f32 %v12171_v14, %v12171_v14  ;;  %v16459_v26 = vld [vmem:[#allocation73_spill] sm:$0xff]  ;;  %v16462_v27 = vld [vmem:[#allocation124_spill] sm:$0xff] }
 0x544   :  { %v2750_v23 = vmul.f32 %v12165_v43, %v12165_v43  ;;  %v12183_v32 = vsub.f32 %v16412_v52, %v16305_v33  ;;  %v2758_v63 = vmul.f32 %v12177_v45, %v12177_v45  ;;  %v16460_v30 = vld [vmem:[#allocation121_spill] sm:$0xff]  ;;  %v16461_v34 = vld [vmem:[#allocation123_spill] sm:$0xff]  ;;  %v16464_v12 = vld [vmem:[#allocation126_spill] sm:$0xff] }
 0x545   :  { %v2929_v25 = vadd.f32 %v2928_v5, %v2742_v57  ;;  %v2875_v4 = vrot.slane %v2874_v0, 1  ;;  %v16414_v57 = vld [vmem:[#allocation72_spill] sm:$0xff]  ;;  %v16463_v36 = vld [vmem:[#allocation125_spill] sm:$0xff]  ;;  %v16465_v38 = vld [vmem:[#allocation127_spill] sm:$0xff] }
 0x546   :  { %16413 = vst [vmem:[#allocation67_spill] sm:$0xff] %v12183_v32  ;;  %v12189_v5 = vsub.f32 %v16414_v57, %v16305_v33  ;;  %v16466_v19 = vld [vmem:[#allocation128_spill] sm:$0xff] }
 0x547   :  { %v2930_v39 = vadd.f32 %v2929_v25, %v2746_v9  ;;  %v2876_v49 = vadd.f32 %v2875_v4, %v2874_v0  ;;  %v16416_v25 = vld [vmem:[#allocation105_spill] sm:$0xff]  ;;  %v2762_v0 = vmul.f32 %v12183_v32, %v12183_v32 }
 0x548   :  { %16415 = vst [vmem:[#allocation100_spill] sm:$0xff] %v12189_v5  ;;  %v12195_v4 = vsub.f32 %v16416_v25, %v16305_v33  ;;  %v16422_v25 = vld [vmem:[#allocation74_spill] sm:$0xff] }
 0x549   :  { %v2931_v7 = vadd.f32 %v2930_v39, %v2750_v23  ;;  %v2952_v61 = vmul.f32 0.00390625, %v2876_v49  ;;  %v16418_v49 = vld [vmem:[#allocation14_spill] sm:$0xff]  ;;  %v2766_v23 = vmul.f32 %v12189_v5, %v12189_v5  ;;  %16432 = vst [vmem:[#allocation74_spill] sm:$0xff] %v12241_v40 }
 0x54a   :  { %16417 = vst [vmem:[#allocation37_spill] sm:$0xff] %v12195_v4  ;;  %v12201_v39 = vsub.f32 %v16418_v49, %v16305_v33  ;;  %v16424_v49 = vld [vmem:[#allocation78_spill] sm:$0xff] }
 0x54b   :  { %v2932_v58 = vadd.f32 %v2931_v7, %v2754_v37  ;;  %v2956_v24 = vadd.f32 1e-05, %v2952_v61  ;;  %v16420_v37 = vld [vmem:[#allocation15_spill] sm:$0xff]  ;;  %v2770_v61 = vmul.f32 %v12195_v4, %v12195_v4  ;;  %v12219_v59 = vsub.f32 %v16424_v49, %v16305_v33  ;;  %v16429_v49 = vld [vmem:[#allocation110_spill] sm:$0xff] }
 0x54c   :  { %16419 = vst [vmem:[#allocation102_spill] sm:$0xff] %v12201_v39  ;;  %v12207_v7 = vsub.f32 %v16420_v37, %v16305_v33  ;;  %v16426_v37 = vld [vmem:[#allocation107_spill] sm:$0xff]  ;;  %v12235_v16 = vsub.f32 %v16429_v49, %v16305_v33  ;;  %v16435_v49 = vld [vmem:[#allocation118_spill] sm:$0xff] }
 0x54d   :  { %v2933_v9 = vadd.f32 %v2932_v58, %v2758_v63  ;;  %7873 = vrsqrt.f32 %v2956_v24  ;;  %v12213_v58 = vsub.f32 %v16422_v25, %v16305_v33  ;;  %v2774_v24 = vmul.f32 %v12201_v39, %v12201_v39  ;;  %16425 = vst [vmem:[#allocation105_spill] sm:$0xff] %v12219_v59  ;;  %v16428_v25 = vld [vmem:[#allocation108_spill] sm:$0xff] }
 0x54e   :  { %16421 = vst [vmem:[#allocation103_spill] sm:$0xff] %v12207_v7  ;;  %v12225_v44 = vsub.f32 %v16426_v37, %v16305_v33  ;;  %v2971_v54 = vrot.slane %v11352_v8, %v16428_v25  ;;  %16430 = vst [vmem:[#allocation15_spill] sm:$0xff] %v12235_v16  ;;  %v12252_v56 = vrot.slane %v16435_v49, %v16428_v25  ;;  %v16440_v49 = vld [vmem:[#allocation20_spill] sm:$0xff] }
 0x54f   :  { %v2934_v52 = vadd.f32 %v2933_v9, %v2762_v0  ;;  %16423 = vst [vmem:[#allocation72_spill] sm:$0xff] %v12213_v58  ;;  %v2778_v0 = vmul.f32 %v12207_v7, %v12207_v7 }
 0x550   :  { %16427 = vst [vmem:[#allocation14_spill] sm:$0xff] %v12225_v44 }
 0x551   :  { %v2935_v57 = vadd.f32 %v2934_v52, %v2766_v23  ;;  %v2782_v23 = vmul.f32 %v12213_v58, %v12213_v58 }
 0x553   :  { %v2936_v63 = vadd.f32 %v2935_v57, %v2770_v61  ;;  %v2786_v61 = vmul.f32 %v12219_v59, %v12219_v59 }
 0x555   :  { %v2937_v9 = vadd.f32 %v2936_v63, %v2774_v24  ;;  %v2790_v24 = vmul.f32 %v12225_v44, %v12225_v44 }
 0x557   :  { %v2938_v52 = vadd.f32 %v2937_v9, %v2778_v0  ;;  %v16433_v0 = vld [vmem:[#allocation36_spill] sm:$0xff] }
 0x558   :  { %v12245_v8 = vsub.f32 %v16433_v0, %v16305_v33  ;;  %v16436_v33 = vld [vmem:[#allocation89_spill] sm:$0xff] }
 0x559   :  { %v2939_v57 = vadd.f32 %v2938_v52, %v2782_v23  ;;  %v2794_v52 = vmul.f32 %v12235_v16, %v12235_v16 }
 0x55a   :  { %v7874_v37 = vpop.eup %7873  ;;  %16434 = vst [vmem:[#allocation78_spill] sm:$0xff] %v12245_v8  ;;  %v12260_v6 = vmul.f32 %v12245_v8, %v12245_v8  ;;  %v16467_v8 = vld [vmem:[#allocation129_spill] sm:$0xff] }
 0x55b   :  { %v2940_v63 = vadd.f32 %v2939_v57, %v2786_v61  ;;  %v2985_v9 = vmul.f32 %v7874_v37, %v2971_v54  ;;  %v12256_v61 = vmul.f32 %v12241_v40, %v12241_v40  ;;  %v16437_v57 = vld [vmem:[#allocation17_spill] sm:$0xff] }
 0x55d   :  { %v2941_v48 = vadd.f32 %v2940_v63, %v2790_v24  ;;  %v2995_v23 = vrot.slane %v2985_v9, %v16304_v21  ;;  %v16438_v63 = vld [vmem:[#allocation91_spill] sm:$0xff]  ;;  %v16439_v9 = vld [vmem:[#allocation25_spill] sm:$0xff] }
 0x55f   :  { %v3005_v54 = vmul.f32 %v2995_v23, %v16436_v33  ;;  %v3009_v24 = vmul.f32 %v2995_v23, %v16437_v57  ;;  %v3013_v37 = vmul.f32 %v2995_v23, %v16438_v63  ;;  %v12265_v0 = vadd.f32 %v2941_v48, %v2794_v52  ;;  %v16448_v48 = vld [vmem:[#allocation88_spill] sm:$0xff] }
 0x560   :  { %v3017_v22 = vmul.f32 %v2995_v23, %v16439_v9  ;;  %v3021_v25 = vmul.f32 %v2995_v23, %v16440_v49  ;;  %v3025_v15 = vmul.f32 %v2995_v23, %v16441_v10  ;;  %v3029_v60 = vmul.f32 %v2995_v23, %v16442_v3 }
 0x561   :  { %v3033_v55 = vmul.f32 %v2995_v23, %v16443_v28  ;;  %v3037_v41 = vmul.f32 %v2995_v23, %v16444_v46  ;;  %v3041_v33 = vmul.f32 %v2995_v23, %v16445_v18  ;;  %v3045_v57 = vmul.f32 %v2995_v23, %v16446_v2 }
 0x562   :  { %v3049_v63 = vmul.f32 %v2995_v23, %v16447_v51  ;;  %v3053_v52 = vmul.f32 %v2995_v23, %v16448_v48  ;;  %v3057_v9 = vmul.f32 %v2995_v23, %v16449_v62  ;;  %v3061_v49 = vmul.f32 %v2995_v23, %v16450_v53 }
 0x563   :  { %v3065_v10 = vmul.f32 %v2995_v23, %v16451_v42  ;;  %v3069_v3 = vmul.f32 %v2995_v23, %v16452_v11  ;;  %v3073_v28 = vmul.f32 %v2995_v23, %v16453_v35  ;;  %v3077_v46 = vmul.f32 %v2995_v23, %v16454_v13 }
 0x564   :  { %v3081_v18 = vmul.f32 %v2995_v23, %v16455_v20  ;;  %v3085_v2 = vmul.f32 %v2995_v23, %v16456_v29  ;;  %v3089_v51 = vmul.f32 %v2995_v23, %v16457_v50  ;;  %v3093_v48 = vmul.f32 %v2995_v23, %v16458_v31 }
 0x565   :  { %v3097_v62 = vmul.f32 %v2995_v23, %v16459_v26  ;;  %v3101_v53 = vmul.f32 %v2995_v23, %v16460_v30  ;;  %v3105_v42 = vmul.f32 %v2995_v23, %v16461_v34  ;;  %v3109_v11 = vmul.f32 %v2995_v23, %v16462_v27 }
 0x566   :  { %v3113_v35 = vmul.f32 %v2995_v23, %v16463_v36  ;;  %v3117_v13 = vmul.f32 %v2995_v23, %v16464_v12  ;;  %v3121_v20 = vmul.f32 %v2995_v23, %v16465_v38  ;;  %v3125_v29 = vmul.f32 %v2995_v23, %v16466_v19 }
 0x567   :  { %v3129_v50 = vmul.f32 %v2995_v23, %v16467_v8  ;;  %v12297_v31 = vadd.f32 %v12252_v56, %v3005_v54  ;;  %v12300_v26 = vadd.f32 %v12252_v56, %v3009_v24  ;;  %v12303_v30 = vadd.f32 %v12252_v56, %v3013_v37 }
 0x568   :  { %v12306_v27 = vadd.f32 %v12252_v56, %v3017_v22  ;;  %v12309_v12 = vadd.f32 %v12252_v56, %v3021_v25  ;;  %v12312_v38 = vadd.f32 %v12252_v56, %v3025_v15  ;;  %v12315_v19 = vadd.f32 %v12252_v56, %v3029_v60 }
 0x569   :  { %16468 = vst [vmem:[#allocation107_spill] sm:$0xff] %v12297_v31  ;;  %16469 = vst [vmem:[#allocation110_spill] sm:$0xff] %v12300_v26  ;;  %v12318_v36 = vadd.f32 %v12252_v56, %v3033_v55  ;;  %v12321_v34 = vadd.f32 %v12252_v56, %v3037_v41  ;;  %v12324_v8 = vadd.f32 %v12252_v56, %v3041_v33 }
 0x56a   :  { %16470 = vst [vmem:[#allocation112_spill] sm:$0xff] %v12303_v30  ;;  %16471 = vst [vmem:[#allocation36_spill] sm:$0xff] %v12306_v27  ;;  %v12327_v22 = vadd.f32 %v12252_v56, %v3045_v57  ;;  %v12330_v25 = vadd.f32 %v12252_v56, %v3049_v63  ;;  %v12333_v15 = vadd.f32 %v12252_v56, %v3053_v52 }
 0x56b   :  { %16472 = vst [vmem:[#allocation118_spill] sm:$0xff] %v12309_v12  ;;  %16473 = vst [vmem:[#allocation89_spill] sm:$0xff] %v12312_v38  ;;  %v12336_v60 = vadd.f32 %v12252_v56, %v3057_v9  ;;  %v12339_v55 = vadd.f32 %v12252_v56, %v3061_v49  ;;  %v12342_v41 = vadd.f32 %v12252_v56, %v3065_v10 }
 0x56c   :  { %16474 = vst [vmem:[#allocation17_spill] sm:$0xff] %v12315_v19  ;;  %16475 = vst [vmem:[#allocation91_spill] sm:$0xff] %v12318_v36  ;;  %v12345_v23 = vadd.f32 %v12252_v56, %v3069_v3  ;;  %v12348_v54 = vadd.f32 %v12252_v56, %v3073_v28  ;;  %v12351_v24 = vadd.f32 %v12252_v56, %v3077_v46  ;;  %v12427_v40 = vmul.f32 0.2, %v12327_v22 }
 0x56d   :  { %16476 = vst [vmem:[#allocation25_spill] sm:$0xff] %v12321_v34  ;;  %16477 = vst [vmem:[#allocation20_spill] sm:$0xff] %v12324_v8  ;;  %v12354_v37 = vadd.f32 %v12252_v56, %v3081_v18  ;;  %v12357_v33 = vadd.f32 %v12252_v56, %v3085_v2  ;;  %v12360_v57 = vadd.f32 %v12252_v56, %v3089_v51  ;;  %v12393_v51 = vmul.f32 0.2, %v12297_v31 }
 0x56e   :  { %16478 = vst [vmem:[#allocation45_spill] sm:$0xff] %v12327_v22  ;;  %16479 = vst [vmem:[#allocation47_spill] sm:$0xff] %v12330_v25  ;;  %v12363_v63 = vadd.f32 %v12252_v56, %v3093_v48  ;;  %v12366_v52 = vadd.f32 %v12252_v56, %v3097_v62  ;;  %v12369_v9 = vadd.f32 %v12252_v56, %v3101_v53  ;;  %v12396_v48 = vmul.f32 0.2, %v12300_v26 }
 0x56f   :  { %16480 = vst [vmem:[#allocation80_spill] sm:$0xff] %v12333_v15  ;;  %16481 = vst [vmem:[#allocation35_spill] sm:$0xff] %v12336_v60  ;;  %v12372_v49 = vadd.f32 %v12252_v56, %v3105_v42  ;;  %v12375_v10 = vadd.f32 %v12252_v56, %v3109_v11  ;;  %v12378_v3 = vadd.f32 %v12252_v56, %v3113_v35  ;;  %v12399_v62 = vmul.f32 0.2, %v12303_v30 }
 0x570   :  { %16482 = vst [vmem:[#allocation82_spill] sm:$0xff] %v12339_v55  ;;  %16483 = vst [vmem:[#allocation84_spill] sm:$0xff] %v12342_v41  ;;  %v12381_v28 = vadd.f32 %v12252_v56, %v3117_v13  ;;  %v12384_v46 = vadd.f32 %v12252_v56, %v3121_v20  ;;  %v12387_v18 = vadd.f32 %v12252_v56, %v3125_v29  ;;  %v12402_v53 = vmul.f32 0.2, %v12306_v27 }
 0x571   :  { %16484 = vst [vmem:[#allocation86_spill] sm:$0xff] %v12345_v23  ;;  %16485 = vst [vmem:[#allocation88_spill] sm:$0xff] %v12348_v54  ;;  %v12390_v2 = vadd.f32 %v12252_v56, %v3129_v50  ;;  %v12405_v42 = vmul.f32 0.2, %v12309_v12  ;;  %v12408_v11 = vmul.f32 0.2, %v12312_v38  ;;  %v2943_v56 = vadd.f32 %v12265_v0, %v12256_v61 }
 0x572   :  { %16486 = vst [vmem:[#allocation58_spill] sm:$0xff] %v12351_v24  ;;  %16487 = vst [vmem:[#allocation60_spill] sm:$0xff] %v12354_v37  ;;  %v12413_v35 = vmul.f32 0.2, %v12315_v19  ;;  %v12416_v13 = vmul.f32 0.2, %v12318_v36 }
 0x573   :  { %16488 = vst [vmem:[#allocation106_spill] sm:$0xff] %v12357_v33  ;;  %16489 = vst [vmem:[#allocation65_spill] sm:$0xff] %v12360_v57  ;;  %v12419_v20 = vmul.f32 0.2, %v12321_v34  ;;  %v12424_v50 = vmul.f32 0.2, %v12324_v8  ;;  %v2944_v32 = vadd.f32 %v2943_v56, %v12260_v6 }
 0x574   :  { %16490 = vst [vmem:[#allocation98_spill] sm:$0xff] %v12363_v63  ;;  %16491 = vst [vmem:[#allocation68_spill] sm:$0xff] %v12366_v52  ;;  %v12430_v61 = vmul.f32 0.2, %v12330_v25  ;;  %v12435_v16 = vmul.f32 0.2, %v12333_v15 }
 0x575   :  { %16492 = vst [vmem:[#allocation101_spill] sm:$0xff] %v12369_v9  ;;  %16493 = vst [vmem:[#allocation70_spill] sm:$0xff] %v12372_v49  ;;  %v12438_v44 = vmul.f32 0.2, %v12336_v60  ;;  %v12441_v29 = vmul.f32 0.2, %v12339_v55 }
 0x576   :  { %16494 = vst [vmem:[#allocation117_spill] sm:$0xff] %v12375_v10  ;;  %16495 = vst [vmem:[#allocation120_spill] sm:$0xff] %v12378_v3  ;;  %v12446_v31 = vmul.f32 0.2, %v12342_v41  ;;  %v12449_v59 = vmul.f32 0.2, %v12345_v23 }
 0x577   :  { %16496 = vst [vmem:[#allocation73_spill] sm:$0xff] %v12381_v28  ;;  %16497 = vst [vmem:[#allocation121_spill] sm:$0xff] %v12384_v46  ;;  %v12452_v0 = vmul.f32 0.2, %v12348_v54  ;;  %v12457_v26 = vmul.f32 0.2, %v12351_v24 }
 0x578   :  { %16498 = vst [vmem:[#allocation123_spill] sm:$0xff] %v12387_v18  ;;  %16499 = vst [vmem:[#allocation124_spill] sm:$0xff] %v12390_v2  ;;  %v12460_v58 = vmul.f32 0.2, %v12354_v37  ;;  %v12468_v30 = vmul.f32 0.2, %v12360_v57 }
 0x579   :  { %16500 = vst [vmem:[#allocation125_spill] sm:$0xff] %v12393_v51  ;;  %16501 = vst [vmem:[#allocation126_spill] sm:$0xff] %v12396_v48  ;;  %v12463_v51 = vmul.f32 0.2, %v12357_v33  ;;  %v12471_v7 = vmul.f32 0.2, %v12363_v63 }
 0x57a   :  { %16502 = vst [vmem:[#allocation127_spill] sm:$0xff] %v12399_v62  ;;  %16503 = vst [vmem:[#allocation128_spill] sm:$0xff] %v12402_v53  ;;  %v12474_v48 = vmul.f32 0.2, %v12366_v52  ;;  %v12479_v27 = vmul.f32 0.2, %v12369_v9 }
 0x57b   :  { %16504 = vst [vmem:[#allocation129_spill] sm:$0xff] %v12405_v42  ;;  %16505 = vst [vmem:[#allocation209_spill] sm:$0xff] %v12408_v11  ;;  %v12482_v39 = vmul.f32 0.2, %v12372_v49  ;;  %v12485_v62 = vmul.f32 0.2, %v12375_v10 }
 0x57c   :  { %16506 = vst [vmem:[#allocation210_spill] sm:$0xff] %v12413_v35  ;;  %16507 = vst [vmem:[#allocation211_spill] sm:$0xff] %v12416_v13  ;;  %v12490_v12 = vmul.f32 0.2, %v12378_v3  ;;  %v12493_v4 = vmul.f32 0.2, %v12381_v28 }
 0x57d   :  { %16508 = vst [vmem:[#allocation212_spill] sm:$0xff] %v12419_v20  ;;  %16509 = vst [vmem:[#allocation213_spill] sm:$0xff] %v12424_v50  ;;  %v12496_v53 = vmul.f32 0.2, %v12384_v46  ;;  %v12501_v38 = vmul.f32 0.2, %v12387_v18 }
 0x57e   :  { %16510 = vst [vmem:[#allocation214_spill] sm:$0xff] %v12427_v40  ;;  %16511 = vst [vmem:[#allocation215_spill] sm:$0xff] %v12430_v61  ;;  %v12504_v5 = vmul.f32 0.2, %v12390_v2  ;;  %v16532_v36 = vld [vmem:[#allocation42_spill] sm:$0xff]  ;;  %v16543_v18 = vld [vmem:[#allocation53_spill] sm:$0xff] }
 0x57f   :  { %16512 = vst [vmem:[#allocation216_spill] sm:$0xff] %v12435_v16  ;;  %16513 = vst [vmem:[#allocation217_spill] sm:$0xff] %v12438_v44  ;;  %v7877_v35 = vld [vmem:[%s14991_s7] sm:$0xf]  ;;  %v16544_v46 = vld [vmem:[#allocation55_spill] sm:$0xff] }
 0x580   :  { %16514 = vst [vmem:[#allocation218_spill] sm:$0xff] %v12441_v29  ;;  %16515 = vst [vmem:[#allocation219_spill] sm:$0xff] %v12446_v31  ;;  %v16547_v9 = vld [vmem:[#allocation92_spill] sm:$0xff]  ;;  %v16549_v52 = vld [vmem:[#allocation67_spill] sm:$0xff] }
 0x581   :  { %16516 = vst [vmem:[#allocation220_spill] sm:$0xff] %v12449_v59  ;;  %16517 = vst [vmem:[#allocation221_spill] sm:$0xff] %v12452_v0  ;;  %v16551_v63 = vld [vmem:[#allocation37_spill] sm:$0xff]  ;;  %v16553_v57 = vld [vmem:[#allocation103_spill] sm:$0xff] }
 0x582   :  { %16518 = vst [vmem:[#allocation222_spill] sm:$0xff] %v12457_v26  ;;  %16519 = vst [vmem:[#allocation223_spill] sm:$0xff] %v12460_v58  ;;  %v16555_v33 = vld [vmem:[#allocation105_spill] sm:$0xff]  ;;  %v16556_v58 = vld [vmem:[#allocation14_spill] sm:$0xff] }
 0x583   :  { %16520 = vst [vmem:[#allocation224_spill] sm:$0xff] %v12463_v51  ;;  %16521 = vst [vmem:[#allocation225_spill] sm:$0xff] %v12468_v30  ;;  %v16552_v30 = vld [vmem:[#allocation102_spill] sm:$0xff]  ;;  %v16554_v51 = vld [vmem:[#allocation72_spill] sm:$0xff] }
 0x584   :  { %16522 = vst [vmem:[#allocation226_spill] sm:$0xff] %v12471_v7  ;;  %16523 = vst [vmem:[#allocation227_spill] sm:$0xff] %v12474_v48  ;;  %v16548_v48 = vld [vmem:[#allocation130_spill] sm:$0xff]  ;;  %v16550_v7 = vld [vmem:[#allocation100_spill] sm:$0xff] }
 0x585   :  { %16524 = vst [vmem:[#allocation228_spill] sm:$0xff] %v12479_v27  ;;  %16525 = vst [vmem:[#allocation229_spill] sm:$0xff] %v12482_v39  ;;  %v2945_v39 = vrot.slane %v2944_v32, 4  ;;  %v16546_v27 = vld [vmem:[#allocation90_spill] sm:$0xff]  ;;  %v16557_v37 = vld [vmem:[#allocation15_spill] sm:$0xff] }
 0x586   :  { %16526 = vst [vmem:[#allocation230_spill] sm:$0xff] %v12485_v62  ;;  %16527 = vst [vmem:[#allocation231_spill] sm:$0xff] %v12490_v12  ;;  %v16558_v26 = vld [vmem:[#allocation74_spill] sm:$0xff] }
 0x587   :  { %16528 = vst [vmem:[#allocation232_spill] sm:$0xff] %v12493_v4  ;;  %16529 = vst [vmem:[#allocation233_spill] sm:$0xff] %v12496_v53  ;;  %v2946_v49 = vadd.f32 %v2945_v39, %v2944_v32  ;;  %v12556_v4 = vsub.s32 3, %v16532_v36  ;;  %v16534_v39 = vld [vmem:[#allocation18_spill] sm:$0xff] }
 0x588   :  { %16530 = vst [vmem:[#allocation234_spill] sm:$0xff] %v12501_v38  ;;  %16531 = vst [vmem:[#allocation235_spill] sm:$0xff] %v12504_v5  ;;  %v16559_v24 = vld [vmem:[#allocation78_spill] sm:$0xff] }
 0x589   :  { %v2947_v11 = vrot.slane %v2946_v49, 2  ;;  %16533 = vst [vmem:[#allocation236_spill] sm:$0xff] %v12556_v4  ;;  %v2979_v19 = vrot.slane %v7877_v35, %v12556_v4  ;;  %v16538_v35 = vld [vmem:[#allocation76_spill] sm:$0xff] }
 0x58b   :  { %v2948_v62 = vadd.f32 %v2947_v11, %v2946_v49  ;;  %v16535_v11 = vld [vmem:[#allocation22_spill] sm:$0xff] }
 0x58d   :  { %v2949_v10 = vrot.slane %v2948_v62, 1 }
 0x58f   :  { %v2950_v13 = vadd.f32 %v2949_v10, %v2948_v62  ;;  %v16536_v62 = vld [vmem:[#allocation26_spill] sm:$0xff] }
 0x591   :  { %v2954_v12 = vmul.f32 0.00390625, %v2950_v13  ;;  %v16537_v13 = vld [vmem:[#allocation21_spill] sm:$0xff] }
 0x593   :  { %v2958_v3 = vadd.f32 1e-05, %v2954_v12  ;;  %v7878_v12 = vld [vmem:[%s14992_s8] sm:$0xf] }
 0x595   :  { %7875 = vrsqrt.f32 %v2958_v3  ;;  %v12569_v3 = vrot.slane %v7878_v12, %v12556_v4  ;;  %v16545_v12 = vld [vmem:[#allocation57_spill] sm:$0xff] }
 0x5a2   :  { %v7876_v42 = vpop.eup %7875 }
 0x5a3   :  { %v2987_v6 = vmul.f32 %v7876_v42, %v2979_v19  ;;  %v16539_v19 = vld [vmem:[#allocation79_spill] sm:$0xff] }
 0x5a5   :  { %v3003_v32 = vrot.slane %v2987_v6, %v16304_v21  ;;  %v16540_v6 = vld [vmem:[#allocation49_spill] sm:$0xff] }
 0x5a7   :  { %v3007_v49 = vmul.f32 %v3003_v32, %v16534_v39  ;;  %v3011_v10 = vmul.f32 %v3003_v32, %v16535_v11  ;;  %v3015_v56 = vmul.f32 %v3003_v32, %v16536_v62  ;;  %v3019_v36 = vmul.f32 %v3003_v32, %v16537_v13  ;;  %v16541_v39 = vld [vmem:[#allocation31_spill] sm:$0xff] }
 0x5a8   :  { %v3023_v5 = vmul.f32 %v3003_v32, %v16538_v35  ;;  %v3027_v42 = vmul.f32 %v3003_v32, %v16539_v19  ;;  %v3031_v21 = vmul.f32 %v3003_v32, %v16540_v6  ;;  %v3035_v2 = vmul.f32 %v3003_v32, %v16541_v39  ;;  %v16542_v11 = vld [vmem:[#allocation51_spill] sm:$0xff] }
 0x5a9   :  { %v3039_v38 = vmul.f32 %v3003_v32, %v16542_v11  ;;  %v3043_v53 = vmul.f32 %v3003_v32, %v16543_v18  ;;  %v3047_v28 = vmul.f32 %v3003_v32, %v16544_v46  ;;  %v3051_v4 = vmul.f32 %v3003_v32, %v16545_v12 }
 0x5aa   :  { %v3055_v62 = vmul.f32 %v3003_v32, %v16546_v27  ;;  %v3059_v13 = vmul.f32 %v3003_v32, %v16547_v9  ;;  %v3063_v35 = vmul.f32 %v3003_v32, %v16548_v48  ;;  %v3067_v19 = vmul.f32 %v3003_v32, %v11837_v1 }
 0x5ab   :  { %v3071_v6 = vmul.f32 %v3003_v32, %v11841_v47  ;;  %v3075_v39 = vmul.f32 %v3003_v32, %v12158_v17  ;;  %v3079_v11 = vmul.f32 %v3003_v32, %v12165_v43  ;;  %v3083_v18 = vmul.f32 %v3003_v32, %v12171_v14 }
 0x5ac   :  { %v3087_v46 = vmul.f32 %v3003_v32, %v12177_v45  ;;  %v3091_v12 = vmul.f32 %v3003_v32, %v16549_v52  ;;  %v3095_v27 = vmul.f32 %v3003_v32, %v16550_v7  ;;  %v3099_v9 = vmul.f32 %v3003_v32, %v16551_v63 }
 0x5ad   :  { %v3103_v48 = vmul.f32 %v3003_v32, %v16552_v30  ;;  %v3107_v1 = vmul.f32 %v3003_v32, %v16553_v57  ;;  %v3111_v47 = vmul.f32 %v3003_v32, %v16554_v51  ;;  %v3115_v17 = vmul.f32 %v3003_v32, %v16555_v33 }
 0x5ae   :  { %v3119_v43 = vmul.f32 %v3003_v32, %v16556_v58  ;;  %v3123_v14 = vmul.f32 %v3003_v32, %v16557_v37  ;;  %v3127_v45 = vmul.f32 %v3003_v32, %v16558_v26  ;;  %v3131_v52 = vmul.f32 %v3003_v32, %v16559_v24 }
 0x5af   :  { %v12602_v7 = vadd.f32 %v12569_v3, %v3007_v49  ;;  %v12605_v63 = vadd.f32 %v12569_v3, %v3011_v10  ;;  %v12608_v30 = vadd.f32 %v12569_v3, %v3015_v56  ;;  %v12611_v57 = vadd.f32 %v12569_v3, %v3019_v36 }
 0x5b0   :  { %v12614_v58 = vadd.f32 %v12569_v3, %v3023_v5  ;;  %v12617_v37 = vadd.f32 %v12569_v3, %v3027_v42  ;;  %v12620_v26 = vadd.f32 %v12569_v3, %v3031_v21  ;;  %v12623_v24 = vadd.f32 %v12569_v3, %v3035_v2 }
 0x5b1   :  { %v12626_v33 = vadd.f32 %v12569_v3, %v3039_v38  ;;  %v12629_v51 = vadd.f32 %v12569_v3, %v3043_v53  ;;  %v12632_v36 = vadd.f32 %v12569_v3, %v3047_v28  ;;  %v12635_v5 = vadd.f32 %v12569_v3, %v3051_v4 }
 0x5b2   :  { %16560 = vst [vmem:[#allocation18_spill] sm:$0xff] %v12620_v26  ;;  %16561 = vst [vmem:[#allocation22_spill] sm:$0xff] %v12623_v24  ;;  %v12638_v32 = vadd.f32 %v12569_v3, %v3055_v62  ;;  %v12641_v21 = vadd.f32 %v12569_v3, %v3059_v13  ;;  %v12644_v2 = vadd.f32 %v12569_v3, %v3063_v35 }
 0x5b3   :  { %v12647_v38 = vadd.f32 %v12569_v3, %v3067_v19  ;;  %v12650_v53 = vadd.f32 %v12569_v3, %v3071_v6  ;;  %v12653_v28 = vadd.f32 %v12569_v3, %v3075_v39  ;;  %v12656_v4 = vadd.f32 %v12569_v3, %v3079_v11 }
 0x5b4   :  { %v12659_v49 = vadd.f32 %v12569_v3, %v3083_v18  ;;  %v12662_v10 = vadd.f32 %v12569_v3, %v3087_v46  ;;  %v12665_v56 = vadd.f32 %v12569_v3, %v3091_v12  ;;  %v12668_v42 = vadd.f32 %v12569_v3, %v3095_v27 }
 0x5b5   :  { %v12671_v62 = vadd.f32 %v12569_v3, %v3099_v9  ;;  %v12674_v13 = vadd.f32 %v12569_v3, %v3103_v48  ;;  %v12677_v35 = vadd.f32 %v12569_v3, %v3107_v1  ;;  %v12680_v19 = vadd.f32 %v12569_v3, %v3111_v47 }
 0x5b6   :  { %v12683_v6 = vadd.f32 %v12569_v3, %v3115_v17  ;;  %v12686_v39 = vadd.f32 %v12569_v3, %v3119_v43  ;;  %v12689_v11 = vadd.f32 %v12569_v3, %v3123_v14  ;;  %v12692_v18 = vadd.f32 %v12569_v3, %v3127_v45 }
 0x5b7   :  { %16562 = vst [vmem:[#allocation26_spill] sm:$0xff] %v12680_v19  ;;  %v12695_v46 = vmul.f32 0.2, %v12602_v7  ;;  %v12698_v12 = vmul.f32 0.2, %v12605_v63  ;;  %v12704_v9 = vadd.f32 %v12569_v3, %v3131_v52 }
 0x5b8   :  { %16563 = vst [vmem:[#allocation21_spill] sm:$0xff] %v12683_v6  ;;  %16564 = vst [vmem:[#allocation76_spill] sm:$0xff] %v12686_v39  ;;  %v12701_v27 = vmul.f32 0.2, %v12608_v30  ;;  %v12707_v48 = vmul.f32 0.2, %v12611_v57 }
 0x5b9   :  { %16565 = vst [vmem:[#allocation79_spill] sm:$0xff] %v12689_v11  ;;  %16566 = vst [vmem:[#allocation49_spill] sm:$0xff] %v12692_v18  ;;  %v12710_v1 = vmul.f32 0.2, %v12614_v58  ;;  %v12713_v47 = vmul.f32 0.2, %v12617_v37  ;;  %v3412_v3 = vmax.f32 %v12602_v7, %v12695_v46  ;;  %v3416_v54 = vmax.f32 %v12605_v63, %v12698_v12 }
 0x5ba   :  { %16567 = vst [vmem:[#allocation31_spill] sm:$0xff] %v12704_v9  ;;  %v12716_v17 = vmul.f32 0.2, %v12620_v26  ;;  %v12719_v43 = vmul.f32 0.2, %v12623_v24 }
 0x5bb   :  { %16568 = vst [vmem:[#allocation51_spill] sm:$0xff] %v12713_v47  ;;  %v12722_v14 = vmul.f32 0.2, %v12626_v33  ;;  %v12727_v45 = vmul.f32 0.2, %v12629_v51 }
 0x5bc   :  { %16569 = vst [vmem:[#allocation53_spill] sm:$0xff] %v12716_v17  ;;  %16570 = vst [vmem:[#allocation55_spill] sm:$0xff] %v12719_v43  ;;  %v12730_v52 = vmul.f32 0.2, %v12632_v36  ;;  %v12733_v0 = vmul.f32 0.2, %v12635_v5 }
 0x5bd   :  { %v12738_v59 = vmul.f32 0.2, %v12638_v32  ;;  %v12741_v23 = vmul.f32 0.2, %v12641_v21  ;;  %v12744_v7 = vmul.f32 0.2, %v12644_v2 }
 0x5be   :  { %v12749_v31 = vmul.f32 0.2, %v12647_v38  ;;  %v12752_v41 = vmul.f32 0.2, %v12650_v53  ;;  %v12755_v63 = vmul.f32 0.2, %v12653_v28 }
 0x5bf   :  { %v12760_v29 = vmul.f32 0.2, %v12656_v4  ;;  %v12763_v55 = vmul.f32 0.2, %v12659_v49  ;;  %v12766_v46 = vmul.f32 0.2, %v12662_v10 }
 0x5c0   :  { %v12771_v60 = vmul.f32 0.2, %v12665_v56  ;;  %v12774_v16 = vmul.f32 0.2, %v12668_v42  ;;  %v12777_v12 = vmul.f32 0.2, %v12671_v62 }
 0x5c1   :  { %v12782_v61 = vmul.f32 0.2, %v12674_v13  ;;  %v12785_v25 = vmul.f32 0.2, %v12677_v35  ;;  %v12788_v44 = vmul.f32 0.2, %v12680_v19 }
 0x5c2   :  { %v12793_v22 = vmul.f32 0.2, %v12683_v6  ;;  %v12796_v50 = vmul.f32 0.2, %v12686_v39  ;;  %v12799_v15 = vmul.f32 0.2, %v12689_v11 }
 0x5c3   :  { %16571 = vst [vmem:[#allocation57_spill] sm:$0xff] %v12785_v25  ;;  %16572 = vst [vmem:[#allocation90_spill] sm:$0xff] %v12788_v44  ;;  %v12804_v20 = vmul.f32 0.2, %v12692_v18  ;;  %v12807_v34 = vmul.f32 0.2, %v12704_v9 }
 0x5c4   :  { %16573 = vst [vmem:[#allocation92_spill] sm:$0xff] %v12793_v22  ;;  %16574 = vst [vmem:[#allocation130_spill] sm:$0xff] %v12796_v50 }
 0x5c5   :  { %16575 = vst [vmem:[#allocation67_spill] sm:$0xff] %v12799_v15  ;;  %16576 = vst [vmem:[#allocation100_spill] sm:$0xff] %v12804_v20 }
 0x5c6   :  { %16577 = vst [vmem:[#allocation37_spill] sm:$0xff] %v12807_v34 }
 0x5c7   :  { %8702 = dma.done.wait [#allocation5 + $0x1], 28672 }
 0x5c8   :  { %8703 = vsyncadd [#allocation5 + $0x1], 4294938624  ;;  %v16578_v47 = vld [vmem:[#allocation107_spill] sm:$0xff]  ;;  %v16579_v25 = vld [vmem:[#allocation125_spill] sm:$0xff]  ;;  %v12865_v24 = vpack.c.bf16 %v3416_v54, %v3412_v3 }
 0x5c9   :  { %v16580_v8 = vmax.f32 %v16578_v47, %v16579_v25  ;;  %v16581_v44 = vld [vmem:[#allocation110_spill] sm:$0xff]  ;;  %v7879_v17 = vld [vmem:[#allocation4 + $0x18c] ss:$28 sps:$4 sm:$0xff]   ;;  %v7885_v9 = vld [vmem:[#allocation4 + $0x154] ss:$28 sps:$4 sm:$0xff]  }
 0x5ca   :  { %v16582_v19 = vld [vmem:[#allocation126_spill] sm:$0xff]  ;;  %16585 = vst [vmem:[#allocation103_spill] sm:$0xff] %v12865_v24  ;;  %5275 = vmatprep.mubr.bf16.mxu1 %v12865_v24  ;;  %5050 = vmatprep.subr.bf16.mxu0 %v7879_v17  ;;  %v7882_v26 = vld [vmem:[#allocation4 + $0x50c] ss:$28 sps:$4 sm:$0xff]   ;;  %v7888_v25 = vld [vmem:[#allocation4 + $0x4d4] ss:$28 sps:$4 sm:$0xff]  }
 0x5cb   :  { %v16583_v43 = vmax.f32 %v16581_v44, %v16582_v19  ;;  %v7881_v40 = vld [vmem:[#allocation4 + $0x188] ss:$28 sps:$4 sm:$0xff]   ;;  %v7887_v20 = vld [vmem:[#allocation4 + $0x150] ss:$28 sps:$4 sm:$0xff]   ;;  %5243 = vmatprep.subr.bf16.mxu1 %v7882_v26  ;;  %v7893_v54 = vld [vmem:[#allocation4 + $0x118] ss:$28 sps:$4 sm:$0xff]  }
 0x5cc   :  { %v7884_v34 = vld [vmem:[#allocation4 + $0x508] ss:$28 sps:$4 sm:$0xff]   ;;  %5051 = vmatpush1.bf16.msra.mxu0 %v7881_v40  ;;  %v7890_v44 = vld [vmem:[#allocation4 + $0x4d0] ss:$28 sps:$4 sm:$0xff]   ;;  %v7894_v19 = vld [vmem:[#allocation4 + $0x49c] ss:$28 sps:$4 sm:$0xff]  }
 0x5cd   :  { %v12863_v22 = vpack.c.bf16 %v16583_v43, %v16580_v8  ;;  %5244 = vmatpush1.bf16.msra.mxu1 %v7884_v34  ;;  %5052 = vmatprep.subr.bf16.mxu0 %v7885_v9  ;;  %v7891_v8 = vld [vmem:[#allocation4 + $0x11c] ss:$28 sps:$4 sm:$0xff]   ;;  %v7897_v47 = vld [vmem:[#allocation4 + $0xe4] ss:$28 sps:$4 sm:$0xff]   ;;  %v7903_v3 = vld [vmem:[#allocation4 + $0xac] ss:$28 sps:$4 sm:$0xff]  }
 0x5ce   :  { %5245 = vmatprep.subr.bf16.mxu1 %v7888_v25  ;;  %v7896_v43 = vld [vmem:[#allocation4 + $0x498] ss:$28 sps:$4 sm:$0xff]   ;;  %v7900_v17 = vld [vmem:[#allocation4 + $0x464] ss:$28 sps:$4 sm:$0xff]   ;;  %v7906_v34 = vld [vmem:[#allocation4 + $0x42c] ss:$28 sps:$4 sm:$0xff]  }
 0x5cf   :  { %16584 = vst [vmem:[#allocation102_spill] sm:$0xff] %v12863_v22  ;;  %5082 = vmatprep.mubr.bf16.mxu0 %v12863_v22  ;;  %v7899_v40 = vld [vmem:[#allocation4 + $0xe0] ss:$28 sps:$4 sm:$0xff]   ;;  %v7905_v9 = vld [vmem:[#allocation4 + $0xa8] ss:$28 sps:$4 sm:$0xff]   ;;  %v16595_v11 = vld [vmem:[#allocation36_spill] sm:$0xff] }
 0x5d0   :  { %5053 = vmatpush1.bf16.msra.mxu0 %v7887_v20  ;;  %v7902_v26 = vld [vmem:[#allocation4 + $0x460] ss:$28 sps:$4 sm:$0xff]   ;;  %v7909_v20 = vld [vmem:[#allocation4 + $0x74] ss:$28 sps:$4 sm:$0xff]   ;;  %v7908_v25 = vld [vmem:[#allocation4 + $0x428] ss:$28 sps:$4 sm:$0xff]  }
 0x5d1   :  { %5054 = vmatprep.subr.bf16.mxu0 %v7891_v8  ;;  %5246 = vmatpush1.bf16.msra.mxu1 %v7890_v44  ;;  %v7912_v8 = vld [vmem:[#allocation4 + $0x3f4] ss:$28 sps:$4 sm:$0xff]   ;;  %v16590_v22 = vld [vmem:[#allocation150_spill] sm:$0xff]  ;;  %v16593_v15 = vld [vmem:[#allocation127_spill] sm:$0xff] }
 0x5d2   :  { %5247 = vmatprep.subr.bf16.mxu1 %v7894_v19  ;;  %v7911_v44 = vld [vmem:[#allocation4 + $0x70] ss:$28 sps:$4 sm:$0xff]   ;;  %v7915_v19 = vld [vmem:[#allocation4 + $0x3c] ss:$28 sps:$4 sm:$0xff]  }
 0x5d3   :  { %v16599_v39 = vld [vmem:[#allocation113_spill] sm:$0xff]  ;;  %v16602_v6 = vld [vmem:[#allocation115_spill] sm:$0xff] }
 0x5d4   :  { %5055 = vmatpush1.bf16.msra.mxu0 %v7893_v54  ;;  %v7914_v54 = vld [vmem:[#allocation4 + $0x3f0] ss:$28 sps:$4 sm:$0xff]  }
 0x5d5   :  { %5056 = vmatprep.subr.bf16.mxu0 %v7897_v47  ;;  %5248 = vmatpush1.bf16.msra.mxu1 %v7896_v43  ;;  %v7918_v47 = vld [vmem:[#allocation4 + $0x3bc] ss:$28 sps:$4 sm:$0xff]  }
 0x5d6   :  { %5249 = vmatprep.subr.bf16.mxu1 %v7900_v17  ;;  %v7917_v43 = vld [vmem:[#allocation4 + $0x38] ss:$28 sps:$4 sm:$0xff]   ;;  %v7921_v17 = vld [vmem:[#allocation4 + $0x4] ss:$28 sps:$4 sm:$0xff]  }
 0x5d8   :  { %5057 = vmatpush1.bf16.msra.mxu0 %v7899_v40  ;;  %v7920_v40 = vld [vmem:[#allocation4 + $0x3b8] ss:$28 sps:$4 sm:$0xff]  }
 0x5d9   :  { %5058 = vmatprep.subr.bf16.mxu0 %v7903_v3  ;;  %5250 = vmatpush1.bf16.msra.mxu1 %v7902_v26  ;;  %v7924_v3 = vld [vmem:[#allocation4 + $0x384] ss:$28 sps:$4 sm:$0xff]  }
 0x5da   :  { %5251 = vmatprep.subr.bf16.mxu1 %v7906_v34  ;;  %v7923_v26 = vld [vmem:[#allocation4] ss:$28 sps:$4 sm:$0xff]   ;;  %v7927_v34 = vld [vmem:[#allocation4 + $0x34c] ss:$28 sps:$4 sm:$0xff]  }
 0x5dc   :  { %5059 = vmatpush1.bf16.msra.mxu0 %v7905_v9  ;;  %v7926_v9 = vld [vmem:[#allocation4 + $0x380] ss:$28 sps:$4 sm:$0xff]  }
 0x5dd   :  { %5060 = vmatprep.subr.bf16.mxu0 %v7909_v20  ;;  %5252 = vmatpush1.bf16.msra.mxu1 %v7908_v25  ;;  %v7930_v20 = vld [vmem:[#allocation4 + $0x6cc] ss:$28 sps:$4 sm:$0xff]  }
 0x5de   :  { %5253 = vmatprep.subr.bf16.mxu1 %v7912_v8  ;;  %v7929_v25 = vld [vmem:[#allocation4 + $0x348] ss:$28 sps:$4 sm:$0xff]   ;;  %v7933_v8 = vld [vmem:[#allocation4 + $0x314] ss:$28 sps:$4 sm:$0xff]  }
 0x5e0   :  { %5061 = vmatpush1.bf16.msra.mxu0 %v7911_v44  ;;  %v7932_v44 = vld [vmem:[#allocation4 + $0x6c8] ss:$28 sps:$4 sm:$0xff]  }
 0x5e1   :  { %5062 = vmatprep.subr.bf16.mxu0 %v7915_v19  ;;  %5254 = vmatpush1.bf16.msra.mxu1 %v7914_v54  ;;  %v7936_v19 = vld [vmem:[#allocation4 + $0x694] ss:$28 sps:$4 sm:$0xff]  }
 0x5e2   :  { %5255 = vmatprep.subr.bf16.mxu1 %v7918_v47  ;;  %v7935_v54 = vld [vmem:[#allocation4 + $0x310] ss:$28 sps:$4 sm:$0xff]   ;;  %v7939_v47 = vld [vmem:[#allocation4 + $0x2dc] ss:$28 sps:$4 sm:$0xff]  }
 0x5e4   :  { %5063 = vmatpush1.bf16.msra.mxu0 %v7917_v43  ;;  %v7938_v43 = vld [vmem:[#allocation4 + $0x690] ss:$28 sps:$4 sm:$0xff]  }
 0x5e5   :  { %5064 = vmatprep.subr.bf16.mxu0 %v7921_v17  ;;  %5256 = vmatpush1.bf16.msra.mxu1 %v7920_v40  ;;  %v7942_v17 = vld [vmem:[#allocation4 + $0x65c] ss:$28 sps:$4 sm:$0xff]  }
 0x5e6   :  { %5257 = vmatprep.subr.bf16.mxu1 %v7924_v3  ;;  %v7941_v40 = vld [vmem:[#allocation4 + $0x2d8] ss:$28 sps:$4 sm:$0xff]   ;;  %v7945_v3 = vld [vmem:[#allocation4 + $0x2a4] ss:$28 sps:$4 sm:$0xff]  }
 0x5e8   :  { %5065 = vmatpush1.bf16.msra.mxu0 %v7923_v26  ;;  %v7944_v26 = vld [vmem:[#allocation4 + $0x658] ss:$28 sps:$4 sm:$0xff]  }
 0x5e9   :  { %5066 = vmatprep.subr.bf16.mxu0 %v7927_v34  ;;  %5258 = vmatpush1.bf16.msra.mxu1 %v7926_v9  ;;  %v7948_v34 = vld [vmem:[#allocation4 + $0x624] ss:$28 sps:$4 sm:$0xff]  }
 0x5ea   :  { %5259 = vmatprep.subr.bf16.mxu1 %v7930_v20  ;;  %v7947_v9 = vld [vmem:[#allocation4 + $0x2a0] ss:$28 sps:$4 sm:$0xff]   ;;  %v7951_v20 = vld [vmem:[#allocation4 + $0x26c] ss:$28 sps:$4 sm:$0xff]  }
 0x5ec   :  { %5067 = vmatpush2.bf16.msra.mxu0 %v7929_v25  ;;  %v7950_v25 = vld [vmem:[#allocation4 + $0x620] ss:$28 sps:$4 sm:$0xff]  }
 0x5ed   :  { %5068 = vmatprep.subr.bf16.mxu0 %v7933_v8  ;;  %5260 = vmatpush2.bf16.msra.mxu1 %v7932_v44  ;;  %v7954_v8 = vld [vmem:[#allocation4 + $0x5ec] ss:$28 sps:$4 sm:$0xff]  }
 0x5ee   :  { %5261 = vmatprep.subr.bf16.mxu1 %v7936_v19  ;;  %v7953_v44 = vld [vmem:[#allocation4 + $0x268] ss:$28 sps:$4 sm:$0xff]   ;;  %v7957_v19 = vld [vmem:[#allocation4 + $0x234] ss:$28 sps:$4 sm:$0xff]  }
 0x5f0   :  { %5069 = vmatpush2.bf16.msra.mxu0 %v7935_v54  ;;  %v7956_v54 = vld [vmem:[#allocation4 + $0x5e8] ss:$28 sps:$4 sm:$0xff]  }
 0x5f1   :  { %5070 = vmatprep.subr.bf16.mxu0 %v7939_v47  ;;  %5262 = vmatpush2.bf16.msra.mxu1 %v7938_v43  ;;  %v7960_v47 = vld [vmem:[#allocation4 + $0x5b4] ss:$28 sps:$4 sm:$0xff]  }
 0x5f2   :  { %5263 = vmatprep.subr.bf16.mxu1 %v7942_v17  ;;  %v7959_v43 = vld [vmem:[#allocation4 + $0x230] ss:$28 sps:$4 sm:$0xff]   ;;  %v7963_v17 = vld [vmem:[#allocation4 + $0x1fc] ss:$28 sps:$4 sm:$0xff]  }
 0x5f4   :  { %5071 = vmatpush2.bf16.msra.mxu0 %v7941_v40  ;;  %v7962_v40 = vld [vmem:[#allocation4 + $0x5b0] ss:$28 sps:$4 sm:$0xff]  }
 0x5f5   :  { %5072 = vmatprep.subr.bf16.mxu0 %v7945_v3  ;;  %5264 = vmatpush2.bf16.msra.mxu1 %v7944_v26  ;;  %v7966_v3 = vld [vmem:[#allocation4 + $0x57c] ss:$28 sps:$4 sm:$0xff]  }
 0x5f6   :  { %5265 = vmatprep.subr.bf16.mxu1 %v7948_v34  ;;  %v7965_v26 = vld [vmem:[#allocation4 + $0x1f8] ss:$28 sps:$4 sm:$0xff]   ;;  %v7969_v34 = vld [vmem:[#allocation4 + $0x1c4] ss:$28 sps:$4 sm:$0xff]  }
 0x5f8   :  { %5073 = vmatpush2.bf16.msra.mxu0 %v7947_v9  ;;  %v7968_v9 = vld [vmem:[#allocation4 + $0x578] ss:$28 sps:$4 sm:$0xff]  }
 0x5f9   :  { %5074 = vmatprep.subr.bf16.mxu0 %v7951_v20  ;;  %5266 = vmatpush2.bf16.msra.mxu1 %v7950_v25  ;;  %v7972_v20 = vld [vmem:[#allocation4 + $0x544] ss:$28 sps:$4 sm:$0xff]  }
 0x5fa   :  { %5267 = vmatprep.subr.bf16.mxu1 %v7954_v8  ;;  %v7971_v25 = vld [vmem:[#allocation4 + $0x1c0] ss:$28 sps:$4 sm:$0xff]   ;;  %v7977_v8 = vld [vmem:[#allocation4 + $0x194] ss:$28 sps:$4 sm:$0xff]  }
 0x5fc   :  { %5075 = vmatpush2.bf16.msra.mxu0 %v7953_v44  ;;  %v7974_v44 = vld [vmem:[#allocation4 + $0x540] ss:$28 sps:$4 sm:$0xff]  }
 0x5fd   :  { %5076 = vmatprep.subr.bf16.mxu0 %v7957_v19  ;;  %5268 = vmatpush2.bf16.msra.mxu1 %v7956_v54  ;;  %v16586_v19 = vld [vmem:[#allocation94_spill] sm:$0xff]  ;;  %v16587_v54 = vld [vmem:[#allocation149_spill] sm:$0xff] }
 0x5fe   :  { %5269 = vmatprep.subr.bf16.mxu1 %v7960_v47  ;;  %v16588_v24 = vmax.f32 %v16586_v19, %v16587_v54  ;;  %v16589_v47 = vld [vmem:[#allocation16_spill] sm:$0xff] }
 0x5ff   :  { %v16601_v54 = vld [vmem:[#allocation64_spill] sm:$0xff] }
 0x600   :  { %5077 = vmatpush2.bf16.msra.mxu0 %v7959_v43  ;;  %v16591_v43 = vmax.f32 %v16589_v47, %v16590_v22  ;;  %v16603_v22 = vmax.f32 %v16601_v54, %v16602_v6  ;;  %v7980_v47 = vld [vmem:[#allocation4 + $0x15c] ss:$28 sps:$4 sm:$0xff]  }
 0x601   :  { %5078 = vmatprep.subr.bf16.mxu0 %v7963_v17  ;;  %5270 = vmatpush2.bf16.msra.mxu1 %v7962_v40  ;;  %v8004_v17 = vld [vmem:[#allocation4 + $0x514] ss:$28 sps:$4 sm:$0xff]   ;;  %v16618_v54 = vld [vmem:[#allocation209_spill] sm:$0xff] }
 0x602   :  { %5271 = vmatprep.subr.bf16.mxu1 %v7966_v3  ;;  %v12875_v18 = vpack.c.bf16 %v16591_v43, %v16588_v24  ;;  %v7975_v40 = vld [vmem:[#allocation4 + $0x190] ss:$28 sps:$4 sm:$0xff]   ;;  %v7978_v6 = vld [vmem:[#allocation4 + $0x158] ss:$28 sps:$4 sm:$0xff]  }
 0x603   :  { %v16592_v3 = vld [vmem:[#allocation112_spill] sm:$0xff] }
 0x604   :  { %5079 = vmatpush2.bf16.msra.mxu0 %v7965_v26  ;;  %v16594_v26 = vmax.f32 %v16592_v3, %v16593_v15  ;;  %v16606_v15 = vmax.f32 %v12611_v57, %v12707_v48  ;;  %v16608_v57 = vld [vmem:[#allocation40_spill] sm:$0xff] }
 0x605   :  { %5080 = vmatprep.subr.bf16.mxu0 %v7969_v34  ;;  %5272 = vmatpush2.bf16.msra.mxu1 %v7968_v9  ;;  %v16596_v34 = vld [vmem:[#allocation128_spill] sm:$0xff] }
 0x606   :  { %5273 = vmatprep.subr.bf16.mxu1 %v7972_v20  ;;  %v16597_v50 = vmax.f32 %v16595_v11, %v16596_v34  ;;  %v16598_v20 = vld [vmem:[#allocation114_spill] sm:$0xff]  ;;  %v16612_v43 = vld [vmem:[#allocation152_spill] sm:$0xff]  ;;  %v16615_v34 = vld [vmem:[#allocation129_spill] sm:$0xff] }
 0x607   :  { %v16600_v19 = vmax.f32 %v16598_v20, %v16599_v39  ;;  %v8007_v39 = vld [vmem:[#allocation4 + $0x4dc] ss:$28 sps:$4 sm:$0xff]  }
 0x608   :  { %5081 = vmatpush2.bf16.msra.mxu0 %v7971_v25  ;;  %v12883_v9 = vpack.c.bf16 %v16597_v50, %v16594_v26  ;;  %v16605_v25 = vmax.f32 %v12608_v30, %v12701_v27  ;;  %v8002_v50 = vld [vmem:[#allocation4 + $0x510] ss:$28 sps:$4 sm:$0xff]   ;;  %v8005_v30 = vld [vmem:[#allocation4 + $0x4d8] ss:$28 sps:$4 sm:$0xff]   ;;  %v16614_v26 = vld [vmem:[#allocation118_spill] sm:$0xff] }
 0x609   :  { %5436 = vmatprep.subr.bf16.mxu0 %v7977_v8  ;;  %v12891_v24 = vpack.c.bf16 %v16603_v22, %v16600_v19  ;;  %5274 = vmatpush2.bf16.msra.mxu1 %v7974_v44  ;;  %v7983_v8 = vld [vmem:[#allocation4 + $0x124] ss:$28 sps:$4 sm:$0xff]   ;;  %v16609_v27 = vld [vmem:[#allocation151_spill] sm:$0xff]  ;;  %v16611_v44 = vld [vmem:[#allocation44_spill] sm:$0xff]  ;;  %v16616_v20 = vmax.f32 %v16614_v26, %v16615_v34 }
 0x60a   :  { %v12899_v11 = vpack.c.bf16 %v16606_v15, %v16605_v25  ;;  %5629 = vmatprep.subr.bf16.mxu1 %v8004_v17  ;;  %v16610_v48 = vmax.f32 %v16608_v57, %v16609_v27  ;;  %v16613_v3 = vmax.f32 %v16611_v44, %v16612_v43  ;;  %v16617_v19 = vld [vmem:[#allocation89_spill] sm:$0xff]  ;;  %v16624_v27 = vld [vmem:[#allocation28_spill] sm:$0xff]  ;;  %v16629_v43 = vld [vmem:[#allocation51_spill] sm:$0xff] }
 0x60b   :  { %16604 = vst [vmem:[#allocation72_spill] sm:$0xff] %v12891_v24  ;;  %5083 = vmatmul.mubr.bf16.vlgmr.msra.gmra.mxu0 %v12875_v18  ;;  %v16619_v22 = vmax.f32 %v16617_v19, %v16618_v54  ;;  %v7981_v25 = vld [vmem:[#allocation4 + $0x120] ss:$28 sps:$4 sm:$0xff]   ;;  %v16635_v19 = vld [vmem:[#allocation87_spill] sm:$0xff] }
 0x60c   :  { %16607 = vst [vmem:[#allocation105_spill] sm:$0xff] %v12899_v11  ;;  %5437 = vmatpush1.bf16.msra.mxu0 %v7975_v40  ;;  %5092 = vmatprep.mubr.bf16.mxu0 %v12883_v9  ;;  %v12911_v17 = vpack.c.bf16 %v16613_v3, %v16610_v48  ;;  %v8013_v40 = vld [vmem:[#allocation4 + $0x4a4] ss:$28 sps:$4 sm:$0xff]   ;;  %v16621_v15 = vld [vmem:[#allocation97_spill] sm:$0xff]  ;;  %v16630_v3 = vmax.f32 %v12617_v37, %v16629_v43  ;;  %v7987_v43 = vld [vmem:[#allocation4 + $0xb0] ss:$28 sps:$4 sm:$0xff]  }
 0x60d   :  { %5276 = vmatmul.mubr.bf16.vlgmr.msra.gmra.mxu1 %v12891_v24  ;;  %5438 = vmatprep.subr.bf16.mxu0 %v7980_v47  ;;  %v12919_v47 = vpack.c.bf16 %v16619_v22, %v16616_v20  ;;  %v8011_v34 = vld [vmem:[#allocation4 + $0x4a0] ss:$28 sps:$4 sm:$0xff]   ;;  %v8016_v20 = vld [vmem:[#allocation4 + $0x46c] ss:$28 sps:$4 sm:$0xff]  }
 0x60e   :  { %5285 = vmatprep.mubr.bf16.mxu1 %v12899_v11  ;;  %5630 = vmatpush1.bf16.msra.mxu1 %v8002_v50  ;;  %v16622_v50 = vld [vmem:[#allocation116_spill] sm:$0xff]  ;;  %v16625_v11 = vld [vmem:[#allocation122_spill] sm:$0xff] }
 0x60f   :  { %5631 = vmatprep.subr.bf16.mxu1 %v8007_v39  ;;  %16620 = vst [vmem:[#allocation14_spill] sm:$0xff] %v12919_v47  ;;  %v16623_v57 = vmax.f32 %v16621_v15, %v16622_v50  ;;  %v16626_v44 = vmax.f32 %v16624_v27, %v16625_v11  ;;  %v7986_v39 = vld [vmem:[#allocation4 + $0xec] ss:$28 sps:$4 sm:$0xff]   ;;  %v16632_v37 = vld [vmem:[#allocation34_spill] sm:$0xff]  ;;  %v8022_v15 = vld [vmem:[#allocation4 + $0x434] ss:$28 sps:$4 sm:$0xff]  }
 0x610   :  { %5439 = vmatpush1.bf16.msra.mxu0 %v7978_v6  ;;  %v16628_v6 = vmax.f32 %v12614_v58, %v12710_v1  ;;  %v7984_v11 = vld [vmem:[#allocation4 + $0xe8] ss:$28 sps:$4 sm:$0xff]   ;;  %v16633_v1 = vld [vmem:[#allocation153_spill] sm:$0xff] }
 0x611   :  { %v12927_v48 = vpack.c.bf16 %v16626_v44, %v16623_v57  ;;  %5440 = vmatprep.subr.bf16.mxu0 %v7983_v8  ;;  %v7989_v8 = vld [vmem:[#allocation4 + $0xb4] ss:$28 sps:$4 sm:$0xff]   ;;  %v8014_v58 = vld [vmem:[#allocation4 + $0x468] ss:$28 sps:$4 sm:$0xff]  }
 0x612   :  { %v12935_v26 = vpack.c.bf16 %v16630_v3, %v16628_v6  ;;  %5632 = vmatpush1.bf16.msra.mxu1 %v8005_v30  ;;  %v16634_v30 = vmax.f32 %v16632_v37, %v16633_v1  ;;  %v16636_v54 = vld [vmem:[#allocation154_spill] sm:$0xff]  ;;  %v16642_v27 = vld [vmem:[#allocation91_spill] sm:$0xff] }
 0x613   :  { %16627 = vst [vmem:[#allocation15_spill] sm:$0xff] %v12927_v48  ;;  %5093 = vmatmul.mubr.bf16.gmra.mxu0 %v12911_v17  ;;  %5633 = vmatprep.subr.bf16.mxu1 %v8013_v40  ;;  %v16637_v22 = vmax.f32 %v16635_v19, %v16636_v54  ;;  %v16640_v50 = vld [vmem:[#allocation210_spill] sm:$0xff]  ;;  %v16643_v44 = vld [vmem:[#allocation211_spill] sm:$0xff] }
 0x614   :  { %16631 = vst [vmem:[#allocation74_spill] sm:$0xff] %v12935_v26  ;;  %5102 = vmatprep.mubr.bf16.mxu0 %v12919_v47  ;;  %5441 = vmatpush1.bf16.msra.mxu0 %v7981_v25  ;;  %v16639_v25 = vld [vmem:[#allocation17_spill] sm:$0xff]  ;;  %v16646_v3 = vld [vmem:[#allocation23_spill] sm:$0xff]  ;;  %v16649_v1 = vld [vmem:[#allocation46_spill] sm:$0xff] }
 0x615   :  { %5286 = vmatmul.mubr.bf16.gmra.mxu1 %v12927_v48  ;;  %5442 = vmatprep.subr.bf16.mxu0 %v7986_v39  ;;  %v12947_v40 = vpack.c.bf16 %v16637_v22, %v16634_v30  ;;  %v16641_v57 = vmax.f32 %v16639_v25, %v16640_v50  ;;  %v16644_v39 = vmax.f32 %v16642_v27, %v16643_v44  ;;  %v16653_v54 = vld [vmem:[#allocation18_spill] sm:$0xff]  ;;  %v16654_v22 = vld [vmem:[#allocation53_spill] sm:$0xff]  ;;  %v16657_v48 = vld [vmem:[#allocation55_spill] sm:$0xff] }
 0x616   :  { %5295 = vmatprep.mubr.bf16.mxu1 %v12935_v26  ;;  %5634 = vmatpush1.bf16.msra.mxu1 %v8011_v34  ;;  %v16647_v34 = vld [vmem:[#allocation181_spill] sm:$0xff]  ;;  %v16650_v26 = vld [vmem:[#allocation182_spill] sm:$0xff]  ;;  %v16655_v25 = vmax.f32 %v16653_v54, %v16654_v22  ;;  %v16668_v54 = vld [vmem:[#allocation212_spill] sm:$0xff] }
 0x617   :  { %16638 = vst [vmem:[#allocation78_spill] sm:$0xff] %v12947_v40  ;;  %5635 = vmatprep.subr.bf16.mxu1 %v8016_v20  ;;  %v12955_v6 = vpack.c.bf16 %v16644_v39, %v16641_v57  ;;  %v16648_v37 = vmax.f32 %v16646_v3, %v16647_v34  ;;  %v16651_v19 = vmax.f32 %v16649_v1, %v16650_v26  ;;  %v7992_v20 = vld [vmem:[#allocation4 + $0x7c] ss:$28 sps:$4 sm:$0xff]   ;;  %v16656_v50 = vld [vmem:[#allocation22_spill] sm:$0xff]  ;;  %v16660_v39 = vld [vmem:[#allocation24_spill] sm:$0xff] }
 0x618   :  { %5443 = vmatpush1.bf16.msra.mxu0 %v7984_v11  ;;  %v16658_v27 = vmax.f32 %v16656_v50, %v16657_v48  ;;  %v8020_v11 = vld [vmem:[#allocation4 + $0x430] ss:$28 sps:$4 sm:$0xff]   ;;  %v8025_v44 = vld [vmem:[#allocation4 + $0x3fc] ss:$28 sps:$4 sm:$0xff]  }
 0x619   :  { %16645 = vst [vmem:[#allocation107_spill] sm:$0xff] %v12955_v6  ;;  %v12963_v30 = vpack.c.bf16 %v16651_v19, %v16648_v37  ;;  %5444 = vmatprep.subr.bf16.mxu0 %v7989_v8  ;;  %v7990_v26 = vld [vmem:[#allocation4 + $0x78] ss:$28 sps:$4 sm:$0xff]   ;;  %v7995_v8 = vld [vmem:[#allocation4 + $0x44] ss:$28 sps:$4 sm:$0xff]   ;;  %v16661_v3 = vld [vmem:[#allocation155_spill] sm:$0xff] }
 0x61a   :  { %v12971_v57 = vpack.c.bf16 %v16658_v27, %v16655_v25  ;;  %5636 = vmatpush1.bf16.msra.mxu1 %v8014_v58  ;;  %v8023_v48 = vld [vmem:[#allocation4 + $0x3f8] ss:$28 sps:$4 sm:$0xff]   ;;  %v16662_v58 = vmax.f32 %v16660_v39, %v16661_v3  ;;  %v16663_v34 = vld [vmem:[#allocation59_spill] sm:$0xff]  ;;  %v8031_v19 = vld [vmem:[#allocation4 + $0x3c4] ss:$28 sps:$4 sm:$0xff]  }
 0x61b   :  { %16652 = vst [vmem:[#allocation125_spill] sm:$0xff] %v12963_v30  ;;  %5103 = vmatmul.mubr.bf16.gmra.mxu0 %v12947_v40  ;;  %5637 = vmatprep.subr.bf16.mxu1 %v8022_v15  ;;  %v16664_v37 = vld [vmem:[#allocation156_spill] sm:$0xff]  ;;  %v16677_v3 = vld [vmem:[#allocation83_spill] sm:$0xff] }
 0x61c   :  { %16659 = vst [vmem:[#allocation110_spill] sm:$0xff] %v12971_v57  ;;  %5112 = vmatprep.mubr.bf16.mxu0 %v12955_v6  ;;  %5445 = vmatpush1.bf16.msra.mxu0 %v7987_v43  ;;  %v16665_v1 = vmax.f32 %v16663_v34, %v16664_v37  ;;  %v16667_v43 = vld [vmem:[#allocation25_spill] sm:$0xff]  ;;  %v16670_v25 = vld [vmem:[#allocation20_spill] sm:$0xff]  ;;  %v16681_v37 = vmax.f32 %v12626_v33, %v12722_v14  ;;  %v16684_v14 = vld [vmem:[#allocation75_spill] sm:$0xff] }
 0x61d   :  { %5296 = vmatmul.mubr.bf16.gmra.mxu1 %v12963_v30  ;;  %5446 = vmatprep.subr.bf16.mxu0 %v7992_v20  ;;  %v16669_v22 = vmax.f32 %v16667_v43, %v16668_v54  ;;  %v16671_v20 = vld [vmem:[#allocation213_spill] sm:$0xff]  ;;  %v16675_v30 = vld [vmem:[#allocation183_spill] sm:$0xff]  ;;  %v16678_v6 = vld [vmem:[#allocation184_spill] sm:$0xff] }
 0x61e   :  { %5305 = vmatprep.mubr.bf16.mxu1 %v12971_v57  ;;  %5638 = vmatpush1.bf16.msra.mxu1 %v8020_v11  ;;  %v12983_v15 = vpack.c.bf16 %v16665_v1, %v16662_v58  ;;  %v16672_v50 = vmax.f32 %v16670_v25, %v16671_v20  ;;  %v7993_v11 = vld [vmem:[#allocation4 + $0x40] ss:$28 sps:$4 sm:$0xff]   ;;  %v16679_v34 = vmax.f32 %v16677_v3, %v16678_v6  ;;  %v8034_v6 = vld [vmem:[#allocation4 + $0x38c] ss:$28 sps:$4 sm:$0xff]   ;;  %v8040_v33 = vld [vmem:[#allocation4 + $0x6d4] ss:$28 sps:$4 sm:$0xff]  }
 0x61f   :  { %5639 = vmatprep.subr.bf16.mxu1 %v8025_v44  ;;  %v16674_v57 = vld [vmem:[#allocation81_spill] sm:$0xff]  ;;  %v7998_v44 = vld [vmem:[#allocation4 + $0xc] ss:$28 sps:$4 sm:$0xff]   ;;  %v16682_v1 = vmax.f32 %v12629_v51, %v12727_v45 }
 0x620   :  { %16666 = vst [vmem:[#allocation126_spill] sm:$0xff] %v12983_v15  ;;  %v12991_v27 = vpack.c.bf16 %v16672_v50, %v16669_v22  ;;  %5447 = vmatpush1.bf16.msra.mxu0 %v7990_v26  ;;  %v16676_v39 = vmax.f32 %v16674_v57, %v16675_v30  ;;  %v7996_v26 = vld [vmem:[#allocation4 + $0x8] ss:$28 sps:$4 sm:$0xff]   ;;  %v8029_v54 = vld [vmem:[#allocation4 + $0x3c0] ss:$28 sps:$4 sm:$0xff]  }
 0x621   :  { %5448 = vmatprep.subr.bf16.mxu0 %v7995_v8  ;;  %v13007_v43 = vpack.c.bf16 %v16682_v1, %v16681_v37  ;;  %v8001_v30 = vld [vmem:[#allocation4 + $0x354] ss:$28 sps:$4 sm:$0xff]   ;;  %v8032_v57 = vld [vmem:[#allocation4 + $0x388] ss:$28 sps:$4 sm:$0xff]   ;;  %v16685_v45 = vld [vmem:[#allocation157_spill] sm:$0xff] }
 0x622   :  { %16673 = vst [vmem:[#allocation94_spill] sm:$0xff] %v12991_v27  ;;  %v12999_v58 = vpack.c.bf16 %v16679_v34, %v16676_v39  ;;  %5640 = vmatpush1.bf16.msra.mxu1 %v8023_v48  ;;  %v7999_v51 = vld [vmem:[#allocation4 + $0x350] ss:$28 sps:$4 sm:$0xff]   ;;  %v16686_v8 = vmax.f32 %v16684_v14, %v16685_v45  ;;  %v16687_v48 = vld [vmem:[#allocation61_spill] sm:$0xff]  ;;  %v16688_v22 = vld [vmem:[#allocation158_spill] sm:$0xff] }
 0x623   :  { %16683 = vst [vmem:[#allocation16_spill] sm:$0xff] %v13007_v43  ;;  %5113 = vmatmul.mubr.bf16.gmra.mxu0 %v12983_v15  ;;  %5641 = vmatprep.subr.bf16.mxu1 %v8031_v19  ;;  %v16689_v25 = vmax.f32 %v16687_v48, %v16688_v22  ;;  %v8010_v20 = vld [vmem:[#allocation4 + $0x31c] ss:$28 sps:$4 sm:$0xff]   ;;  %v16694_v3 = vld [vmem:[#allocation47_spill] sm:$0xff]  ;;  %v16705_v22 = vmax.f32 %v12635_v5, %v12733_v0  ;;  %v16706_v5 = vld [vmem:[#allocation48_spill] sm:$0xff] }
 0x624   :  { %16680 = vst [vmem:[#allocation149_spill] sm:$0xff] %v12999_v58  ;;  %5122 = vmatprep.mubr.bf16.mxu0 %v12991_v27  ;;  %5449 = vmatpush1.bf16.msra.mxu0 %v7993_v11  ;;  %v16691_v50 = vld [vmem:[#allocation45_spill] sm:$0xff]  ;;  %v16692_v11 = vld [vmem:[#allocation214_spill] sm:$0xff]  ;;  %v16695_v34 = vld [vmem:[#allocation215_spill] sm:$0xff] }
 0x625   :  { %5306 = vmatmul.mubr.bf16.gmra.mxu1 %v12999_v58  ;;  %5450 = vmatprep.subr.bf16.mxu0 %v7998_v44  ;;  %v13019_v19 = vpack.c.bf16 %v16689_v25, %v16686_v8  ;;  %v16693_v39 = vmax.f32 %v16691_v50, %v16692_v11  ;;  %v16696_v44 = vmax.f32 %v16694_v3, %v16695_v34  ;;  %v8038_v1 = vld [vmem:[#allocation4 + $0x6d0] ss:$28 sps:$4 sm:$0xff]   ;;  %v16702_v58 = vld [vmem:[#allocation186_spill] sm:$0xff]  ;;  %v8008_v50 = vld [vmem:[#allocation4 + $0x318] ss:$28 sps:$4 sm:$0xff]  }
 0x626   :  { %5315 = vmatprep.mubr.bf16.mxu1 %v13007_v43  ;;  %5642 = vmatpush1.bf16.msra.mxu1 %v8029_v54  ;;  %v16698_v54 = vld [vmem:[#allocation27_spill] sm:$0xff]  ;;  %v16699_v43 = vld [vmem:[#allocation185_spill] sm:$0xff]  ;;  %v16710_v11 = vld [vmem:[#allocation160_spill] sm:$0xff] }
 0x627   :  { %16690 = vst [vmem:[#allocation150_spill] sm:$0xff] %v13019_v19  ;;  %5643 = vmatprep.subr.bf16.mxu1 %v8034_v6  ;;  %v13027_v37 = vpack.c.bf16 %v16696_v44, %v16693_v39  ;;  %v16700_v14 = vmax.f32 %v16698_v54, %v16699_v43  ;;  %v16701_v45 = vld [vmem:[#allocation19_spill] sm:$0xff]  ;;  %v16704_v6 = vmax.f32 %v12632_v36, %v12730_v52  ;;  %v8043_v43 = vld [vmem:[#allocation4 + $0x69c] ss:$28 sps:$4 sm:$0xff]   ;;  %v8049_v36 = vld [vmem:[#allocation4 + $0x664] ss:$28 sps:$4 sm:$0xff]  }
 0x628   :  { %5451 = vmatpush1.bf16.msra.mxu0 %v7996_v26  ;;  %v16703_v48 = vmax.f32 %v16701_v45, %v16702_v58  ;;  %v8019_v26 = vld [vmem:[#allocation4 + $0x2e4] ss:$28 sps:$4 sm:$0xff]   ;;  %v8041_v58 = vld [vmem:[#allocation4 + $0x698] ss:$28 sps:$4 sm:$0xff]   ;;  %v16707_v52 = vld [vmem:[#allocation159_spill] sm:$0xff] }
 0x629   :  { %16697 = vst [vmem:[#allocation112_spill] sm:$0xff] %v13027_v37  ;;  %5452 = vmatprep.subr.bf16.mxu0 %v8001_v30  ;;  %v13043_v25 = vpack.c.bf16 %v16705_v22, %v16704_v6  ;;  %v8017_v0 = vld [vmem:[#allocation4 + $0x2e0] ss:$28 sps:$4 sm:$0xff]   ;;  %v16708_v30 = vmax.f32 %v16706_v5, %v16707_v52  ;;  %v8028_v3 = vld [vmem:[#allocation4 + $0x2ac] ss:$28 sps:$4 sm:$0xff]   ;;  %v16714_v34 = vld [vmem:[#allocation216_spill] sm:$0xff] }
 0x62a   :  { %v13035_v8 = vpack.c.bf16 %v16703_v48, %v16700_v14  ;;  %5644 = vmatpush1.bf16.msra.mxu1 %v8032_v57  ;;  %v16709_v57 = vld [vmem:[#allocation30_spill] sm:$0xff]  ;;  %v16716_v54 = vld [vmem:[#allocation35_spill] sm:$0xff]  ;;  %v16719_v48 = vld [vmem:[#allocation85_spill] sm:$0xff] }
 0x62b   :  { %5123 = vmatmul.mubr.bf16.gmra.mxu0 %v13019_v19  ;;  %5645 = vmatprep.subr.bf16.mxu1 %v8040_v33  ;;  %v16711_v39 = vmax.f32 %v16709_v57, %v16710_v11  ;;  %v16720_v6 = vld [vmem:[#allocation187_spill] sm:$0xff]  ;;  %v16722_v5 = vld [vmem:[#allocation41_spill] sm:$0xff]  ;;  %v16723_v52 = vld [vmem:[#allocation188_spill] sm:$0xff]  ;;  %v16726_v11 = vmax.f32 %v12641_v21, %v12741_v23 }
 0x62c   :  { %5132 = vmatprep.mubr.bf16.mxu0 %v13027_v37  ;;  %5453 = vmatpush2.bf16.msra.mxu0 %v7999_v51  ;;  %v16713_v51 = vld [vmem:[#allocation80_spill] sm:$0xff]  ;;  %v16721_v22 = vmax.f32 %v16719_v48, %v16720_v6  ;;  %v16724_v57 = vmax.f32 %v16722_v5, %v16723_v52  ;;  %v16728_v21 = vld [vmem:[#allocation161_spill] sm:$0xff]  ;;  %v16734_v48 = vld [vmem:[#allocation218_spill] sm:$0xff] }
 0x62d   :  { %5316 = vmatmul.mubr.bf16.gmra.mxu1 %v13035_v8  ;;  %5454 = vmatprep.subr.bf16.mxu0 %v8010_v20  ;;  %v13055_v33 = vpack.c.bf16 %v16711_v39, %v16708_v30  ;;  %v16715_v44 = vmax.f32 %v16713_v51, %v16714_v34  ;;  %v16717_v20 = vld [vmem:[#allocation217_spill] sm:$0xff]  ;;  %v8026_v51 = vld [vmem:[#allocation4 + $0x2a8] ss:$28 sps:$4 sm:$0xff]   ;;  %v8035_v23 = vld [vmem:[#allocation4 + $0x270] ss:$28 sps:$4 sm:$0xff]  }
 0x62e   :  { %5325 = vmatprep.mubr.bf16.mxu1 %v13043_v25  ;;  %5646 = vmatpush2.bf16.msra.mxu1 %v8038_v1  ;;  %v16718_v14 = vmax.f32 %v16716_v54, %v16717_v20  ;;  %v8047_v1 = vld [vmem:[#allocation4 + $0x660] ss:$28 sps:$4 sm:$0xff]   ;;  %v13071_v30 = vpack.c.bf16 %v16724_v57, %v16721_v22  ;;  %v8052_v34 = vld [vmem:[#allocation4 + $0x62c] ss:$28 sps:$4 sm:$0xff]   ;;  %v16736_v22 = vld [vmem:[#allocation84_spill] sm:$0xff] }
 0x62f   :  { %16712 = vst [vmem:[#allocation127_spill] sm:$0xff] %v13055_v33  ;;  %5647 = vmatprep.subr.bf16.mxu1 %v8043_v43  ;;  %v16725_v43 = vmax.f32 %v12638_v32, %v12738_v59  ;;  %v8058_v59 = vld [vmem:[#allocation4 + $0x5f4] ss:$28 sps:$4 sm:$0xff]   ;;  %v16731_v54 = vld [vmem:[#allocation162_spill] sm:$0xff]  ;;  %v16740_v57 = vld [vmem:[#allocation77_spill] sm:$0xff] }
 0x630   :  { %v13063_v45 = vpack.c.bf16 %v16718_v14, %v16715_v44  ;;  %5455 = vmatpush2.bf16.msra.mxu0 %v8008_v50  ;;  %v8037_v50 = vld [vmem:[#allocation4 + $0x274] ss:$28 sps:$4 sm:$0xff]   ;;  %v8050_v44 = vld [vmem:[#allocation4 + $0x628] ss:$28 sps:$4 sm:$0xff]   ;;  %v8046_v14 = vld [vmem:[#allocation4 + $0x23c] ss:$28 sps:$4 sm:$0xff]  }
 0x631   :  { %5456 = vmatprep.subr.bf16.mxu0 %v8019_v26  ;;  %v13079_v39 = vpack.c.bf16 %v16726_v11, %v16725_v43  ;;  %v16727_v32 = vld [vmem:[#allocation52_spill] sm:$0xff]  ;;  %v16741_v43 = vld [vmem:[#allocation189_spill] sm:$0xff] }
 0x632   :  { %5648 = vmatpush2.bf16.msra.mxu1 %v8041_v58  ;;  %v16729_v26 = vmax.f32 %v16727_v32, %v16728_v21  ;;  %v16730_v58 = vld [vmem:[#allocation54_spill] sm:$0xff]  ;;  %v16742_v11 = vmax.f32 %v16740_v57, %v16741_v43  ;;  %v16756_v57 = vld [vmem:[#allocation220_spill] sm:$0xff] }
 0x633   :  { %5133 = vmatmul.mubr.bf16.gmra.mxu0 %v13055_v33  ;;  %5649 = vmatprep.subr.bf16.mxu1 %v8049_v36  ;;  %v16732_v20 = vmax.f32 %v16730_v58, %v16731_v54  ;;  %v16743_v32 = vld [vmem:[#allocation50_spill] sm:$0xff]  ;;  %v16747_v54 = vmax.f32 %v12647_v38, %v12749_v31  ;;  %v16748_v38 = vld [vmem:[#allocation131_spill] sm:$0xff] }
 0x634   :  { %5142 = vmatprep.mubr.bf16.mxu0 %v13063_v45  ;;  %5457 = vmatpush2.bf16.msra.mxu0 %v8017_v0  ;;  %v16733_v0 = vld [vmem:[#allocation82_spill] sm:$0xff] }
 0x635   :  { %5326 = vmatmul.mubr.bf16.gmra.mxu1 %v13071_v30  ;;  %5458 = vmatprep.subr.bf16.mxu0 %v8028_v3  ;;  %v13091_v36 = vpack.c.bf16 %v16732_v20, %v16729_v26  ;;  %v16735_v6 = vmax.f32 %v16733_v0, %v16734_v48  ;;  %v16737_v3 = vld [vmem:[#allocation219_spill] sm:$0xff]  ;;  %v16744_v21 = vld [vmem:[#allocation190_spill] sm:$0xff]  ;;  %v8044_v0 = vld [vmem:[#allocation4 + $0x238] ss:$28 sps:$4 sm:$0xff]  }
 0x636   :  { %5335 = vmatprep.mubr.bf16.mxu1 %v13079_v39  ;;  %5650 = vmatpush2.bf16.msra.mxu1 %v8047_v1  ;;  %v16738_v5 = vmax.f32 %v16736_v22, %v16737_v3  ;;  %v8056_v1 = vld [vmem:[#allocation4 + $0x5f0] ss:$28 sps:$4 sm:$0xff]   ;;  %v16745_v58 = vmax.f32 %v16743_v32, %v16744_v21  ;;  %v8061_v48 = vld [vmem:[#allocation4 + $0x5bc] ss:$28 sps:$4 sm:$0xff]  }
 0x637   :  { %5651 = vmatprep.subr.bf16.mxu1 %v8052_v34  ;;  %v16746_v34 = vmax.f32 %v12644_v2, %v12744_v7  ;;  %v8067_v2 = vld [vmem:[#allocation4 + $0x584] ss:$28 sps:$4 sm:$0xff]   ;;  %v16749_v7 = vld [vmem:[#allocation163_spill] sm:$0xff]  ;;  %v16752_v22 = vld [vmem:[#allocation164_spill] sm:$0xff] }
 0x638   :  { %v13099_v52 = vpack.c.bf16 %v16738_v5, %v16735_v6  ;;  %5459 = vmatpush2.bf16.msra.mxu0 %v8026_v51  ;;  %v13107_v26 = vpack.c.bf16 %v16745_v58, %v16742_v11  ;;  %v8055_v51 = vld [vmem:[#allocation4 + $0x204] ss:$28 sps:$4 sm:$0xff]   ;;  %v8059_v6 = vld [vmem:[#allocation4 + $0x5b8] ss:$28 sps:$4 sm:$0xff]   ;;  %v8064_v5 = vld [vmem:[#allocation4 + $0x1cc] ss:$28 sps:$4 sm:$0xff]  }
 0x639   :  { %5460 = vmatprep.subr.bf16.mxu0 %v8037_v50  ;;  %v13115_v20 = vpack.c.bf16 %v16747_v54, %v16746_v34  ;;  %v8053_v31 = vld [vmem:[#allocation4 + $0x200] ss:$28 sps:$4 sm:$0xff]   ;;  %v16750_v50 = vmax.f32 %v16748_v38, %v16749_v7  ;;  %v16758_v11 = vld [vmem:[#allocation88_spill] sm:$0xff]  ;;  %v16763_v34 = vld [vmem:[#allocation191_spill] sm:$0xff] }
 0x63a   :  { %16739 = vst [vmem:[#allocation36_spill] sm:$0xff] %v13099_v52  ;;  %5652 = vmatpush2.bf16.msra.mxu1 %v8050_v44  ;;  %v16751_v44 = vld [vmem:[#allocation132_spill] sm:$0xff]  ;;  %v16765_v38 = vld [vmem:[#allocation109_spill] sm:$0xff] }
 0x63b   :  { %5143 = vmatmul.mubr.bf16.gmra.mxu0 %v13091_v36  ;;  %5653 = vmatprep.subr.bf16.mxu1 %v8058_v59  ;;  %v16753_v3 = vmax.f32 %v16751_v44, %v16752_v22  ;;  %v16762_v58 = vld [vmem:[#allocation56_spill] sm:$0xff]  ;;  %v16769_v22 = vmax.f32 %v12653_v28, %v12755_v63  ;;  %v16773_v63 = vld [vmem:[#allocation134_spill] sm:$0xff] }
 0x63c   :  { %5152 = vmatprep.mubr.bf16.mxu0 %v13099_v52  ;;  %5461 = vmatpush2.bf16.msra.mxu0 %v8035_v23  ;;  %v16755_v23 = vld [vmem:[#allocation86_spill] sm:$0xff]  ;;  %v16764_v54 = vmax.f32 %v16762_v58, %v16763_v34  ;;  %v16766_v7 = vld [vmem:[#allocation192_spill] sm:$0xff]  ;;  %v16781_v58 = vld [vmem:[#allocation223_spill] sm:$0xff] }
 0x63d   :  { %5336 = vmatmul.mubr.bf16.gmra.mxu1 %v13107_v26  ;;  %5462 = vmatprep.subr.bf16.mxu0 %v8046_v14  ;;  %v13127_v59 = vpack.c.bf16 %v16753_v3, %v16750_v50  ;;  %v16757_v43 = vmax.f32 %v16755_v23, %v16756_v57  ;;  %v16759_v14 = vld [vmem:[#allocation221_spill] sm:$0xff]  ;;  %v16767_v44 = vmax.f32 %v16765_v38, %v16766_v7  ;;  %v8070_v23 = vld [vmem:[#allocation4 + $0x54c] ss:$28 sps:$4 sm:$0xff]  }
 0x63e   :  { %5345 = vmatprep.mubr.bf16.mxu1 %v13115_v20  ;;  %5654 = vmatpush2.bf16.msra.mxu1 %v8056_v1  ;;  %v16760_v32 = vmax.f32 %v16758_v11, %v16759_v14  ;;  %v8065_v1 = vld [vmem:[#allocation4 + $0x580] ss:$28 sps:$4 sm:$0xff]   ;;  %v8068_v57 = vld [vmem:[#allocation4 + $0x548] ss:$28 sps:$4 sm:$0xff]  }
 0x63f   :  { %16754 = vst [vmem:[#allocation128_spill] sm:$0xff] %v13127_v59  ;;  %5655 = vmatprep.subr.bf16.mxu1 %v8061_v48  ;;  %v13143_v50 = vpack.c.bf16 %v16767_v44, %v16764_v54  ;;  %v16768_v48 = vmax.f32 %v12650_v53, %v12752_v41  ;;  %v16770_v41 = vld [vmem:[#allocation133_spill] sm:$0xff]  ;;  %v16778_v14 = vld [vmem:[#allocation222_spill] sm:$0xff]  ;;  %v16787_v7 = vld [vmem:[#allocation111_spill] sm:$0xff] }
 0x640   :  { %v13135_v21 = vpack.c.bf16 %v16760_v32, %v16757_v43  ;;  %5463 = vmatpush2.bf16.msra.mxu0 %v8044_v0  ;;  %v8062_v0 = vld [vmem:[#allocation4 + $0x1c8] ss:$28 sps:$4 sm:$0xff]   ;;  %v16771_v53 = vld [vmem:[#allocation165_spill] sm:$0xff]  ;;  %v16780_v32 = vld [vmem:[#allocation60_spill] sm:$0xff] }
 0x641   :  { %5464 = vmatprep.subr.bf16.mxu0 %v8055_v51  ;;  %v13151_v3 = vpack.c.bf16 %v16769_v22, %v16768_v48  ;;  %v8073_v51 = vld [vmem:[#allocation4 + $0x19c] ss:$28 sps:$4 sm:$0xff]   ;;  %v16772_v28 = vmax.f32 %v16770_v41, %v16771_v53  ;;  %v16782_v34 = vmax.f32 %v16780_v32, %v16781_v58  ;;  %v16788_v44 = vld [vmem:[#allocation194_spill] sm:$0xff]  ;;  %v16791_v41 = vmax.f32 %v12659_v49, %v12763_v55  ;;  %v16800_v49 = vld [vmem:[#allocation224_spill] sm:$0xff] }
 0x642   :  { %16761 = vst [vmem:[#allocation114_spill] sm:$0xff] %v13135_v21  ;;  %5656 = vmatpush2.bf16.msra.mxu1 %v8059_v6  ;;  %v16774_v6 = vld [vmem:[#allocation166_spill] sm:$0xff]  ;;  %v16784_v54 = vld [vmem:[#allocation29_spill] sm:$0xff]  ;;  %v16789_v48 = vmax.f32 %v16787_v7, %v16788_v44  ;;  %v16807_v58 = vld [vmem:[#allocation195_spill] sm:$0xff]  ;;  %v16812_v44 = vmax.f32 %v12662_v10, %v12766_v46 }
 0x643   :  { %5153 = vmatmul.mubr.bf16.gmra.mxu0 %v13127_v59  ;;  %5657 = vmatprep.subr.bf16.mxu1 %v8067_v2  ;;  %v16775_v43 = vmax.f32 %v16773_v63, %v16774_v6  ;;  %v16777_v2 = vld [vmem:[#allocation58_spill] sm:$0xff]  ;;  %v16795_v63 = vld [vmem:[#allocation136_spill] sm:$0xff]  ;;  %v16806_v32 = vld [vmem:[#allocation93_spill] sm:$0xff] }
 0x644   :  { %5162 = vmatprep.mubr.bf16.mxu0 %v13135_v21  ;;  %5465 = vmatpush2.bf16.msra.mxu0 %v8053_v31  ;;  %v16779_v31 = vmax.f32 %v16777_v2, %v16778_v14  ;;  %v16796_v6 = vld [vmem:[#allocation168_spill] sm:$0xff]  ;;  %v16799_v55 = vld [vmem:[#allocation106_spill] sm:$0xff]  ;;  %v16803_v2 = vld [vmem:[#allocation225_spill] sm:$0xff] }
 0x645   :  { %5346 = vmatmul.mubr.bf16.gmra.mxu1 %v13143_v50  ;;  %5466 = vmatprep.subr.bf16.mxu0 %v8064_v5  ;;  %v13163_v11 = vpack.c.bf16 %v16775_v43, %v16772_v28  ;;  %v16793_v28 = vld [vmem:[#allocation167_spill] sm:$0xff]  ;;  %v16801_v43 = vmax.f32 %v16799_v55, %v16800_v49  ;;  %v16821_v46 = vld [vmem:[#allocation98_spill] sm:$0xff] }
 0x646   :  { %5355 = vmatprep.mubr.bf16.mxu1 %v13151_v3  ;;  %5658 = vmatpush2.bf16.msra.mxu1 %v8065_v1  ;;  %v13171_v5 = vpack.c.bf16 %v16782_v34, %v16779_v31  ;;  %v16785_v1 = vld [vmem:[#allocation193_spill] sm:$0xff]  ;;  %v16808_v34 = vmax.f32 %v16806_v32, %v16807_v58  ;;  %v16825_v55 = vld [vmem:[#allocation227_spill] sm:$0xff]  ;;  %v16831_v32 = vld [vmem:[#allocation66_spill] sm:$0xff] }
 0x647   :  { %16776 = vst [vmem:[#allocation113_spill] sm:$0xff] %v13163_v11  ;;  %5659 = vmatprep.subr.bf16.mxu1 %v8070_v23  ;;  %v16786_v38 = vmax.f32 %v16784_v54, %v16785_v1  ;;  %v16790_v23 = vmax.f32 %v12656_v4, %v12760_v29  ;;  %v16797_v29 = vmax.f32 %v16795_v63, %v16796_v6  ;;  %v16809_v54 = vld [vmem:[#allocation63_spill] sm:$0xff]  ;;  %v16810_v1 = vld [vmem:[#allocation196_spill] sm:$0xff]  ;;  %v16818_v63 = vld [vmem:[#allocation170_spill] sm:$0xff] }
 0x648   :  { %16783 = vst [vmem:[#allocation64_spill] sm:$0xff] %v13171_v5  ;;  %5467 = vmatpush2.bf16.msra.mxu0 %v8062_v0  ;;  %v16792_v0 = vld [vmem:[#allocation135_spill] sm:$0xff]  ;;  %v16832_v58 = vld [vmem:[#allocation198_spill] sm:$0xff] }
 0x649   :  { %v13179_v22 = vpack.c.bf16 %v16789_v48, %v16786_v38  ;;  %5822 = vmatprep.subr.bf16.mxu0 %v8073_v51  ;;  %v13187_v53 = vpack.c.bf16 %v16791_v41, %v16790_v23  ;;  %v16794_v51 = vmax.f32 %v16792_v0, %v16793_v28  ;;  %v16811_v38 = vmax.f32 %v16809_v54, %v16810_v1  ;;  %v16814_v41 = vld [vmem:[#allocation137_spill] sm:$0xff] }
 0x64a   :  { %5660 = vmatpush2.bf16.msra.mxu1 %v8068_v57  ;;  %v16802_v57 = vld [vmem:[#allocation65_spill] sm:$0xff]  ;;  %v16813_v48 = vmax.f32 %v12665_v56, %v12771_v60  ;;  %v16822_v60 = vld [vmem:[#allocation226_spill] sm:$0xff]  ;;  %v16834_v1 = vmax.f32 %v12668_v42, %v12774_v16  ;;  %v16840_v16 = vld [vmem:[#allocation172_spill] sm:$0xff] }
 0x64b   :  { %5163 = vmatmul.mubr.bf16.gmra.mxu0 %v13163_v11  ;;  %v13199_v4 = vpack.c.bf16 %v16797_v29, %v16794_v51  ;;  %v16804_v14 = vmax.f32 %v16802_v57, %v16803_v2  ;;  %v13215_v7 = vpack.c.bf16 %v16811_v38, %v16808_v34  ;;  %v16815_v0 = vld [vmem:[#allocation169_spill] sm:$0xff]  ;;  %v16817_v51 = vld [vmem:[#allocation138_spill] sm:$0xff]  ;;  %v16823_v56 = vmax.f32 %v16821_v46, %v16822_v60  ;;  %v16824_v29 = vld [vmem:[#allocation68_spill] sm:$0xff] }
 0x64c   :  { %5172 = vmatprep.mubr.bf16.mxu0 %v13171_v5  ;;  %v13223_v23 = vpack.c.bf16 %v16813_v48, %v16812_v44  ;;  %v16816_v28 = vmax.f32 %v16814_v41, %v16815_v0  ;;  %v16819_v6 = vmax.f32 %v16817_v51, %v16818_v63  ;;  %v16826_v49 = vmax.f32 %v16824_v29, %v16825_v55  ;;  %v16828_v57 = vld [vmem:[#allocation96_spill] sm:$0xff]  ;;  %v16829_v2 = vld [vmem:[#allocation197_spill] sm:$0xff]  ;;  %v16836_v41 = vld [vmem:[#allocation139_spill] sm:$0xff] }
 0x64d   :  { %5356 = vmatmul.mubr.bf16.gmra.mxu1 %v13179_v22  ;;  %16798 = vst [vmem:[#allocation115_spill] sm:$0xff] %v13199_v4  ;;  %v13207_v31 = vpack.c.bf16 %v16804_v14, %v16801_v43  ;;  %v16830_v14 = vmax.f32 %v16828_v57, %v16829_v2  ;;  %v16833_v34 = vmax.f32 %v16831_v32, %v16832_v58  ;;  %v13265_v48 = vld [vmem:[#allocation4 + $0x51c] ss:$28 sps:$4 sm:$0xff]   ;;  %v16837_v0 = vld [vmem:[#allocation171_spill] sm:$0xff]  ;;  %v16839_v51 = vld [vmem:[#allocation140_spill] sm:$0xff] }
 0x64e   :  { %5365 = vmatprep.mubr.bf16.mxu1 %v13187_v53  ;;  %v13235_v10 = vpack.c.bf16 %v16819_v6, %v16816_v28  ;;  %v13243_v43 = vpack.c.bf16 %v16826_v49, %v16823_v56  ;;  %v16835_v38 = vmax.f32 %v12671_v62, %v12777_v12  ;;  %v16838_v28 = vmax.f32 %v16836_v41, %v16837_v0  ;;  %v16843_v62 = vld [vmem:[#allocation101_spill] sm:$0xff]  ;;  %v16844_v12 = vld [vmem:[#allocation228_spill] sm:$0xff]  ;;  %v16846_v46 = vld [vmem:[#allocation70_spill] sm:$0xff] }
 0x64f   :  { %16805 = vst [vmem:[#allocation40_spill] sm:$0xff] %v13207_v31  ;;  %v13251_v54 = vpack.c.bf16 %v16833_v34, %v16830_v14  ;;  %v16841_v42 = vmax.f32 %v16839_v51, %v16840_v16  ;;  %v16845_v6 = vmax.f32 %v16843_v62, %v16844_v12  ;;  %v16847_v60 = vld [vmem:[#allocation229_spill] sm:$0xff]  ;;  %7686 = vmatprep.subr.bf16.mxu1 %v13265_v48  ;;  %v16850_v55 = vld [vmem:[#allocation99_spill] sm:$0xff]  ;;  %v16854_v14 = vld [vmem:[#allocation200_spill] sm:$0xff] }
 0x650   :  { %16820 = vst [vmem:[#allocation151_spill] sm:$0xff] %v13235_v10  ;;  %16827 = vst [vmem:[#allocation44_spill] sm:$0xff] %v13243_v43  ;;  %v13259_v44 = vpack.c.bf16 %v16835_v38, %v16834_v1  ;;  %v16848_v56 = vmax.f32 %v16846_v46, %v16847_v60  ;;  %v16851_v49 = vld [vmem:[#allocation199_spill] sm:$0xff]  ;;  %v16853_v2 = vld [vmem:[#allocation69_spill] sm:$0xff]  ;;  %v16856_v34 = vmax.f32 %v12674_v13, %v12782_v61 }
 0x651   :  { %v13273_v63 = vpack.c.bf16 %v16841_v42, %v16838_v28  ;;  %v16852_v57 = vmax.f32 %v16850_v55, %v16851_v49  ;;  %v16855_v32 = vmax.f32 %v16853_v2, %v16854_v14  ;;  %v16857_v1 = vld [vmem:[#allocation57_spill] sm:$0xff]  ;;  %v16862_v16 = vld [vmem:[#allocation142_spill] sm:$0xff]  ;;  %v16870_v46 = vld [vmem:[#allocation231_spill] sm:$0xff] }
 0x652   :  { %v13281_v29 = vpack.c.bf16 %v16848_v56, %v16845_v6  ;;  %v16858_v38 = vmax.f32 %v12677_v35, %v16857_v1  ;;  %v16859_v0 = vld [vmem:[#allocation141_spill] sm:$0xff]  ;;  %v16863_v42 = vld [vmem:[#allocation174_spill] sm:$0xff]  ;;  %v16869_v6 = vld [vmem:[#allocation120_spill] sm:$0xff] }
 0x653   :  { %5173 = vmatmul.mubr.bf16.gmra.mxu0 %v13199_v4  ;;  %16842 = vst [vmem:[#allocation152_spill] sm:$0xff] %v13273_v63  ;;  %v13290_v58 = vpack.c.bf16 %v16855_v32, %v16852_v57  ;;  %v16860_v28 = vld [vmem:[#allocation173_spill] sm:$0xff]  ;;  %v16864_v62 = vmax.f32 %v16862_v16, %v16863_v42  ;;  %v16867_v35 = vld [vmem:[#allocation230_spill] sm:$0xff]  ;;  %v16871_v60 = vmax.f32 %v16869_v6, %v16870_v46  ;;  %v16876_v2 = vld [vmem:[#allocation71_spill] sm:$0xff] }
 0x654   :  { %5182 = vmatprep.mubr.bf16.mxu0 %v13207_v31  ;;  %16849 = vst [vmem:[#allocation118_spill] sm:$0xff] %v13281_v29  ;;  %v13298_v41 = vpack.c.bf16 %v16858_v38, %v16856_v34  ;;  %v16861_v51 = vmax.f32 %v16859_v0, %v16860_v28  ;;  %v16866_v13 = vld [vmem:[#allocation117_spill] sm:$0xff]  ;;  %v16873_v55 = vld [vmem:[#allocation38_spill] sm:$0xff]  ;;  %v16891_v6 = vld [vmem:[#allocation176_spill] sm:$0xff] }
 0x655   :  { %5366 = vmatmul.mubr.bf16.gmra.mxu1 %v13215_v7  ;;  %v16868_v12 = vmax.f32 %v16866_v13, %v16867_v35  ;;  %v16874_v49 = vld [vmem:[#allocation201_spill] sm:$0xff]  ;;  %v16877_v14 = vld [vmem:[#allocation202_spill] sm:$0xff]  ;;  %v16888_v13 = vld [vmem:[#allocation175_spill] sm:$0xff] }
 0x656   :  { %5375 = vmatprep.mubr.bf16.mxu1 %v13223_v23  ;;  %v13310_v61 = vpack.c.bf16 %v16864_v62, %v16861_v51  ;;  %v16875_v57 = vmax.f32 %v16873_v55, %v16874_v49  ;;  %v16878_v32 = vmax.f32 %v16876_v2, %v16877_v14  ;;  %v16880_v1 = vld [vmem:[#allocation26_spill] sm:$0xff]  ;;  %v16883_v28 = vld [vmem:[#allocation21_spill] sm:$0xff]  ;;  %v16884_v51 = vld [vmem:[#allocation92_spill] sm:$0xff] }
 0x657   :  { %v13318_v56 = vpack.c.bf16 %v16871_v60, %v16868_v12  ;;  %v16881_v38 = vld [vmem:[#allocation90_spill] sm:$0xff]  ;;  %v16885_v16 = vmax.f32 %v16883_v28, %v16884_v51  ;;  %v16887_v62 = vld [vmem:[#allocation143_spill] sm:$0xff]  ;;  %v16890_v12 = vld [vmem:[#allocation144_spill] sm:$0xff] }
 0x658   :  { %16865 = vst [vmem:[#allocation129_spill] sm:$0xff] %v13310_v61  ;;  %v13326_v34 = vpack.c.bf16 %v16878_v32, %v16875_v57  ;;  %v16882_v0 = vmax.f32 %v16880_v1, %v16881_v38  ;;  %v16889_v35 = vmax.f32 %v16887_v62, %v16888_v13  ;;  %v16892_v46 = vmax.f32 %v16890_v12, %v16891_v6  ;;  %v16894_v55 = vld [vmem:[#allocation73_spill] sm:$0xff]  ;;  %v16895_v49 = vld [vmem:[#allocation232_spill] sm:$0xff]  ;;  %v16901_v38 = vld [vmem:[#allocation39_spill] sm:$0xff] }
 0x659   :  { %16872 = vst [vmem:[#allocation89_spill] sm:$0xff] %v13318_v56  ;;  %v16896_v57 = vmax.f32 %v16894_v55, %v16895_v49  ;;  %v16897_v2 = vld [vmem:[#allocation121_spill] sm:$0xff]  ;;  %v16904_v51 = vld [vmem:[#allocation104_spill] sm:$0xff]  ;;  %v16909_v12 = vld [vmem:[#allocation130_spill] sm:$0xff] }
 0x65a   :  { %16879 = vst [vmem:[#allocation209_spill] sm:$0xff] %v13326_v34  ;;  %v13334_v42 = vpack.c.bf16 %v16885_v16, %v16882_v0  ;;  %v13346_v60 = vpack.c.bf16 %v16892_v46, %v16889_v35  ;;  %v16898_v14 = vld [vmem:[#allocation233_spill] sm:$0xff]  ;;  %v16902_v0 = vld [vmem:[#allocation203_spill] sm:$0xff]  ;;  %v16905_v16 = vld [vmem:[#allocation204_spill] sm:$0xff] }
 0x65b   :  { %5183 = vmatmul.mubr.bf16.gmra.mxu0 %v13235_v10  ;;  %v16899_v32 = vmax.f32 %v16897_v2, %v16898_v14  ;;  %v16903_v28 = vmax.f32 %v16901_v38, %v16902_v0  ;;  %v16908_v13 = vld [vmem:[#allocation76_spill] sm:$0xff]  ;;  %v16911_v6 = vld [vmem:[#allocation79_spill] sm:$0xff]  ;;  %v16915_v49 = vld [vmem:[#allocation145_spill] sm:$0xff] }
 0x65c   :  { %5192 = vmatprep.mubr.bf16.mxu0 %v13243_v43  ;;  %16886 = vst [vmem:[#allocation97_spill] sm:$0xff] %v13334_v42  ;;  %16893 = vst [vmem:[#allocation116_spill] sm:$0xff] %v13346_v60  ;;  %v16910_v35 = vmax.f32 %v16908_v13, %v16909_v12  ;;  %v16912_v46 = vld [vmem:[#allocation67_spill] sm:$0xff]  ;;  %v16918_v2 = vld [vmem:[#allocation146_spill] sm:$0xff] }
 0x65d   :  { %5376 = vmatmul.mubr.bf16.gmra.mxu1 %v13251_v54  ;;  %v13354_v1 = vpack.c.bf16 %v16899_v32, %v16896_v57  ;;  %v16916_v57 = vld [vmem:[#allocation177_spill] sm:$0xff]  ;;  %v16919_v14 = vld [vmem:[#allocation178_spill] sm:$0xff]  ;;  %v16922_v0 = vld [vmem:[#allocation123_spill] sm:$0xff] }
 0x65e   :  { %5385 = vmatprep.mubr.bf16.mxu1 %v13259_v44  ;;  %v16920_v32 = vmax.f32 %v16918_v2, %v16919_v14  ;;  %v16936_v2 = vld [vmem:[#allocation100_spill] sm:$0xff]  ;;  %v16938_v14 = vld [vmem:[#allocation31_spill] sm:$0xff] }
 0x65f   :  { %16900 = vst [vmem:[#allocation28_spill] sm:$0xff] %v13354_v1 }
 0x663   :  { %5193 = vmatmul.mubr.bf16.gmra.mxu0 %v13273_v63 }
 0x664   :  { %5202 = vmatprep.mubr.bf16.mxu0 %v13281_v29 }
 0x665   :  { %5386 = vmatmul.mubr.bf16.gmra.mxu1 %v13290_v58 }
 0x666   :  { %5395 = vmatprep.mubr.bf16.mxu1 %v13298_v41 }
 0x66b   :  { %5203 = vmatmul.mubr.bf16.gmra.mxu0 %v13310_v61 }
 0x66c   :  { %5212 = vmatprep.mubr.bf16.mxu0 %v13318_v56 }
 0x66d   :  { %5396 = vmatmul.mubr.bf16.gmra.mxu1 %v13326_v34  ;;  %v16913_v34 = vmax.f32 %v16911_v6, %v16912_v46  ;;  %v16930_v6 = vld [vmem:[#allocation205_spill] sm:$0xff] }
 0x66e   :  { %5405 = vmatprep.mubr.bf16.mxu1 %v13334_v42  ;;  %v16906_v42 = vmax.f32 %v16904_v51, %v16905_v16  ;;  %v16925_v51 = vld [vmem:[#allocation124_spill] sm:$0xff]  ;;  %v16926_v16 = vld [vmem:[#allocation235_spill] sm:$0xff] }
 0x66f   :  { %v13370_v55 = vpack.c.bf16 %v16913_v34, %v16910_v35  ;;  %v16927_v13 = vmax.f32 %v16925_v51, %v16926_v16  ;;  %v16929_v35 = vld [vmem:[#allocation32_spill] sm:$0xff] }
 0x670   :  { %v13362_v62 = vpack.c.bf16 %v16906_v42, %v16903_v28  ;;  %v16917_v42 = vmax.f32 %v16915_v49, %v16916_v57  ;;  %v16923_v28 = vld [vmem:[#allocation234_spill] sm:$0xff]  ;;  %v16931_v46 = vmax.f32 %v16929_v35, %v16930_v6  ;;  %v16935_v57 = vld [vmem:[#allocation49_spill] sm:$0xff]  ;;  %v16948_v35 = vld [vmem:[#allocation207_spill] sm:$0xff] }
 0x671   :  { %16914 = vst [vmem:[#allocation51_spill] sm:$0xff] %v13370_v55  ;;  %v16924_v34 = vmax.f32 %v16922_v0, %v16923_v28  ;;  %v16941_v28 = vld [vmem:[#allocation147_spill] sm:$0xff] }
 0x672   :  { %16907 = vst [vmem:[#allocation122_spill] sm:$0xff] %v13362_v62  ;;  %v13382_v38 = vpack.c.bf16 %v16920_v32, %v16917_v42  ;;  %v16937_v42 = vmax.f32 %v16935_v57, %v16936_v2  ;;  %v16939_v32 = vld [vmem:[#allocation37_spill] sm:$0xff]  ;;  %v16950_v6 = vld [vmem:[#allocation95_spill] sm:$0xff] }
 0x673   :  { %5213 = vmatmul.mubr.bf16.gmra.mxu0 %v13346_v60  ;;  %v13390_v12 = vpack.c.bf16 %v16927_v13, %v16924_v34  ;;  %v16940_v60 = vmax.f32 %v16938_v14, %v16939_v32  ;;  %v16945_v34 = vld [vmem:[#allocation180_spill] sm:$0xff]  ;;  %v16947_v13 = vld [vmem:[#allocation62_spill] sm:$0xff]  ;;  %v16954_v14 = vld [vmem:[#allocation103_spill] sm:$0xff] }
 0x674   :  { %5222 = vmatprep.mubr.bf16.mxu0 %v13354_v1  ;;  %16921 = vst [vmem:[#allocation34_spill] sm:$0xff] %v13382_v38  ;;  %v8071_v32 = vld [vmem:[#allocation4 + $0x198] ss:$28 sps:$4 sm:$0xff]  }
 0x675   :  { %5406 = vmatmul.mubr.bf16.gmra.mxu1 %v13362_v62  ;;  %16928 = vst [vmem:[#allocation153_spill] sm:$0xff] %v13390_v12  ;;  %v16933_v62 = vld [vmem:[#allocation206_spill] sm:$0xff]  ;;  %v13406_v0 = vpack.c.bf16 %v16940_v60, %v16937_v42  ;;  %v16949_v60 = vmax.f32 %v16947_v13, %v16948_v35  ;;  %v13444_v35 = vld [vmem:[#allocation4 + $0x4ac] ss:$28 sps:$4 sm:$0xff]  }
 0x676   :  { %5415 = vmatprep.mubr.bf16.mxu1 %v13370_v55  ;;  %v16932_v55 = vld [vmem:[#allocation33_spill] sm:$0xff]  ;;  %v16953_v42 = vld [vmem:[#allocation102_spill] sm:$0xff] }
 0x677   :  { %v16934_v1 = vmax.f32 %v16932_v55, %v16933_v62  ;;  %v16942_v62 = vld [vmem:[#allocation179_spill] sm:$0xff]  ;;  %v16944_v55 = vld [vmem:[#allocation148_spill] sm:$0xff]  ;;  %v13441_v13 = vld [vmem:[#allocation4 + $0x4e0] ss:$28 sps:$4 sm:$0xff]  }
 0x678   :  { %v16946_v51 = vmax.f32 %v16944_v55, %v16945_v34  ;;  %v8074_v55 = vld [vmem:[#allocation4 + $0x160] ss:$28 sps:$4 sm:$0xff]   ;;  %v8079_v34 = vld [vmem:[#allocation4 + $0x12c] ss:$28 sps:$4 sm:$0xff]  }
 0x679   :  { %v13398_v49 = vpack.c.bf16 %v16934_v1, %v16931_v46  ;;  %v16943_v1 = vmax.f32 %v16941_v28, %v16942_v62  ;;  %v16951_v46 = vld [vmem:[#allocation208_spill] sm:$0xff]  ;;  %v8076_v28 = vld [vmem:[#allocation4 + $0x164] ss:$28 sps:$4 sm:$0xff]  }
 0x67a   :  { %v16952_v57 = vmax.f32 %v16950_v6, %v16951_v46  ;;  %v13432_v62 = vld [vmem:[#allocation4 + $0x518] ss:$28 sps:$4 sm:$0xff]   ;;  %v13447_v46 = vld [vmem:[#allocation4 + $0x4a8] ss:$28 sps:$4 sm:$0xff]  }
 0x67b   :  { %5223 = vmatmul.mubr.bf16.gmra.mxu0 %v13382_v38  ;;  %v13418_v16 = vpack.c.bf16 %v16946_v51, %v16943_v1  ;;  %v13435_v1 = vld [vmem:[#allocation4 + $0x4e4] ss:$28 sps:$4 sm:$0xff]   ;;  %v16955_v51 = vld [vmem:[#allocation105_spill] sm:$0xff]  ;;  %v8082_v6 = vld [vmem:[#allocation4 + $0xf4] ss:$28 sps:$4 sm:$0xff]  }
 0x67c   :  { %5232 = vmatprep.mubr.bf16.mxu0 %v13390_v12  ;;  %v13426_v2 = vpack.c.bf16 %v16952_v57, %v16949_v60  ;;  %v8077_v60 = vld [vmem:[#allocation4 + $0x128] ss:$28 sps:$4 sm:$0xff]   ;;  %v13451_v57 = vld [vmem:[#allocation4 + $0x474] ss:$28 sps:$4 sm:$0xff]  }
 0x67d   :  { %5416 = vmatmul.mubr.bf16.gmra.mxu1 %v13398_v49  ;;  %16956 = vst [vmem:[#allocation87_spill] sm:$0xff] %v13451_v57 }
 0x67e   :  { %5425 = vmatprep.mubr.bf16.mxu1 %v13406_v0 }
 0x683   :  { %5233 = vmatmul.mubr.bf16.gmra.mxu0 %v13418_v16 }
 0x684   :  { %5468 = vmatprep.mubr.bf16.mxu0 %v16953_v42 }
 0x685   :  { %5426 = vmatmul.mubr.bf16.gmra.mxu1 %v13426_v2 }
 0x686   :  { %5661 = vmatprep.mubr.bf16.mxu1 %v16954_v14  ;;  %v8083_v14 = vld [vmem:[#allocation4 + $0xb8] ss:$28 sps:$4 sm:$0xff]  }
 0x68b   :  { %5469 = vmatmul.mubr.bf16.vlgmr.msra.gmra.mxu0 %v12875_v18 }
 0x68c   :  { %5823 = vmatpush1.bf16.msra.mxu0 %v8071_v32  ;;  %5478 = vmatprep.mubr.bf16.mxu0 %v12883_v9  ;;  %v8080_v32 = vld [vmem:[#allocation4 + $0xf0] ss:$28 sps:$4 sm:$0xff]  }
 0x68d   :  { %5662 = vmatmul.mubr.bf16.vlgmr.msra.gmra.mxu1 %v12891_v24  ;;  %5824 = vmatprep.subr.bf16.mxu0 %v8076_v28  ;;  %v16957_v28 = vld [vmem:[#allocation15_spill] sm:$0xff]  ;;  %v13460_v24 = vld [vmem:[#allocation4 + $0x43c] ss:$28 sps:$4 sm:$0xff]  }
 0x68e   :  { %5671 = vmatprep.mubr.bf16.mxu1 %v16955_v51  ;;  %7702 = vmatpush1.bf16.msra.mxu1 %v13432_v62  ;;  %v13457_v51 = vld [vmem:[#allocation4 + $0x470] ss:$28 sps:$4 sm:$0xff]   ;;  %16960 = vst [vmem:[#allocation17_spill] sm:$0xff] %v13460_v24 }
 0x68f   :  { %7687 = vmatprep.subr.bf16.mxu1 %v13435_v1  ;;  %16959 = vst [vmem:[#allocation154_spill] sm:$0xff] %v13457_v51 }
 0x690   :  { %5825 = vmatpush1.bf16.msra.mxu0 %v8074_v55  ;;  %v8085_v55 = vld [vmem:[#allocation4 + $0xbc] ss:$28 sps:$4 sm:$0xff]  }
 0x691   :  { %5826 = vmatprep.subr.bf16.mxu0 %v8079_v34  ;;  %v16958_v34 = vld [vmem:[#allocation74_spill] sm:$0xff] }
 0x692   :  { %7703 = vmatpush1.bf16.msra.mxu1 %v13441_v13 }
 0x693   :  { %5479 = vmatmul.mubr.bf16.gmra.mxu0 %v12911_v17  ;;  %7688 = vmatprep.subr.bf16.mxu1 %v13444_v35 }
 0x694   :  { %5488 = vmatprep.mubr.bf16.mxu0 %v12919_v47  ;;  %5827 = vmatpush1.bf16.msra.mxu0 %v8077_v60  ;;  %v8088_v47 = vld [vmem:[#allocation4 + $0x84] ss:$28 sps:$4 sm:$0xff]   ;;  %v13463_v60 = vld [vmem:[#allocation4 + $0x438] ss:$28 sps:$4 sm:$0xff]  }
 0x695   :  { %5672 = vmatmul.mubr.bf16.gmra.mxu1 %v16957_v28  ;;  %5828 = vmatprep.subr.bf16.mxu0 %v8082_v6  ;;  %v13467_v6 = vld [vmem:[#allocation4 + $0x404] ss:$28 sps:$4 sm:$0xff]  }
 0x696   :  { %5681 = vmatprep.mubr.bf16.mxu1 %v16958_v34  ;;  %7704 = vmatpush1.bf16.msra.mxu1 %v13447_v46  ;;  %v16961_v34 = vld [vmem:[#allocation107_spill] sm:$0xff]  ;;  %v8086_v28 = vld [vmem:[#allocation4 + $0x80] ss:$28 sps:$4 sm:$0xff]  }
 0x697   :  { %7689 = vmatprep.subr.bf16.mxu1 %v13451_v57  ;;  %v16962_v57 = vld [vmem:[#allocation125_spill] sm:$0xff] }
 0x698   :  { %5829 = vmatpush1.bf16.msra.mxu0 %v8080_v32  ;;  %v8091_v32 = vld [vmem:[#allocation4 + $0x4c] ss:$28 sps:$4 sm:$0xff]  }
 0x699   :  { %5830 = vmatprep.subr.bf16.mxu0 %v8085_v55  ;;  %v16963_v55 = vld [vmem:[#allocation110_spill] sm:$0xff] }
 0x69a   :  { %7705 = vmatpush1.bf16.msra.mxu1 %v13457_v51  ;;  %v13473_v51 = vld [vmem:[#allocation4 + $0x400] ss:$28 sps:$4 sm:$0xff]  }
 0x69b   :  { %5489 = vmatmul.mubr.bf16.gmra.mxu0 %v12947_v40  ;;  %7690 = vmatprep.subr.bf16.mxu1 %v13460_v24  ;;  %16964 = vst [vmem:[#allocation210_spill] sm:$0xff] %v13473_v51  ;;  %v13476_v40 = vld [vmem:[#allocation4 + $0x3cc] ss:$28 sps:$4 sm:$0xff]  }
 0x69c   :  { %5498 = vmatprep.mubr.bf16.mxu0 %v16961_v34  ;;  %5831 = vmatpush1.bf16.msra.mxu0 %v8083_v14  ;;  %16965 = vst [vmem:[#allocation91_spill] sm:$0xff] %v13476_v40  ;;  %v8089_v24 = vld [vmem:[#allocation4 + $0x48] ss:$28 sps:$4 sm:$0xff]   ;;  %v8094_v34 = vld [vmem:[#allocation4 + $0x14] ss:$28 sps:$4 sm:$0xff]  }
 0x69d   :  { %5682 = vmatmul.mubr.bf16.gmra.mxu1 %v16962_v57  ;;  %5832 = vmatprep.subr.bf16.mxu0 %v8088_v47  ;;  %v13479_v14 = vld [vmem:[#allocation4 + $0x3c8] ss:$28 sps:$4 sm:$0xff]   ;;  %v13483_v47 = vld [vmem:[#allocation4 + $0x394] ss:$28 sps:$4 sm:$0xff]   ;;  %v16966_v57 = vld [vmem:[#allocation149_spill] sm:$0xff] }
 0x69e   :  { %5691 = vmatprep.mubr.bf16.mxu1 %v16963_v55  ;;  %7706 = vmatpush1.bf16.msra.mxu1 %v13463_v60  ;;  %v8092_v55 = vld [vmem:[#allocation4 + $0x10] ss:$28 sps:$4 sm:$0xff]  }
 0x69f   :  { %7691 = vmatprep.subr.bf16.mxu1 %v13467_v6 }
 0x6a0   :  { %5833 = vmatpush1.bf16.msra.mxu0 %v8086_v28  ;;  %v8097_v28 = vld [vmem:[#allocation4 + $0x35c] ss:$28 sps:$4 sm:$0xff]  }
 0x6a1   :  { %5834 = vmatprep.subr.bf16.mxu0 %v8091_v32  ;;  %v16967_v32 = vld [vmem:[#allocation16_spill] sm:$0xff] }
 0x6a2   :  { %7707 = vmatpush1.bf16.msra.mxu1 %v13473_v51  ;;  %v13489_v51 = vld [vmem:[#allocation4 + $0x390] ss:$28 sps:$4 sm:$0xff]  }
 0x6a3   :  { %5499 = vmatmul.mubr.bf16.gmra.mxu0 %v12983_v15  ;;  %7692 = vmatprep.subr.bf16.mxu1 %v13476_v40  ;;  %v13492_v15 = vld [vmem:[#allocation4 + $0x6dc] ss:$28 sps:$4 sm:$0xff]  }
 0x6a4   :  { %5508 = vmatprep.mubr.bf16.mxu0 %v12991_v27  ;;  %5835 = vmatpush1.bf16.msra.mxu0 %v8089_v24  ;;  %16968 = vst [vmem:[#allocation211_spill] sm:$0xff] %v13492_v15  ;;  %v8095_v40 = vld [vmem:[#allocation4 + $0x358] ss:$28 sps:$4 sm:$0xff]   ;;  %v8103_v27 = vld [vmem:[#allocation4 + $0x324] ss:$28 sps:$4 sm:$0xff]  }
 0x6a5   :  { %5692 = vmatmul.mubr.bf16.gmra.mxu1 %v16966_v57  ;;  %5836 = vmatprep.subr.bf16.mxu0 %v8094_v34  ;;  %v13495_v24 = vld [vmem:[#allocation4 + $0x6d8] ss:$28 sps:$4 sm:$0xff]   ;;  %v13499_v34 = vld [vmem:[#allocation4 + $0x6a4] ss:$28 sps:$4 sm:$0xff]  }
 0x6a6   :  { %5701 = vmatprep.mubr.bf16.mxu1 %v16967_v32  ;;  %7708 = vmatpush1.bf16.msra.mxu1 %v13479_v14  ;;  %16969 = vst [vmem:[#allocation23_spill] sm:$0xff] %v13495_v24  ;;  %16970 = vst [vmem:[#allocation181_spill] sm:$0xff] %v13499_v34  ;;  %v8101_v57 = vld [vmem:[#allocation4 + $0x320] ss:$28 sps:$4 sm:$0xff]  }
 0x6a7   :  { %7693 = vmatprep.subr.bf16.mxu1 %v13483_v47 }
 0x6a8   :  { %5837 = vmatpush1.bf16.msra.mxu0 %v8092_v55  ;;  %v8109_v55 = vld [vmem:[#allocation4 + $0x2ec] ss:$28 sps:$4 sm:$0xff]  }
 0x6a9   :  { %5838 = vmatprep.subr.bf16.mxu0 %v8097_v28  ;;  %v13505_v28 = vld [vmem:[#allocation4 + $0x6a0] ss:$28 sps:$4 sm:$0xff]  }
 0x6aa   :  { %7709 = vmatpush1.bf16.msra.mxu1 %v13489_v51  ;;  %16971 = vst [vmem:[#allocation46_spill] sm:$0xff] %v13505_v28 }
 0x6ab   :  { %5509 = vmatmul.mubr.bf16.gmra.mxu0 %v13019_v19  ;;  %7694 = vmatprep.subr.bf16.mxu1 %v13492_v15  ;;  %v13508_v19 = vld [vmem:[#allocation4 + $0x66c] ss:$28 sps:$4 sm:$0xff]  }
 0x6ac   :  { %5518 = vmatprep.mubr.bf16.mxu0 %v13027_v37  ;;  %5839 = vmatpush2.bf16.msra.mxu0 %v8095_v40  ;;  %16972 = vst [vmem:[#allocation182_spill] sm:$0xff] %v13508_v19  ;;  %v8107_v15 = vld [vmem:[#allocation4 + $0x2e8] ss:$28 sps:$4 sm:$0xff]   ;;  %v8115_v37 = vld [vmem:[#allocation4 + $0x2b4] ss:$28 sps:$4 sm:$0xff]  }
 0x6ad   :  { %5702 = vmatmul.mubr.bf16.gmra.mxu1 %v13035_v8  ;;  %5840 = vmatprep.subr.bf16.mxu0 %v8103_v27  ;;  %v8149_v40 = vld [vmem:[#allocation4 + $0x668] ss:$28 sps:$4 sm:$0xff]   ;;  %v8154_v27 = vld [vmem:[#allocation4 + $0x634] ss:$28 sps:$4 sm:$0xff]  }
 0x6ae   :  { %5711 = vmatprep.mubr.bf16.mxu1 %v13043_v25  ;;  %7710 = vmatpush2.bf16.msra.mxu1 %v13495_v24  ;;  %v8113_v24 = vld [vmem:[#allocation4 + $0x2b0] ss:$28 sps:$4 sm:$0xff]  }
 0x6af   :  { %7695 = vmatprep.subr.bf16.mxu1 %v13499_v34  ;;  %v8121_v34 = vld [vmem:[#allocation4 + $0x27c] ss:$28 sps:$4 sm:$0xff]  }
 0x6b0   :  { %5841 = vmatpush2.bf16.msra.mxu0 %v8101_v57  ;;  %v8152_v57 = vld [vmem:[#allocation4 + $0x630] ss:$28 sps:$4 sm:$0xff]  }
 0x6b1   :  { %5842 = vmatprep.subr.bf16.mxu0 %v8109_v55  ;;  %v8157_v55 = vld [vmem:[#allocation4 + $0x5fc] ss:$28 sps:$4 sm:$0xff]  }
 0x6b2   :  { %7711 = vmatpush2.bf16.msra.mxu1 %v13505_v28  ;;  %v8119_v28 = vld [vmem:[#allocation4 + $0x278] ss:$28 sps:$4 sm:$0xff]  }
 0x6b3   :  { %5519 = vmatmul.mubr.bf16.gmra.mxu0 %v13055_v33  ;;  %7696 = vmatprep.subr.bf16.mxu1 %v13508_v19  ;;  %v8127_v33 = vld [vmem:[#allocation4 + $0x244] ss:$28 sps:$4 sm:$0xff]   ;;  %v8155_v19 = vld [vmem:[#allocation4 + $0x5f8] ss:$28 sps:$4 sm:$0xff]  }
 0x6b4   :  { %5528 = vmatprep.mubr.bf16.mxu0 %v13063_v45  ;;  %5843 = vmatpush2.bf16.msra.mxu0 %v8107_v15  ;;  %v8160_v15 = vld [vmem:[#allocation4 + $0x5c4] ss:$28 sps:$4 sm:$0xff]  }
 0x6b5   :  { %5712 = vmatmul.mubr.bf16.gmra.mxu1 %v13071_v30  ;;  %5844 = vmatprep.subr.bf16.mxu0 %v8115_v37  ;;  %v8125_v37 = vld [vmem:[#allocation4 + $0x240] ss:$28 sps:$4 sm:$0xff]  }
 0x6b6   :  { %5721 = vmatprep.mubr.bf16.mxu1 %v13079_v39  ;;  %7712 = vmatpush2.bf16.msra.mxu1 %v8149_v40  ;;  %v8133_v40 = vld [vmem:[#allocation4 + $0x20c] ss:$28 sps:$4 sm:$0xff]  }
 0x6b7   :  { %7697 = vmatprep.subr.bf16.mxu1 %v8154_v27  ;;  %v8131_v27 = vld [vmem:[#allocation4 + $0x208] ss:$28 sps:$4 sm:$0xff]  }
 0x6b8   :  { %5845 = vmatpush2.bf16.msra.mxu0 %v8113_v24  ;;  %v8158_v24 = vld [vmem:[#allocation4 + $0x5c0] ss:$28 sps:$4 sm:$0xff]  }
 0x6b9   :  { %5846 = vmatprep.subr.bf16.mxu0 %v8121_v34  ;;  %v8163_v34 = vld [vmem:[#allocation4 + $0x58c] ss:$28 sps:$4 sm:$0xff]  }
 0x6ba   :  { %7713 = vmatpush2.bf16.msra.mxu1 %v8152_v57  ;;  %v8139_v57 = vld [vmem:[#allocation4 + $0x1d4] ss:$28 sps:$4 sm:$0xff]  }
 0x6bb   :  { %5529 = vmatmul.mubr.bf16.gmra.mxu0 %v13091_v36  ;;  %7698 = vmatprep.subr.bf16.mxu1 %v8157_v55  ;;  %v8161_v55 = vld [vmem:[#allocation4 + $0x588] ss:$28 sps:$4 sm:$0xff]  }
 0x6bc   :  { %5538 = vmatprep.mubr.bf16.mxu0 %v13099_v52  ;;  %5847 = vmatpush2.bf16.msra.mxu0 %v8119_v28  ;;  %v8166_v28 = vld [vmem:[#allocation4 + $0x554] ss:$28 sps:$4 sm:$0xff]  }
 0x6bd   :  { %5722 = vmatmul.mubr.bf16.gmra.mxu1 %v13107_v26  ;;  %5848 = vmatprep.subr.bf16.mxu0 %v8127_v33  ;;  %v8137_v33 = vld [vmem:[#allocation4 + $0x1d0] ss:$28 sps:$4 sm:$0xff]  }
 0x6be   :  { %5731 = vmatprep.mubr.bf16.mxu1 %v13115_v20  ;;  %7714 = vmatpush2.bf16.msra.mxu1 %v8155_v19  ;;  %v3861_v19 = vld [vmem:[%s14993_s10] sm:$0xff] }
 0x6bf   :  { %7699 = vmatprep.subr.bf16.mxu1 %v8160_v15  ;;  %v8164_v15 = vld [vmem:[#allocation4 + $0x550] ss:$28 sps:$4 sm:$0xff]  }
 0x6c0   :  { %5849 = vmatpush2.bf16.msra.mxu0 %v8125_v37  ;;  %v16973_v37 = vld [vmem:[#allocation43_spill] sm:$0xff] }
 0x6c1   :  { %5850 = vmatprep.subr.bf16.mxu0 %v8133_v40  ;;  %v13528_v40 = vrot.slane %v3861_v19, %v16973_v37 }
 0x6c2   :  { %7715 = vmatpush2.bf16.msra.mxu1 %v8158_v24  ;;  %v16974_v24 = vld [vmem:[#allocation108_spill] sm:$0xff] }
 0x6c3   :  { %5539 = vmatmul.mubr.bf16.gmra.mxu0 %v13127_v59  ;;  %7700 = vmatprep.subr.bf16.mxu1 %v8163_v34  ;;  %v13532_v34 = vrot.slane %v3861_v19, %v16974_v24 }
 0x6c4   :  { %5548 = vmatprep.mubr.bf16.mxu0 %v13135_v21  ;;  %5851 = vmatpush2.bf16.msra.mxu0 %v8131_v27 }
 0x6c5   :  { %5732 = vmatmul.mubr.bf16.gmra.mxu1 %v13143_v50  ;;  %5852 = vmatprep.subr.bf16.mxu0 %v8139_v57 }
 0x6c6   :  { %5741 = vmatprep.mubr.bf16.mxu1 %v13151_v3  ;;  %7716 = vmatpush2.bf16.msra.mxu1 %v8161_v55 }
 0x6c7   :  { %7701 = vmatprep.subr.bf16.mxu1 %v8166_v28 }
 0x6c8   :  { %5853 = vmatpush2.bf16.msra.mxu0 %v8137_v33 }
 0x6c9   :  { %6015 = vmatprep.subr.bf16.mxu0 %v13265_v48 }
 0x6ca   :  { %7717 = vmatpush2.bf16.msra.mxu1 %v8164_v15 }
 0x6cb   :  { %v5084_v27 = vpop.f32.mrf.mxu0  ;;  %5549 = vmatmul.mubr.bf16.gmra.mxu0 %v13163_v11 }
 0x6cc   :  { %v5085_v57 = vadd.f32 %v5084_v27, %v13528_v40  ;;  %5558 = vmatprep.mubr.bf16.mxu0 %v13171_v5 }
 0x6cd   :  { %v5086_v55 = vpop.f32.mrf.mxu0  ;;  %v5277_v21 = vpop.f32.mrf.mxu1  ;;  %5742 = vmatmul.mubr.bf16.gmra.mxu1 %v13179_v22 }
 0x6ce   :  { %v5087_v28 = vadd.f32 %v5086_v55, %v13532_v34  ;;  %v5278_v33 = vadd.f32 %v5277_v21, %v5085_v57  ;;  %5751 = vmatprep.mubr.bf16.mxu1 %v13187_v53 }
 0x6cf   :  { %v5088_v48 = vpop.f32.mrf.mxu0  ;;  %v5279_v19 = vpop.f32.mrf.mxu1 }
 0x6d0   :  { %8199 = vtanh.f32 %v5278_v33  ;;  %v5089_v15 = vadd.f32 %v5088_v48, %v13528_v40  ;;  %v5280_v37 = vadd.f32 %v5279_v19, %v5087_v28 }
 0x6d1   :  { %v5090_v24 = vpop.f32.mrf.mxu0  ;;  %v5281_v11 = vpop.f32.mrf.mxu1 }
 0x6d2   :  { %8201 = vtanh.f32 %v5280_v37  ;;  %v5091_v27 = vadd.f32 %v5090_v24, %v13532_v34  ;;  %v5282_v5 = vadd.f32 %v5281_v11, %v5089_v15 }
 0x6d3   :  { %v5094_v59 = vpop.f32.mrf.mxu0  ;;  %v5283_v52 = vpop.f32.mrf.mxu1  ;;  %5559 = vmatmul.mubr.bf16.gmra.mxu0 %v13199_v4 }
 0x6d4   :  { %8203 = vtanh.f32 %v5282_v5  ;;  %v5095_v21 = vadd.f32 %v5094_v59, %v13528_v40  ;;  %v5284_v57 = vadd.f32 %v5283_v52, %v5091_v27  ;;  %5568 = vmatprep.mubr.bf16.mxu0 %v13207_v31 }
 0x6d5   :  { %v5096_v55 = vpop.f32.mrf.mxu0  ;;  %v5287_v33 = vpop.f32.mrf.mxu1  ;;  %5752 = vmatmul.mubr.bf16.gmra.mxu1 %v13215_v7 }
 0x6d6   :  { %8205 = vtanh.f32 %v5284_v57  ;;  %v5097_v28 = vadd.f32 %v5096_v55, %v13532_v34  ;;  %v5288_v48 = vadd.f32 %v5287_v33, %v5095_v21  ;;  %5761 = vmatprep.mubr.bf16.mxu1 %v13223_v23 }
 0x6d7   :  { %v5098_v11 = vpop.f32.mrf.mxu0  ;;  %v5289_v19 = vpop.f32.mrf.mxu1 }
 0x6d8   :  { %8207 = vtanh.f32 %v5288_v48  ;;  %v5099_v5 = vadd.f32 %v5098_v11, %v13528_v40  ;;  %v5290_v15 = vadd.f32 %v5289_v19, %v5097_v28  ;;  %v8167_v19 = vld [vmem:[#allocation4 + $0x6e0] ss:$28 sps:$4 sm:$0xff]  }
 0x6d9   :  { %v5100_v59 = vpop.f32.mrf.mxu0  ;;  %v5291_v52 = vpop.f32.mrf.mxu1  ;;  %7526 = vmatprep.subr.bf16.mxu1 %v8167_v19 }
 0x6da   :  { %8209 = vtanh.f32 %v5290_v15  ;;  %v5101_v37 = vadd.f32 %v5100_v59, %v13532_v34  ;;  %v5292_v24 = vadd.f32 %v5291_v52, %v5099_v5 }
 0x6db   :  { %v5104_v27 = vpop.f32.mrf.mxu0  ;;  %v5293_v31 = vpop.f32.mrf.mxu1  ;;  %5569 = vmatmul.mubr.bf16.gmra.mxu0 %v13235_v10 }
 0x6dc   :  { %8211 = vtanh.f32 %v5292_v24  ;;  %v5105_v21 = vadd.f32 %v5104_v27, %v13528_v40  ;;  %v5294_v57 = vadd.f32 %v5293_v31, %v5101_v37  ;;  %5578 = vmatprep.mubr.bf16.mxu0 %v13243_v43 }
 0x6dd   :  { %v8200_v55 = vpop.eup %8199  ;;  %v5106_v33 = vpop.f32.mrf.mxu0  ;;  %5762 = vmatmul.mubr.bf16.gmra.mxu1 %v13251_v54 }
 0x6de   :  { %v5297_v48 = vpop.f32.mrf.mxu1  ;;  %6754 = vst [vmem:[%s14994_s11] sm:$0xff] %v8200_v55  ;;  %8213 = vtanh.f32 %v5294_v57  ;;  %v5107_v28 = vadd.f32 %v5106_v33, %v13532_v34  ;;  %5771 = vmatprep.mubr.bf16.mxu1 %v13259_v44 }
 0x6df   :  { %v5298_v11 = vadd.f32 %v5297_v48, %v5105_v21  ;;  %v8202_v5 = vpop.eup %8201  ;;  %v5108_v31 = vpop.f32.mrf.mxu0 }
 0x6e0   :  { %v5299_v15 = vpop.f32.mrf.mxu1  ;;  %6755 = vst [vmem:[%s14994_s11 + $0x8] sm:$0xff] %v8202_v5  ;;  %v5109_v59 = vadd.f32 %v5108_v31, %v13528_v40 }
 0x6e1   :  { %8215 = vtanh.f32 %v5298_v11  ;;  %v5300_v52 = vadd.f32 %v5299_v15, %v5107_v28  ;;  %v8204_v37 = vpop.eup %8203  ;;  %v5110_v24 = vpop.f32.mrf.mxu0 }
 0x6e2   :  { %v5301_v27 = vpop.f32.mrf.mxu1  ;;  %6761 = vst [vmem:[%s14994_s11 + $0x38] sm:$0xff] %v8204_v37  ;;  %v5111_v21 = vadd.f32 %v5110_v24, %v13532_v34 }
 0x6e3   :  { %8217 = vtanh.f32 %v5300_v52  ;;  %v5302_v57 = vadd.f32 %v5301_v27, %v5109_v59  ;;  %v8206_v55 = vpop.eup %8205  ;;  %v5114_v33 = vpop.f32.mrf.mxu0  ;;  %5579 = vmatmul.mubr.bf16.gmra.mxu0 %v13273_v63 }
 0x6e4   :  { %v5303_v48 = vpop.f32.mrf.mxu1  ;;  %6762 = vst [vmem:[%s14994_s11 + $0x40] sm:$0xff] %v8206_v55  ;;  %v5115_v28 = vadd.f32 %v5114_v33, %v13528_v40  ;;  %5588 = vmatprep.mubr.bf16.mxu0 %v13281_v29 }
 0x6e5   :  { %8219 = vtanh.f32 %v5302_v57  ;;  %v5304_v11 = vadd.f32 %v5303_v48, %v5111_v21  ;;  %v8208_v19 = vpop.eup %8207  ;;  %v5116_v5 = vpop.f32.mrf.mxu0  ;;  %5772 = vmatmul.mubr.bf16.gmra.mxu1 %v13290_v58 }
 0x6e6   :  { %v5307_v31 = vpop.f32.mrf.mxu1  ;;  %6768 = vst [vmem:[%s14994_s11 + $0x70] sm:$0xff] %v8208_v19  ;;  %v5117_v15 = vadd.f32 %v5116_v5, %v13532_v34  ;;  %5781 = vmatprep.mubr.bf16.mxu1 %v13298_v41 }
 0x6e7   :  { %8221 = vtanh.f32 %v5304_v11  ;;  %v5308_v59 = vadd.f32 %v5307_v31, %v5115_v28  ;;  %v8210_v52 = vpop.eup %8209  ;;  %v5118_v37 = vpop.f32.mrf.mxu0 }
 0x6e8   :  { %v5309_v24 = vpop.f32.mrf.mxu1  ;;  %6769 = vst [vmem:[%s14994_s11 + $0x78] sm:$0xff] %v8210_v52  ;;  %v5119_v27 = vadd.f32 %v5118_v37, %v13528_v40 }
 0x6e9   :  { %8223 = vtanh.f32 %v5308_v59  ;;  %v5310_v21 = vadd.f32 %v5309_v24, %v5117_v15  ;;  %v8212_v57 = vpop.eup %8211  ;;  %v5120_v55 = vpop.f32.mrf.mxu0  ;;  %v16975_v24 = vld [vmem:[#allocation209_spill] sm:$0xff] }
 0x6ea   :  { %v5311_v33 = vpop.f32.mrf.mxu1  ;;  %6775 = vst [vmem:[%s14994_s11 + $0xa8] sm:$0xff] %v8212_v57  ;;  %v5121_v48 = vadd.f32 %v5120_v55, %v13532_v34  ;;  %v16976_v57 = vld [vmem:[#allocation97_spill] sm:$0xff] }
 0x6eb   :  { %8225 = vtanh.f32 %v5310_v21  ;;  %v5312_v28 = vadd.f32 %v5311_v33, %v5119_v27  ;;  %v8214_v11 = vpop.eup %8213  ;;  %v5124_v19 = vpop.f32.mrf.mxu0  ;;  %5589 = vmatmul.mubr.bf16.gmra.mxu0 %v13310_v61  ;;  %v16977_v61 = vld [vmem:[#allocation116_spill] sm:$0xff] }
 0x6ec   :  { %v5313_v5 = vpop.f32.mrf.mxu1  ;;  %6776 = vst [vmem:[%s14994_s11 + $0xb0] sm:$0xff] %v8214_v11  ;;  %v5125_v31 = vadd.f32 %v5124_v19, %v13528_v40  ;;  %5598 = vmatprep.mubr.bf16.mxu0 %v13318_v56 }
 0x6ed   :  { %8227 = vtanh.f32 %v5312_v28  ;;  %v5314_v15 = vadd.f32 %v5313_v5, %v5121_v48  ;;  %v5126_v52 = vpop.f32.mrf.mxu0  ;;  %5782 = vmatmul.mubr.bf16.gmra.mxu1 %v16975_v24 }
 0x6ee   :  { %v8216_v59 = vpop.eup %8215  ;;  %v5317_v37 = vpop.f32.mrf.mxu1  ;;  %v5127_v27 = vadd.f32 %v5126_v52, %v13532_v34  ;;  %5791 = vmatprep.mubr.bf16.mxu1 %v16976_v57 }
 0x6ef   :  { %6782 = vst [vmem:[%s14994_s11 + $0xe0] sm:$0xff] %v8216_v59  ;;  %8229 = vtanh.f32 %v5314_v15  ;;  %v5318_v21 = vadd.f32 %v5317_v37, %v5125_v31  ;;  %v5128_v33 = vpop.f32.mrf.mxu0 }
 0x6f0   :  { %v8218_v55 = vpop.eup %8217  ;;  %v5319_v48 = vpop.f32.mrf.mxu1  ;;  %v5129_v28 = vadd.f32 %v5128_v33, %v13528_v40 }
 0x6f1   :  { %6783 = vst [vmem:[%s14994_s11 + $0xe8] sm:$0xff] %v8218_v55  ;;  %8231 = vtanh.f32 %v5318_v21  ;;  %v5320_v11 = vadd.f32 %v5319_v48, %v5127_v27  ;;  %v5130_v5 = vpop.f32.mrf.mxu0  ;;  %v16978_v55 = vld [vmem:[#allocation28_spill] sm:$0xff] }
 0x6f2   :  { %v8220_v19 = vpop.eup %8219  ;;  %v5321_v59 = vpop.f32.mrf.mxu1  ;;  %v5131_v31 = vadd.f32 %v5130_v5, %v13532_v34 }
 0x6f3   :  { %6789 = vst [vmem:[%s14994_s11 + $0x118] sm:$0xff] %v8220_v19  ;;  %8233 = vtanh.f32 %v5320_v11  ;;  %v5322_v15 = vadd.f32 %v5321_v59, %v5129_v28  ;;  %v5134_v37 = vpop.f32.mrf.mxu0  ;;  %5599 = vmatmul.mubr.bf16.gmra.mxu0 %v16977_v61  ;;  %v16979_v19 = vld [vmem:[#allocation122_spill] sm:$0xff]  ;;  %v16980_v59 = vld [vmem:[#allocation51_spill] sm:$0xff] }
 0x6f4   :  { %v8222_v52 = vpop.eup %8221  ;;  %v5323_v56 = vpop.f32.mrf.mxu1  ;;  %v5135_v27 = vadd.f32 %v5134_v37, %v13528_v40  ;;  %5608 = vmatprep.mubr.bf16.mxu0 %v16978_v55 }
 0x6f5   :  { %6790 = vst [vmem:[%s14994_s11 + $0x120] sm:$0xff] %v8222_v52  ;;  %8235 = vtanh.f32 %v5322_v15  ;;  %v5324_v21 = vadd.f32 %v5323_v56, %v5131_v31  ;;  %v5136_v48 = vpop.f32.mrf.mxu0  ;;  %5792 = vmatmul.mubr.bf16.gmra.mxu1 %v16979_v19 }
 0x6f6   :  { %v8224_v33 = vpop.eup %8223  ;;  %v5327_v11 = vpop.f32.mrf.mxu1  ;;  %v5137_v28 = vadd.f32 %v5136_v48, %v13532_v34  ;;  %5801 = vmatprep.mubr.bf16.mxu1 %v16980_v59 }
 0x6f7   :  { %6796 = vst [vmem:[%s14994_s11 + $0x150] sm:$0xff] %v8224_v33  ;;  %8237 = vtanh.f32 %v5324_v21  ;;  %v5328_v5 = vadd.f32 %v5327_v11, %v5135_v27  ;;  %v5138_v52 = vpop.f32.mrf.mxu0 }
 0x6f8   :  { %v8226_v15 = vpop.eup %8225  ;;  %v5329_v56 = vpop.f32.mrf.mxu1  ;;  %v5139_v31 = vadd.f32 %v5138_v52, %v13528_v40 }
 0x6f9   :  { %6797 = vst [vmem:[%s14994_s11 + $0x158] sm:$0xff] %v8226_v15  ;;  %8239 = vtanh.f32 %v5328_v5  ;;  %v5330_v37 = vadd.f32 %v5329_v56, %v5137_v28  ;;  %v5140_v61 = vpop.f32.mrf.mxu0 }
 0x6fa   :  { %v8228_v55 = vpop.eup %8227  ;;  %v5331_v33 = vpop.f32.mrf.mxu1  ;;  %v5141_v27 = vadd.f32 %v5140_v61, %v13532_v34 }
 0x6fb   :  { %6803 = vst [vmem:[%s14994_s11 + $0x188] sm:$0xff] %v8228_v55  ;;  %8241 = vtanh.f32 %v5330_v37  ;;  %v5332_v21 = vadd.f32 %v5331_v33, %v5139_v31  ;;  %v5144_v11 = vpop.f32.mrf.mxu0  ;;  %5609 = vmatmul.mubr.bf16.gmra.mxu0 %v13382_v38 }
 0x6fc   :  { %v8230_v48 = vpop.eup %8229  ;;  %v5333_v29 = vpop.f32.mrf.mxu1  ;;  %v5145_v28 = vadd.f32 %v5144_v11, %v13528_v40  ;;  %5618 = vmatprep.mubr.bf16.mxu0 %v13390_v12 }
 0x6fd   :  { %6804 = vst [vmem:[%s14994_s11 + $0x190] sm:$0xff] %v8230_v48  ;;  %8243 = vtanh.f32 %v5332_v21  ;;  %v5334_v5 = vadd.f32 %v5333_v29, %v5141_v27  ;;  %v5146_v15 = vpop.f32.mrf.mxu0  ;;  %5802 = vmatmul.mubr.bf16.gmra.mxu1 %v13398_v49 }
 0x6fe   :  { %v8232_v55 = vpop.eup %8231  ;;  %v5337_v52 = vpop.f32.mrf.mxu1  ;;  %v5147_v61 = vadd.f32 %v5146_v15, %v13532_v34  ;;  %5811 = vmatprep.mubr.bf16.mxu1 %v13406_v0 }
 0x6ff   :  { %6810 = vst [vmem:[%s14994_s11 + $0x1c0] sm:$0xff] %v8232_v55  ;;  %8245 = vtanh.f32 %v5334_v5  ;;  %v5338_v56 = vadd.f32 %v5337_v52, %v5145_v28  ;;  %v5148_v37 = vpop.f32.mrf.mxu0 }
 0x700   :  { %v8234_v31 = vpop.eup %8233  ;;  %v5339_v29 = vpop.f32.mrf.mxu1  ;;  %v5149_v33 = vadd.f32 %v5148_v37, %v13528_v40 }
 0x701   :  { %6811 = vst [vmem:[%s14994_s11 + $0x1c8] sm:$0xff] %v8234_v31  ;;  %8247 = vtanh.f32 %v5338_v56  ;;  %v5340_v27 = vadd.f32 %v5339_v29, %v5147_v61  ;;  %v5150_v48 = vpop.f32.mrf.mxu0 }
 0x702   :  { %v8236_v21 = vpop.eup %8235  ;;  %v5341_v11 = vpop.f32.mrf.mxu1  ;;  %v5151_v28 = vadd.f32 %v5150_v48, %v13532_v34 }
 0x703   :  { %6817 = vst [vmem:[%s14994_s11 + $0x1f8] sm:$0xff] %v8236_v21  ;;  %8249 = vtanh.f32 %v5340_v27  ;;  %v5342_v5 = vadd.f32 %v5341_v11, %v5149_v33  ;;  %v5154_v15 = vpop.f32.mrf.mxu0  ;;  %5619 = vmatmul.mubr.bf16.gmra.mxu0 %v13418_v16 }
 0x704   :  { %v8238_v55 = vpop.eup %8237  ;;  %v5343_v52 = vpop.f32.mrf.mxu1  ;;  %v5155_v61 = vadd.f32 %v5154_v15, %v13528_v40  ;;  %5854 = vmatprep.mubr.bf16.mxu0 %v16953_v42 }
 0x705   :  { %6818 = vst [vmem:[%s14994_s11 + $0x200] sm:$0xff] %v8238_v55  ;;  %8251 = vtanh.f32 %v5342_v5  ;;  %v5344_v56 = vadd.f32 %v5343_v52, %v5151_v28  ;;  %v5156_v37 = vpop.f32.mrf.mxu0  ;;  %5812 = vmatmul.mubr.bf16.gmra.mxu1 %v13426_v2 }
 0x706   :  { %v8240_v31 = vpop.eup %8239  ;;  %v5347_v29 = vpop.f32.mrf.mxu1  ;;  %v5157_v33 = vadd.f32 %v5156_v37, %v13532_v34  ;;  %6087 = vmatprep.mubr.bf16.mxu1 %v16967_v32 }
 0x707   :  { %6824 = vst [vmem:[%s14994_s11 + $0x230] sm:$0xff] %v8240_v31  ;;  %8253 = vtanh.f32 %v5344_v56  ;;  %v5348_v27 = vadd.f32 %v5347_v29, %v5155_v61  ;;  %v5158_v48 = vpop.f32.mrf.mxu0  ;;  %v8168_v31 = vld [vmem:[#allocation4 + $0x520] ss:$28 sps:$4 sm:$0xff]  }
 0x708   :  { %v8242_v21 = vpop.eup %8241  ;;  %v5349_v11 = vpop.f32.mrf.mxu1  ;;  %v5159_v28 = vadd.f32 %v5158_v48, %v13528_v40 }
 0x709   :  { %6825 = vst [vmem:[%s14994_s11 + $0x238] sm:$0xff] %v8242_v21  ;;  %8255 = vtanh.f32 %v5348_v27  ;;  %v5350_v5 = vadd.f32 %v5349_v11, %v5157_v33  ;;  %v5160_v15 = vpop.f32.mrf.mxu0  ;;  %v8169_v27 = vld [vmem:[#allocation4 + $0x6a8] ss:$28 sps:$4 sm:$0xff]  }
 0x70a   :  { %v8244_v55 = vpop.eup %8243  ;;  %v5351_v52 = vpop.f32.mrf.mxu1  ;;  %v5161_v61 = vadd.f32 %v5160_v15, %v13532_v34 }
 0x70b   :  { %6831 = vst [vmem:[%s14994_s11 + $0x268] sm:$0xff] %v8244_v55  ;;  %8257 = vtanh.f32 %v5350_v5  ;;  %v5352_v56 = vadd.f32 %v5351_v52, %v5159_v28  ;;  %v5164_v29 = vpop.f32.mrf.mxu0  ;;  %5855 = vmatmul.mubr.bf16.vlgmr.msra.gmra.mxu0 %v12875_v18 }
 0x70c   :  { %v8246_v37 = vpop.eup %8245  ;;  %v5353_v42 = vpop.f32.mrf.mxu1  ;;  %v5165_v33 = vadd.f32 %v5164_v29, %v13528_v40  ;;  %6016 = vmatpush1.bf16.msra.mxu0 %v13432_v62  ;;  %5864 = vmatprep.mubr.bf16.mxu0 %v12883_v9 }
 0x70d   :  { %6832 = vst [vmem:[%s14994_s11 + $0x270] sm:$0xff] %v8246_v37  ;;  %8259 = vtanh.f32 %v5352_v56  ;;  %v5354_v21 = vadd.f32 %v5353_v42, %v5161_v61  ;;  %v5166_v11 = vpop.f32.mrf.mxu0  ;;  %6017 = vmatprep.subr.bf16.mxu0 %v13435_v1  ;;  %6088 = vmatmul.mubr.bf16.vlgmr.msra.gmra.mxu1 %v13035_v8  ;;  %v8170_v42 = vld [vmem:[#allocation4 + $0x4e8] ss:$28 sps:$4 sm:$0xff]   ;;  %v8171_v61 = vld [vmem:[#allocation4 + $0x670] ss:$28 sps:$4 sm:$0xff]  }
 0x70e   :  { %v8248_v48 = vpop.eup %8247  ;;  %v5357_v28 = vpop.f32.mrf.mxu1  ;;  %v5167_v5 = vadd.f32 %v5166_v11, %v13532_v34  ;;  %6097 = vmatprep.mubr.bf16.mxu1 %v13043_v25  ;;  %7527 = vmatpush3.bf16.msra.mxu1 %v8168_v31 }
 0x70f   :  { %6838 = vst [vmem:[%s14994_s11 + $0x2a0] sm:$0xff] %v8248_v48  ;;  %8261 = vtanh.f32 %v5354_v21  ;;  %v5358_v55 = vadd.f32 %v5357_v28, %v5165_v33  ;;  %v5168_v15 = vpop.f32.mrf.mxu0  ;;  %7528 = vmatprep.subr.bf16.mxu1 %v8169_v27  ;;  %v8172_v21 = vld [vmem:[#allocation4 + $0x4b0] ss:$28 sps:$4 sm:$0xff]  }
 0x710   :  { %v8250_v62 = vpop.eup %8249  ;;  %v5359_v52 = vpop.f32.mrf.mxu1  ;;  %v5169_v1 = vadd.f32 %v5168_v15, %v13528_v40  ;;  %6018 = vmatpush1.bf16.msra.mxu0 %v13441_v13  ;;  %v8173_v13 = vld [vmem:[#allocation4 + $0x638] ss:$28 sps:$4 sm:$0xff]  }
 0x711   :  { %6839 = vst [vmem:[%s14994_s11 + $0x2a8] sm:$0xff] %v8250_v62  ;;  %8263 = vtanh.f32 %v5358_v55  ;;  %v5360_v56 = vadd.f32 %v5359_v52, %v5167_v5  ;;  %v5170_v29 = vpop.f32.mrf.mxu0  ;;  %6019 = vmatprep.subr.bf16.mxu0 %v13444_v35  ;;  %v16981_v55 = vld [vmem:[#allocation14_spill] sm:$0xff]  ;;  %v16982_v52 = vld [vmem:[#allocation87_spill] sm:$0xff] }
 0x712   :  { %v8252_v37 = vpop.eup %8251  ;;  %v5361_v33 = vpop.f32.mrf.mxu1  ;;  %v5171_v31 = vadd.f32 %v5170_v29, %v13532_v34  ;;  %7529 = vmatpush3.bf16.msra.mxu1 %v8170_v42 }
 0x713   :  { %6845 = vst [vmem:[%s14994_s11 + $0x2d8] sm:$0xff] %v8252_v37  ;;  %8265 = vtanh.f32 %v5360_v56  ;;  %v5362_v27 = vadd.f32 %v5361_v33, %v5169_v1  ;;  %v5174_v11 = vpop.f32.mrf.mxu0  ;;  %5865 = vmatmul.mubr.bf16.gmra.mxu0 %v12911_v17  ;;  %7530 = vmatprep.subr.bf16.mxu1 %v8171_v61  ;;  %v8174_v56 = vld [vmem:[#allocation4 + $0x478] ss:$28 sps:$4 sm:$0xff]   ;;  %v8175_v33 = vld [vmem:[#allocation4 + $0x600] ss:$28 sps:$4 sm:$0xff]  }
 0x714   :  { %v8254_v48 = vpop.eup %8253  ;;  %v5363_v28 = vpop.f32.mrf.mxu1  ;;  %v5175_v35 = vadd.f32 %v5174_v11, %v13528_v40  ;;  %5874 = vmatprep.mubr.bf16.mxu0 %v16981_v55  ;;  %6020 = vmatpush1.bf16.msra.mxu0 %v13447_v46 }
 0x715   :  { %6846 = vst [vmem:[%s14994_s11 + $0x2e0] sm:$0xff] %v8254_v48  ;;  %8267 = vtanh.f32 %v5362_v27  ;;  %v5364_v5 = vadd.f32 %v5363_v28, %v5171_v31  ;;  %v5176_v62 = vpop.f32.mrf.mxu0  ;;  %6021 = vmatprep.subr.bf16.mxu0 %v16982_v52  ;;  %6098 = vmatmul.mubr.bf16.gmra.mxu1 %v13071_v30  ;;  %v16983_v48 = vld [vmem:[#allocation154_spill] sm:$0xff] }
 0x716   :  { %v8256_v42 = vpop.eup %8255  ;;  %v5367_v15 = vpop.f32.mrf.mxu1  ;;  %v5177_v61 = vadd.f32 %v5176_v62, %v13532_v34  ;;  %6107 = vmatprep.mubr.bf16.mxu1 %v13079_v39  ;;  %7531 = vmatpush3.bf16.msra.mxu1 %v8172_v21  ;;  %v16984_v21 = vld [vmem:[#allocation17_spill] sm:$0xff] }
 0x717   :  { %6852 = vst [vmem:[%s14994_s11 + $0x310] sm:$0xff] %v8256_v42  ;;  %8269 = vtanh.f32 %v5364_v5  ;;  %v5368_v1 = vadd.f32 %v5367_v15, %v5175_v35  ;;  %v5178_v37 = vpop.f32.mrf.mxu0  ;;  %7532 = vmatprep.subr.bf16.mxu1 %v8173_v13  ;;  %v8176_v42 = vld [vmem:[#allocation4 + $0x440] ss:$28 sps:$4 sm:$0xff]  }
 0x718   :  { %v8258_v46 = vpop.eup %8257  ;;  %v5369_v29 = vpop.f32.mrf.mxu1  ;;  %v5179_v31 = vadd.f32 %v5178_v37, %v13528_v40  ;;  %6022 = vmatpush1.bf16.msra.mxu0 %v16983_v48 }
 0x719   :  { %6853 = vst [vmem:[%s14994_s11 + $0x318] sm:$0xff] %v8258_v46  ;;  %8271 = vtanh.f32 %v5368_v1  ;;  %v5370_v27 = vadd.f32 %v5369_v29, %v5177_v61  ;;  %v5180_v28 = vpop.f32.mrf.mxu0  ;;  %6023 = vmatprep.subr.bf16.mxu0 %v16984_v21  ;;  %v16985_v61 = vld [vmem:[#allocation78_spill] sm:$0xff]  ;;  %v16986_v29 = vld [vmem:[#allocation107_spill] sm:$0xff] }
 0x71a   :  { %v8260_v11 = vpop.eup %8259  ;;  %v5371_v35 = vpop.f32.mrf.mxu1  ;;  %v5181_v13 = vadd.f32 %v5180_v28, %v13532_v34  ;;  %7533 = vmatpush3.bf16.msra.mxu1 %v8174_v56  ;;  %v8177_v1 = vld [vmem:[#allocation4 + $0x5c8] ss:$28 sps:$4 sm:$0xff]   ;;  %v8185_v21 = vld [vmem:[#allocation4 + $0x590] ss:$28 sps:$4 sm:$0xff]  }
 0x71b   :  { %6859 = vst [vmem:[%s14994_s11 + $0x348] sm:$0xff] %v8260_v11  ;;  %8273 = vtanh.f32 %v5370_v27  ;;  %v5372_v5 = vadd.f32 %v5371_v35, %v5179_v31  ;;  %v5184_v15 = vpop.f32.mrf.mxu0  ;;  %5875 = vmatmul.mubr.bf16.gmra.mxu0 %v16985_v61  ;;  %7534 = vmatprep.subr.bf16.mxu1 %v8175_v33  ;;  %v8178_v11 = vld [vmem:[#allocation4 + $0x408] ss:$28 sps:$4 sm:$0xff]  }
 0x71c   :  { %v8262_v62 = vpop.eup %8261  ;;  %v5373_v52 = vpop.f32.mrf.mxu1  ;;  %v5185_v46 = vadd.f32 %v5184_v15, %v13528_v40  ;;  %5884 = vmatprep.mubr.bf16.mxu0 %v16986_v29  ;;  %6024 = vmatpush1.bf16.msra.mxu0 %v13463_v60 }
 0x71d   :  { %6860 = vst [vmem:[%s14994_s11 + $0x350] sm:$0xff] %v8262_v62  ;;  %8275 = vtanh.f32 %v5372_v5  ;;  %v5374_v37 = vadd.f32 %v5373_v52, %v5181_v13  ;;  %v5186_v31 = vpop.f32.mrf.mxu0  ;;  %6025 = vmatprep.subr.bf16.mxu0 %v13467_v6  ;;  %6108 = vmatmul.mubr.bf16.gmra.mxu1 %v13107_v26  ;;  %v16987_v5 = vld [vmem:[#allocation210_spill] sm:$0xff] }
 0x71e   :  { %v8264_v56 = vpop.eup %8263  ;;  %v5377_v27 = vpop.f32.mrf.mxu1  ;;  %v5187_v33 = vadd.f32 %v5186_v31, %v13532_v34  ;;  %6117 = vmatprep.mubr.bf16.mxu1 %v13115_v20  ;;  %7535 = vmatpush3.bf16.msra.mxu1 %v8176_v42  ;;  %v16988_v42 = vld [vmem:[#allocation91_spill] sm:$0xff] }
 0x71f   :  { %6866 = vst [vmem:[%s14994_s11 + $0x380] sm:$0xff] %v8264_v56  ;;  %8277 = vtanh.f32 %v5374_v37  ;;  %v5378_v48 = vadd.f32 %v5377_v27, %v5185_v46  ;;  %v5188_v28 = vpop.f32.mrf.mxu0  ;;  %7536 = vmatprep.subr.bf16.mxu1 %v8177_v1  ;;  %v8186_v37 = vld [vmem:[#allocation4 + $0x3d0] ss:$28 sps:$4 sm:$0xff]  }
 0x720   :  { %v8266_v60 = vpop.eup %8265  ;;  %v5379_v35 = vpop.f32.mrf.mxu1  ;;  %v5189_v6 = vadd.f32 %v5188_v28, %v13528_v40  ;;  %6026 = vmatpush1.bf16.msra.mxu0 %v16987_v5 }
 0x721   :  { %6867 = vst [vmem:[%s14994_s11 + $0x388] sm:$0xff] %v8266_v60  ;;  %8279 = vtanh.f32 %v5378_v48  ;;  %v5380_v13 = vadd.f32 %v5379_v35, %v5187_v33  ;;  %v5190_v15 = vpop.f32.mrf.mxu0  ;;  %6027 = vmatprep.subr.bf16.mxu0 %v16988_v42  ;;  %v16989_v33 = vld [vmem:[#allocation126_spill] sm:$0xff]  ;;  %v8193_v48 = vld [vmem:[#allocation4 + $0x558] ss:$28 sps:$4 sm:$0xff]  }
 0x722   :  { %v8268_v62 = vpop.eup %8267  ;;  %v5381_v52 = vpop.f32.mrf.mxu1  ;;  %v5191_v1 = vadd.f32 %v5190_v15, %v13532_v34  ;;  %7537 = vmatpush3.bf16.msra.mxu1 %v8178_v11  ;;  %v16990_v35 = vld [vmem:[#allocation94_spill] sm:$0xff] }
 0x723   :  { %6873 = vst [vmem:[%s14994_s11 + $0x3b8] sm:$0xff] %v8268_v62  ;;  %8281 = vtanh.f32 %v5380_v13  ;;  %v5382_v46 = vadd.f32 %v5381_v52, %v5189_v6  ;;  %v5194_v31 = vpop.f32.mrf.mxu0  ;;  %5885 = vmatmul.mubr.bf16.gmra.mxu0 %v16989_v33  ;;  %7538 = vmatprep.subr.bf16.mxu1 %v8185_v21  ;;  %v8194_v62 = vld [vmem:[#allocation4 + $0x398] ss:$28 sps:$4 sm:$0xff]  }
 0x724   :  { %v8270_v56 = vpop.eup %8269  ;;  %v5383_v27 = vpop.f32.mrf.mxu1  ;;  %v5195_v60 = vadd.f32 %v5194_v31, %v13528_v40  ;;  %5894 = vmatprep.mubr.bf16.mxu0 %v16990_v35  ;;  %6028 = vmatpush1.bf16.msra.mxu0 %v13479_v14  ;;  %v16991_v31 = vld [vmem:[#allocation211_spill] sm:$0xff] }
 0x725   :  { %6874 = vst [vmem:[%s14994_s11 + $0x3c0] sm:$0xff] %v8270_v56  ;;  %8283 = vtanh.f32 %v5382_v46  ;;  %v5384_v28 = vadd.f32 %v5383_v27, %v5191_v1  ;;  %v5196_v6 = vpop.f32.mrf.mxu0  ;;  %6029 = vmatprep.subr.bf16.mxu0 %v13483_v47  ;;  %6118 = vmatmul.mubr.bf16.gmra.mxu1 %v13143_v50 }
 0x726   :  { %v8272_v11 = vpop.eup %8271  ;;  %v5387_v13 = vpop.f32.mrf.mxu1  ;;  %v5197_v21 = vadd.f32 %v5196_v6, %v13532_v34  ;;  %6127 = vmatprep.mubr.bf16.mxu1 %v13151_v3  ;;  %7539 = vmatpush3.bf16.msra.mxu1 %v8186_v37 }
 0x727   :  { %6880 = vst [vmem:[%s14994_s11 + $0x3f0] sm:$0xff] %v8272_v11  ;;  %8285 = vtanh.f32 %v5384_v28  ;;  %v5388_v5 = vadd.f32 %v5387_v13, %v5195_v60  ;;  %v5198_v15 = vpop.f32.mrf.mxu0  ;;  %7540 = vmatprep.subr.bf16.mxu1 %v8193_v48  ;;  %v16992_v11 = vld [vmem:[#allocation150_spill] sm:$0xff]  ;;  %v16993_v13 = vld [vmem:[#allocation112_spill] sm:$0xff] }
 0x728   :  { %v8274_v14 = vpop.eup %8273  ;;  %v5389_v52 = vpop.f32.mrf.mxu1  ;;  %v5199_v47 = vadd.f32 %v5198_v15, %v13528_v40  ;;  %6030 = vmatpush1.bf16.msra.mxu0 %v13489_v51  ;;  %v16995_v15 = vld [vmem:[#allocation181_spill] sm:$0xff] }
 0x729   :  { %6881 = vst [vmem:[%s14994_s11 + $0x3f8] sm:$0xff] %v8274_v14  ;;  %8287 = vtanh.f32 %v5388_v5  ;;  %v5390_v42 = vadd.f32 %v5389_v52, %v5197_v21  ;;  %v5200_v46 = vpop.f32.mrf.mxu0  ;;  %6031 = vmatprep.subr.bf16.mxu0 %v16991_v31  ;;  %v16994_v21 = vld [vmem:[#allocation23_spill] sm:$0xff] }
 0x72a   :  { %v8276_v1 = vpop.eup %8275  ;;  %v5391_v56 = vpop.f32.mrf.mxu1  ;;  %v5201_v37 = vadd.f32 %v5200_v46, %v13532_v34  ;;  %7541 = vmatpush3.bf16.msra.mxu1 %v8194_v62 }
 0x72b   :  { %6887 = vst [vmem:[%s14994_s11 + $0x428] sm:$0xff] %v8276_v1  ;;  %8289 = vtanh.f32 %v5390_v42  ;;  %v5392_v27 = vadd.f32 %v5391_v56, %v5199_v47  ;;  %v5204_v60 = vpop.f32.mrf.mxu0  ;;  %5895 = vmatmul.mubr.bf16.gmra.mxu0 %v16992_v11 }
 0x72c   :  { %v8278_v48 = vpop.eup %8277  ;;  %v5393_v28 = vpop.f32.mrf.mxu1  ;;  %v5205_v51 = vadd.f32 %v5204_v60, %v13528_v40  ;;  %5904 = vmatprep.mubr.bf16.mxu0 %v16993_v13  ;;  %6032 = vmatpush2.bf16.msra.mxu0 %v16994_v21 }
 0x72d   :  { %6888 = vst [vmem:[%s14994_s11 + $0x430] sm:$0xff] %v8278_v48  ;;  %8291 = vtanh.f32 %v5392_v27  ;;  %v5394_v6 = vadd.f32 %v5393_v28, %v5201_v37  ;;  %v5206_v14 = vpop.f32.mrf.mxu0  ;;  %6128 = vmatmul.mubr.bf16.gmra.mxu1 %v13179_v22  ;;  %6033 = vmatprep.subr.bf16.mxu0 %v16995_v15  ;;  %v16996_v37 = vld [vmem:[#allocation46_spill] sm:$0xff] }
 0x72e   :  { %v8280_v5 = vpop.eup %8279  ;;  %v5397_v62 = vpop.f32.mrf.mxu1  ;;  %v5207_v52 = vadd.f32 %v5206_v14, %v13532_v34  ;;  %6137 = vmatprep.mubr.bf16.mxu1 %v13187_v53  ;;  %v16997_v28 = vld [vmem:[#allocation182_spill] sm:$0xff] }
 0x72f   :  { %6894 = vst [vmem:[%s14994_s11 + $0x460] sm:$0xff] %v8280_v5  ;;  %8293 = vtanh.f32 %v5394_v6  ;;  %v5398_v47 = vadd.f32 %v5397_v62, %v5205_v51  ;;  %v5208_v1 = vpop.f32.mrf.mxu0  ;;  %v16998_v62 = vld [vmem:[#allocation127_spill] sm:$0xff] }
 0x730   :  { %v8282_v42 = vpop.eup %8281  ;;  %v5399_v46 = vpop.f32.mrf.mxu1  ;;  %v5209_v56 = vadd.f32 %v5208_v1, %v13528_v40  ;;  %6034 = vmatpush2.bf16.msra.mxu0 %v16996_v37 }
 0x731   :  { %6895 = vst [vmem:[%s14994_s11 + $0x468] sm:$0xff] %v8282_v42  ;;  %8295 = vtanh.f32 %v5398_v47  ;;  %v5400_v31 = vadd.f32 %v5399_v46, %v5207_v52  ;;  %v5210_v48 = vpop.f32.mrf.mxu0  ;;  %6035 = vmatprep.subr.bf16.mxu0 %v16997_v28  ;;  %v8647_v47 = vld [vmem:[#allocation4 + $0x668] ss:$28 sps:$4 sm:$0xff]  }
 0x732   :  { %v8284_v27 = vpop.eup %8283  ;;  %v5401_v60 = vpop.f32.mrf.mxu1  ;;  %v5211_v51 = vadd.f32 %v5210_v48, %v13532_v34 }
 0x733   :  { %6901 = vst [vmem:[%s14994_s11 + $0x498] sm:$0xff] %v8284_v27  ;;  %8297 = vtanh.f32 %v5400_v31  ;;  %v5402_v6 = vadd.f32 %v5401_v60, %v5209_v56  ;;  %v5214_v5 = vpop.f32.mrf.mxu0  ;;  %5905 = vmatmul.mubr.bf16.gmra.mxu0 %v16998_v62  ;;  %v8648_v56 = vld [vmem:[#allocation4 + $0x634] ss:$28 sps:$4 sm:$0xff]  }
 0x734   :  { %v8286_v21 = vpop.eup %8285  ;;  %v5403_v14 = vpop.f32.mrf.mxu1  ;;  %v5215_v15 = vadd.f32 %v5214_v5, %v13528_v40  ;;  %5914 = vmatprep.mubr.bf16.mxu0 %v13063_v45  ;;  %6036 = vmatpush2.bf16.msra.mxu0 %v8647_v47 }
 0x735   :  { %6902 = vst [vmem:[%s14994_s11 + $0x4a0] sm:$0xff] %v8286_v21  ;;  %8299 = vtanh.f32 %v5402_v6  ;;  %v5404_v52 = vadd.f32 %v5403_v14, %v5211_v51  ;;  %v5216_v1 = vpop.f32.mrf.mxu0  ;;  %6138 = vmatmul.mubr.bf16.gmra.mxu1 %v13215_v7  ;;  %6037 = vmatprep.subr.bf16.mxu0 %v8648_v56  ;;  %v8649_v6 = vld [vmem:[#allocation4 + $0x630] ss:$28 sps:$4 sm:$0xff]  }
 0x736   :  { %v8288_v42 = vpop.eup %8287  ;;  %v5407_v46 = vpop.f32.mrf.mxu1  ;;  %v5217_v31 = vadd.f32 %v5216_v1, %v13532_v34  ;;  %6147 = vmatprep.mubr.bf16.mxu1 %v13223_v23 }
 0x737   :  { %6908 = vst [vmem:[%s14994_s11 + $0x4d0] sm:$0xff] %v8288_v42  ;;  %8301 = vtanh.f32 %v5404_v52  ;;  %v5408_v37 = vadd.f32 %v5407_v46, %v5215_v15  ;;  %v5218_v48 = vpop.f32.mrf.mxu0  ;;  %v8650_v52 = vld [vmem:[#allocation4 + $0x5fc] ss:$28 sps:$4 sm:$0xff]  }
 0x738   :  { %v8290_v27 = vpop.eup %8289  ;;  %v5409_v60 = vpop.f32.mrf.mxu1  ;;  %v5219_v28 = vadd.f32 %v5218_v48, %v13528_v40  ;;  %6038 = vmatpush2.bf16.msra.mxu0 %v8649_v6 }
 0x739   :  { %6909 = vst [vmem:[%s14994_s11 + $0x4d8] sm:$0xff] %v8290_v27  ;;  %8303 = vtanh.f32 %v5408_v37  ;;  %v5410_v51 = vadd.f32 %v5409_v60, %v5217_v31  ;;  %v5220_v5 = vpop.f32.mrf.mxu0  ;;  %6039 = vmatprep.subr.bf16.mxu0 %v8650_v52  ;;  %v16999_v37 = vld [vmem:[#allocation36_spill] sm:$0xff] }
 0x73a   :  { %v8292_v21 = vpop.eup %8291  ;;  %v5411_v14 = vpop.f32.mrf.mxu1  ;;  %v5221_v15 = vadd.f32 %v5220_v5, %v13532_v34  ;;  %v8651_v27 = vld [vmem:[#allocation4 + $0x5f8] ss:$28 sps:$4 sm:$0xff]  }
 0x73b   :  { %6915 = vst [vmem:[%s14994_s11 + $0x508] sm:$0xff] %v8292_v21  ;;  %8305 = vtanh.f32 %v5410_v51  ;;  %v5412_v47 = vadd.f32 %v5411_v14, %v5219_v28  ;;  %v5224_v1 = vpop.f32.mrf.mxu0  ;;  %5915 = vmatmul.mubr.bf16.gmra.mxu0 %v13091_v36  ;;  %v8652_v51 = vld [vmem:[#allocation4 + $0x5c4] ss:$28 sps:$4 sm:$0xff]  }
 0x73c   :  { %v8294_v42 = vpop.eup %8293  ;;  %v5413_v46 = vpop.f32.mrf.mxu1  ;;  %v5225_v56 = vadd.f32 %v5224_v1, %v13528_v40  ;;  %5924 = vmatprep.mubr.bf16.mxu0 %v16999_v37  ;;  %6040 = vmatpush2.bf16.msra.mxu0 %v8651_v27  ;;  %v8654_v27 = vld [vmem:[#allocation4 + $0x58c] ss:$28 sps:$4 sm:$0xff]  }
 0x73d   :  { %6916 = vst [vmem:[%s14994_s11 + $0x510] sm:$0xff] %v8294_v42  ;;  %8307 = vtanh.f32 %v5412_v47  ;;  %v5414_v31 = vadd.f32 %v5413_v46, %v5221_v15  ;;  %v5226_v60 = vpop.f32.mrf.mxu0  ;;  %6148 = vmatmul.mubr.bf16.gmra.mxu1 %v13251_v54  ;;  %6041 = vmatprep.subr.bf16.mxu0 %v8652_v51  ;;  %v8653_v42 = vld [vmem:[#allocation4 + $0x5c0] ss:$28 sps:$4 sm:$0xff]  }
 0x73e   :  { %v8296_v48 = vpop.eup %8295  ;;  %v5417_v28 = vpop.f32.mrf.mxu1  ;;  %v5227_v6 = vadd.f32 %v5226_v60, %v13532_v34  ;;  %6157 = vmatprep.mubr.bf16.mxu1 %v13259_v44 }
 0x73f   :  { %6922 = vst [vmem:[%s14994_s11 + $0x540] sm:$0xff] %v8296_v48  ;;  %8309 = vtanh.f32 %v5414_v31  ;;  %v5418_v21 = vadd.f32 %v5417_v28, %v5225_v56  ;;  %v5228_v14 = vpop.f32.mrf.mxu0 }
 0x740   :  { %v8298_v5 = vpop.eup %8297  ;;  %v5419_v52 = vpop.f32.mrf.mxu1  ;;  %v5229_v15 = vadd.f32 %v5228_v14, %v13528_v40  ;;  %6042 = vmatpush2.bf16.msra.mxu0 %v8653_v42  ;;  %v17001_v14 = vld [vmem:[#allocation114_spill] sm:$0xff] }
 0x741   :  { %6923 = vst [vmem:[%s14994_s11 + $0x548] sm:$0xff] %v8298_v5  ;;  %8311 = vtanh.f32 %v5418_v21  ;;  %v5420_v47 = vadd.f32 %v5419_v52, %v5227_v6  ;;  %v5230_v46 = vpop.f32.mrf.mxu0  ;;  %6043 = vmatprep.subr.bf16.mxu0 %v8654_v27  ;;  %v17000_v21 = vld [vmem:[#allocation128_spill] sm:$0xff]  ;;  %v8655_v52 = vld [vmem:[#allocation4 + $0x588] ss:$28 sps:$4 sm:$0xff]  }
 0x742   :  { %v8300_v1 = vpop.eup %8299  ;;  %v5421_v31 = vpop.f32.mrf.mxu1  ;;  %v5231_v56 = vadd.f32 %v5230_v46, %v13532_v34  ;;  %v8179_v46 = vld [vmem:[#allocation4 + $0x360] ss:$28 sps:$4 sm:$0xff]  }
 0x743   :  { %6929 = vst [vmem:[%s14994_s11 + $0x578] sm:$0xff] %v8300_v1  ;;  %8313 = vtanh.f32 %v5420_v47  ;;  %v5422_v48 = vadd.f32 %v5421_v31, %v5229_v15  ;;  %v5234_v28 = vpop.f32.mrf.mxu0  ;;  %5925 = vmatmul.mubr.bf16.gmra.mxu0 %v17000_v21  ;;  %v8656_v1 = vld [vmem:[#allocation4 + $0x554] ss:$28 sps:$4 sm:$0xff]  }
 0x744   :  { %v8302_v60 = vpop.eup %8301  ;;  %v5423_v51 = vpop.f32.mrf.mxu1  ;;  %v5235_v6 = vadd.f32 %v5234_v28, %v13528_v40  ;;  %5934 = vmatprep.mubr.bf16.mxu0 %v17001_v14  ;;  %6044 = vmatpush2.bf16.msra.mxu0 %v8655_v52  ;;  %v17002_v52 = vld [vmem:[#allocation119_spill] sm:$0xff]  ;;  %v17004_v14 = vld [vmem:[#allocation113_spill] sm:$0xff] }
 0x745   :  { %6930 = vst [vmem:[%s14994_s11 + $0x580] sm:$0xff] %v8302_v60  ;;  %8315 = vtanh.f32 %v5422_v48  ;;  %v5424_v5 = vadd.f32 %v5423_v51, %v5231_v56  ;;  %v5236_v42 = vpop.f32.mrf.mxu0  ;;  %6158 = vmatmul.mubr.bf16.gmra.mxu1 %v13290_v58  ;;  %6045 = vmatprep.subr.bf16.mxu0 %v8656_v1 }
 0x746   :  { %v8304_v47 = vpop.eup %8303  ;;  %v5427_v15 = vpop.f32.mrf.mxu1  ;;  %v5237_v31 = vadd.f32 %v5236_v42, %v13532_v34  ;;  %6167 = vmatprep.mubr.bf16.mxu1 %v13298_v41 }
 0x747   :  { %6936 = vst [vmem:[%s14994_s11 + $0x5b0] sm:$0xff] %v8304_v47  ;;  %8317 = vtanh.f32 %v5424_v5  ;;  %v5428_v27 = vadd.f32 %v5427_v15, %v5235_v6  ;;  %v5238_v48 = vpop.f32.mrf.mxu0  ;;  %v8657_v5 = vld [vmem:[%s14993_s10] sm:$0xff]  ;;  %v8658_v6 = vld [vmem:[#allocation4 + $0x550] ss:$28 sps:$4 sm:$0xff]  }
 0x748   :  { %v8306_v56 = vpop.eup %8305  ;;  %v5429_v60 = vpop.f32.mrf.mxu1  ;;  %v5239_v28 = vadd.f32 %v5238_v48, %v13528_v40  ;;  %v13847_v47 = vrot.slane %v8657_v5, %v17002_v52  ;;  %6046 = vmatpush2.bf16.msra.mxu0 %v8658_v6 }
 0x749   :  { %6937 = vst [vmem:[%s14994_s11 + $0x5b8] sm:$0xff] %v8306_v56  ;;  %8319 = vtanh.f32 %v5428_v27  ;;  %v5430_v51 = vadd.f32 %v5429_v60, %v5237_v31  ;;  %v5240_v15 = vpop.f32.mrf.mxu0  ;;  %7414 = vmatprep.subr.bf16.mxu0 %v8179_v46  ;;  %v17003_v27 = vld [vmem:[#allocation236_spill] sm:$0xff] }
 0x74a   :  { %v8308_v42 = vpop.eup %8307  ;;  %v5431_v1 = vpop.f32.mrf.mxu1  ;;  %v5241_v40 = vadd.f32 %v5240_v15, %v13532_v34  ;;  %v13854_v56 = vrot.slane %v8657_v5, %v17003_v27 }
 0x74b   :  { %6943 = vst [vmem:[%s14994_s11 + $0x5e8] sm:$0xff] %v8308_v42  ;;  %8321 = vtanh.f32 %v5430_v51  ;;  %v5432_v31 = vadd.f32 %v5431_v1, %v5239_v28  ;;  %v5470_v52 = vpop.f32.mrf.mxu0  ;;  %5935 = vmatmul.mubr.bf16.gmra.mxu0 %v17004_v14  ;;  %v17005_v51 = vld [vmem:[#allocation64_spill] sm:$0xff] }
 0x74c   :  { %v8310_v48 = vpop.eup %8309  ;;  %v5433_v60 = vpop.f32.mrf.mxu1  ;;  %v5471_v6 = vadd.f32 %v5470_v52, %v13847_v47  ;;  %5944 = vmatprep.mubr.bf16.mxu0 %v17005_v51 }
 0x74d   :  { %6944 = vst [vmem:[%s14994_s11 + $0x5f0] sm:$0xff] %v8310_v48  ;;  %8323 = vtanh.f32 %v5432_v31  ;;  %v5434_v46 = vadd.f32 %v5433_v60, %v5241_v40  ;;  %v5472_v28 = vpop.f32.mrf.mxu0  ;;  %6168 = vmatmul.mubr.bf16.gmra.mxu1 %v16975_v24 }
 0x74e   :  { %v8312_v34 = vpop.eup %8311  ;;  %v5663_v42 = vpop.f32.mrf.mxu1  ;;  %v5473_v5 = vadd.f32 %v5472_v28, %v13854_v56  ;;  %6177 = vmatprep.mubr.bf16.mxu1 %v16976_v57 }
 0x74f   :  { %6950 = vst [vmem:[%s14994_s11 + $0x620] sm:$0xff] %v8312_v34  ;;  %8325 = vtanh.f32 %v5434_v46  ;;  %v5664_v15 = vadd.f32 %v5663_v42, %v5471_v6  ;;  %v5474_v40 = vpop.f32.mrf.mxu0 }
 0x750   :  { %v8314_v1 = vpop.eup %8313  ;;  %v5665_v31 = vpop.f32.mrf.mxu1  ;;  %v5475_v27 = vadd.f32 %v5474_v40, %v13847_v47 }
 0x751   :  { %6951 = vst [vmem:[%s14994_s11 + $0x628] sm:$0xff] %v8314_v1  ;;  %8327 = vtanh.f32 %v5664_v15  ;;  %v5666_v48 = vadd.f32 %v5665_v31, %v5473_v5  ;;  %v5476_v52 = vpop.f32.mrf.mxu0  ;;  %v17006_v1 = vld [vmem:[#allocation40_spill] sm:$0xff] }
 0x752   :  { %v8316_v60 = vpop.eup %8315  ;;  %v5667_v34 = vpop.f32.mrf.mxu1  ;;  %v5477_v46 = vadd.f32 %v5476_v52, %v13854_v56 }
 0x753   :  { %6957 = vst [vmem:[%s14994_s11 + $0x658] sm:$0xff] %v8316_v60  ;;  %8329 = vtanh.f32 %v5666_v48  ;;  %v5668_v6 = vadd.f32 %v5667_v34, %v5475_v27  ;;  %v5480_v42 = vpop.f32.mrf.mxu0  ;;  %5945 = vmatmul.mubr.bf16.gmra.mxu0 %v13199_v4  ;;  %v17013_v4 = vld [vmem:[#allocation116_spill] sm:$0xff] }
 0x754   :  { %v8318_v28 = vpop.eup %8317  ;;  %v5669_v51 = vpop.f32.mrf.mxu1  ;;  %v5481_v5 = vadd.f32 %v5480_v42, %v13847_v47  ;;  %5954 = vmatprep.mubr.bf16.mxu0 %v17006_v1 }
 0x755   :  { %6958 = vst [vmem:[%s14994_s11 + $0x660] sm:$0xff] %v8318_v28  ;;  %8331 = vtanh.f32 %v5668_v6  ;;  %v5670_v15 = vadd.f32 %v5669_v51, %v5477_v46  ;;  %v5482_v31 = vpop.f32.mrf.mxu0  ;;  %6178 = vmatmul.mubr.bf16.gmra.mxu1 %v16979_v19 }
 0x756   :  { %v8320_v40 = vpop.eup %8319  ;;  %v5673_v48 = vpop.f32.mrf.mxu1  ;;  %v5483_v27 = vadd.f32 %v5482_v31, %v13854_v56  ;;  %6187 = vmatprep.mubr.bf16.mxu1 %v16980_v59 }
 0x757   :  { %6964 = vst [vmem:[%s14994_s11 + $0x690] sm:$0xff] %v8320_v40  ;;  %8333 = vtanh.f32 %v5670_v15  ;;  %v5674_v60 = vadd.f32 %v5673_v48, %v5481_v5  ;;  %v5484_v34 = vpop.f32.mrf.mxu0 }
 0x758   :  { %v8322_v52 = vpop.eup %8321  ;;  %v5675_v51 = vpop.f32.mrf.mxu1  ;;  %v5485_v46 = vadd.f32 %v5484_v34, %v13847_v47 }
 0x759   :  { %6965 = vst [vmem:[%s14994_s11 + $0x698] sm:$0xff] %v8322_v52  ;;  %8335 = vtanh.f32 %v5674_v60  ;;  %v5676_v6 = vadd.f32 %v5675_v51, %v5483_v27  ;;  %v5486_v42 = vpop.f32.mrf.mxu0 }
 0x75a   :  { %v8324_v28 = vpop.eup %8323  ;;  %v5677_v40 = vpop.f32.mrf.mxu1  ;;  %v5487_v5 = vadd.f32 %v5486_v42, %v13854_v56 }
 0x75b   :  { %6971 = vst [vmem:[%s14994_s11 + $0x6c8] sm:$0xff] %v8324_v28  ;;  %8337 = vtanh.f32 %v5676_v6  ;;  %v5678_v15 = vadd.f32 %v5677_v40, %v5485_v46  ;;  %v5490_v48 = vpop.f32.mrf.mxu0  ;;  %5955 = vmatmul.mubr.bf16.gmra.mxu0 %v13235_v10 }
 0x75c   :  { %v8326_v31 = vpop.eup %8325  ;;  %v5679_v1 = vpop.f32.mrf.mxu1  ;;  %v5491_v27 = vadd.f32 %v5490_v48, %v13847_v47  ;;  %5964 = vmatprep.mubr.bf16.mxu0 %v13243_v43  ;;  %v17009_v43 = vld [vmem:[#allocation129_spill] sm:$0xff] }
 0x75d   :  { %6972 = vst [vmem:[%s14994_s11 + $0x6d0] sm:$0xff] %v8326_v31  ;;  %8339 = vtanh.f32 %v5678_v15  ;;  %v5680_v60 = vadd.f32 %v5679_v1, %v5487_v5  ;;  %v5492_v34 = vpop.f32.mrf.mxu0  ;;  %6188 = vmatmul.mubr.bf16.gmra.mxu1 %v13398_v49 }
 0x75e   :  { %v8328_v52 = vpop.eup %8327  ;;  %v5683_v51 = vpop.f32.mrf.mxu1  ;;  %v5493_v46 = vadd.f32 %v5492_v34, %v13854_v56  ;;  %6197 = vmatprep.mubr.bf16.mxu1 %v13406_v0 }
 0x75f   :  { %6756 = vst [vmem:[%s14994_s11 + $0x10] sm:$0xff] %v8328_v52  ;;  %8341 = vtanh.f32 %v5680_v60  ;;  %v5684_v6 = vadd.f32 %v5683_v51, %v5491_v27  ;;  %v5494_v42 = vpop.f32.mrf.mxu0 }
 0x760   :  { %v8330_v28 = vpop.eup %8329  ;;  %v5685_v1 = vpop.f32.mrf.mxu1  ;;  %v5495_v40 = vadd.f32 %v5494_v42, %v13847_v47 }
 0x761   :  { %6757 = vst [vmem:[%s14994_s11 + $0x18] sm:$0xff] %v8330_v28  ;;  %8343 = vtanh.f32 %v5684_v6  ;;  %v5686_v5 = vadd.f32 %v5685_v1, %v5493_v46  ;;  %v5496_v31 = vpop.f32.mrf.mxu0  ;;  %v17007_v28 = vld [vmem:[#allocation118_spill] sm:$0xff] }
 0x762   :  { %v8332_v15 = vpop.eup %8331  ;;  %v5687_v48 = vpop.f32.mrf.mxu1  ;;  %v5497_v27 = vadd.f32 %v5496_v31, %v13854_v56  ;;  %v17008_v31 = vld [vmem:[#allocation103_spill] sm:$0xff] }
 0x763   :  { %6763 = vst [vmem:[%s14994_s11 + $0x48] sm:$0xff] %v8332_v15  ;;  %8345 = vtanh.f32 %v5686_v5  ;;  %v5688_v60 = vadd.f32 %v5687_v48, %v5495_v40  ;;  %v5500_v34 = vpop.f32.mrf.mxu0  ;;  %5965 = vmatmul.mubr.bf16.gmra.mxu0 %v13273_v63 }
 0x764   :  { %v8334_v52 = vpop.eup %8333  ;;  %v5689_v51 = vpop.f32.mrf.mxu1  ;;  %v5501_v46 = vadd.f32 %v5500_v34, %v13847_v47  ;;  %5974 = vmatprep.mubr.bf16.mxu0 %v17007_v28 }
 0x765   :  { %6764 = vst [vmem:[%s14994_s11 + $0x50] sm:$0xff] %v8334_v52  ;;  %8347 = vtanh.f32 %v5688_v60  ;;  %v5690_v6 = vadd.f32 %v5689_v51, %v5497_v27  ;;  %v5502_v1 = vpop.f32.mrf.mxu0  ;;  %6198 = vmatmul.mubr.bf16.gmra.mxu1 %v13426_v2 }
 0x766   :  { %v8336_v42 = vpop.eup %8335  ;;  %v5693_v5 = vpop.f32.mrf.mxu1  ;;  %v5503_v40 = vadd.f32 %v5502_v1, %v13854_v56  ;;  %6401 = vmatprep.mubr.bf16.mxu1 %v17008_v31 }
 0x767   :  { %6770 = vst [vmem:[%s14994_s11 + $0x80] sm:$0xff] %v8336_v42  ;;  %8349 = vtanh.f32 %v5690_v6  ;;  %v5694_v15 = vadd.f32 %v5693_v5, %v5501_v46  ;;  %v5504_v60 = vpop.f32.mrf.mxu0 }
 0x768   :  { %v8338_v48 = vpop.eup %8337  ;;  %v5695_v27 = vpop.f32.mrf.mxu1  ;;  %v5505_v52 = vadd.f32 %v5504_v60, %v13847_v47 }
 0x769   :  { %6771 = vst [vmem:[%s14994_s11 + $0x88] sm:$0xff] %v8338_v48  ;;  %8351 = vtanh.f32 %v5694_v15  ;;  %v5696_v34 = vadd.f32 %v5695_v27, %v5503_v40  ;;  %v5506_v28 = vpop.f32.mrf.mxu0  ;;  %v17010_v48 = vld [vmem:[#allocation89_spill] sm:$0xff] }
 0x76a   :  { %v8340_v51 = vpop.eup %8339  ;;  %v5697_v42 = vpop.f32.mrf.mxu1  ;;  %v5507_v46 = vadd.f32 %v5506_v28, %v13854_v56  ;;  %v17011_v28 = vld [vmem:[#allocation72_spill] sm:$0xff] }
 0x76b   :  { %6777 = vst [vmem:[%s14994_s11 + $0xb8] sm:$0xff] %v8340_v51  ;;  %8353 = vtanh.f32 %v5696_v34  ;;  %v5698_v6 = vadd.f32 %v5697_v42, %v5505_v52  ;;  %v5510_v5 = vpop.f32.mrf.mxu0  ;;  %5975 = vmatmul.mubr.bf16.gmra.mxu0 %v17009_v43  ;;  %v17012_v42 = vld [vmem:[#allocation105_spill] sm:$0xff] }
 0x76c   :  { %v8342_v1 = vpop.eup %8341  ;;  %v5699_v63 = vpop.f32.mrf.mxu1  ;;  %v5511_v40 = vadd.f32 %v5510_v5, %v13847_v47  ;;  %5984 = vmatprep.mubr.bf16.mxu0 %v17010_v48 }
 0x76d   :  { %6778 = vst [vmem:[%s14994_s11 + $0xc0] sm:$0xff] %v8342_v1  ;;  %8355 = vtanh.f32 %v5698_v6  ;;  %v5700_v15 = vadd.f32 %v5699_v63, %v5507_v46  ;;  %v5512_v27 = vpop.f32.mrf.mxu0  ;;  %6402 = vmatmul.mubr.bf16.vlgmr.msra.gmra.mxu1 %v17011_v28 }
 0x76e   :  { %v8344_v60 = vpop.eup %8343  ;;  %v5703_v34 = vpop.f32.mrf.mxu1  ;;  %v5513_v52 = vadd.f32 %v5512_v27, %v13854_v56  ;;  %6409 = vmatprep.mubr.bf16.mxu1 %v17012_v42 }
 0x76f   :  { %6784 = vst [vmem:[%s14994_s11 + $0xf0] sm:$0xff] %v8344_v60  ;;  %8357 = vtanh.f32 %v5700_v15  ;;  %v5704_v51 = vadd.f32 %v5703_v34, %v5511_v40  ;;  %v5514_v1 = vpop.f32.mrf.mxu0 }
 0x770   :  { %v8346_v6 = vpop.eup %8345  ;;  %v5705_v63 = vpop.f32.mrf.mxu1  ;;  %v5515_v46 = vadd.f32 %v5514_v1, %v13847_v47 }
 0x771   :  { %6785 = vst [vmem:[%s14994_s11 + $0xf8] sm:$0xff] %v8346_v6  ;;  %8359 = vtanh.f32 %v5704_v51  ;;  %v5706_v5 = vadd.f32 %v5705_v63, %v5513_v52  ;;  %v5516_v43 = vpop.f32.mrf.mxu0  ;;  %v17014_v6 = vld [vmem:[#allocation28_spill] sm:$0xff] }
 0x772   :  { %v8348_v48 = vpop.eup %8347  ;;  %v5707_v60 = vpop.f32.mrf.mxu1  ;;  %v5517_v40 = vadd.f32 %v5516_v43, %v13854_v56  ;;  %v17015_v43 = vld [vmem:[#allocation15_spill] sm:$0xff] }
 0x773   :  { %6791 = vst [vmem:[%s14994_s11 + $0x128] sm:$0xff] %v8348_v48  ;;  %8361 = vtanh.f32 %v5706_v5  ;;  %v5708_v15 = vadd.f32 %v5707_v60, %v5515_v46  ;;  %v5520_v34 = vpop.f32.mrf.mxu0  ;;  %5985 = vmatmul.mubr.bf16.gmra.mxu0 %v17013_v4  ;;  %v17016_v60 = vld [vmem:[#allocation74_spill] sm:$0xff] }
 0x774   :  { %v8350_v27 = vpop.eup %8349  ;;  %v5709_v10 = vpop.f32.mrf.mxu1  ;;  %v5521_v52 = vadd.f32 %v5520_v34, %v13847_v47  ;;  %5994 = vmatprep.mubr.bf16.mxu0 %v17014_v6 }
 0x775   :  { %6792 = vst [vmem:[%s14994_s11 + $0x130] sm:$0xff] %v8350_v27  ;;  %8363 = vtanh.f32 %v5708_v15  ;;  %v5710_v51 = vadd.f32 %v5709_v10, %v5517_v40  ;;  %v5522_v1 = vpop.f32.mrf.mxu0  ;;  %6410 = vmatmul.mubr.bf16.gmra.mxu1 %v17015_v43 }
 0x776   :  { %v8352_v48 = vpop.eup %8351  ;;  %v5713_v63 = vpop.f32.mrf.mxu1  ;;  %v5523_v46 = vadd.f32 %v5522_v1, %v13854_v56  ;;  %6417 = vmatprep.mubr.bf16.mxu1 %v17016_v60 }
 0x777   :  { %6798 = vst [vmem:[%s14994_s11 + $0x160] sm:$0xff] %v8352_v48  ;;  %8365 = vtanh.f32 %v5710_v51  ;;  %v5714_v5 = vadd.f32 %v5713_v63, %v5521_v52  ;;  %v5524_v27 = vpop.f32.mrf.mxu0 }
 0x778   :  { %v8354_v15 = vpop.eup %8353  ;;  %v5715_v10 = vpop.f32.mrf.mxu1  ;;  %v5525_v40 = vadd.f32 %v5524_v27, %v13847_v47 }
 0x779   :  { %6799 = vst [vmem:[%s14994_s11 + $0x168] sm:$0xff] %v8354_v15  ;;  %8367 = vtanh.f32 %v5714_v5  ;;  %v5716_v34 = vadd.f32 %v5715_v10, %v5523_v46  ;;  %v5526_v4 = vpop.f32.mrf.mxu0 }
 0x77a   :  { %v8356_v6 = vpop.eup %8355  ;;  %v5717_v48 = vpop.f32.mrf.mxu1  ;;  %v5527_v52 = vadd.f32 %v5526_v4, %v13854_v56  ;;  %v17017_v4 = vld [vmem:[#allocation125_spill] sm:$0xff] }
 0x77b   :  { %6805 = vst [vmem:[%s14994_s11 + $0x198] sm:$0xff] %v8356_v6  ;;  %8369 = vtanh.f32 %v5716_v34  ;;  %v5718_v51 = vadd.f32 %v5717_v48, %v5525_v40  ;;  %v5530_v63 = vpop.f32.mrf.mxu0  ;;  %5995 = vmatmul.mubr.bf16.gmra.mxu0 %v13382_v38  ;;  %v17018_v34 = vld [vmem:[#allocation110_spill] sm:$0xff] }
 0x77c   :  { %v8358_v1 = vpop.eup %8357  ;;  %v5719_v14 = vpop.f32.mrf.mxu1  ;;  %v5531_v46 = vadd.f32 %v5530_v63, %v13847_v47  ;;  %6004 = vmatprep.mubr.bf16.mxu0 %v13390_v12 }
 0x77d   :  { %6806 = vst [vmem:[%s14994_s11 + $0x1a0] sm:$0xff] %v8358_v1  ;;  %8371 = vtanh.f32 %v5718_v51  ;;  %v5720_v5 = vadd.f32 %v5719_v14, %v5527_v52  ;;  %v5532_v15 = vpop.f32.mrf.mxu0  ;;  %6418 = vmatmul.mubr.bf16.gmra.mxu1 %v17017_v4 }
 0x77e   :  { %v8360_v6 = vpop.eup %8359  ;;  %v5723_v27 = vpop.f32.mrf.mxu1  ;;  %v5533_v10 = vadd.f32 %v5532_v15, %v13854_v56  ;;  %6425 = vmatprep.mubr.bf16.mxu1 %v17018_v34 }
 0x77f   :  { %6812 = vst [vmem:[%s14994_s11 + $0x1d0] sm:$0xff] %v8360_v6  ;;  %8373 = vtanh.f32 %v5720_v5  ;;  %v5724_v40 = vadd.f32 %v5723_v27, %v5531_v46  ;;  %v5534_v51 = vpop.f32.mrf.mxu0 }
 0x780   :  { %v8362_v48 = vpop.eup %8361  ;;  %v5725_v14 = vpop.f32.mrf.mxu1  ;;  %v5535_v52 = vadd.f32 %v5534_v51, %v13847_v47 }
 0x781   :  { %6813 = vst [vmem:[%s14994_s11 + $0x1d8] sm:$0xff] %v8362_v48  ;;  %8375 = vtanh.f32 %v5724_v40  ;;  %v5726_v1 = vadd.f32 %v5725_v14, %v5533_v10  ;;  %v5536_v12 = vpop.f32.mrf.mxu0 }
 0x782   :  { %v8364_v63 = vpop.eup %8363  ;;  %v5727_v6 = vpop.f32.mrf.mxu1  ;;  %v5537_v46 = vadd.f32 %v5536_v12, %v13854_v56  ;;  %v17019_v12 = vld [vmem:[#allocation149_spill] sm:$0xff] }
 0x783   :  { %6819 = vst [vmem:[%s14994_s11 + $0x208] sm:$0xff] %v8364_v63  ;;  %8377 = vtanh.f32 %v5726_v1  ;;  %v5728_v5 = vadd.f32 %v5727_v6, %v5535_v52  ;;  %v5540_v27 = vpop.f32.mrf.mxu0  ;;  %6005 = vmatmul.mubr.bf16.gmra.mxu0 %v13418_v16 }
 0x784   :  { %v8366_v15 = vpop.eup %8365  ;;  %v5729_v38 = vpop.f32.mrf.mxu1  ;;  %v5541_v10 = vadd.f32 %v5540_v27, %v13847_v47  ;;  %6047 = vmatprep.mubr.bf16.mxu0 %v17008_v31 }
 0x785   :  { %6820 = vst [vmem:[%s14994_s11 + $0x210] sm:$0xff] %v8366_v15  ;;  %8379 = vtanh.f32 %v5728_v5  ;;  %v5730_v40 = vadd.f32 %v5729_v38, %v5537_v46  ;;  %v5542_v51 = vpop.f32.mrf.mxu0  ;;  %6426 = vmatmul.mubr.bf16.gmra.mxu1 %v17019_v12  ;;  %v8180_v5 = vld [vmem:[#allocation4 + $0x1a0] ss:$28 sps:$4 sm:$0xff]  }
 0x786   :  { %v8368_v48 = vpop.eup %8367  ;;  %v5733_v14 = vpop.f32.mrf.mxu1  ;;  %v5543_v52 = vadd.f32 %v5542_v51, %v13854_v56  ;;  %6433 = vmatprep.mubr.bf16.mxu1 %v16967_v32 }
 0x787   :  { %6826 = vst [vmem:[%s14994_s11 + $0x240] sm:$0xff] %v8368_v48  ;;  %8381 = vtanh.f32 %v5730_v40  ;;  %v5734_v1 = vadd.f32 %v5733_v14, %v5541_v10  ;;  %v5544_v6 = vpop.f32.mrf.mxu0  ;;  %v8181_v48 = vld [vmem:[#allocation4 + $0x328] ss:$28 sps:$4 sm:$0xff]  }
 0x788   :  { %v8370_v63 = vpop.eup %8369  ;;  %v5735_v38 = vpop.f32.mrf.mxu1  ;;  %v5545_v31 = vadd.f32 %v5544_v6, %v13847_v47  ;;  %v8182_v6 = vld [vmem:[#allocation4 + $0x168] ss:$28 sps:$4 sm:$0xff]  }
 0x789   :  { %6827 = vst [vmem:[%s14994_s11 + $0x248] sm:$0xff] %v8370_v63  ;;  %8383 = vtanh.f32 %v5734_v1  ;;  %v5736_v46 = vadd.f32 %v5735_v38, %v5543_v52  ;;  %v5546_v27 = vpop.f32.mrf.mxu0 }
 0x78a   :  { %v8372_v15 = vpop.eup %8371  ;;  %v5737_v40 = vpop.f32.mrf.mxu1  ;;  %v5547_v32 = vadd.f32 %v5546_v27, %v13854_v56 }
 0x78b   :  { %6833 = vst [vmem:[%s14994_s11 + $0x278] sm:$0xff] %v8372_v15  ;;  %8385 = vtanh.f32 %v5736_v46  ;;  %v5738_v10 = vadd.f32 %v5737_v40, %v5545_v31  ;;  %v5550_v14 = vpop.f32.mrf.mxu0  ;;  %6048 = vmatmul.mubr.bf16.vlgmr.msra.gmra.mxu0 %v17011_v28  ;;  %v8183_v15 = vld [vmem:[#allocation4 + $0x2f0] ss:$28 sps:$4 sm:$0xff]  }
 0x78c   :  { %v8374_v51 = vpop.eup %8373  ;;  %v5739_v63 = vpop.f32.mrf.mxu1  ;;  %v5551_v52 = vadd.f32 %v5550_v14, %v13847_v47  ;;  %7415 = vmatpush3.bf16.msra.mxu0 %v8180_v5  ;;  %6057 = vmatprep.mubr.bf16.mxu0 %v17012_v42 }
 0x78d   :  { %6834 = vst [vmem:[%s14994_s11 + $0x280] sm:$0xff] %v8374_v51  ;;  %8387 = vtanh.f32 %v5738_v10  ;;  %v5740_v1 = vadd.f32 %v5739_v63, %v5547_v32  ;;  %v5552_v46 = vpop.f32.mrf.mxu0  ;;  %7416 = vmatprep.subr.bf16.mxu0 %v8181_v48  ;;  %6434 = vmatmul.mubr.bf16.gmra.mxu1 %v13035_v8  ;;  %v8184_v32 = vld [vmem:[#allocation4 + $0x130] ss:$28 sps:$4 sm:$0xff]   ;;  %v8187_v63 = vld [vmem:[#allocation4 + $0x2b8] ss:$28 sps:$4 sm:$0xff]  }
 0x78e   :  { %v8376_v38 = vpop.eup %8375  ;;  %v5743_v31 = vpop.f32.mrf.mxu1  ;;  %v5553_v28 = vadd.f32 %v5552_v46, %v13854_v56  ;;  %6441 = vmatprep.mubr.bf16.mxu1 %v13043_v25 }
 0x78f   :  { %6840 = vst [vmem:[%s14994_s11 + $0x2b0] sm:$0xff] %v8376_v38  ;;  %8389 = vtanh.f32 %v5740_v1  ;;  %v5744_v27 = vadd.f32 %v5743_v31, %v5551_v52  ;;  %v5554_v40 = vpop.f32.mrf.mxu0 }
 0x790   :  { %v8378_v5 = vpop.eup %8377  ;;  %v5745_v42 = vpop.f32.mrf.mxu1  ;;  %v5555_v8 = vadd.f32 %v5554_v40, %v13847_v47  ;;  %7417 = vmatpush3.bf16.msra.mxu0 %v8182_v6  ;;  %v8189_v40 = vld [vmem:[#allocation4 + $0x280] ss:$28 sps:$4 sm:$0xff]  }
 0x791   :  { %6841 = vst [vmem:[%s14994_s11 + $0x2b8] sm:$0xff] %v8378_v5  ;;  %8391 = vtanh.f32 %v5744_v27  ;;  %v5746_v48 = vadd.f32 %v5745_v42, %v5553_v28  ;;  %v5556_v51 = vpop.f32.mrf.mxu0  ;;  %7418 = vmatprep.subr.bf16.mxu0 %v8183_v15  ;;  %v8188_v15 = vld [vmem:[#allocation4 + $0xf8] ss:$28 sps:$4 sm:$0xff]  }
 0x792   :  { %v8380_v10 = vpop.eup %8379  ;;  %v5747_v14 = vpop.f32.mrf.mxu1  ;;  %v5557_v25 = vadd.f32 %v5556_v51, %v13854_v56 }
 0x793   :  { %6847 = vst [vmem:[%s14994_s11 + $0x2e8] sm:$0xff] %v8380_v10  ;;  %8393 = vtanh.f32 %v5746_v48  ;;  %v5748_v52 = vadd.f32 %v5747_v14, %v5555_v8  ;;  %v5560_v38 = vpop.f32.mrf.mxu0  ;;  %6058 = vmatmul.mubr.bf16.gmra.mxu0 %v17015_v43  ;;  %v8190_v10 = vld [vmem:[#allocation4 + $0xc0] ss:$28 sps:$4 sm:$0xff]  }
 0x794   :  { %v8382_v1 = vpop.eup %8381  ;;  %v5749_v46 = vpop.f32.mrf.mxu1  ;;  %v5561_v6 = vadd.f32 %v5560_v38, %v13847_v47  ;;  %7419 = vmatpush3.bf16.msra.mxu0 %v8184_v32  ;;  %6067 = vmatprep.mubr.bf16.mxu0 %v17016_v60 }
 0x795   :  { %6848 = vst [vmem:[%s14994_s11 + $0x2f0] sm:$0xff] %v8382_v1  ;;  %8395 = vtanh.f32 %v5748_v52  ;;  %v5750_v31 = vadd.f32 %v5749_v46, %v5557_v25  ;;  %v5562_v27 = vpop.f32.mrf.mxu0  ;;  %7420 = vmatprep.subr.bf16.mxu0 %v8187_v63  ;;  %6442 = vmatmul.mubr.bf16.gmra.mxu1 %v13071_v30  ;;  %v8191_v25 = vld [vmem:[#allocation4 + $0x248] ss:$28 sps:$4 sm:$0xff]  }
 0x796   :  { %v8384_v28 = vpop.eup %8383  ;;  %v5753_v5 = vpop.f32.mrf.mxu1  ;;  %v5563_v43 = vadd.f32 %v5562_v27, %v13854_v56  ;;  %6449 = vmatprep.mubr.bf16.mxu1 %v13079_v39 }
 0x797   :  { %6854 = vst [vmem:[%s14994_s11 + $0x320] sm:$0xff] %v8384_v28  ;;  %8397 = vtanh.f32 %v5750_v31  ;;  %v5754_v42 = vadd.f32 %v5753_v5, %v5561_v6  ;;  %v5564_v48 = vpop.f32.mrf.mxu0 }
 0x798   :  { %v8386_v8 = vpop.eup %8385  ;;  %v5755_v60 = vpop.f32.mrf.mxu1  ;;  %v5565_v30 = vadd.f32 %v5564_v48, %v13847_v47  ;;  %7421 = vmatpush3.bf16.msra.mxu0 %v8188_v15  ;;  %v8192_v15 = vld [vmem:[#allocation4 + $0x88] ss:$28 sps:$4 sm:$0xff]  }
 0x799   :  { %6855 = vst [vmem:[%s14994_s11 + $0x328] sm:$0xff] %v8386_v8  ;;  %8399 = vtanh.f32 %v5754_v42  ;;  %v5756_v32 = vadd.f32 %v5755_v60, %v5563_v43  ;;  %v5566_v14 = vpop.f32.mrf.mxu0  ;;  %7422 = vmatprep.subr.bf16.mxu0 %v8189_v40  ;;  %v8195_v40 = vld [vmem:[#allocation4 + $0x210] ss:$28 sps:$4 sm:$0xff]  }
 0x79a   :  { %v8388_v51 = vpop.eup %8387  ;;  %v5757_v63 = vpop.f32.mrf.mxu1  ;;  %v5567_v39 = vadd.f32 %v5566_v14, %v13854_v56  ;;  %v8196_v60 = vld [vmem:[#allocation4 + $0x50] ss:$28 sps:$4 sm:$0xff]  }
 0x79b   :  { %6861 = vst [vmem:[%s14994_s11 + $0x358] sm:$0xff] %v8388_v51  ;;  %8401 = vtanh.f32 %v5756_v32  ;;  %v5758_v52 = vadd.f32 %v5757_v63, %v5565_v30  ;;  %v5570_v38 = vpop.f32.mrf.mxu0  ;;  %6068 = vmatmul.mubr.bf16.gmra.mxu0 %v17017_v4  ;;  %v8197_v51 = vld [vmem:[#allocation4 + $0x1d8] ss:$28 sps:$4 sm:$0xff]  }
 0x79c   :  { %v8390_v1 = vpop.eup %8389  ;;  %v5759_v46 = vpop.f32.mrf.mxu1  ;;  %v5571_v6 = vadd.f32 %v5570_v38, %v13847_v47  ;;  %7423 = vmatpush3.bf16.msra.mxu0 %v8190_v10  ;;  %6077 = vmatprep.mubr.bf16.mxu0 %v17018_v34  ;;  %v8198_v38 = vld [vmem:[#allocation4 + $0x18] ss:$28 sps:$4 sm:$0xff]  }
 0x79d   :  { %6862 = vst [vmem:[%s14994_s11 + $0x360] sm:$0xff] %v8390_v1  ;;  %8403 = vtanh.f32 %v5758_v52  ;;  %v5760_v31 = vadd.f32 %v5759_v46, %v5567_v39  ;;  %v5572_v27 = vpop.f32.mrf.mxu0  ;;  %7424 = vmatprep.subr.bf16.mxu0 %v8191_v25  ;;  %6450 = vmatmul.mubr.bf16.gmra.mxu1 %v13107_v26  ;;  %v17020_v46 = vld [vmem:[#allocation102_spill] sm:$0xff] }
 0x79e   :  { %v8392_v28 = vpop.eup %8391  ;;  %v5763_v5 = vpop.f32.mrf.mxu1  ;;  %v5573_v4 = vadd.f32 %v5572_v27, %v13854_v56  ;;  %6457 = vmatprep.mubr.bf16.mxu1 %v13115_v20 }
 0x79f   :  { %6868 = vst [vmem:[%s14994_s11 + $0x390] sm:$0xff] %v8392_v28  ;;  %8405 = vtanh.f32 %v5760_v31  ;;  %v5764_v43 = vadd.f32 %v5763_v5, %v5571_v6  ;;  %v5574_v8 = vpop.f32.mrf.mxu0 }
 0x7a0   :  { %v8394_v42 = vpop.eup %8393  ;;  %v5765_v34 = vpop.f32.mrf.mxu1  ;;  %v5575_v26 = vadd.f32 %v5574_v8, %v13847_v47  ;;  %7425 = vmatpush3.bf16.msra.mxu0 %v8192_v15 }
 0x7a1   :  { %6869 = vst [vmem:[%s14994_s11 + $0x398] sm:$0xff] %v8394_v42  ;;  %8407 = vtanh.f32 %v5764_v43  ;;  %v5766_v48 = vadd.f32 %v5765_v34, %v5573_v4  ;;  %v5576_v32 = vpop.f32.mrf.mxu0  ;;  %7426 = vmatprep.subr.bf16.mxu0 %v8195_v40 }
 0x7a2   :  { %v8396_v30 = vpop.eup %8395  ;;  %v5767_v10 = vpop.f32.mrf.mxu1  ;;  %v5577_v20 = vadd.f32 %v5576_v32, %v13854_v56 }
 0x7a3   :  { %6875 = vst [vmem:[%s14994_s11 + $0x3c8] sm:$0xff] %v8396_v30  ;;  %8409 = vtanh.f32 %v5766_v48  ;;  %v5768_v14 = vadd.f32 %v5767_v10, %v5575_v26  ;;  %v5580_v25 = vpop.f32.mrf.mxu0  ;;  %6078 = vmatmul.mubr.bf16.gmra.mxu0 %v17019_v12 }
 0x7a4   :  { %v8398_v63 = vpop.eup %8397  ;;  %v5769_v39 = vpop.f32.mrf.mxu1  ;;  %v5581_v52 = vadd.f32 %v5580_v25, %v13847_v47  ;;  %7427 = vmatpush3.bf16.msra.mxu0 %v8196_v60  ;;  %6240 = vmatprep.mubr.bf16.mxu0 %v17020_v46 }
 0x7a5   :  { %6876 = vst [vmem:[%s14994_s11 + $0x3d0] sm:$0xff] %v8398_v63  ;;  %8411 = vtanh.f32 %v5768_v14  ;;  %v5770_v1 = vadd.f32 %v5769_v39, %v5577_v20  ;;  %v5582_v31 = vpop.f32.mrf.mxu0  ;;  %7428 = vmatprep.subr.bf16.mxu0 %v8197_v51  ;;  %6458 = vmatmul.mubr.bf16.gmra.mxu1 %v13143_v50 }
 0x7a6   :  { %v8400_v6 = vpop.eup %8399  ;;  %v5773_v15 = vpop.f32.mrf.mxu1  ;;  %v5583_v12 = vadd.f32 %v5582_v31, %v13854_v56  ;;  %6465 = vmatprep.mubr.bf16.mxu1 %v13151_v3 }
 0x7a7   :  { %6882 = vst [vmem:[%s14994_s11 + $0x400] sm:$0xff] %v8400_v6  ;;  %8413 = vtanh.f32 %v5770_v1  ;;  %v5774_v28 = vadd.f32 %v5773_v15, %v5581_v52  ;;  %v5584_v5 = vpop.f32.mrf.mxu0 }
 0x7a8   :  { %v8402_v27 = vpop.eup %8401  ;;  %v5775_v40 = vpop.f32.mrf.mxu1  ;;  %v5585_v50 = vadd.f32 %v5584_v5, %v13847_v47  ;;  %7429 = vmatpush3.bf16.msra.mxu0 %v8198_v38 }
 0x7a9   :  { %6883 = vst [vmem:[%s14994_s11 + $0x408] sm:$0xff] %v8402_v27  ;;  %8415 = vtanh.f32 %v5774_v28  ;;  %v5776_v4 = vadd.f32 %v5775_v40, %v5583_v12  ;;  %v5586_v42 = vpop.f32.mrf.mxu0 }
 0x7aa   :  { %v8404_v43 = vpop.eup %8403  ;;  %v5777_v8 = vpop.f32.mrf.mxu1  ;;  %v5587_v3 = vadd.f32 %v5586_v42, %v13854_v56 }
 0x7ab   :  { %6889 = vst [vmem:[%s14994_s11 + $0x438] sm:$0xff] %v8404_v43  ;;  %8417 = vtanh.f32 %v5776_v4  ;;  %v5778_v34 = vadd.f32 %v5777_v8, %v5585_v50  ;;  %v5590_v48 = vpop.f32.mrf.mxu0  ;;  %6241 = vmatmul.mubr.bf16.vlgmr.msra.gmra.mxu0 %v12875_v18 }
 0x7ac   :  { %v8406_v26 = vpop.eup %8405  ;;  %v5779_v60 = vpop.f32.mrf.mxu1  ;;  %v5591_v30 = vadd.f32 %v5590_v48, %v13847_v47  ;;  %6248 = vmatprep.mubr.bf16.mxu0 %v12883_v9 }
 0x7ad   :  { %6890 = vst [vmem:[%s14994_s11 + $0x440] sm:$0xff] %v8406_v26  ;;  %8419 = vtanh.f32 %v5778_v34  ;;  %v5780_v32 = vadd.f32 %v5779_v60, %v5587_v3  ;;  %v5592_v51 = vpop.f32.mrf.mxu0  ;;  %6466 = vmatmul.mubr.bf16.gmra.mxu1 %v13179_v22 }
 0x7ae   :  { %v8408_v10 = vpop.eup %8407  ;;  %v5783_v20 = vpop.f32.mrf.mxu1  ;;  %v5593_v18 = vadd.f32 %v5592_v51, %v13854_v56  ;;  %6473 = vmatprep.mubr.bf16.mxu1 %v13187_v53 }
 0x7af   :  { %6896 = vst [vmem:[%s14994_s11 + $0x470] sm:$0xff] %v8408_v10  ;;  %8421 = vtanh.f32 %v5780_v32  ;;  %v5784_v14 = vadd.f32 %v5783_v20, %v5591_v30  ;;  %v5594_v25 = vpop.f32.mrf.mxu0 }
 0x7b0   :  { %v8410_v63 = vpop.eup %8409  ;;  %v5785_v39 = vpop.f32.mrf.mxu1  ;;  %v5595_v9 = vadd.f32 %v5594_v25, %v13847_v47 }
 0x7b1   :  { %6897 = vst [vmem:[%s14994_s11 + $0x478] sm:$0xff] %v8410_v63  ;;  %8423 = vtanh.f32 %v5784_v14  ;;  %v5786_v22 = vadd.f32 %v5785_v39, %v5593_v18  ;;  %v5596_v1 = vpop.f32.mrf.mxu0 }
 0x7b2   :  { %v8412_v52 = vpop.eup %8411  ;;  %v5787_v38 = vpop.f32.mrf.mxu1  ;;  %v5597_v53 = vadd.f32 %v5596_v1, %v13854_v56 }
 0x7b3   :  { %6903 = vst [vmem:[%s14994_s11 + $0x4a8] sm:$0xff] %v8412_v52  ;;  %8425 = vtanh.f32 %v5786_v22  ;;  %v5788_v46 = vadd.f32 %v5787_v38, %v5595_v9  ;;  %v5600_v31 = vpop.f32.mrf.mxu0  ;;  %6249 = vmatmul.mubr.bf16.gmra.mxu0 %v12911_v17 }
 0x7b4   :  { %v8414_v6 = vpop.eup %8413  ;;  %v5789_v15 = vpop.f32.mrf.mxu1  ;;  %v5601_v12 = vadd.f32 %v5600_v31, %v13847_v47  ;;  %6256 = vmatprep.mubr.bf16.mxu0 %v16981_v55 }
 0x7b5   :  { %6904 = vst [vmem:[%s14994_s11 + $0x4b0] sm:$0xff] %v8414_v6  ;;  %8427 = vtanh.f32 %v5788_v46  ;;  %v5790_v28 = vadd.f32 %v5789_v15, %v5597_v53  ;;  %v5602_v5 = vpop.f32.mrf.mxu0  ;;  %6474 = vmatmul.mubr.bf16.gmra.mxu1 %v13215_v7 }
 0x7b6   :  { %v8416_v27 = vpop.eup %8415  ;;  %v5793_v40 = vpop.f32.mrf.mxu1  ;;  %v5603_v17 = vadd.f32 %v5602_v5, %v13854_v56  ;;  %6481 = vmatprep.mubr.bf16.mxu1 %v13223_v23 }
 0x7b7   :  { %6910 = vst [vmem:[%s14994_s11 + $0x4e0] sm:$0xff] %v8416_v27  ;;  %8429 = vtanh.f32 %v5790_v28  ;;  %v5794_v50 = vadd.f32 %v5793_v40, %v5601_v12  ;;  %v5604_v43 = vpop.f32.mrf.mxu0 }
 0x7b8   :  { %v8418_v4 = vpop.eup %8417  ;;  %v5795_v42 = vpop.f32.mrf.mxu1  ;;  %v5605_v7 = vadd.f32 %v5604_v43, %v13847_v47 }
 0x7b9   :  { %6911 = vst [vmem:[%s14994_s11 + $0x4e8] sm:$0xff] %v8418_v4  ;;  %8431 = vtanh.f32 %v5794_v50  ;;  %v5796_v55 = vadd.f32 %v5795_v42, %v5603_v17  ;;  %v5606_v3 = vpop.f32.mrf.mxu0 }
 0x7ba   :  { %v8420_v8 = vpop.eup %8419  ;;  %v5797_v34 = vpop.f32.mrf.mxu1  ;;  %v5607_v23 = vadd.f32 %v5606_v3, %v13854_v56 }
 0x7bb   :  { %6917 = vst [vmem:[%s14994_s11 + $0x518] sm:$0xff] %v8420_v8  ;;  %8433 = vtanh.f32 %v5796_v55  ;;  %v5798_v26 = vadd.f32 %v5797_v34, %v5605_v7  ;;  %v5610_v60 = vpop.f32.mrf.mxu0  ;;  %6257 = vmatmul.mubr.bf16.gmra.mxu0 %v16985_v61 }
 0x7bc   :  { %v8422_v48 = vpop.eup %8421  ;;  %v5799_v30 = vpop.f32.mrf.mxu1  ;;  %v5611_v32 = vadd.f32 %v5610_v60, %v13847_v47  ;;  %6264 = vmatprep.mubr.bf16.mxu0 %v16986_v29 }
 0x7bd   :  { %6918 = vst [vmem:[%s14994_s11 + $0x520] sm:$0xff] %v8422_v48  ;;  %8435 = vtanh.f32 %v5798_v26  ;;  %v5800_v10 = vadd.f32 %v5799_v30, %v5607_v23  ;;  %v5612_v20 = vpop.f32.mrf.mxu0  ;;  %6482 = vmatmul.mubr.bf16.gmra.mxu1 %v13251_v54 }
 0x7be   :  { %v8424_v51 = vpop.eup %8423  ;;  %v5803_v18 = vpop.f32.mrf.mxu1  ;;  %v5613_v61 = vadd.f32 %v5612_v20, %v13854_v56  ;;  %6489 = vmatprep.mubr.bf16.mxu1 %v13259_v44 }
 0x7bf   :  { %6924 = vst [vmem:[%s14994_s11 + $0x550] sm:$0xff] %v8424_v51  ;;  %8437 = vtanh.f32 %v5800_v10  ;;  %v5804_v14 = vadd.f32 %v5803_v18, %v5611_v32  ;;  %v5614_v25 = vpop.f32.mrf.mxu0 }
 0x7c0   :  { %v8426_v63 = vpop.eup %8425  ;;  %v5805_v39 = vpop.f32.mrf.mxu1  ;;  %v5615_v54 = vadd.f32 %v5614_v25, %v13847_v47 }
 0x7c1   :  { %6925 = vst [vmem:[%s14994_s11 + $0x558] sm:$0xff] %v8426_v63  ;;  %8439 = vtanh.f32 %v5804_v14  ;;  %v5806_v29 = vadd.f32 %v5805_v39, %v5613_v61  ;;  %v5616_v22 = vpop.f32.mrf.mxu0 }
 0x7c2   :  { %v8428_v9 = vpop.eup %8427  ;;  %v5807_v52 = vpop.f32.mrf.mxu1  ;;  %v5617_v44 = vadd.f32 %v5616_v22, %v13854_v56 }
 0x7c3   :  { %6931 = vst [vmem:[%s14994_s11 + $0x588] sm:$0xff] %v8428_v9  ;;  %8441 = vtanh.f32 %v5806_v29  ;;  %v5808_v1 = vadd.f32 %v5807_v52, %v5615_v54  ;;  %v5620_v53 = vpop.f32.mrf.mxu0  ;;  %6265 = vmatmul.mubr.bf16.gmra.mxu0 %v16989_v33  ;;  %v17021_v52 = vld [vmem:[#allocation114_spill] sm:$0xff] }
 0x7c4   :  { %v8430_v38 = vpop.eup %8429  ;;  %v5809_v46 = vpop.f32.mrf.mxu1  ;;  %v5621_v6 = vadd.f32 %v5620_v53, %v13847_v47  ;;  %6272 = vmatprep.mubr.bf16.mxu0 %v16990_v35 }
 0x7c5   :  { %6932 = vst [vmem:[%s14994_s11 + $0x590] sm:$0xff] %v8430_v38  ;;  %8443 = vtanh.f32 %v5808_v1  ;;  %v5810_v31 = vadd.f32 %v5809_v46, %v5617_v44  ;;  %v5622_v12 = vpop.f32.mrf.mxu0  ;;  %6490 = vmatmul.mubr.bf16.gmra.mxu1 %v13290_v58 }
 0x7c6   :  { %v8432_v15 = vpop.eup %8431  ;;  %v5813_v28 = vpop.f32.mrf.mxu1  ;;  %v5623_v33 = vadd.f32 %v5622_v12, %v13854_v56  ;;  %6497 = vmatprep.mubr.bf16.mxu1 %v13298_v41  ;;  %v17023_v12 = vld [vmem:[#allocation113_spill] sm:$0xff] }
 0x7c7   :  { %6938 = vst [vmem:[%s14994_s11 + $0x5c0] sm:$0xff] %v8432_v15  ;;  %8445 = vtanh.f32 %v5810_v31  ;;  %v5814_v27 = vadd.f32 %v5813_v28, %v5621_v6  ;;  %v5624_v40 = vpop.f32.mrf.mxu0  ;;  %v14285_v31 = vld [vmem:[%s14993_s10] sm:$0xff] }
 0x7c8   :  { %v8434_v5 = vpop.eup %8433  ;;  %v5815_v17 = vpop.f32.mrf.mxu1  ;;  %v5625_v58 = vadd.f32 %v5624_v40, %v13847_v47 }
 0x7c9   :  { %6939 = vst [vmem:[%s14994_s11 + $0x5c8] sm:$0xff] %v8434_v5  ;;  %8447 = vtanh.f32 %v5814_v27  ;;  %v5816_v35 = vadd.f32 %v5815_v17, %v5623_v33  ;;  %v5626_v4 = vpop.f32.mrf.mxu0  ;;  %v17024_v5 = vld [vmem:[#allocation64_spill] sm:$0xff] }
 0x7ca   :  { %v8436_v50 = vpop.eup %8435  ;;  %v5817_v43 = vpop.f32.mrf.mxu1  ;;  %v5627_v41 = vadd.f32 %v5626_v4, %v13854_v56 }
 0x7cb   :  { %6945 = vst [vmem:[%s14994_s11 + $0x5f8] sm:$0xff] %v8436_v50  ;;  %8449 = vtanh.f32 %v5816_v35  ;;  %v5818_v42 = vadd.f32 %v5817_v43, %v5625_v58  ;;  %v14176_v8 = vpop.f32.mrf.mxu0  ;;  %6273 = vmatmul.mubr.bf16.gmra.mxu0 %v16992_v11 }
 0x7cc   :  { %v8438_v7 = vpop.eup %8437  ;;  %v5819_v55 = vpop.f32.mrf.mxu1  ;;  %6280 = vmatprep.mubr.bf16.mxu0 %v16993_v13 }
 0x7cd   :  { %6946 = vst [vmem:[%s14994_s11 + $0x600] sm:$0xff] %v8438_v7  ;;  %8451 = vtanh.f32 %v5818_v42  ;;  %v5820_v47 = vadd.f32 %v5819_v55, %v5627_v41  ;;  %v14183_v34 = vpop.f32.mrf.mxu0  ;;  %6498 = vmatmul.mubr.bf16.gmra.mxu1 %v16975_v24 }
 0x7ce   :  { %v8440_v3 = vpop.eup %8439  ;;  %v14185_v23 = vpop.f32.mrf.mxu1  ;;  %6505 = vmatprep.mubr.bf16.mxu1 %v16976_v57 }
 0x7cf   :  { %6952 = vst [vmem:[%s14994_s11 + $0x630] sm:$0xff] %v8440_v3  ;;  %8453 = vtanh.f32 %v5820_v47  ;;  %v14192_v56 = vpop.f32.mrf.mxu0 }
 0x7d0   :  { %v8442_v11 = vpop.eup %8441  ;;  %v14194_v26 = vpop.f32.mrf.mxu1 }
 0x7d1   :  { %6953 = vst [vmem:[%s14994_s11 + $0x638] sm:$0xff] %v8442_v11  ;;  %v14199_v48 = vpop.f32.mrf.mxu0  ;;  %v17025_v11 = vld [vmem:[#allocation115_spill] sm:$0xff] }
 0x7d2   :  { %v8444_v13 = vpop.eup %8443  ;;  %v14201_v24 = vpop.f32.mrf.mxu1 }
 0x7d3   :  { %6959 = vst [vmem:[%s14994_s11 + $0x668] sm:$0xff] %v8444_v13  ;;  %v14206_v57 = vpop.f32.mrf.mxu0  ;;  %6281 = vmatmul.mubr.bf16.gmra.mxu0 %v16998_v62 }
 0x7d4   :  { %v8446_v60 = vpop.eup %8445  ;;  %v14209_v30 = vpop.f32.mrf.mxu1  ;;  %6288 = vmatprep.mubr.bf16.mxu0 %v13063_v45 }
 0x7d5   :  { %6960 = vst [vmem:[%s14994_s11 + $0x670] sm:$0xff] %v8446_v60  ;;  %v14215_v10 = vpop.f32.mrf.mxu0  ;;  %6506 = vmatmul.mubr.bf16.gmra.mxu1 %v16979_v19 }
 0x7d6   :  { %v8448_v32 = vpop.eup %8447  ;;  %v14217_v51 = vpop.f32.mrf.mxu1  ;;  %6513 = vmatprep.mubr.bf16.mxu1 %v16980_v59 }
 0x7d7   :  { %6966 = vst [vmem:[%s14994_s11 + $0x6a0] sm:$0xff] %v8448_v32  ;;  %v14224_v20 = vpop.f32.mrf.mxu0  ;;  %v17026_v32 = vld [vmem:[#allocation40_spill] sm:$0xff] }
 0x7d8   :  { %v8450_v62 = vpop.eup %8449  ;;  %v14226_v18 = vpop.f32.mrf.mxu1 }
 0x7d9   :  { %6967 = vst [vmem:[%s14994_s11 + $0x6a8] sm:$0xff] %v8450_v62  ;;  %v14231_v61 = vpop.f32.mrf.mxu0 }
 0x7da   :  { %v8452_v45 = vpop.eup %8451  ;;  %v14233_v14 = vpop.f32.mrf.mxu1 }
 0x7db   :  { %6973 = vst [vmem:[%s14994_s11 + $0x6d8] sm:$0xff] %v8452_v45  ;;  %v14238_v59 = vpop.f32.mrf.mxu0  ;;  %6289 = vmatmul.mubr.bf16.gmra.mxu0 %v13091_v36 }
 0x7dc   :  { %v8454_v19 = vpop.eup %8453  ;;  %v14241_v63 = vpop.f32.mrf.mxu1  ;;  %6296 = vmatprep.mubr.bf16.mxu0 %v16999_v37 }
 0x7dd   :  { %6974 = vst [vmem:[%s14994_s11 + $0x6e0] sm:$0xff] %v8454_v19  ;;  %v14247_v25 = vpop.f32.mrf.mxu0  ;;  %6514 = vmatmul.mubr.bf16.gmra.mxu1 %v13398_v49 }
 0x7de   :  { %v14249_v39 = vpop.f32.mrf.mxu1  ;;  %6521 = vmatprep.mubr.bf16.mxu1 %v13406_v0  ;;  %v17022_v0 = vld [vmem:[#allocation42_spill] sm:$0xff] }
 0x7df   :  { %v14253_v54 = vpop.f32.mrf.mxu0  ;;  %v3881_v1 = vsub.s32 4, %v17022_v0  ;;  %v3885_v46 = vsub.s32 5, %v17022_v0 }
 0x7e0   :  { %v14255_v29 = vpop.f32.mrf.mxu1 }
 0x7e1   :  { %v14257_v36 = vpop.f32.mrf.mxu0  ;;  %v14288_v15 = vrot.slane %v14285_v31, %v3881_v1  ;;  %v14294_v33 = vrot.slane %v14285_v31, %v3885_v46 }
 0x7e2   :  { %v14259_v9 = vpop.f32.mrf.mxu1 }
 0x7e3   :  { %v14261_v22 = vpop.f32.mrf.mxu0  ;;  %6297 = vmatmul.mubr.bf16.gmra.mxu0 %v17000_v21 }
 0x7e4   :  { %v14264_v37 = vpop.f32.mrf.mxu1  ;;  %6304 = vmatprep.mubr.bf16.mxu0 %v17021_v52 }
 0x7e5   :  { %v14267_v44 = vpop.f32.mrf.mxu0  ;;  %6522 = vmatmul.mubr.bf16.gmra.mxu1 %v13426_v2 }
 0x7e6   :  { %v14269_v49 = vpop.f32.mrf.mxu1 }
 0x7e7   :  { %v14273_v38 = vpop.f32.mrf.mxu0 }
 0x7e8   :  { %v14275_v53 = vpop.f32.mrf.mxu1 }
 0x7e9   :  { %v14278_v6 = vpop.f32.mrf.mxu0 }
 0x7ea   :  { %v14280_v21 = vpop.f32.mrf.mxu1 }
 0x7eb   :  { %v5896_v2 = vpop.f32.mrf.mxu0  ;;  %6305 = vmatmul.mubr.bf16.gmra.mxu0 %v17023_v12 }
 0x7ec   :  { %v14291_v28 = vpop.f32.mrf.mxu1  ;;  %v5897_v27 = vadd.f32 %v5896_v2, %v14288_v15  ;;  %6312 = vmatprep.mubr.bf16.mxu0 %v17024_v5 }
 0x7ed   :  { %v5898_v40 = vpop.f32.mrf.mxu0 }
 0x7ee   :  { %v14298_v17 = vpop.f32.mrf.mxu1  ;;  %v5899_v58 = vadd.f32 %v5898_v40, %v14294_v33  ;;  %v6090_v35 = vadd.f32 %v14185_v23, %v5897_v27  ;;  %v17027_v40 = vld [vmem:[#allocation151_spill] sm:$0xff] }
 0x7ef   :  { %v5900_v50 = vpop.f32.mrf.mxu0 }
 0x7f0   :  { %v14302_v4 = vpop.f32.mrf.mxu1  ;;  %8455 = vtanh.f32 %v6090_v35  ;;  %v5901_v43 = vadd.f32 %v5900_v50, %v14288_v15  ;;  %v6092_v41 = vadd.f32 %v14194_v26, %v5899_v58  ;;  %v17028_v50 = vld [vmem:[#allocation44_spill] sm:$0xff] }
 0x7f1   :  { %v5902_v42 = vpop.f32.mrf.mxu0 }
 0x7f2   :  { %v14306_v7 = vpop.f32.mrf.mxu1  ;;  %8457 = vtanh.f32 %v6092_v41  ;;  %v5903_v55 = vadd.f32 %v5902_v42, %v14294_v33  ;;  %v6094_v47 = vadd.f32 %v14201_v24, %v5901_v43 }
 0x7f3   :  { %v5906_v3 = vpop.f32.mrf.mxu0  ;;  %6313 = vmatmul.mubr.bf16.gmra.mxu0 %v17025_v11 }
 0x7f4   :  { %v14311_v23 = vpop.f32.mrf.mxu1  ;;  %8459 = vtanh.f32 %v6094_v47  ;;  %v5907_v13 = vadd.f32 %v5906_v3, %v14288_v15  ;;  %v6096_v60 = vadd.f32 %v14209_v30, %v5903_v55  ;;  %6320 = vmatprep.mubr.bf16.mxu0 %v17026_v32 }
 0x7f5   :  { %v5908_v26 = vpop.f32.mrf.mxu0 }
 0x7f6   :  { %v14316_v62 = vpop.f32.mrf.mxu1  ;;  %8461 = vtanh.f32 %v6096_v60  ;;  %v5909_v45 = vadd.f32 %v5908_v26, %v14294_v33  ;;  %v6100_v24 = vadd.f32 %v14217_v51, %v5907_v13 }
 0x7f7   :  { %v5910_v19 = vpop.f32.mrf.mxu0 }
 0x7f8   :  { %v14320_v52 = vpop.f32.mrf.mxu1  ;;  %8463 = vtanh.f32 %v6100_v24  ;;  %v5911_v1 = vadd.f32 %v5910_v19, %v14288_v15  ;;  %v6102_v46 = vadd.f32 %v14226_v18, %v5909_v45  ;;  %v17029_v19 = vld [vmem:[#allocation152_spill] sm:$0xff] }
 0x7f9   :  { %v5912_v2 = vpop.f32.mrf.mxu0 }
 0x7fa   :  { %v14324_v30 = vpop.f32.mrf.mxu1  ;;  %8465 = vtanh.f32 %v6102_v46  ;;  %v5913_v12 = vadd.f32 %v5912_v2, %v14294_v33  ;;  %v6104_v27 = vadd.f32 %v14233_v14, %v5911_v1  ;;  %v17030_v2 = vld [vmem:[#allocation118_spill] sm:$0xff] }
 0x7fb   :  { %v5916_v5 = vpop.f32.mrf.mxu0  ;;  %6321 = vmatmul.mubr.bf16.gmra.mxu0 %v17027_v40 }
 0x7fc   :  { %v14329_v51 = vpop.f32.mrf.mxu1  ;;  %8467 = vtanh.f32 %v6104_v27  ;;  %v5917_v58 = vadd.f32 %v5916_v5, %v14288_v15  ;;  %v6106_v35 = vadd.f32 %v14241_v63, %v5913_v12  ;;  %6328 = vmatprep.mubr.bf16.mxu0 %v17028_v50 }
 0x7fd   :  { %v8456_v18 = vpop.eup %8455  ;;  %v5918_v43 = vpop.f32.mrf.mxu0 }
 0x7fe   :  { %v14334_v41 = vpop.f32.mrf.mxu1  ;;  %6814 = vst [vmem:[%s14994_s11 + $0x1e0] sm:$0xff] %v8456_v18  ;;  %8469 = vtanh.f32 %v6106_v35  ;;  %v5919_v14 = vadd.f32 %v5918_v43, %v14294_v33  ;;  %v6110_v42 = vadd.f32 %v14249_v39, %v5917_v58 }
 0x7ff   :  { %v8458_v55 = vpop.eup %8457  ;;  %v5920_v47 = vpop.f32.mrf.mxu0 }
 0x800   :  { %v14341_v3 = vpop.f32.mrf.mxu1  ;;  %6815 = vst [vmem:[%s14994_s11 + $0x1e8] sm:$0xff] %v8458_v55  ;;  %8471 = vtanh.f32 %v6110_v42  ;;  %v5921_v63 = vadd.f32 %v5920_v47, %v14288_v15  ;;  %v6112_v11 = vadd.f32 %v14255_v29, %v5919_v14 }
 0x801   :  { %v8460_v13 = vpop.eup %8459  ;;  %v5922_v60 = vpop.f32.mrf.mxu0 }
 0x802   :  { %v14348_v32 = vpop.f32.mrf.mxu1  ;;  %6821 = vst [vmem:[%s14994_s11 + $0x218] sm:$0xff] %v8460_v13  ;;  %8473 = vtanh.f32 %v6112_v11  ;;  %v5923_v39 = vadd.f32 %v5922_v60, %v14294_v33  ;;  %v6114_v26 = vadd.f32 %v14259_v9, %v5921_v63  ;;  %v17031_v11 = vld [vmem:[#allocation129_spill] sm:$0xff] }
 0x803   :  { %v8462_v45 = vpop.eup %8461  ;;  %v5926_v24 = vpop.f32.mrf.mxu0  ;;  %6329 = vmatmul.mubr.bf16.gmra.mxu0 %v17029_v19 }
 0x804   :  { %v14356_v1 = vpop.f32.mrf.mxu1  ;;  %6822 = vst [vmem:[%s14994_s11 + $0x220] sm:$0xff] %v8462_v45  ;;  %8475 = vtanh.f32 %v6114_v26  ;;  %v5927_v29 = vadd.f32 %v5926_v24, %v14288_v15  ;;  %v6116_v46 = vadd.f32 %v14264_v37, %v5923_v39  ;;  %6336 = vmatprep.mubr.bf16.mxu0 %v17030_v2  ;;  %v17032_v39 = vld [vmem:[#allocation89_spill] sm:$0xff] }
 0x805   :  { %v8464_v12 = vpop.eup %8463  ;;  %v5928_v27 = vpop.f32.mrf.mxu0 }
 0x806   :  { %v14364_v9 = vpop.f32.mrf.mxu1  ;;  %6828 = vst [vmem:[%s14994_s11 + $0x250] sm:$0xff] %v8464_v12  ;;  %8477 = vtanh.f32 %v6116_v46  ;;  %v5929_v5 = vadd.f32 %v5928_v27, %v14294_v33  ;;  %v6120_v40 = vadd.f32 %v14269_v49, %v5927_v29 }
 0x807   :  { %v8466_v58 = vpop.eup %8465  ;;  %v5930_v35 = vpop.f32.mrf.mxu0 }
 0x808   :  { %v14371_v50 = vpop.f32.mrf.mxu1  ;;  %6829 = vst [vmem:[%s14994_s11 + $0x258] sm:$0xff] %v8466_v58  ;;  %8479 = vtanh.f32 %v6120_v40  ;;  %v5931_v37 = vadd.f32 %v5930_v35, %v14288_v15  ;;  %v6122_v18 = vadd.f32 %v14275_v53, %v5929_v5 }
 0x809   :  { %v8468_v43 = vpop.eup %8467  ;;  %v5932_v14 = vpop.f32.mrf.mxu0 }
 0x80a   :  { %v14378_v42 = vpop.f32.mrf.mxu1  ;;  %6835 = vst [vmem:[%s14994_s11 + $0x288] sm:$0xff] %v8468_v43  ;;  %8481 = vtanh.f32 %v6122_v18  ;;  %v5933_v49 = vadd.f32 %v5932_v14, %v14294_v33  ;;  %v6124_v55 = vadd.f32 %v14280_v21, %v5931_v37  ;;  %v17033_v18 = vld [vmem:[#allocation116_spill] sm:$0xff] }
 0x80b   :  { %v8470_v47 = vpop.eup %8469  ;;  %v5936_v63 = vpop.f32.mrf.mxu0  ;;  %6337 = vmatmul.mubr.bf16.gmra.mxu0 %v17031_v11 }
 0x80c   :  { %v14386_v13 = vpop.f32.mrf.mxu1  ;;  %6836 = vst [vmem:[%s14994_s11 + $0x290] sm:$0xff] %v8470_v47  ;;  %8483 = vtanh.f32 %v6124_v55  ;;  %v5937_v53 = vadd.f32 %v5936_v63, %v14288_v15  ;;  %v6126_v60 = vadd.f32 %v14291_v28, %v5933_v49  ;;  %6344 = vmatprep.mubr.bf16.mxu0 %v17032_v39  ;;  %v17034_v49 = vld [vmem:[#allocation28_spill] sm:$0xff] }
 0x80d   :  { %v8472_v26 = vpop.eup %8471  ;;  %v5938_v45 = vpop.f32.mrf.mxu0 }
 0x80e   :  { %v14394_v21 = vpop.f32.mrf.mxu1  ;;  %6842 = vst [vmem:[%s14994_s11 + $0x2c0] sm:$0xff] %v8472_v26  ;;  %8485 = vtanh.f32 %v6126_v60  ;;  %v5939_v24 = vadd.f32 %v5938_v45, %v14294_v33  ;;  %v6130_v19 = vadd.f32 %v14298_v17, %v5937_v53 }
 0x80f   :  { %v8474_v29 = vpop.eup %8473  ;;  %v5940_v46 = vpop.f32.mrf.mxu0 }
 0x810   :  { %v14401_v2 = vpop.f32.mrf.mxu1  ;;  %6843 = vst [vmem:[%s14994_s11 + $0x2c8] sm:$0xff] %v8474_v29  ;;  %8487 = vtanh.f32 %v6130_v19  ;;  %v5941_v28 = vadd.f32 %v5940_v46, %v14288_v15  ;;  %v6132_v12 = vadd.f32 %v14302_v4, %v5939_v24 }
 0x811   :  { %v8476_v27 = vpop.eup %8475  ;;  %v5942_v5 = vpop.f32.mrf.mxu0 }
 0x812   :  { %v14408_v40 = vpop.f32.mrf.mxu1  ;;  %6849 = vst [vmem:[%s14994_s11 + $0x2f8] sm:$0xff] %v8476_v27  ;;  %8489 = vtanh.f32 %v6132_v12  ;;  %v5943_v17 = vadd.f32 %v5942_v5, %v14294_v33  ;;  %v6134_v58 = vadd.f32 %v14306_v7, %v5941_v28  ;;  %v17035_v12 = vld [vmem:[#allocation34_spill] sm:$0xff] }
 0x813   :  { %v8478_v35 = vpop.eup %8477  ;;  %v5946_v37 = vpop.f32.mrf.mxu0  ;;  %6345 = vmatmul.mubr.bf16.gmra.mxu0 %v17033_v18 }
 0x814   :  { %v14416_v43 = vpop.f32.mrf.mxu1  ;;  %6850 = vst [vmem:[%s14994_s11 + $0x300] sm:$0xff] %v8478_v35  ;;  %8491 = vtanh.f32 %v6134_v58  ;;  %v5947_v4 = vadd.f32 %v5946_v37, %v14288_v15  ;;  %v6136_v14 = vadd.f32 %v14311_v23, %v5943_v17  ;;  %6352 = vmatprep.mubr.bf16.mxu0 %v17034_v49  ;;  %v17036_v17 = vld [vmem:[#allocation153_spill] sm:$0xff] }
 0x815   :  { %v8480_v55 = vpop.eup %8479  ;;  %v5948_v47 = vpop.f32.mrf.mxu0 }
 0x816   :  { %v14424_v7 = vpop.f32.mrf.mxu1  ;;  %6856 = vst [vmem:[%s14994_s11 + $0x330] sm:$0xff] %v8480_v55  ;;  %8493 = vtanh.f32 %v6136_v14  ;;  %v5949_v63 = vadd.f32 %v5948_v47, %v14294_v33  ;;  %v6140_v11 = vadd.f32 %v14316_v62, %v5947_v4 }
 0x817   :  { %v8482_v53 = vpop.eup %8481  ;;  %v5950_v60 = vpop.f32.mrf.mxu0 }
 0x818   :  { %v14431_v39 = vpop.f32.mrf.mxu1  ;;  %6857 = vst [vmem:[%s14994_s11 + $0x338] sm:$0xff] %v8482_v53  ;;  %8495 = vtanh.f32 %v6140_v11  ;;  %v5951_v23 = vadd.f32 %v5950_v60, %v14288_v15  ;;  %v6142_v26 = vadd.f32 %v14320_v52, %v5949_v63 }
 0x819   :  { %v8484_v45 = vpop.eup %8483  ;;  %v5952_v24 = vpop.f32.mrf.mxu0 }
 0x81a   :  { %v14438_v19 = vpop.f32.mrf.mxu1  ;;  %6863 = vst [vmem:[%s14994_s11 + $0x368] sm:$0xff] %v8484_v45  ;;  %8497 = vtanh.f32 %v6142_v26  ;;  %v5953_v62 = vadd.f32 %v5952_v24, %v14294_v33  ;;  %v6144_v29 = vadd.f32 %v14324_v30, %v5951_v23 }
 0x81b   :  { %v8486_v46 = vpop.eup %8485  ;;  %v5956_v28 = vpop.f32.mrf.mxu0  ;;  %6353 = vmatmul.mubr.bf16.gmra.mxu0 %v17035_v12 }
 0x81c   :  { %v14446_v27 = vpop.f32.mrf.mxu1  ;;  %6864 = vst [vmem:[%s14994_s11 + $0x370] sm:$0xff] %v8486_v46  ;;  %8499 = vtanh.f32 %v6144_v29  ;;  %v5957_v52 = vadd.f32 %v5956_v28, %v14288_v15  ;;  %v6146_v5 = vadd.f32 %v14329_v51, %v5953_v62  ;;  %6360 = vmatprep.mubr.bf16.mxu0 %v17036_v17 }
 0x81d   :  { %v8488_v58 = vpop.eup %8487  ;;  %v5958_v35 = vpop.f32.mrf.mxu0 }
 0x81e   :  { %v14454_v30 = vpop.f32.mrf.mxu1  ;;  %6870 = vst [vmem:[%s14994_s11 + $0x3a0] sm:$0xff] %v8488_v58  ;;  %8501 = vtanh.f32 %v6146_v5  ;;  %v5959_v37 = vadd.f32 %v5958_v35, %v14294_v33  ;;  %v6150_v18 = vadd.f32 %v14334_v41, %v5957_v52 }
 0x81f   :  { %v8490_v4 = vpop.eup %8489  ;;  %v5960_v14 = vpop.f32.mrf.mxu0 }
 0x820   :  { %v14461_v49 = vpop.f32.mrf.mxu1  ;;  %6871 = vst [vmem:[%s14994_s11 + $0x3a8] sm:$0xff] %v8490_v4  ;;  %8503 = vtanh.f32 %v6150_v18  ;;  %v5961_v51 = vadd.f32 %v5960_v14, %v14288_v15  ;;  %v6152_v55 = vadd.f32 %v14341_v3, %v5959_v37 }
 0x821   :  { %v8492_v47 = vpop.eup %8491  ;;  %v5962_v63 = vpop.f32.mrf.mxu0 }
 0x822   :  { %v14468_v11 = vpop.f32.mrf.mxu1  ;;  %6877 = vst [vmem:[%s14994_s11 + $0x3d8] sm:$0xff] %v8492_v47  ;;  %8505 = vtanh.f32 %v6152_v55  ;;  %v5963_v41 = vadd.f32 %v5962_v63, %v14294_v33  ;;  %v6154_v53 = vadd.f32 %v14348_v32, %v5961_v51 }
 0x823   :  { %v8494_v60 = vpop.eup %8493  ;;  %v5966_v23 = vpop.f32.mrf.mxu0  ;;  %6361 = vmatmul.mubr.bf16.gmra.mxu0 %v13418_v16 }
 0x824   :  { %v14476_v26 = vpop.f32.mrf.mxu1  ;;  %6878 = vst [vmem:[%s14994_s11 + $0x3e0] sm:$0xff] %v8494_v60  ;;  %8507 = vtanh.f32 %v6154_v53  ;;  %v5967_v3 = vadd.f32 %v5966_v23, %v14288_v15  ;;  %v6156_v45 = vadd.f32 %v14356_v1, %v5963_v41 }
 0x825   :  { %v8496_v24 = vpop.eup %8495  ;;  %v5968_v62 = vpop.f32.mrf.mxu0 }
 0x826   :  { %v14483_v29 = vpop.f32.mrf.mxu1  ;;  %6884 = vst [vmem:[%s14994_s11 + $0x410] sm:$0xff] %v8496_v24  ;;  %8509 = vtanh.f32 %v6156_v45  ;;  %v5969_v16 = vadd.f32 %v5968_v62, %v14294_v33  ;;  %v6160_v32 = vadd.f32 %v14364_v9, %v5967_v3 }
 0x827   :  { %v8498_v46 = vpop.eup %8497  ;;  %v5970_v28 = vpop.f32.mrf.mxu0 }
 0x828   :  { %v14490_v12 = vpop.f32.mrf.mxu1  ;;  %6885 = vst [vmem:[%s14994_s11 + $0x418] sm:$0xff] %v8498_v46  ;;  %8511 = vtanh.f32 %v6160_v32  ;;  %v5971_v1 = vadd.f32 %v5970_v28, %v14288_v15  ;;  %v6162_v52 = vadd.f32 %v14371_v50, %v5969_v16 }
 0x829   :  { %v8500_v5 = vpop.eup %8499  ;;  %v5972_v17 = vpop.f32.mrf.mxu0 }
 0x82a   :  { %v14497_v58 = vpop.f32.mrf.mxu1  ;;  %6891 = vst [vmem:[%s14994_s11 + $0x448] sm:$0xff] %v8500_v5  ;;  %8513 = vtanh.f32 %v6162_v52  ;;  %v5973_v9 = vadd.f32 %v5972_v17, %v14294_v33  ;;  %v6164_v35 = vadd.f32 %v14378_v42, %v5971_v1 }
 0x82b   :  { %v8502_v37 = vpop.eup %8501  ;;  %v5976_v18 = vpop.f32.mrf.mxu0 }
 0x82c   :  { %v14504_v4 = vpop.f32.mrf.mxu1  ;;  %6892 = vst [vmem:[%s14994_s11 + $0x450] sm:$0xff] %v8502_v37  ;;  %8515 = vtanh.f32 %v6164_v35  ;;  %v5977_v50 = vadd.f32 %v5976_v18, %v14288_v15  ;;  %v6166_v14 = vadd.f32 %v14386_v13, %v5973_v9 }
 0x82d   :  { %v8504_v51 = vpop.eup %8503  ;;  %v5978_v55 = vpop.f32.mrf.mxu0 }
 0x82e   :  { %v14511_v47 = vpop.f32.mrf.mxu1  ;;  %6898 = vst [vmem:[%s14994_s11 + $0x480] sm:$0xff] %v8504_v51  ;;  %8517 = vtanh.f32 %v6166_v14  ;;  %v5979_v42 = vadd.f32 %v5978_v55, %v14294_v33  ;;  %v6170_v63 = vadd.f32 %v14394_v21, %v5977_v50 }
 0x82f   :  { %v8506_v41 = vpop.eup %8505  ;;  %v5980_v53 = vpop.f32.mrf.mxu0 }
 0x830   :  { %v14518_v60 = vpop.f32.mrf.mxu1  ;;  %6899 = vst [vmem:[%s14994_s11 + $0x488] sm:$0xff] %v8506_v41  ;;  %8519 = vtanh.f32 %v6170_v63  ;;  %v5981_v13 = vadd.f32 %v5980_v53, %v14288_v15  ;;  %v6172_v23 = vadd.f32 %v14401_v2, %v5979_v42 }
 0x831   :  { %v8508_v3 = vpop.eup %8507  ;;  %v5982_v45 = vpop.f32.mrf.mxu0 }
 0x832   :  { %v14525_v24 = vpop.f32.mrf.mxu1  ;;  %6905 = vst [vmem:[%s14994_s11 + $0x4b8] sm:$0xff] %v8508_v3  ;;  %8521 = vtanh.f32 %v6172_v23  ;;  %v5983_v21 = vadd.f32 %v5982_v45, %v14294_v33  ;;  %v6174_v62 = vadd.f32 %v14408_v40, %v5981_v13 }
 0x833   :  { %v8510_v16 = vpop.eup %8509  ;;  %v5986_v32 = vpop.f32.mrf.mxu0 }
 0x834   :  { %v14532_v46 = vpop.f32.mrf.mxu1  ;;  %6906 = vst [vmem:[%s14994_s11 + $0x4c0] sm:$0xff] %v8510_v16  ;;  %8523 = vtanh.f32 %v6174_v62  ;;  %v5987_v2 = vadd.f32 %v5986_v32, %v14288_v15  ;;  %v6176_v28 = vadd.f32 %v14416_v43, %v5983_v21 }
 0x835   :  { %v8512_v1 = vpop.eup %8511  ;;  %v5988_v52 = vpop.f32.mrf.mxu0 }
 0x836   :  { %v14539_v5 = vpop.f32.mrf.mxu1  ;;  %6912 = vst [vmem:[%s14994_s11 + $0x4f0] sm:$0xff] %v8512_v1  ;;  %8525 = vtanh.f32 %v6176_v28  ;;  %v5989_v40 = vadd.f32 %v5988_v52, %v14294_v33  ;;  %v6180_v17 = vadd.f32 %v14424_v7, %v5987_v2 }
 0x837   :  { %v8514_v9 = vpop.eup %8513  ;;  %v5990_v35 = vpop.f32.mrf.mxu0 }
 0x838   :  { %v14546_v37 = vpop.f32.mrf.mxu1  ;;  %6913 = vst [vmem:[%s14994_s11 + $0x4f8] sm:$0xff] %v8514_v9  ;;  %8527 = vtanh.f32 %v6180_v17  ;;  %v5991_v43 = vadd.f32 %v5990_v35, %v14288_v15  ;;  %v6182_v18 = vadd.f32 %v14431_v39, %v5989_v40 }
 0x839   :  { %v8516_v50 = vpop.eup %8515  ;;  %v5992_v14 = vpop.f32.mrf.mxu0 }
 0x83a   :  { %v14553_v51 = vpop.f32.mrf.mxu1  ;;  %6919 = vst [vmem:[%s14994_s11 + $0x528] sm:$0xff] %v8516_v50  ;;  %8529 = vtanh.f32 %v6182_v18  ;;  %v5993_v7 = vadd.f32 %v5992_v14, %v14294_v33  ;;  %v6184_v55 = vadd.f32 %v14438_v19, %v5991_v43 }
 0x83b   :  { %v8518_v42 = vpop.eup %8517  ;;  %v5996_v63 = vpop.f32.mrf.mxu0 }
 0x83c   :  { %v14560_v41 = vpop.f32.mrf.mxu1  ;;  %6920 = vst [vmem:[%s14994_s11 + $0x530] sm:$0xff] %v8518_v42  ;;  %8531 = vtanh.f32 %v6184_v55  ;;  %v5997_v39 = vadd.f32 %v5996_v63, %v14288_v15  ;;  %v6186_v53 = vadd.f32 %v14446_v27, %v5993_v7 }
 0x83d   :  { %v8520_v13 = vpop.eup %8519  ;;  %v5998_v23 = vpop.f32.mrf.mxu0 }
 0x83e   :  { %v14567_v3 = vpop.f32.mrf.mxu1  ;;  %6926 = vst [vmem:[%s14994_s11 + $0x560] sm:$0xff] %v8520_v13  ;;  %8533 = vtanh.f32 %v6186_v53  ;;  %v5999_v19 = vadd.f32 %v5998_v23, %v14294_v33  ;;  %v6190_v45 = vadd.f32 %v14454_v30, %v5997_v39 }
 0x83f   :  { %v8522_v21 = vpop.eup %8521  ;;  %v6000_v62 = vpop.f32.mrf.mxu0 }
 0x840   :  { %v14574_v16 = vpop.f32.mrf.mxu1  ;;  %6927 = vst [vmem:[%s14994_s11 + $0x568] sm:$0xff] %v8522_v21  ;;  %8535 = vtanh.f32 %v6190_v45  ;;  %v6001_v27 = vadd.f32 %v6000_v62, %v14288_v15  ;;  %v6192_v32 = vadd.f32 %v14461_v49, %v5999_v19 }
 0x841   :  { %v8524_v2 = vpop.eup %8523  ;;  %v6002_v28 = vpop.f32.mrf.mxu0 }
 0x842   :  { %v14581_v1 = vpop.f32.mrf.mxu1  ;;  %6933 = vst [vmem:[%s14994_s11 + $0x598] sm:$0xff] %v8524_v2  ;;  %8537 = vtanh.f32 %v6192_v32  ;;  %v6003_v30 = vadd.f32 %v6002_v28, %v14294_v33  ;;  %v6194_v52 = vadd.f32 %v14468_v11, %v6001_v27 }
 0x843   :  { %v8526_v40 = vpop.eup %8525  ;;  %v6006_v17 = vpop.f32.mrf.mxu0 }
 0x844   :  { %v14588_v9 = vpop.f32.mrf.mxu1  ;;  %6934 = vst [vmem:[%s14994_s11 + $0x5a0] sm:$0xff] %v8526_v40  ;;  %8539 = vtanh.f32 %v6194_v52  ;;  %v6007_v49 = vadd.f32 %v6006_v17, %v14288_v15  ;;  %v6196_v35 = vadd.f32 %v14476_v26, %v6003_v30 }
 0x845   :  { %v8528_v43 = vpop.eup %8527  ;;  %v6008_v18 = vpop.f32.mrf.mxu0 }
 0x846   :  { %v14595_v50 = vpop.f32.mrf.mxu1  ;;  %6940 = vst [vmem:[%s14994_s11 + $0x5d0] sm:$0xff] %v8528_v43  ;;  %8541 = vtanh.f32 %v6196_v35  ;;  %v6009_v11 = vadd.f32 %v6008_v18, %v14294_v33  ;;  %v6200_v14 = vadd.f32 %v14483_v29, %v6007_v49  ;;  %v5857_v29 = vadd.f32 %v14176_v8, %v14288_v15 }
 0x847   :  { %v8530_v7 = vpop.eup %8529  ;;  %v6010_v55 = vpop.f32.mrf.mxu0  ;;  %v5867_v43 = vadd.f32 %v14206_v57, %v14288_v15 }
 0x848   :  { %v14602_v42 = vpop.f32.mrf.mxu1  ;;  %6941 = vst [vmem:[%s14994_s11 + $0x5d8] sm:$0xff] %v8530_v7  ;;  %8543 = vtanh.f32 %v6200_v14  ;;  %v6011_v26 = vadd.f32 %v6010_v55, %v14288_v15  ;;  %v6202_v63 = vadd.f32 %v14490_v12, %v6009_v11  ;;  %v5859_v12 = vadd.f32 %v14183_v34, %v14294_v33 }
 0x849   :  { %v8532_v39 = vpop.eup %8531  ;;  %v6012_v53 = vpop.f32.mrf.mxu0  ;;  %v5869_v7 = vadd.f32 %v14215_v10, %v14294_v33 }
 0x84a   :  { %v14609_v13 = vpop.f32.mrf.mxu1  ;;  %6947 = vst [vmem:[%s14994_s11 + $0x608] sm:$0xff] %v8532_v39  ;;  %8545 = vtanh.f32 %v6202_v63  ;;  %v6013_v23 = vadd.f32 %v6012_v53, %v14294_v33  ;;  %v6204_v19 = vadd.f32 %v14497_v58, %v6011_v26  ;;  %v5861_v58 = vadd.f32 %v14192_v56, %v14288_v15 }
 0x84b   :  { %v8534_v45 = vpop.eup %8533  ;;  %v6049_v21 = vpop.f32.mrf.mxu0  ;;  %v5871_v39 = vadd.f32 %v14224_v20, %v14288_v15 }
 0x84c   :  { %v14618_v62 = vpop.f32.mrf.mxu1  ;;  %6948 = vst [vmem:[%s14994_s11 + $0x610] sm:$0xff] %v8534_v45  ;;  %8547 = vtanh.f32 %v6204_v19  ;;  %v6050_v8 = vadd.f32 %v6049_v21, %v5857_v29  ;;  %v6206_v27 = vadd.f32 %v14504_v4, %v6013_v23  ;;  %v5863_v4 = vadd.f32 %v14199_v48, %v14294_v33 }
 0x84d   :  { %v8536_v32 = vpop.eup %8535  ;;  %v6051_v2 = vpop.f32.mrf.mxu0  ;;  %v5873_v19 = vadd.f32 %v14231_v61, %v14294_v33 }
 0x84e   :  { %v14626_v28 = vpop.f32.mrf.mxu1  ;;  %6954 = vst [vmem:[%s14994_s11 + $0x640] sm:$0xff] %v8536_v32  ;;  %8549 = vtanh.f32 %v6050_v8  ;;  %v6052_v34 = vadd.f32 %v6051_v2, %v5859_v12  ;;  %v5877_v8 = vadd.f32 %v14238_v59, %v14288_v15 }
 0x84f   :  { %v8538_v30 = vpop.eup %8537  ;;  %8551 = vtanh.f32 %v6206_v27  ;;  %v6053_v52 = vpop.f32.mrf.mxu0 }
 0x850   :  { %v14633_v40 = vpop.f32.mrf.mxu1  ;;  %6955 = vst [vmem:[%s14994_s11 + $0x648] sm:$0xff] %v8538_v30  ;;  %8553 = vtanh.f32 %v6052_v34  ;;  %v6054_v56 = vadd.f32 %v6053_v52, %v5861_v58  ;;  %v5879_v34 = vadd.f32 %v14247_v25, %v14294_v33 }
 0x851   :  { %v8540_v17 = vpop.eup %8539  ;;  %v6055_v49 = vpop.f32.mrf.mxu0 }
 0x852   :  { %v14640_v35 = vpop.f32.mrf.mxu1  ;;  %6961 = vst [vmem:[%s14994_s11 + $0x678] sm:$0xff] %v8540_v17  ;;  %8555 = vtanh.f32 %v6054_v56  ;;  %v6056_v18 = vadd.f32 %v6055_v49, %v5863_v4  ;;  %v5881_v56 = vadd.f32 %v14253_v54, %v14288_v15 }
 0x853   :  { %v8542_v48 = vpop.eup %8541  ;;  %v6059_v11 = vpop.f32.mrf.mxu0 }
 0x854   :  { %v14647_v14 = vpop.f32.mrf.mxu1  ;;  %6962 = vst [vmem:[%s14994_s11 + $0x680] sm:$0xff] %v8542_v48  ;;  %8557 = vtanh.f32 %v6056_v18  ;;  %v6060_v55 = vadd.f32 %v6059_v11, %v5867_v43  ;;  %v5883_v18 = vadd.f32 %v14257_v36, %v14294_v33 }
 0x855   :  { %v8544_v57 = vpop.eup %8543  ;;  %v6061_v26 = vpop.f32.mrf.mxu0 }
 0x856   :  { %v14654_v63 = vpop.f32.mrf.mxu1  ;;  %6968 = vst [vmem:[%s14994_s11 + $0x6b0] sm:$0xff] %v8544_v57  ;;  %8559 = vtanh.f32 %v6060_v55  ;;  %v6062_v53 = vadd.f32 %v6061_v26, %v5869_v7  ;;  %v5887_v55 = vadd.f32 %v14261_v22, %v14288_v15 }
 0x857   :  { %v8546_v10 = vpop.eup %8545  ;;  %v6063_v29 = vpop.f32.mrf.mxu0 }
 0x858   :  { %v14661_v23 = vpop.f32.mrf.mxu1  ;;  %6969 = vst [vmem:[%s14994_s11 + $0x6b8] sm:$0xff] %v8546_v10  ;;  %8561 = vtanh.f32 %v6062_v53  ;;  %v6064_v45 = vadd.f32 %v6063_v29, %v5871_v39  ;;  %v5889_v53 = vadd.f32 %v14267_v44, %v14294_v33 }
 0x859   :  { %v8548_v20 = vpop.eup %8547  ;;  %v6065_v21 = vpop.f32.mrf.mxu0 }
 0x85a   :  { %v14668_v12 = vpop.f32.mrf.mxu1  ;;  %6975 = vst [vmem:[%s14994_s11 + $0x6e8] sm:$0xff] %v8548_v20  ;;  %8563 = vtanh.f32 %v6064_v45  ;;  %v6066_v27 = vadd.f32 %v6065_v21, %v5873_v19  ;;  %v5891_v45 = vadd.f32 %v14273_v38, %v14288_v15  ;;  %v3889_v38 = vsub.s32 6, %v17022_v0 }
 0x85b   :  { %v8550_v61 = vpop.eup %8549  ;;  %v6069_v32 = vpop.f32.mrf.mxu0 }
 0x85c   :  { %v14675_v2 = vpop.f32.mrf.mxu1  ;;  %v8552_v58 = vpop.eup %8551  ;;  %6758 = vst [vmem:[%s14994_s11 + $0x20] sm:$0xff] %v8550_v61  ;;  %8565 = vtanh.f32 %v6066_v27  ;;  %v6070_v59 = vadd.f32 %v6069_v32, %v5877_v8  ;;  %v5893_v27 = vadd.f32 %v14278_v6, %v14294_v33  ;;  %v14739_v0 = vrot.slane %v14285_v31, %v3889_v38 }
 0x85d   :  { %v8554_v30 = vpop.eup %8553  ;;  %6976 = vst [vmem:[%s14994_s11 + $0x6f0] sm:$0xff] %v8552_v58  ;;  %v6071_v52 = vpop.f32.mrf.mxu0 }
 0x85e   :  { %v14685_v4 = vpop.f32.mrf.mxu1  ;;  %6759 = vst [vmem:[%s14994_s11 + $0x28] sm:$0xff] %v8554_v30  ;;  %8567 = vtanh.f32 %v6070_v59  ;;  %v6072_v25 = vadd.f32 %v6071_v52, %v5879_v34 }
 0x85f   :  { %v8556_v17 = vpop.eup %8555  ;;  %v6073_v49 = vpop.f32.mrf.mxu0 }
 0x860   :  { %v14692_v43 = vpop.f32.mrf.mxu1  ;;  %6765 = vst [vmem:[%s14994_s11 + $0x58] sm:$0xff] %v8556_v17  ;;  %8569 = vtanh.f32 %v6072_v25  ;;  %v6074_v48 = vadd.f32 %v6073_v49, %v5881_v56 }
 0x861   :  { %v8558_v54 = vpop.eup %8557  ;;  %v6075_v11 = vpop.f32.mrf.mxu0 }
 0x862   :  { %v14699_v7 = vpop.f32.mrf.mxu1  ;;  %6766 = vst [vmem:[%s14994_s11 + $0x60] sm:$0xff] %v8558_v54  ;;  %8571 = vtanh.f32 %v6074_v48  ;;  %v6076_v57 = vadd.f32 %v6075_v11, %v5883_v18  ;;  %v7544_v18 = vadd.f32 %v14518_v60, %v14511_v47  ;;  %v7547_v47 = vadd.f32 %v14532_v46, %v14525_v24 }
 0x863   :  { %v8560_v36 = vpop.eup %8559  ;;  %v6079_v26 = vpop.f32.mrf.mxu0  ;;  %v7550_v24 = vadd.f32 %v14546_v37, %v14539_v5 }
 0x864   :  { %v14706_v39 = vpop.f32.mrf.mxu1  ;;  %6772 = vst [vmem:[%s14994_s11 + $0x90] sm:$0xff] %v8560_v36  ;;  %8573 = vtanh.f32 %v6076_v57  ;;  %v6080_v10 = vadd.f32 %v6079_v26, %v5887_v55 }
 0x865   :  { %v8562_v22 = vpop.eup %8561  ;;  %v6081_v29 = vpop.f32.mrf.mxu0 }
 0x866   :  { %v14713_v19 = vpop.f32.mrf.mxu1  ;;  %6773 = vst [vmem:[%s14994_s11 + $0x98] sm:$0xff] %v8562_v22  ;;  %8575 = vtanh.f32 %v6080_v10  ;;  %v6082_v20 = vadd.f32 %v6081_v29, %v5889_v53 }
 0x867   :  { %v8564_v44 = vpop.eup %8563  ;;  %v6083_v21 = vpop.f32.mrf.mxu0 }
 0x868   :  { %v14720_v8 = vpop.f32.mrf.mxu1  ;;  %6779 = vst [vmem:[%s14994_s11 + $0xc8] sm:$0xff] %v8564_v44  ;;  %8577 = vtanh.f32 %v6082_v20  ;;  %v6084_v61 = vadd.f32 %v6083_v21, %v5891_v45 }
 0x869   :  { %v8566_v15 = vpop.eup %8565  ;;  %v6085_v32 = vpop.f32.mrf.mxu0 }
 0x86a   :  { %v14728_v58 = vpop.f32.mrf.mxu1  ;;  %6780 = vst [vmem:[%s14994_s11 + $0xd0] sm:$0xff] %v8566_v15  ;;  %8579 = vtanh.f32 %v6084_v61  ;;  %v6086_v34 = vadd.f32 %v6085_v32, %v5893_v27 }
 0x86b   :  { %v8568_v59 = vpop.eup %8567  ;;  %v7430_v6 = vpop.f32.mrf.mxu0 }
 0x86c   :  { %v14733_v33 = vpop.f32.mrf.mxu1  ;;  %6786 = vst [vmem:[%s14994_s11 + $0x100] sm:$0xff] %v8568_v59  ;;  %8581 = vtanh.f32 %v6086_v34  ;;  %v7553_v34 = vadd.f32 %v14560_v41, %v14553_v51 }
 0x86d   :  { %v8570_v30 = vpop.eup %8569  ;;  %v7431_v52 = vpop.f32.mrf.mxu0 }
 0x86e   :  { %v14741_v56 = vpop.f32.mrf.mxu1  ;;  %6787 = vst [vmem:[%s14994_s11 + $0x108] sm:$0xff] %v8570_v30  ;;  %v7432_v25 = vadd.f32 %v7431_v52, %v7430_v6 }
 0x86f   :  { %v8572_v17 = vpop.eup %8571  ;;  %v7433_v49 = vpop.f32.mrf.mxu0 }
 0x870   :  { %6793 = vst [vmem:[%s14994_s11 + $0x138] sm:$0xff] %v8572_v17  ;;  %v6243_v31 = vadd.f32 %v7432_v25, %v14739_v0  ;;  %v14752_v11 = vpop.f32.mrf.mxu1  ;;  %v7556_v25 = vadd.f32 %v14574_v16, %v14567_v3 }
 0x871   :  { %v8574_v48 = vpop.eup %8573  ;;  %v7434_v54 = vpop.f32.mrf.mxu0 }
 0x872   :  { %6794 = vst [vmem:[%s14994_s11 + $0x140] sm:$0xff] %v8574_v48  ;;  %v6404_v55 = vadd.f32 %v7544_v18, %v6243_v31  ;;  %v7435_v57 = vadd.f32 %v7434_v54, %v7433_v49  ;;  %v14763_v22 = vpop.f32.mrf.mxu1  ;;  %v7559_v54 = vadd.f32 %v14588_v9, %v14581_v1 }
 0x873   :  { %v8576_v36 = vpop.eup %8575  ;;  %v7436_v26 = vpop.f32.mrf.mxu0 }
 0x874   :  { %6800 = vst [vmem:[%s14994_s11 + $0x170] sm:$0xff] %v8576_v36  ;;  %8583 = vtanh.f32 %v6404_v55  ;;  %v6246_v60 = vadd.f32 %v7435_v57, %v14739_v0  ;;  %v14774_v61 = vpop.f32.mrf.mxu1 }
 0x875   :  { %v8578_v53 = vpop.eup %8577  ;;  %v7437_v10 = vpop.f32.mrf.mxu0 }
 0x876   :  { %6801 = vst [vmem:[%s14994_s11 + $0x178] sm:$0xff] %v8578_v53  ;;  %v6407_v29 = vadd.f32 %v7547_v47, %v6246_v60  ;;  %v7438_v45 = vadd.f32 %v7437_v10, %v7436_v26  ;;  %v14782_v37 = vpop.f32.mrf.mxu1  ;;  %v7562_v60 = vadd.f32 %v14602_v42, %v14595_v50 }
 0x877   :  { %v8580_v20 = vpop.eup %8579  ;;  %v7439_v44 = vpop.f32.mrf.mxu0 }
 0x878   :  { %6807 = vst [vmem:[%s14994_s11 + $0x1a8] sm:$0xff] %v8580_v20  ;;  %8585 = vtanh.f32 %v6407_v29  ;;  %v6251_v46 = vadd.f32 %v7438_v45, %v14739_v0  ;;  %v14787_v31 = vpop.f32.mrf.mxu1 }
 0x879   :  { %v8582_v21 = vpop.eup %8581  ;;  %v7440_v27 = vpop.f32.mrf.mxu0 }
 0x87a   :  { %6808 = vst [vmem:[%s14994_s11 + $0x1b0] sm:$0xff] %v8582_v21  ;;  %v6412_v38 = vadd.f32 %v7550_v24, %v6251_v46  ;;  %v7441_v15 = vadd.f32 %v7440_v27, %v7439_v44  ;;  %v14795_v57 = vpop.f32.mrf.mxu1  ;;  %v7565_v44 = vadd.f32 %v14618_v62, %v14609_v13 }
 0x87b   :  { %v7442_v32 = vpop.f32.mrf.mxu0 }
 0x87c   :  { %8587 = vtanh.f32 %v6412_v38  ;;  %v6254_v59 = vadd.f32 %v7441_v15, %v14739_v0  ;;  %v14803_v10 = vpop.f32.mrf.mxu1  ;;  %v7568_v15 = vadd.f32 %v14633_v40, %v14626_v28 }
 0x87d   :  { %v7443_v5 = vpop.f32.mrf.mxu0 }
 0x87e   :  { %v6415_v6 = vadd.f32 %v7553_v34, %v6254_v59  ;;  %v7444_v30 = vadd.f32 %v7443_v5, %v7442_v32  ;;  %v14811_v46 = vpop.f32.mrf.mxu1 }
 0x87f   :  { %v7445_v52 = vpop.f32.mrf.mxu0 }
 0x880   :  { %8589 = vtanh.f32 %v6415_v6  ;;  %v6259_v17 = vadd.f32 %v7444_v30, %v14739_v0  ;;  %v14819_v34 = vpop.f32.mrf.mxu1  ;;  %v7571_v30 = vadd.f32 %v14647_v14, %v14640_v35 }
 0x881   :  { %v8584_v49 = vpop.eup %8583  ;;  %v7446_v18 = vpop.f32.mrf.mxu0 }
 0x882   :  { %6760 = vst [vmem:[%s14994_s11 + $0x30] sm:$0xff] %v8584_v49  ;;  %v6420_v51 = vadd.f32 %v7556_v25, %v6259_v17  ;;  %v7447_v41 = vadd.f32 %v7446_v18, %v7445_v52  ;;  %v14827_v25 = vpop.f32.mrf.mxu1 }
 0x883   :  { %v7448_v48 = vpop.f32.mrf.mxu0 }
 0x884   :  { %8591 = vtanh.f32 %v6420_v51  ;;  %v6262_v55 = vadd.f32 %v7447_v41, %v14739_v0  ;;  %v7574_v51 = vadd.f32 %v14661_v23, %v14654_v63 }
 0x885   :  { %v8586_v3 = vpop.eup %8585  ;;  %v7449_v16 = vpop.f32.mrf.mxu0 }
 0x886   :  { %6767 = vst [vmem:[%s14994_s11 + $0x68] sm:$0xff] %v8586_v3  ;;  %v6423_v36 = vadd.f32 %v7559_v54, %v6262_v55  ;;  %v7450_v26 = vadd.f32 %v7449_v16, %v7448_v48  ;;  %v14835_v48 = vpop.f32.mrf.mxu1  ;;  %v7577_v16 = vadd.f32 %v14675_v2, %v14668_v12 }
 0x887   :  { %v7451_v47 = vpop.f32.mrf.mxu0 }
 0x888   :  { %8593 = vtanh.f32 %v6423_v36  ;;  %v6267_v53 = vadd.f32 %v7450_v26, %v14739_v0  ;;  %v14843_v26 = vpop.f32.mrf.mxu1 }
 0x889   :  { %v8588_v1 = vpop.eup %8587  ;;  %v7452_v9 = vpop.f32.mrf.mxu0 }
 0x88a   :  { %6774 = vst [vmem:[%s14994_s11 + $0xa0] sm:$0xff] %v8588_v1  ;;  %v6428_v29 = vadd.f32 %v7562_v60, %v6267_v53  ;;  %v7453_v45 = vadd.f32 %v7452_v9, %v7451_v47  ;;  %v7580_v1 = vadd.f32 %v14692_v43, %v14685_v4 }
 0x88b   :  { %v7454_v20 = vpop.f32.mrf.mxu0 }
 0x88c   :  { %8595 = vtanh.f32 %v6428_v29  ;;  %v6270_v24 = vadd.f32 %v7453_v45, %v14739_v0  ;;  %v14851_v29 = vpop.f32.mrf.mxu1 }
 0x88d   :  { %v8590_v50 = vpop.eup %8589  ;;  %v7455_v42 = vpop.f32.mrf.mxu0 }
 0x88e   :  { %6781 = vst [vmem:[%s14994_s11 + $0xd8] sm:$0xff] %v8590_v50  ;;  %v6431_v21 = vadd.f32 %v7565_v44, %v6270_v24  ;;  %v7456_v27 = vadd.f32 %v7455_v42, %v7454_v20  ;;  %v7583_v24 = vadd.f32 %v14706_v39, %v14699_v7  ;;  %v14859_v42 = vpop.f32.mrf.mxu1 }
 0x88f   :  { %v7457_v38 = vpop.f32.mrf.mxu0 }
 0x890   :  { %8597 = vtanh.f32 %v6431_v21  ;;  %v6275_v32 = vadd.f32 %v7456_v27, %v14739_v0 }
 0x891   :  { %v8592_v13 = vpop.eup %8591  ;;  %v7458_v62 = vpop.f32.mrf.mxu0 }
 0x892   :  { %6788 = vst [vmem:[%s14994_s11 + $0x110] sm:$0xff] %v8592_v13  ;;  %v6436_v59 = vadd.f32 %v7568_v15, %v6275_v32  ;;  %v7459_v5 = vadd.f32 %v7458_v62, %v7457_v38  ;;  %v7586_v15 = vadd.f32 %v14720_v8, %v14713_v19  ;;  %v14867_v13 = vpop.f32.mrf.mxu1 }
 0x893   :  { %v7460_v6 = vpop.f32.mrf.mxu0 }
 0x894   :  { %8599 = vtanh.f32 %v6436_v59  ;;  %v6278_v52 = vadd.f32 %v7459_v5, %v14739_v0 }
 0x895   :  { %v8594_v28 = vpop.eup %8593  ;;  %v7461_v40 = vpop.f32.mrf.mxu0 }
 0x896   :  { %6795 = vst [vmem:[%s14994_s11 + $0x148] sm:$0xff] %v8594_v28  ;;  %v6439_v17 = vadd.f32 %v7571_v30, %v6278_v52  ;;  %v7462_v49 = vadd.f32 %v7461_v40, %v7460_v6  ;;  %v7589_v6 = vadd.f32 %v14733_v33, %v14728_v58  ;;  %v14875_v52 = vpop.f32.mrf.mxu1 }
 0x897   :  { %v7463_v18 = vpop.f32.mrf.mxu0 }
 0x898   :  { %8601 = vtanh.f32 %v6439_v17  ;;  %v6283_v41 = vadd.f32 %v7462_v49, %v14739_v0  ;;  %v7592_v49 = vadd.f32 %v14752_v11, %v14741_v56 }
 0x899   :  { %v8596_v35 = vpop.eup %8595  ;;  %v7464_v14 = vpop.f32.mrf.mxu0 }
 0x89a   :  { %6802 = vst [vmem:[%s14994_s11 + $0x180] sm:$0xff] %v8596_v35  ;;  %v6444_v54 = vadd.f32 %v7574_v51, %v6283_v41  ;;  %v7465_v55 = vadd.f32 %v7464_v14, %v7463_v18  ;;  %v14883_v51 = vpop.f32.mrf.mxu1 }
 0x89b   :  { %v7466_v3 = vpop.f32.mrf.mxu0 }
 0x89c   :  { %8603 = vtanh.f32 %v6444_v54  ;;  %v6286_v36 = vadd.f32 %v7465_v55, %v14739_v0  ;;  %v7595_v54 = vadd.f32 %v14774_v61, %v14763_v22 }
 0x89d   :  { %v8598_v63 = vpop.eup %8597  ;;  %v7467_v23 = vpop.f32.mrf.mxu0 }
 0x89e   :  { %6809 = vst [vmem:[%s14994_s11 + $0x1b8] sm:$0xff] %v8598_v63  ;;  %v6447_v47 = vadd.f32 %v7577_v16, %v6286_v36  ;;  %v7468_v60 = vadd.f32 %v7467_v23, %v7466_v3  ;;  %v14891_v3 = vpop.f32.mrf.mxu1  ;;  %v7598_v23 = vadd.f32 %v14787_v31, %v14782_v37 }
 0x89f   :  { %v7469_v53 = vpop.f32.mrf.mxu0 }
 0x8a0   :  { %8605 = vtanh.f32 %v6447_v47  ;;  %v6291_v9 = vadd.f32 %v7468_v60, %v14739_v0  ;;  %v14899_v60 = vpop.f32.mrf.mxu1 }
 0x8a1   :  { %v8600_v12 = vpop.eup %8599  ;;  %v7470_v2 = vpop.f32.mrf.mxu0 }
 0x8a2   :  { %6816 = vst [vmem:[%s14994_s11 + $0x1f0] sm:$0xff] %v8600_v12  ;;  %v6452_v45 = vadd.f32 %v7580_v1, %v6291_v9  ;;  %v7471_v20 = vadd.f32 %v7470_v2, %v7469_v53  ;;  %v7601_v12 = vadd.f32 %v14803_v10, %v14795_v57 }
 0x8a3   :  { %v7472_v44 = vpop.f32.mrf.mxu0 }
 0x8a4   :  { %8607 = vtanh.f32 %v6452_v45  ;;  %v6294_v50 = vadd.f32 %v7471_v20, %v14739_v0  ;;  %v14907_v45 = vpop.f32.mrf.mxu1 }
 0x8a5   :  { %v8602_v4 = vpop.eup %8601  ;;  %v7473_v43 = vpop.f32.mrf.mxu0 }
 0x8a6   :  { %6823 = vst [vmem:[%s14994_s11 + $0x228] sm:$0xff] %v8602_v4  ;;  %v6455_v21 = vadd.f32 %v7583_v24, %v6294_v50  ;;  %v7474_v27 = vadd.f32 %v7473_v43, %v7472_v44  ;;  %v7604_v50 = vadd.f32 %v14819_v34, %v14811_v46  ;;  %v7621_v43 = vpop.f32.mrf.mxu1 }
 0x8a7   :  { %v7475_v38 = vpop.f32.mrf.mxu0 }
 0x8a8   :  { %8609 = vtanh.f32 %v6455_v21  ;;  %v6299_v32 = vadd.f32 %v7474_v27, %v14739_v0  ;;  %v7623_v34 = vpop.f32.mrf.mxu1 }
 0x8a9   :  { %v8604_v7 = vpop.eup %8603  ;;  %v7476_v39 = vpop.f32.mrf.mxu0 }
 0x8aa   :  { %6830 = vst [vmem:[%s14994_s11 + $0x260] sm:$0xff] %v8604_v7  ;;  %v6460_v62 = vadd.f32 %v7586_v15, %v6299_v32  ;;  %v7477_v59 = vadd.f32 %v7476_v39, %v7475_v38  ;;  %v7607_v15 = vadd.f32 %v14835_v48, %v14827_v25  ;;  %v7624_v48 = vpop.f32.mrf.mxu1 }
 0x8ab   :  { %v7478_v5 = vpop.f32.mrf.mxu0 }
 0x8ac   :  { %8611 = vtanh.f32 %v6460_v62  ;;  %v6302_v30 = vadd.f32 %v7477_v59, %v14739_v0 }
 0x8ad   :  { %v8606_v19 = vpop.eup %8605  ;;  %v7479_v8 = vpop.f32.mrf.mxu0 }
 0x8ae   :  { %6837 = vst [vmem:[%s14994_s11 + $0x298] sm:$0xff] %v8606_v19  ;;  %v6463_v28 = vadd.f32 %v7589_v6, %v6302_v30  ;;  %v7480_v40 = vadd.f32 %v7479_v8, %v7478_v5  ;;  %v7610_v5 = vadd.f32 %v14851_v29, %v14843_v26  ;;  %v7626_v29 = vpop.f32.mrf.mxu1 }
 0x8af   :  { %v7481_v17 = vpop.f32.mrf.mxu0 }
 0x8b0   :  { %8613 = vtanh.f32 %v6463_v28  ;;  %v6307_v18 = vadd.f32 %v7480_v40, %v14739_v0  ;;  %v7613_v40 = vadd.f32 %v14867_v13, %v14859_v42  ;;  %v7627_v13 = vpop.f32.mrf.mxu1 }
 0x8b1   :  { %v8608_v58 = vpop.eup %8607  ;;  %v7482_v33 = vpop.f32.mrf.mxu0 }
 0x8b2   :  { %6844 = vst [vmem:[%s14994_s11 + $0x2d0] sm:$0xff] %v8608_v58  ;;  %v6468_v41 = vadd.f32 %v7592_v49, %v6307_v18  ;;  %v7483_v35 = vadd.f32 %v7482_v33, %v7481_v17 }
 0x8b3   :  { %v7484_v14 = vpop.f32.mrf.mxu0 }
 0x8b4   :  { %8615 = vtanh.f32 %v6468_v41  ;;  %v6310_v55 = vadd.f32 %v7483_v35, %v14739_v0  ;;  %v7616_v41 = vadd.f32 %v14883_v51, %v14875_v52  ;;  %v7629_v51 = vpop.f32.mrf.mxu1 }
 0x8b5   :  { %v8610_v56 = vpop.eup %8609  ;;  %v7485_v11 = vpop.f32.mrf.mxu0 }
 0x8b6   :  { %6851 = vst [vmem:[%s14994_s11 + $0x308] sm:$0xff] %v8610_v56  ;;  %v6471_v16 = vadd.f32 %v7595_v54, %v6310_v55  ;;  %v7486_v36 = vadd.f32 %v7485_v11, %v7484_v14  ;;  %v7619_v11 = vadd.f32 %v14899_v60, %v14891_v3  ;;  %v7630_v3 = vpop.f32.mrf.mxu1 }
 0x8b7   :  { %v7487_v63 = vpop.f32.mrf.mxu0 }
 0x8b8   :  { %8617 = vtanh.f32 %v6471_v16  ;;  %v6315_v47 = vadd.f32 %v7486_v36, %v14739_v0 }
 0x8b9   :  { %v8612_v22 = vpop.eup %8611  ;;  %v7488_v61 = vpop.f32.mrf.mxu0 }
 0x8ba   :  { %6858 = vst [vmem:[%s14994_s11 + $0x340] sm:$0xff] %v8612_v22  ;;  %v6476_v53 = vadd.f32 %v7598_v23, %v6315_v47  ;;  %v7489_v1 = vadd.f32 %v7488_v61, %v7487_v63  ;;  %v7622_v22 = vadd.f32 %v7621_v43, %v14907_v45 }
 0x8bb   :  { %v7490_v9 = vpop.f32.mrf.mxu0 }
 0x8bc   :  { %8619 = vtanh.f32 %v6476_v53  ;;  %v6318_v2 = vadd.f32 %v7489_v1, %v14739_v0 }
 0x8bd   :  { %v8614_v37 = vpop.eup %8613  ;;  %v7491_v31 = vpop.f32.mrf.mxu0 }
 0x8be   :  { %6865 = vst [vmem:[%s14994_s11 + $0x378] sm:$0xff] %v8614_v37  ;;  %v6479_v20 = vadd.f32 %v7601_v12, %v6318_v2  ;;  %v7492_v44 = vadd.f32 %v7491_v31, %v7490_v9  ;;  %v7625_v2 = vadd.f32 %v7624_v48, %v7623_v34 }
 0x8bf   :  { %v7493_v24 = vpop.f32.mrf.mxu0 }
 0x8c0   :  { %8621 = vtanh.f32 %v6479_v20  ;;  %v6323_v4 = vadd.f32 %v7492_v44, %v14739_v0  ;;  %v7632_v44 = vpop.f32.mrf.mxu1 }
 0x8c1   :  { %v8616_v57 = vpop.eup %8615  ;;  %v7494_v10 = vpop.f32.mrf.mxu0 }
 0x8c2   :  { %6872 = vst [vmem:[%s14994_s11 + $0x3b0] sm:$0xff] %v8616_v57  ;;  %v6484_v21 = vadd.f32 %v7604_v50, %v6323_v4  ;;  %v7495_v27 = vadd.f32 %v7494_v10, %v7493_v24  ;;  %v7628_v4 = vadd.f32 %v7627_v13, %v7626_v29 }
 0x8c3   :  { %v7496_v38 = vpop.f32.mrf.mxu0 }
 0x8c4   :  { %8623 = vtanh.f32 %v6484_v21  ;;  %v6326_v32 = vadd.f32 %v7495_v27, %v14739_v0  ;;  %v7633_v21 = vpop.f32.mrf.mxu1 }
 0x8c5   :  { %v8618_v7 = vpop.eup %8617  ;;  %v7497_v46 = vpop.f32.mrf.mxu0 }
 0x8c6   :  { %6879 = vst [vmem:[%s14994_s11 + $0x3e8] sm:$0xff] %v8618_v7  ;;  %v6487_v39 = vadd.f32 %v7607_v15, %v6326_v32  ;;  %v7498_v62 = vadd.f32 %v7497_v46, %v7496_v38  ;;  %v7631_v32 = vadd.f32 %v7630_v3, %v7629_v51  ;;  %v7635_v34 = vpop.f32.mrf.mxu1 }
 0x8c7   :  { %v7499_v59 = vpop.f32.mrf.mxu0 }
 0x8c8   :  { %8625 = vtanh.f32 %v6487_v39  ;;  %v6331_v6 = vadd.f32 %v7498_v62, %v14739_v0  ;;  %v7636_v48 = vpop.f32.mrf.mxu1 }
 0x8c9   :  { %v8620_v30 = vpop.eup %8619  ;;  %v7500_v25 = vpop.f32.mrf.mxu0 }
 0x8ca   :  { %6886 = vst [vmem:[%s14994_s11 + $0x420] sm:$0xff] %v8620_v30  ;;  %v6492_v19 = vadd.f32 %v7610_v5, %v6331_v6  ;;  %v7501_v8 = vadd.f32 %v7500_v25, %v7499_v59  ;;  %v7634_v6 = vadd.f32 %v7633_v21, %v7632_v44 }
 0x8cb   :  { %v7502_v28 = vpop.f32.mrf.mxu0 }
 0x8cc   :  { %8627 = vtanh.f32 %v6492_v19  ;;  %v6334_v17 = vadd.f32 %v7501_v8, %v14739_v0 }
 0x8cd   :  { %v8622_v49 = vpop.eup %8621  ;;  %v7503_v26 = vpop.f32.mrf.mxu0 }
 0x8ce   :  { %6893 = vst [vmem:[%s14994_s11 + $0x458] sm:$0xff] %v8622_v49  ;;  %v6495_v18 = vadd.f32 %v7613_v40, %v6334_v17  ;;  %v7504_v58 = vadd.f32 %v7503_v26, %v7502_v28  ;;  %v7637_v40 = vadd.f32 %v7636_v48, %v7635_v34 }
 0x8cf   :  { %v7505_v33 = vpop.f32.mrf.mxu0 }
 0x8d0   :  { %8629 = vtanh.f32 %v6495_v18  ;;  %v6339_v35 = vadd.f32 %v7504_v58, %v14739_v0 }
 0x8d1   :  { %v8624_v14 = vpop.eup %8623  ;;  %v7506_v42 = vpop.f32.mrf.mxu0 }
 0x8d2   :  { %6900 = vst [vmem:[%s14994_s11 + $0x490] sm:$0xff] %v8624_v14  ;;  %v6500_v54 = vadd.f32 %v7616_v41, %v6339_v35  ;;  %v7507_v55 = vadd.f32 %v7506_v42, %v7505_v33 }
 0x8d3   :  { %v7508_v56 = vpop.f32.mrf.mxu0 }
 0x8d4   :  { %8631 = vtanh.f32 %v6500_v54  ;;  %v6342_v16 = vadd.f32 %v7507_v55, %v14739_v0 }
 0x8d5   :  { %v8626_v36 = vpop.eup %8625  ;;  %v7509_v52 = vpop.f32.mrf.mxu0 }
 0x8d6   :  { %6907 = vst [vmem:[%s14994_s11 + $0x4c8] sm:$0xff] %v8626_v36  ;;  %v6503_v63 = vadd.f32 %v7619_v11, %v6342_v16  ;;  %v7510_v23 = vadd.f32 %v7509_v52, %v7508_v56 }
 0x8d7   :  { %v7511_v47 = vpop.f32.mrf.mxu0 }
 0x8d8   :  { %8633 = vtanh.f32 %v6503_v63  ;;  %v6347_v61 = vadd.f32 %v7510_v23, %v14739_v0 }
 0x8d9   :  { %v8628_v53 = vpop.eup %8627  ;;  %v7512_v1 = vpop.f32.mrf.mxu0 }
 0x8da   :  { %6914 = vst [vmem:[%s14994_s11 + $0x500] sm:$0xff] %v8628_v53  ;;  %v6508_v60 = vadd.f32 %v7622_v22, %v6347_v61  ;;  %v7513_v9 = vadd.f32 %v7512_v1, %v7511_v47 }
 0x8db   :  { %v7514_v12 = vpop.f32.mrf.mxu0 }
 0x8dc   :  { %8635 = vtanh.f32 %v6508_v60  ;;  %v6350_v37 = vadd.f32 %v7513_v9, %v14739_v0 }
 0x8dd   :  { %v8630_v31 = vpop.eup %8629  ;;  %v7515_v20 = vpop.f32.mrf.mxu0 }
 0x8de   :  { %6921 = vst [vmem:[%s14994_s11 + $0x538] sm:$0xff] %v8630_v31  ;;  %v6511_v45 = vadd.f32 %v7625_v2, %v6350_v37  ;;  %v7516_v24 = vadd.f32 %v7515_v20, %v7514_v12 }
 0x8df   :  { %v7517_v50 = vpop.f32.mrf.mxu0 }
 0x8e0   :  { %8637 = vtanh.f32 %v6511_v45  ;;  %v6355_v57 = vadd.f32 %v7516_v24, %v14739_v0 }
 0x8e1   :  { %v8632_v10 = vpop.eup %8631  ;;  %v7518_v43 = vpop.f32.mrf.mxu0 }
 0x8e2   :  { %6928 = vst [vmem:[%s14994_s11 + $0x570] sm:$0xff] %v8632_v10  ;;  %v6516_v27 = vadd.f32 %v7628_v4, %v6355_v57  ;;  %v7519_v38 = vadd.f32 %v7518_v43, %v7517_v50 }
 0x8e3   :  { %v7520_v15 = vpop.f32.mrf.mxu0 }
 0x8e4   :  { %8639 = vtanh.f32 %v6516_v27  ;;  %v6358_v7 = vadd.f32 %v7519_v38, %v14739_v0 }
 0x8e5   :  { %v8634_v46 = vpop.eup %8633  ;;  %v7521_v39 = vpop.f32.mrf.mxu0 }
 0x8e6   :  { %6935 = vst [vmem:[%s14994_s11 + $0x5a8] sm:$0xff] %v8634_v46  ;;  %v6519_v62 = vadd.f32 %v7631_v32, %v6358_v7  ;;  %v7522_v59 = vadd.f32 %v7521_v39, %v7520_v15 }
 0x8e7   :  { %v7523_v5 = vpop.f32.mrf.mxu0 }
 0x8e8   :  { %8641 = vtanh.f32 %v6519_v62  ;;  %v6363_v30 = vadd.f32 %v7522_v59, %v14739_v0 }
 0x8e9   :  { %v8636_v25 = vpop.eup %8635  ;;  %v7524_v19 = vpop.f32.mrf.mxu0 }
 0x8ea   :  { %6942 = vst [vmem:[%s14994_s11 + $0x5e0] sm:$0xff] %v8636_v25  ;;  %v6524_v8 = vadd.f32 %v7634_v6, %v6363_v30  ;;  %v7525_v28 = vadd.f32 %v7524_v19, %v7523_v5 }
 0x8ec   :  { %8643 = vtanh.f32 %v6524_v8  ;;  %v6366_v17 = vadd.f32 %v7525_v28, %v14739_v0 }
 0x8ed   :  { %v8638_v49 = vpop.eup %8637 }
 0x8ee   :  { %6949 = vst [vmem:[%s14994_s11 + $0x618] sm:$0xff] %v8638_v49  ;;  %v6527_v26 = vadd.f32 %v7637_v40, %v6366_v17 }
 0x8f0   :  { %8645 = vtanh.f32 %v6527_v26 }
 0x8f1   :  { %v8640_v29 = vpop.eup %8639 }
 0x8f2   :  { %6956 = vst [vmem:[%s14994_s11 + $0x650] sm:$0xff] %v8640_v29 }
 0x8f5   :  { %v8642_v18 = vpop.eup %8641 }
 0x8f6   :  { %6963 = vst [vmem:[%s14994_s11 + $0x688] sm:$0xff] %v8642_v18 }
 0x8f9   :  { %v8644_v58 = vpop.eup %8643 }
 0x8fa   :  { %6970 = vst [vmem:[%s14994_s11 + $0x6c0] sm:$0xff] %v8644_v58 }
 0x8fd   :  { %v8646_v0 = vpop.eup %8645 }
 0x8fe   :  { %6977 = vst [vmem:[%s14994_s11 + $0x6f8] sm:$0xff] %v8646_v0 }
 0x8ff   :  { %6982 = vsyncmov [#allocation5] }
 0x902   :  { %s6983_s16 = vpop.sfrf %6982 }
 0x903   :  { %p7356_p10 = scmp.ne.s32.totalorder %s6983_s16, 0 }
 0x905   :  { %6987 = shalt.err (%p7356_p10)  }
 0x906   :  { %6989 = vsyncmov [#allocation5 + $0x1] }
 0x909   :  { %s6990_s17 = vpop.sfrf %6989 }
 0x90a   :  { %p7357_p11 = scmp.ne.s32.totalorder %s6990_s17, 0 }
 0x90c   :  { %6994 = shalt.err (%p7357_p11)  }

</bundles_post_ra>
